<compile_context>
chip_gen: v6e
topology: v6e:2x2x1
jax: 0.10.0
libtpu: 0.0.40
codegen_flags: <defaults>
</compile_context>

<pallas_src>
import functools

import jax
import jax.numpy as jnp
from jax.experimental import pallas as pl
from jax.experimental.pallas import tpu as pltpu


def _round_up(x, m):
    return ((x + m - 1) // m) * m


# ----------------------------------------------------------------------------
# Fused Pallas kernel: num_layers x LSTM + Linear(last timestep)
# ----------------------------------------------------------------------------
def make_net_kernel(num_layers, hidden_pad):
    Hp = hidden_pad

    def kernel(*refs):
        # refs: x, (wih_l, whh_l, b_l) * L, fc_w, fc_b, out, xp_scr, hseq_scr
        x_ref = refs[0]                       # (T, Bt, Din0)  time-major
        layer_refs = refs[1:1 + 3 * num_layers]
        fcw_ref = refs[1 + 3 * num_layers]    # (Hp, Op)
        fcb_ref = refs[2 + 3 * num_layers]    # (1, Op)
        out_ref = refs[3 + 3 * num_layers]    # (Bt, Op)
        xp_scr = refs[4 + 3 * num_layers]     # (T, Bt, 4Hp)
        hseq_scr = refs[5 + 3 * num_layers]   # (T, Bt, Hp)

        T = x_ref.shape[0]
        Bt = x_ref.shape[1]

        h = None
        for layer in range(num_layers):
            wih_ref = layer_refs[3 * layer]       # (Din_l, 4Hp)
            whh_ref = layer_refs[3 * layer + 1]   # (Hp, 4Hp)
            b_ref = layer_refs[3 * layer + 2]     # (1, 4Hp)
            last_layer = layer == num_layers - 1
            in_ref = x_ref if layer == 0 else hseq_scr

            # --- Hoisted, gate-packed input projection (+ combined bias) for
            # all timesteps, written to the time-major scratch.  Each step is a
            # contiguous (Bt, Din) slab -> (Bt, 4Hp) matmul; no reshape.
            def project(t):
                xp_scr[t] = (
                    jnp.dot(in_ref[t], wih_ref[...],
                            preferred_element_type=jnp.float32)
                    + b_ref[...])

            if T <= 16:
                for t in range(T):
                    project(t)
            else:
                pl.loop(0, T)(project)

            # --- Serial recurrence: only h @ W_hh is on the critical path.
            h = jnp.zeros((Bt, Hp), jnp.float32)
            c = jnp.zeros((Bt, Hp), jnp.float32)

            def step(t, h, c):
                gates = xp_scr[t] + jnp.dot(
                    h, whh_ref[...], preferred_element_type=jnp.float32)
                # Lane-aligned gate slices (Hp = 128 multiple), order (i,f,g,o).
                i_g = jax.nn.sigmoid(gates[:, 0 * Hp:1 * Hp])
                f_g = jax.nn.sigmoid(gates[:, 1 * Hp:2 * Hp])
                g_g = jnp.tanh(gates[:, 2 * Hp:3 * Hp])
                o_g = jax.nn.sigmoid(gates[:, 3 * Hp:4 * Hp])
                c = f_g * c + i_g * g_g
                h = o_g * jnp.tanh(c)
                if not last_layer:
                    hseq_scr[t] = h           # next layer's input, stays in VMEM
                return h, c

            if T <= 16:
                for t in range(T):
                    h, c = step(t, h, c)
            else:
                h, c = jax.lax.fori_loop(
                    0, T, lambda t, hc: step(t, *hc), (h, c), unroll=2)

        # Final Linear on the last timestep of the last layer (lane-dense Op).
        out_ref[...] = (
            jnp.dot(h, fcw_ref[...], preferred_element_type=jnp.float32)
            + fcb_ref[...])

    return kernel


# ----------------------------------------------------------------------------
# One-time (outside jit) repack/pad of PyTorch-layout weights into kernel layout
# ----------------------------------------------------------------------------
def prepare_params(params, num_layers):
    H = params["lstm_l0"]["w_hh"].shape[1]
    O = params["fc"]["w"].shape[0]
    Hp = _round_up(H, 128)        # lane-aligned hidden (gate blocks of 128)
    Op = _round_up(O, 128)        # lane-dense output slab

    packed = {}
    for layer in range(num_layers):
        p = params[f"lstm_l{layer}"]
        din = p["w_ih"].shape[1]
        din_p = din if layer == 0 else Hp     # layers >0 consume padded h
        wih = jnp.zeros((din_p, 4 * Hp), jnp.float32)
        whh = jnp.zeros((Hp, 4 * Hp), jnp.float32)
        bias = jnp.zeros((1, 4 * Hp), jnp.float32)
        bsum = p["b_ih"] + p["b_hh"]
        for g in range(4):   # torch gate order (i, f, g, o)
            wih = wih.at[:din, g * Hp:g * Hp + H].set(
                p["w_ih"][g * H:(g + 1) * H, :].T)
            whh = whh.at[:H, g * Hp:g * Hp + H].set(
                p["w_hh"][g * H:(g + 1) * H, :].T)
            bias = bias.at[0, g * Hp:g * Hp + H].set(bsum[g * H:(g + 1) * H])
        packed[f"wih_{layer}"] = wih
        packed[f"whh_{layer}"] = whh
        packed[f"b_{layer}"] = bias

    fc_w = jnp.zeros((Hp, Op), jnp.float32).at[:H, :O].set(params["fc"]["w"].T)
    fc_b = jnp.zeros((1, Op), jnp.float32).at[0, :O].set(params["fc"]["b"])
    packed["fc_w"] = fc_w
    packed["fc_b"] = fc_b
    return packed


def _batch_tile(B):
    """Batch tile heuristic.

    v5e/v6e: grid is a purely serial loop -> one big tile (grid of 1) is best.
    v7x: 2 TensorCores -> once the batch is big enough, give the 'parallel'
    batch axis exactly >=2 sublane-aligned steps so both TCs get a shard.
    """
    if B % 8 != 0 or B <= 8:
        return B                                 # toy / ragged batch: one tile
    if B <= 256:
        half = B // 2
        if B >= 32 and half % 8 == 0:
            return half                          # 2 parallel steps (v7x TCs)
        return B
    for bt in range(256, 7, -8):                 # large batch: biggest <=256
        if B % bt == 0:
            return bt
    return 8


# ----------------------------------------------------------------------------
# Forward wrapper
# ----------------------------------------------------------------------------
@functools.partial(jax.jit, static_argnames=("num_layers", "output_dim"))
def net_forward(x, packed, num_layers, output_dim):
    """Equivalent of Net.forward: stacked LSTM -> last timestep -> Linear."""
    B, T, Din = x.shape
    Hp = packed["whh_0"].shape[0]
    Op = packed["fc_w"].shape[1]

    Bt = _batch_tile(B)
    grid = (B // Bt,)

    # Time-major input so per-timestep access is a contiguous leading-axis slab.
    x_tm = jnp.transpose(x, (1, 0, 2))           # (T, B, Din)

    kernel = make_net_kernel(num_layers, Hp)

    in_specs = [pl.BlockSpec((T, Bt, Din), lambda b: (0, b, 0))]
    args = [x_tm]
    for layer in range(num_layers):
        for name in (f"wih_{layer}", f"whh_{layer}", f"b_{layer}"):
            w = packed[name]
            in_specs.append(pl.BlockSpec(w.shape, lambda b: (0, 0)))
            args.append(w)
    for name in ("fc_w", "fc_b"):
        w = packed[name]
        in_specs.append(pl.BlockSpec(w.shape, lambda b: (0, 0)))
        args.append(w)

    out_padded = pl.pallas_call(
        kernel,
        out_shape=jax.ShapeDtypeStruct((B, Op), jnp.float32),
        grid=grid,
        in_specs=in_specs,
        out_specs=pl.BlockSpec((Bt, Op), lambda b: (b, 0)),
        scratch_shapes=[
            pltpu.VMEM((T, Bt, 4 * Hp), jnp.float32),   # hoisted projection
            pltpu.VMEM((T, Bt, Hp), jnp.float32),       # inter-layer sequence
        ],
        compiler_params=pltpu.CompilerParams(
            dimension_semantics=("parallel",)),
    )(*args)

    return out_padded[:, :output_dim]


# ----------------------------------------------------------------------------
# Deterministic parameter init (PyTorch-style uniform(-1/sqrt(H), 1/sqrt(H)))
# ----------------------------------------------------------------------------
def init_params(key, input_dim, hidden_dim, output_dim, num_layers):
    params = {}
    bound = 1.0 / jnp.sqrt(jnp.float32(hidden_dim))
    for layer in range(num_layers):
        din = input_dim if layer == 0 else hidden_dim
        key, k1, k2, k3, k4 = jax.random.split(key, 5)
        params[f"lstm_l{layer}"] = {
            "w_ih": jax.random.uniform(k1, (4 * hidden_dim, din), jnp.float32, -bound, bound),
            "w_hh": jax.random.uniform(k2, (4 * hidden_dim, hidden_dim), jnp.float32, -bound, bound),
            "b_ih": jax.random.uniform(k3, (4 * hidden_dim,), jnp.float32, -bound, bound),
            "b_hh": jax.random.uniform(k4, (4 * hidden_dim,), jnp.float32, -bound, bound),
        }
    key, k1, k2 = jax.random.split(key, 3)
    params["fc"] = {
        "w": jax.random.uniform(k1, (output_dim, hidden_dim), jnp.float32, -bound, bound),
        "b": jax.random.uniform(k2, (output_dim,), jnp.float32, -bound, bound),
    }
    return params


# ----------------------------------------------------------------------------
# Pure-JAX reference (same math, no Pallas, no padding) for a sanity check
# ----------------------------------------------------------------------------
def reference_forward(x, params, num_layers):
    h_seq = x
    B = x.shape[0]
    for layer in range(num_layers):
        p = params[f"lstm_l{layer}"]
        H = p["w_hh"].shape[1]
        h = jnp.zeros((B, H), jnp.float32)
        c = jnp.zeros((B, H), jnp.float32)
        outs = []
        for t in range(h_seq.shape[1]):
            x_t = h_seq[:, t, :]
            gates = x_t @ p["w_ih"].T + h @ p["w_hh"].T + p["b_ih"] + p["b_hh"]
            i_g = jax.nn.sigmoid(gates[:, 0 * H:1 * H])
            f_g = jax.nn.sigmoid(gates[:, 1 * H:2 * H])
            g_g = jnp.tanh(gates[:, 2 * H:3 * H])
            o_g = jax.nn.sigmoid(gates[:, 3 * H:4 * H])
            c = f_g * c + i_g * g_g
            h = o_g * jnp.tanh(c)
            outs.append(h)
        h_seq = jnp.stack(outs, axis=1)
    last = h_seq[:, -1, :]
    return last @ params["fc"]["w"].T + params["fc"]["b"]


# ----------------------------------------------------------------------------
if __name__ == "__main__":
    # Small shapes consistent with the module: batch=2, seq=8, input_dim=4,
    # hidden_dim=10, output_dim=1, layers=2.
    B, T, INPUT_DIM, HIDDEN_DIM, OUTPUT_DIM, LAYERS = 2, 8, 4, 10, 1, 2

    key = jax.random.PRNGKey(0)
    key, xkey = jax.random.split(key)
    x = jax.random.normal(xkey, (B, T, INPUT_DIM), jnp.float32)
    params = init_params(key, INPUT_DIM, HIDDEN_DIM, OUTPUT_DIM, LAYERS)
    packed = prepare_params(params, LAYERS)   # one-time repack/pad (outside jit)

    out = net_forward(x, packed, num_layers=LAYERS, output_dim=OUTPUT_DIM)
    out = jax.block_until_ready(out)
    assert out.shape == (B, OUTPUT_DIM), out.shape

    ref = reference_forward(x, params, LAYERS)
    assert jnp.allclose(out, ref, atol=1e-3, rtol=1e-3), (out, ref)

    print("KERNEL_OK")
</pallas_src>

<mosaic_0001>
module attributes {stable_mosaic.version = 11 : i64} {
  func.func @kernel(%arg0: i32, %arg1: memref<8x2x4xf32, #tpu.memory_space<vmem>>, %arg2: memref<4x512xf32, #tpu.memory_space<vmem>>, %arg3: memref<128x512xf32, #tpu.memory_space<vmem>>, %arg4: memref<1x512xf32, #tpu.memory_space<vmem>>, %arg5: memref<128x512xf32, #tpu.memory_space<vmem>>, %arg6: memref<128x512xf32, #tpu.memory_space<vmem>>, %arg7: memref<1x512xf32, #tpu.memory_space<vmem>>, %arg8: memref<128x128xf32, #tpu.memory_space<vmem>>, %arg9: memref<1x128xf32, #tpu.memory_space<vmem>>, %arg10: memref<2x128xf32, #tpu.memory_space<vmem>>, %arg11: memref<8x2x512xf32, #tpu.memory_space<vmem>>, %arg12: memref<8x2x128xf32, #tpu.memory_space<vmem>>) attributes {dimension_semantics = [#tpu.dimension_semantics<parallel>], iteration_bounds = array<i64: 1>, scalar_prefetch = 0 : i64, scratch_operands = 2 : i64, tpu.core_type = #tpu.core_type<tc>, window_params = [{transform_indices = @transform_0, window_bounds = array<i64: 8, 2, 4>}, {pipeline_mode = #tpu.pipeline_mode<synchronous>, transform_indices = @transform_1, window_bounds = array<i64: 4, 512>}, {pipeline_mode = #tpu.pipeline_mode<synchronous>, transform_indices = @transform_2, window_bounds = array<i64: 128, 512>}, {pipeline_mode = #tpu.pipeline_mode<synchronous>, transform_indices = @transform_3, window_bounds = array<i64: 1, 512>}, {pipeline_mode = #tpu.pipeline_mode<synchronous>, transform_indices = @transform_4, window_bounds = array<i64: 128, 512>}, {pipeline_mode = #tpu.pipeline_mode<synchronous>, transform_indices = @transform_5, window_bounds = array<i64: 128, 512>}, {pipeline_mode = #tpu.pipeline_mode<synchronous>, transform_indices = @transform_6, window_bounds = array<i64: 1, 512>}, {pipeline_mode = #tpu.pipeline_mode<synchronous>, transform_indices = @transform_7, window_bounds = array<i64: 128, 128>}, {pipeline_mode = #tpu.pipeline_mode<synchronous>, transform_indices = @transform_8, window_bounds = array<i64: 1, 128>}, {transform_indices = @transform_9, window_bounds = array<i64: 2, 128>}]} {
    %c0 = arith.constant 0 : index
    %c0_0 = arith.constant 0 : index
    %c0_1 = arith.constant 0 : index
    %0 = vector.load %arg1[%c0, %c0_0, %c0_1] : memref<8x2x4xf32, #tpu.memory_space<vmem>>, vector<1x2x4xf32>
    %1 = vector.shape_cast %0 : vector<1x2x4xf32> to vector<2x4xf32>
    %c0_2 = arith.constant 0 : index
    %c0_3 = arith.constant 0 : index
    %2 = vector.load %arg2[%c0_2, %c0_3] : memref<4x512xf32, #tpu.memory_space<vmem>>, vector<4x512xf32>
    %cst = arith.constant dense<0.000000e+00> : vector<2x512xf32>
    %3 = tpu.matmul %1, %2, %cst {dimension_numbers = #tpu.dot_dimension_numbers<[1], [0], [0], [1], [0, 0, 1, 1], [], []>} : vector<2x4xf32>, vector<4x512xf32>, vector<2x512xf32> -> vector<2x512xf32>
    %c0_4 = arith.constant 0 : index
    %c0_5 = arith.constant 0 : index
    %4 = vector.load %arg4[%c0_4, %c0_5] : memref<1x512xf32, #tpu.memory_space<vmem>>, vector<1x512xf32>
    %5 = vector.broadcast %4 : vector<1x512xf32> to vector<2x512xf32>
    %6 = arith.addf %3, %5 : vector<2x512xf32>
    %c0_6 = arith.constant 0 : index
    %c0_7 = arith.constant 0 : index
    %c0_8 = arith.constant 0 : index
    %7 = vector.load %arg11[%c0_6, %c0_7, %c0_8] : memref<8x2x512xf32, #tpu.memory_space<vmem>>, vector<1x2x512xf32>
    %8 = vector.shape_cast %7 : vector<1x2x512xf32> to vector<2x512xf32>
    %9 = vector.shape_cast %6 : vector<2x512xf32> to vector<1x2x512xf32>
    tpu.vector_store %arg11[%c0_6, %c0_7, %c0_8], %9 {strides = array<i32>} : memref<8x2x512xf32, #tpu.memory_space<vmem>>, vector<1x2x512xf32>,
    %c1 = arith.constant 1 : index
    %c0_9 = arith.constant 0 : index
    %c0_10 = arith.constant 0 : index
    %10 = vector.load %arg1[%c1, %c0_9, %c0_10] : memref<8x2x4xf32, #tpu.memory_space<vmem>>, vector<1x2x4xf32>
    %11 = vector.shape_cast %10 : vector<1x2x4xf32> to vector<2x4xf32>
    %c0_11 = arith.constant 0 : index
    %c0_12 = arith.constant 0 : index
    %12 = vector.load %arg2[%c0_11, %c0_12] : memref<4x512xf32, #tpu.memory_space<vmem>>, vector<4x512xf32>
    %cst_13 = arith.constant dense<0.000000e+00> : vector<2x512xf32>
    %13 = tpu.matmul %11, %12, %cst_13 {dimension_numbers = #tpu.dot_dimension_numbers<[1], [0], [0], [1], [0, 0, 1, 1], [], []>} : vector<2x4xf32>, vector<4x512xf32>, vector<2x512xf32> -> vector<2x512xf32>
    %c0_14 = arith.constant 0 : index
    %c0_15 = arith.constant 0 : index
    %14 = vector.load %arg4[%c0_14, %c0_15] : memref<1x512xf32, #tpu.memory_space<vmem>>, vector<1x512xf32>
    %15 = vector.broadcast %14 : vector<1x512xf32> to vector<2x512xf32>
    %16 = arith.addf %13, %15 : vector<2x512xf32>
    %c1_16 = arith.constant 1 : index
    %c0_17 = arith.constant 0 : index
    %c0_18 = arith.constant 0 : index
    %17 = vector.load %arg11[%c1_16, %c0_17, %c0_18] : memref<8x2x512xf32, #tpu.memory_space<vmem>>, vector<1x2x512xf32>
    %18 = vector.shape_cast %17 : vector<1x2x512xf32> to vector<2x512xf32>
    %19 = vector.shape_cast %16 : vector<2x512xf32> to vector<1x2x512xf32>
    tpu.vector_store %arg11[%c1_16, %c0_17, %c0_18], %19 {strides = array<i32>} : memref<8x2x512xf32, #tpu.memory_space<vmem>>, vector<1x2x512xf32>,
    %c2 = arith.constant 2 : index
    %c0_19 = arith.constant 0 : index
    %c0_20 = arith.constant 0 : index
    %20 = vector.load %arg1[%c2, %c0_19, %c0_20] : memref<8x2x4xf32, #tpu.memory_space<vmem>>, vector<1x2x4xf32>
    %21 = vector.shape_cast %20 : vector<1x2x4xf32> to vector<2x4xf32>
    %c0_21 = arith.constant 0 : index
    %c0_22 = arith.constant 0 : index
    %22 = vector.load %arg2[%c0_21, %c0_22] : memref<4x512xf32, #tpu.memory_space<vmem>>, vector<4x512xf32>
    %cst_23 = arith.constant dense<0.000000e+00> : vector<2x512xf32>
    %23 = tpu.matmul %21, %22, %cst_23 {dimension_numbers = #tpu.dot_dimension_numbers<[1], [0], [0], [1], [0, 0, 1, 1], [], []>} : vector<2x4xf32>, vector<4x512xf32>, vector<2x512xf32> -> vector<2x512xf32>
    %c0_24 = arith.constant 0 : index
    %c0_25 = arith.constant 0 : index
    %24 = vector.load %arg4[%c0_24, %c0_25] : memref<1x512xf32, #tpu.memory_space<vmem>>, vector<1x512xf32>
    %25 = vector.broadcast %24 : vector<1x512xf32> to vector<2x512xf32>
    %26 = arith.addf %23, %25 : vector<2x512xf32>
    %c2_26 = arith.constant 2 : index
    %c0_27 = arith.constant 0 : index
    %c0_28 = arith.constant 0 : index
    %27 = vector.load %arg11[%c2_26, %c0_27, %c0_28] : memref<8x2x512xf32, #tpu.memory_space<vmem>>, vector<1x2x512xf32>
    %28 = vector.shape_cast %27 : vector<1x2x512xf32> to vector<2x512xf32>
    %29 = vector.shape_cast %26 : vector<2x512xf32> to vector<1x2x512xf32>
    tpu.vector_store %arg11[%c2_26, %c0_27, %c0_28], %29 {strides = array<i32>} : memref<8x2x512xf32, #tpu.memory_space<vmem>>, vector<1x2x512xf32>,
    %c3 = arith.constant 3 : index
    %c0_29 = arith.constant 0 : index
    %c0_30 = arith.constant 0 : index
    %30 = vector.load %arg1[%c3, %c0_29, %c0_30] : memref<8x2x4xf32, #tpu.memory_space<vmem>>, vector<1x2x4xf32>
    %31 = vector.shape_cast %30 : vector<1x2x4xf32> to vector<2x4xf32>
    %c0_31 = arith.constant 0 : index
    %c0_32 = arith.constant 0 : index
    %32 = vector.load %arg2[%c0_31, %c0_32] : memref<4x512xf32, #tpu.memory_space<vmem>>, vector<4x512xf32>
    %cst_33 = arith.constant dense<0.000000e+00> : vector<2x512xf32>
    %33 = tpu.matmul %31, %32, %cst_33 {dimension_numbers = #tpu.dot_dimension_numbers<[1], [0], [0], [1], [0, 0, 1, 1], [], []>} : vector<2x4xf32>, vector<4x512xf32>, vector<2x512xf32> -> vector<2x512xf32>
    %c0_34 = arith.constant 0 : index
    %c0_35 = arith.constant 0 : index
    %34 = vector.load %arg4[%c0_34, %c0_35] : memref<1x512xf32, #tpu.memory_space<vmem>>, vector<1x512xf32>
    %35 = vector.broadcast %34 : vector<1x512xf32> to vector<2x512xf32>
    %36 = arith.addf %33, %35 : vector<2x512xf32>
    %c3_36 = arith.constant 3 : index
    %c0_37 = arith.constant 0 : index
    %c0_38 = arith.constant 0 : index
    %37 = vector.load %arg11[%c3_36, %c0_37, %c0_38] : memref<8x2x512xf32, #tpu.memory_space<vmem>>, vector<1x2x512xf32>
    %38 = vector.shape_cast %37 : vector<1x2x512xf32> to vector<2x512xf32>
    %39 = vector.shape_cast %36 : vector<2x512xf32> to vector<1x2x512xf32>
    tpu.vector_store %arg11[%c3_36, %c0_37, %c0_38], %39 {strides = array<i32>} : memref<8x2x512xf32, #tpu.memory_space<vmem>>, vector<1x2x512xf32>,
    %c4 = arith.constant 4 : index
    %c0_39 = arith.constant 0 : index
    %c0_40 = arith.constant 0 : index
    %40 = vector.load %arg1[%c4, %c0_39, %c0_40] : memref<8x2x4xf32, #tpu.memory_space<vmem>>, vector<1x2x4xf32>
    %41 = vector.shape_cast %40 : vector<1x2x4xf32> to vector<2x4xf32>
    %c0_41 = arith.constant 0 : index
    %c0_42 = arith.constant 0 : index
    %42 = vector.load %arg2[%c0_41, %c0_42] : memref<4x512xf32, #tpu.memory_space<vmem>>, vector<4x512xf32>
    %cst_43 = arith.constant dense<0.000000e+00> : vector<2x512xf32>
    %43 = tpu.matmul %41, %42, %cst_43 {dimension_numbers = #tpu.dot_dimension_numbers<[1], [0], [0], [1], [0, 0, 1, 1], [], []>} : vector<2x4xf32>, vector<4x512xf32>, vector<2x512xf32> -> vector<2x512xf32>
    %c0_44 = arith.constant 0 : index
    %c0_45 = arith.constant 0 : index
    %44 = vector.load %arg4[%c0_44, %c0_45] : memref<1x512xf32, #tpu.memory_space<vmem>>, vector<1x512xf32>
    %45 = vector.broadcast %44 : vector<1x512xf32> to vector<2x512xf32>
    %46 = arith.addf %43, %45 : vector<2x512xf32>
    %c4_46 = arith.constant 4 : index
    %c0_47 = arith.constant 0 : index
    %c0_48 = arith.constant 0 : index
    %47 = vector.load %arg11[%c4_46, %c0_47, %c0_48] : memref<8x2x512xf32, #tpu.memory_space<vmem>>, vector<1x2x512xf32>
    %48 = vector.shape_cast %47 : vector<1x2x512xf32> to vector<2x512xf32>
    %49 = vector.shape_cast %46 : vector<2x512xf32> to vector<1x2x512xf32>
    tpu.vector_store %arg11[%c4_46, %c0_47, %c0_48], %49 {strides = array<i32>} : memref<8x2x512xf32, #tpu.memory_space<vmem>>, vector<1x2x512xf32>,
    %c5 = arith.constant 5 : index
    %c0_49 = arith.constant 0 : index
    %c0_50 = arith.constant 0 : index
    %50 = vector.load %arg1[%c5, %c0_49, %c0_50] : memref<8x2x4xf32, #tpu.memory_space<vmem>>, vector<1x2x4xf32>
    %51 = vector.shape_cast %50 : vector<1x2x4xf32> to vector<2x4xf32>
    %c0_51 = arith.constant 0 : index
    %c0_52 = arith.constant 0 : index
    %52 = vector.load %arg2[%c0_51, %c0_52] : memref<4x512xf32, #tpu.memory_space<vmem>>, vector<4x512xf32>
    %cst_53 = arith.constant dense<0.000000e+00> : vector<2x512xf32>
    %53 = tpu.matmul %51, %52, %cst_53 {dimension_numbers = #tpu.dot_dimension_numbers<[1], [0], [0], [1], [0, 0, 1, 1], [], []>} : vector<2x4xf32>, vector<4x512xf32>, vector<2x512xf32> -> vector<2x512xf32>
    %c0_54 = arith.constant 0 : index
    %c0_55 = arith.constant 0 : index
    %54 = vector.load %arg4[%c0_54, %c0_55] : memref<1x512xf32, #tpu.memory_space<vmem>>, vector<1x512xf32>
    %55 = vector.broadcast %54 : vector<1x512xf32> to vector<2x512xf32>
    %56 = arith.addf %53, %55 : vector<2x512xf32>
    %c5_56 = arith.constant 5 : index
    %c0_57 = arith.constant 0 : index
    %c0_58 = arith.constant 0 : index
    %57 = vector.load %arg11[%c5_56, %c0_57, %c0_58] : memref<8x2x512xf32, #tpu.memory_space<vmem>>, vector<1x2x512xf32>
    %58 = vector.shape_cast %57 : vector<1x2x512xf32> to vector<2x512xf32>
    %59 = vector.shape_cast %56 : vector<2x512xf32> to vector<1x2x512xf32>
    tpu.vector_store %arg11[%c5_56, %c0_57, %c0_58], %59 {strides = array<i32>} : memref<8x2x512xf32, #tpu.memory_space<vmem>>, vector<1x2x512xf32>,
    %c6 = arith.constant 6 : index
    %c0_59 = arith.constant 0 : index
    %c0_60 = arith.constant 0 : index
    %60 = vector.load %arg1[%c6, %c0_59, %c0_60] : memref<8x2x4xf32, #tpu.memory_space<vmem>>, vector<1x2x4xf32>
    %61 = vector.shape_cast %60 : vector<1x2x4xf32> to vector<2x4xf32>
    %c0_61 = arith.constant 0 : index
    %c0_62 = arith.constant 0 : index
    %62 = vector.load %arg2[%c0_61, %c0_62] : memref<4x512xf32, #tpu.memory_space<vmem>>, vector<4x512xf32>
    %cst_63 = arith.constant dense<0.000000e+00> : vector<2x512xf32>
    %63 = tpu.matmul %61, %62, %cst_63 {dimension_numbers = #tpu.dot_dimension_numbers<[1], [0], [0], [1], [0, 0, 1, 1], [], []>} : vector<2x4xf32>, vector<4x512xf32>, vector<2x512xf32> -> vector<2x512xf32>
    %c0_64 = arith.constant 0 : index
    %c0_65 = arith.constant 0 : index
    %64 = vector.load %arg4[%c0_64, %c0_65] : memref<1x512xf32, #tpu.memory_space<vmem>>, vector<1x512xf32>
    %65 = vector.broadcast %64 : vector<1x512xf32> to vector<2x512xf32>
    %66 = arith.addf %63, %65 : vector<2x512xf32>
    %c6_66 = arith.constant 6 : index
    %c0_67 = arith.constant 0 : index
    %c0_68 = arith.constant 0 : index
    %67 = vector.load %arg11[%c6_66, %c0_67, %c0_68] : memref<8x2x512xf32, #tpu.memory_space<vmem>>, vector<1x2x512xf32>
    %68 = vector.shape_cast %67 : vector<1x2x512xf32> to vector<2x512xf32>
    %69 = vector.shape_cast %66 : vector<2x512xf32> to vector<1x2x512xf32>
    tpu.vector_store %arg11[%c6_66, %c0_67, %c0_68], %69 {strides = array<i32>} : memref<8x2x512xf32, #tpu.memory_space<vmem>>, vector<1x2x512xf32>,
    %c7 = arith.constant 7 : index
    %c0_69 = arith.constant 0 : index
    %c0_70 = arith.constant 0 : index
    %70 = vector.load %arg1[%c7, %c0_69, %c0_70] : memref<8x2x4xf32, #tpu.memory_space<vmem>>, vector<1x2x4xf32>
    %71 = vector.shape_cast %70 : vector<1x2x4xf32> to vector<2x4xf32>
    %c0_71 = arith.constant 0 : index
    %c0_72 = arith.constant 0 : index
    %72 = vector.load %arg2[%c0_71, %c0_72] : memref<4x512xf32, #tpu.memory_space<vmem>>, vector<4x512xf32>
    %cst_73 = arith.constant dense<0.000000e+00> : vector<2x512xf32>
    %73 = tpu.matmul %71, %72, %cst_73 {dimension_numbers = #tpu.dot_dimension_numbers<[1], [0], [0], [1], [0, 0, 1, 1], [], []>} : vector<2x4xf32>, vector<4x512xf32>, vector<2x512xf32> -> vector<2x512xf32>
    %c0_74 = arith.constant 0 : index
    %c0_75 = arith.constant 0 : index
    %74 = vector.load %arg4[%c0_74, %c0_75] : memref<1x512xf32, #tpu.memory_space<vmem>>, vector<1x512xf32>
    %75 = vector.broadcast %74 : vector<1x512xf32> to vector<2x512xf32>
    %76 = arith.addf %73, %75 : vector<2x512xf32>
    %c7_76 = arith.constant 7 : index
    %c0_77 = arith.constant 0 : index
    %c0_78 = arith.constant 0 : index
    %77 = vector.load %arg11[%c7_76, %c0_77, %c0_78] : memref<8x2x512xf32, #tpu.memory_space<vmem>>, vector<1x2x512xf32>
    %78 = vector.shape_cast %77 : vector<1x2x512xf32> to vector<2x512xf32>
    %79 = vector.shape_cast %76 : vector<2x512xf32> to vector<1x2x512xf32>
    tpu.vector_store %arg11[%c7_76, %c0_77, %c0_78], %79 {strides = array<i32>} : memref<8x2x512xf32, #tpu.memory_space<vmem>>, vector<1x2x512xf32>,
    %cst_79 = arith.constant 0.000000e+00 : f32
    %80 = vector.broadcast %cst_79 : f32 to vector<2x128xf32>
    %cst_80 = arith.constant 0.000000e+00 : f32
    %81 = vector.broadcast %cst_80 : f32 to vector<2x128xf32>
    %c0_81 = arith.constant 0 : index
    %c0_82 = arith.constant 0 : index
    %c0_83 = arith.constant 0 : index
    %82 = vector.load %arg11[%c0_81, %c0_82, %c0_83] : memref<8x2x512xf32, #tpu.memory_space<vmem>>, vector<1x2x512xf32>
    %83 = vector.shape_cast %82 : vector<1x2x512xf32> to vector<2x512xf32>
    %c0_84 = arith.constant 0 : index
    %c0_85 = arith.constant 0 : index
    %84 = vector.load %arg3[%c0_84, %c0_85] : memref<128x512xf32, #tpu.memory_space<vmem>>, vector<128x512xf32>
    %cst_86 = arith.constant dense<0.000000e+00> : vector<2x512xf32>
    %85 = tpu.matmul %80, %84, %cst_86 {dimension_numbers = #tpu.dot_dimension_numbers<[1], [0], [0], [1], [0, 0, 1, 1], [], []>} : vector<2x128xf32>, vector<128x512xf32>, vector<2x512xf32> -> vector<2x512xf32>
    %86 = arith.addf %83, %85 : vector<2x512xf32>
    %87 = vector.extract_strided_slice %86 {offsets = [0, 0], sizes = [2, 128], strides = [1, 1]} : vector<2x512xf32> to vector<2x128xf32>
    %88 = arith.negf %87 : vector<2x128xf32>
    %89 = math.exp %88 : vector<2x128xf32>
    %cst_87 = arith.constant 1.000000e+00 : f32
    %90 = vector.broadcast %cst_87 : f32 to vector<2x128xf32>
    %91 = arith.addf %90, %89 : vector<2x128xf32>
    %92 = arith.divf %90, %91 : vector<2x128xf32>
    %93 = vector.extract_strided_slice %86 {offsets = [0, 128], sizes = [2, 128], strides = [1, 1]} : vector<2x512xf32> to vector<2x128xf32>
    %94 = arith.negf %93 : vector<2x128xf32>
    %95 = math.exp %94 : vector<2x128xf32>
    %cst_88 = arith.constant 1.000000e+00 : f32
    %96 = vector.broadcast %cst_88 : f32 to vector<2x128xf32>
    %97 = arith.addf %96, %95 : vector<2x128xf32>
    %98 = arith.divf %96, %97 : vector<2x128xf32>
    %99 = vector.extract_strided_slice %86 {offsets = [0, 256], sizes = [2, 128], strides = [1, 1]} : vector<2x512xf32> to vector<2x128xf32>
    %100 = math.tanh %99 : vector<2x128xf32>
    %101 = vector.extract_strided_slice %86 {offsets = [0, 384], sizes = [2, 128], strides = [1, 1]} : vector<2x512xf32> to vector<2x128xf32>
    %102 = arith.negf %101 : vector<2x128xf32>
    %103 = math.exp %102 : vector<2x128xf32>
    %cst_89 = arith.constant 1.000000e+00 : f32
    %104 = vector.broadcast %cst_89 : f32 to vector<2x128xf32>
    %105 = arith.addf %104, %103 : vector<2x128xf32>
    %106 = arith.divf %104, %105 : vector<2x128xf32>
    %107 = arith.mulf %98, %81 : vector<2x128xf32>
    %108 = arith.mulf %92, %100 : vector<2x128xf32>
    %109 = arith.addf %107, %108 : vector<2x128xf32>
    %110 = math.tanh %109 : vector<2x128xf32>
    %111 = arith.mulf %106, %110 : vector<2x128xf32>
    %c0_90 = arith.constant 0 : index
    %c0_91 = arith.constant 0 : index
    %c0_92 = arith.constant 0 : index
    %112 = vector.load %arg12[%c0_90, %c0_91, %c0_92] : memref<8x2x128xf32, #tpu.memory_space<vmem>>, vector<1x2x128xf32>
    %113 = vector.shape_cast %112 : vector<1x2x128xf32> to vector<2x128xf32>
    %114 = vector.shape_cast %111 : vector<2x128xf32> to vector<1x2x128xf32>
    tpu.vector_store %arg12[%c0_90, %c0_91, %c0_92], %114 {strides = array<i32>} : memref<8x2x128xf32, #tpu.memory_space<vmem>>, vector<1x2x128xf32>,
    %c1_93 = arith.constant 1 : index
    %c0_94 = arith.constant 0 : index
    %c0_95 = arith.constant 0 : index
    %115 = vector.load %arg11[%c1_93, %c0_94, %c0_95] : memref<8x2x512xf32, #tpu.memory_space<vmem>>, vector<1x2x512xf32>
    %116 = vector.shape_cast %115 : vector<1x2x512xf32> to vector<2x512xf32>
    %c0_96 = arith.constant 0 : index
    %c0_97 = arith.constant 0 : index
    %117 = vector.load %arg3[%c0_96, %c0_97] : memref<128x512xf32, #tpu.memory_space<vmem>>, vector<128x512xf32>
    %cst_98 = arith.constant dense<0.000000e+00> : vector<2x512xf32>
    %118 = tpu.matmul %111, %117, %cst_98 {dimension_numbers = #tpu.dot_dimension_numbers<[1], [0], [0], [1], [0, 0, 1, 1], [], []>} : vector<2x128xf32>, vector<128x512xf32>, vector<2x512xf32> -> vector<2x512xf32>
    %119 = arith.addf %116, %118 : vector<2x512xf32>
    %120 = vector.extract_strided_slice %119 {offsets = [0, 0], sizes = [2, 128], strides = [1, 1]} : vector<2x512xf32> to vector<2x128xf32>
    %121 = arith.negf %120 : vector<2x128xf32>
    %122 = math.exp %121 : vector<2x128xf32>
    %cst_99 = arith.constant 1.000000e+00 : f32
    %123 = vector.broadcast %cst_99 : f32 to vector<2x128xf32>
    %124 = arith.addf %123, %122 : vector<2x128xf32>
    %125 = arith.divf %123, %124 : vector<2x128xf32>
    %126 = vector.extract_strided_slice %119 {offsets = [0, 128], sizes = [2, 128], strides = [1, 1]} : vector<2x512xf32> to vector<2x128xf32>
    %127 = arith.negf %126 : vector<2x128xf32>
    %128 = math.exp %127 : vector<2x128xf32>
    %cst_100 = arith.constant 1.000000e+00 : f32
    %129 = vector.broadcast %cst_100 : f32 to vector<2x128xf32>
    %130 = arith.addf %129, %128 : vector<2x128xf32>
    %131 = arith.divf %129, %130 : vector<2x128xf32>
    %132 = vector.extract_strided_slice %119 {offsets = [0, 256], sizes = [2, 128], strides = [1, 1]} : vector<2x512xf32> to vector<2x128xf32>
    %133 = math.tanh %132 : vector<2x128xf32>
    %134 = vector.extract_strided_slice %119 {offsets = [0, 384], sizes = [2, 128], strides = [1, 1]} : vector<2x512xf32> to vector<2x128xf32>
    %135 = arith.negf %134 : vector<2x128xf32>
    %136 = math.exp %135 : vector<2x128xf32>
    %cst_101 = arith.constant 1.000000e+00 : f32
    %137 = vector.broadcast %cst_101 : f32 to vector<2x128xf32>
    %138 = arith.addf %137, %136 : vector<2x128xf32>
    %139 = arith.divf %137, %138 : vector<2x128xf32>
    %140 = arith.mulf %131, %109 : vector<2x128xf32>
    %141 = arith.mulf %125, %133 : vector<2x128xf32>
    %142 = arith.addf %140, %141 : vector<2x128xf32>
    %143 = math.tanh %142 : vector<2x128xf32>
    %144 = arith.mulf %139, %143 : vector<2x128xf32>
    %c1_102 = arith.constant 1 : index
    %c0_103 = arith.constant 0 : index
    %c0_104 = arith.constant 0 : index
    %145 = vector.load %arg12[%c1_102, %c0_103, %c0_104] : memref<8x2x128xf32, #tpu.memory_space<vmem>>, vector<1x2x128xf32>
    %146 = vector.shape_cast %145 : vector<1x2x128xf32> to vector<2x128xf32>
    %147 = vector.shape_cast %144 : vector<2x128xf32> to vector<1x2x128xf32>
    tpu.vector_store %arg12[%c1_102, %c0_103, %c0_104], %147 {strides = array<i32>} : memref<8x2x128xf32, #tpu.memory_space<vmem>>, vector<1x2x128xf32>,
    %c2_105 = arith.constant 2 : index
    %c0_106 = arith.constant 0 : index
    %c0_107 = arith.constant 0 : index
    %148 = vector.load %arg11[%c2_105, %c0_106, %c0_107] : memref<8x2x512xf32, #tpu.memory_space<vmem>>, vector<1x2x512xf32>
    %149 = vector.shape_cast %148 : vector<1x2x512xf32> to vector<2x512xf32>
    %c0_108 = arith.constant 0 : index
    %c0_109 = arith.constant 0 : index
    %150 = vector.load %arg3[%c0_108, %c0_109] : memref<128x512xf32, #tpu.memory_space<vmem>>, vector<128x512xf32>
    %cst_110 = arith.constant dense<0.000000e+00> : vector<2x512xf32>
    %151 = tpu.matmul %144, %150, %cst_110 {dimension_numbers = #tpu.dot_dimension_numbers<[1], [0], [0], [1], [0, 0, 1, 1], [], []>} : vector<2x128xf32>, vector<128x512xf32>, vector<2x512xf32> -> vector<2x512xf32>
    %152 = arith.addf %149, %151 : vector<2x512xf32>
    %153 = vector.extract_strided_slice %152 {offsets = [0, 0], sizes = [2, 128], strides = [1, 1]} : vector<2x512xf32> to vector<2x128xf32>
    %154 = arith.negf %153 : vector<2x128xf32>
    %155 = math.exp %154 : vector<2x128xf32>
    %cst_111 = arith.constant 1.000000e+00 : f32
    %156 = vector.broadcast %cst_111 : f32 to vector<2x128xf32>
    %157 = arith.addf %156, %155 : vector<2x128xf32>
    %158 = arith.divf %156, %157 : vector<2x128xf32>
    %159 = vector.extract_strided_slice %152 {offsets = [0, 128], sizes = [2, 128], strides = [1, 1]} : vector<2x512xf32> to vector<2x128xf32>
    %160 = arith.negf %159 : vector<2x128xf32>
    %161 = math.exp %160 : vector<2x128xf32>
    %cst_112 = arith.constant 1.000000e+00 : f32
    %162 = vector.broadcast %cst_112 : f32 to vector<2x128xf32>
    %163 = arith.addf %162, %161 : vector<2x128xf32>
    %164 = arith.divf %162, %163 : vector<2x128xf32>
    %165 = vector.extract_strided_slice %152 {offsets = [0, 256], sizes = [2, 128], strides = [1, 1]} : vector<2x512xf32> to vector<2x128xf32>
    %166 = math.tanh %165 : vector<2x128xf32>
    %167 = vector.extract_strided_slice %152 {offsets = [0, 384], sizes = [2, 128], strides = [1, 1]} : vector<2x512xf32> to vector<2x128xf32>
    %168 = arith.negf %167 : vector<2x128xf32>
    %169 = math.exp %168 : vector<2x128xf32>
    %cst_113 = arith.constant 1.000000e+00 : f32
    %170 = vector.broadcast %cst_113 : f32 to vector<2x128xf32>
    %171 = arith.addf %170, %169 : vector<2x128xf32>
    %172 = arith.divf %170, %171 : vector<2x128xf32>
    %173 = arith.mulf %164, %142 : vector<2x128xf32>
    %174 = arith.mulf %158, %166 : vector<2x128xf32>
    %175 = arith.addf %173, %174 : vector<2x128xf32>
    %176 = math.tanh %175 : vector<2x128xf32>
    %177 = arith.mulf %172, %176 : vector<2x128xf32>
    %c2_114 = arith.constant 2 : index
    %c0_115 = arith.constant 0 : index
    %c0_116 = arith.constant 0 : index
    %178 = vector.load %arg12[%c2_114, %c0_115, %c0_116] : memref<8x2x128xf32, #tpu.memory_space<vmem>>, vector<1x2x128xf32>
    %179 = vector.shape_cast %178 : vector<1x2x128xf32> to vector<2x128xf32>
    %180 = vector.shape_cast %177 : vector<2x128xf32> to vector<1x2x128xf32>
    tpu.vector_store %arg12[%c2_114, %c0_115, %c0_116], %180 {strides = array<i32>} : memref<8x2x128xf32, #tpu.memory_space<vmem>>, vector<1x2x128xf32>,
    %c3_117 = arith.constant 3 : index
    %c0_118 = arith.constant 0 : index
    %c0_119 = arith.constant 0 : index
    %181 = vector.load %arg11[%c3_117, %c0_118, %c0_119] : memref<8x2x512xf32, #tpu.memory_space<vmem>>, vector<1x2x512xf32>
    %182 = vector.shape_cast %181 : vector<1x2x512xf32> to vector<2x512xf32>
    %c0_120 = arith.constant 0 : index
    %c0_121 = arith.constant 0 : index
    %183 = vector.load %arg3[%c0_120, %c0_121] : memref<128x512xf32, #tpu.memory_space<vmem>>, vector<128x512xf32>
    %cst_122 = arith.constant dense<0.000000e+00> : vector<2x512xf32>
    %184 = tpu.matmul %177, %183, %cst_122 {dimension_numbers = #tpu.dot_dimension_numbers<[1], [0], [0], [1], [0, 0, 1, 1], [], []>} : vector<2x128xf32>, vector<128x512xf32>, vector<2x512xf32> -> vector<2x512xf32>
    %185 = arith.addf %182, %184 : vector<2x512xf32>
    %186 = vector.extract_strided_slice %185 {offsets = [0, 0], sizes = [2, 128], strides = [1, 1]} : vector<2x512xf32> to vector<2x128xf32>
    %187 = arith.negf %186 : vector<2x128xf32>
    %188 = math.exp %187 : vector<2x128xf32>
    %cst_123 = arith.constant 1.000000e+00 : f32
    %189 = vector.broadcast %cst_123 : f32 to vector<2x128xf32>
    %190 = arith.addf %189, %188 : vector<2x128xf32>
    %191 = arith.divf %189, %190 : vector<2x128xf32>
    %192 = vector.extract_strided_slice %185 {offsets = [0, 128], sizes = [2, 128], strides = [1, 1]} : vector<2x512xf32> to vector<2x128xf32>
    %193 = arith.negf %192 : vector<2x128xf32>
    %194 = math.exp %193 : vector<2x128xf32>
    %cst_124 = arith.constant 1.000000e+00 : f32
    %195 = vector.broadcast %cst_124 : f32 to vector<2x128xf32>
    %196 = arith.addf %195, %194 : vector<2x128xf32>
    %197 = arith.divf %195, %196 : vector<2x128xf32>
    %198 = vector.extract_strided_slice %185 {offsets = [0, 256], sizes = [2, 128], strides = [1, 1]} : vector<2x512xf32> to vector<2x128xf32>
    %199 = math.tanh %198 : vector<2x128xf32>
    %200 = vector.extract_strided_slice %185 {offsets = [0, 384], sizes = [2, 128], strides = [1, 1]} : vector<2x512xf32> to vector<2x128xf32>
    %201 = arith.negf %200 : vector<2x128xf32>
    %202 = math.exp %201 : vector<2x128xf32>
    %cst_125 = arith.constant 1.000000e+00 : f32
    %203 = vector.broadcast %cst_125 : f32 to vector<2x128xf32>
    %204 = arith.addf %203, %202 : vector<2x128xf32>
    %205 = arith.divf %203, %204 : vector<2x128xf32>
    %206 = arith.mulf %197, %175 : vector<2x128xf32>
    %207 = arith.mulf %191, %199 : vector<2x128xf32>
    %208 = arith.addf %206, %207 : vector<2x128xf32>
    %209 = math.tanh %208 : vector<2x128xf32>
    %210 = arith.mulf %205, %209 : vector<2x128xf32>
    %c3_126 = arith.constant 3 : index
    %c0_127 = arith.constant 0 : index
    %c0_128 = arith.constant 0 : index
    %211 = vector.load %arg12[%c3_126, %c0_127, %c0_128] : memref<8x2x128xf32, #tpu.memory_space<vmem>>, vector<1x2x128xf32>
    %212 = vector.shape_cast %211 : vector<1x2x128xf32> to vector<2x128xf32>
    %213 = vector.shape_cast %210 : vector<2x128xf32> to vector<1x2x128xf32>
    tpu.vector_store %arg12[%c3_126, %c0_127, %c0_128], %213 {strides = array<i32>} : memref<8x2x128xf32, #tpu.memory_space<vmem>>, vector<1x2x128xf32>,
    %c4_129 = arith.constant 4 : index
    %c0_130 = arith.constant 0 : index
    %c0_131 = arith.constant 0 : index
    %214 = vector.load %arg11[%c4_129, %c0_130, %c0_131] : memref<8x2x512xf32, #tpu.memory_space<vmem>>, vector<1x2x512xf32>
    %215 = vector.shape_cast %214 : vector<1x2x512xf32> to vector<2x512xf32>
    %c0_132 = arith.constant 0 : index
    %c0_133 = arith.constant 0 : index
    %216 = vector.load %arg3[%c0_132, %c0_133] : memref<128x512xf32, #tpu.memory_space<vmem>>, vector<128x512xf32>
    %cst_134 = arith.constant dense<0.000000e+00> : vector<2x512xf32>
    %217 = tpu.matmul %210, %216, %cst_134 {dimension_numbers = #tpu.dot_dimension_numbers<[1], [0], [0], [1], [0, 0, 1, 1], [], []>} : vector<2x128xf32>, vector<128x512xf32>, vector<2x512xf32> -> vector<2x512xf32>
    %218 = arith.addf %215, %217 : vector<2x512xf32>
    %219 = vector.extract_strided_slice %218 {offsets = [0, 0], sizes = [2, 128], strides = [1, 1]} : vector<2x512xf32> to vector<2x128xf32>
    %220 = arith.negf %219 : vector<2x128xf32>
    %221 = math.exp %220 : vector<2x128xf32>
    %cst_135 = arith.constant 1.000000e+00 : f32
    %222 = vector.broadcast %cst_135 : f32 to vector<2x128xf32>
    %223 = arith.addf %222, %221 : vector<2x128xf32>
    %224 = arith.divf %222, %223 : vector<2x128xf32>
    %225 = vector.extract_strided_slice %218 {offsets = [0, 128], sizes = [2, 128], strides = [1, 1]} : vector<2x512xf32> to vector<2x128xf32>
    %226 = arith.negf %225 : vector<2x128xf32>
    %227 = math.exp %226 : vector<2x128xf32>
    %cst_136 = arith.constant 1.000000e+00 : f32
    %228 = vector.broadcast %cst_136 : f32 to vector<2x128xf32>
    %229 = arith.addf %228, %227 : vector<2x128xf32>
    %230 = arith.divf %228, %229 : vector<2x128xf32>
    %231 = vector.extract_strided_slice %218 {offsets = [0, 256], sizes = [2, 128], strides = [1, 1]} : vector<2x512xf32> to vector<2x128xf32>
    %232 = math.tanh %231 : vector<2x128xf32>
    %233 = vector.extract_strided_slice %218 {offsets = [0, 384], sizes = [2, 128], strides = [1, 1]} : vector<2x512xf32> to vector<2x128xf32>
    %234 = arith.negf %233 : vector<2x128xf32>
    %235 = math.exp %234 : vector<2x128xf32>
    %cst_137 = arith.constant 1.000000e+00 : f32
    %236 = vector.broadcast %cst_137 : f32 to vector<2x128xf32>
    %237 = arith.addf %236, %235 : vector<2x128xf32>
    %238 = arith.divf %236, %237 : vector<2x128xf32>
    %239 = arith.mulf %230, %208 : vector<2x128xf32>
    %240 = arith.mulf %224, %232 : vector<2x128xf32>
    %241 = arith.addf %239, %240 : vector<2x128xf32>
    %242 = math.tanh %241 : vector<2x128xf32>
    %243 = arith.mulf %238, %242 : vector<2x128xf32>
    %c4_138 = arith.constant 4 : index
    %c0_139 = arith.constant 0 : index
    %c0_140 = arith.constant 0 : index
    %244 = vector.load %arg12[%c4_138, %c0_139, %c0_140] : memref<8x2x128xf32, #tpu.memory_space<vmem>>, vector<1x2x128xf32>
    %245 = vector.shape_cast %244 : vector<1x2x128xf32> to vector<2x128xf32>
    %246 = vector.shape_cast %243 : vector<2x128xf32> to vector<1x2x128xf32>
    tpu.vector_store %arg12[%c4_138, %c0_139, %c0_140], %246 {strides = array<i32>} : memref<8x2x128xf32, #tpu.memory_space<vmem>>, vector<1x2x128xf32>,
    %c5_141 = arith.constant 5 : index
    %c0_142 = arith.constant 0 : index
    %c0_143 = arith.constant 0 : index
    %247 = vector.load %arg11[%c5_141, %c0_142, %c0_143] : memref<8x2x512xf32, #tpu.memory_space<vmem>>, vector<1x2x512xf32>
    %248 = vector.shape_cast %247 : vector<1x2x512xf32> to vector<2x512xf32>
    %c0_144 = arith.constant 0 : index
    %c0_145 = arith.constant 0 : index
    %249 = vector.load %arg3[%c0_144, %c0_145] : memref<128x512xf32, #tpu.memory_space<vmem>>, vector<128x512xf32>
    %cst_146 = arith.constant dense<0.000000e+00> : vector<2x512xf32>
    %250 = tpu.matmul %243, %249, %cst_146 {dimension_numbers = #tpu.dot_dimension_numbers<[1], [0], [0], [1], [0, 0, 1, 1], [], []>} : vector<2x128xf32>, vector<128x512xf32>, vector<2x512xf32> -> vector<2x512xf32>
    %251 = arith.addf %248, %250 : vector<2x512xf32>
    %252 = vector.extract_strided_slice %251 {offsets = [0, 0], sizes = [2, 128], strides = [1, 1]} : vector<2x512xf32> to vector<2x128xf32>
    %253 = arith.negf %252 : vector<2x128xf32>
    %254 = math.exp %253 : vector<2x128xf32>
    %cst_147 = arith.constant 1.000000e+00 : f32
    %255 = vector.broadcast %cst_147 : f32 to vector<2x128xf32>
    %256 = arith.addf %255, %254 : vector<2x128xf32>
    %257 = arith.divf %255, %256 : vector<2x128xf32>
    %258 = vector.extract_strided_slice %251 {offsets = [0, 128], sizes = [2, 128], strides = [1, 1]} : vector<2x512xf32> to vector<2x128xf32>
    %259 = arith.negf %258 : vector<2x128xf32>
    %260 = math.exp %259 : vector<2x128xf32>
    %cst_148 = arith.constant 1.000000e+00 : f32
    %261 = vector.broadcast %cst_148 : f32 to vector<2x128xf32>
    %262 = arith.addf %261, %260 : vector<2x128xf32>
    %263 = arith.divf %261, %262 : vector<2x128xf32>
    %264 = vector.extract_strided_slice %251 {offsets = [0, 256], sizes = [2, 128], strides = [1, 1]} : vector<2x512xf32> to vector<2x128xf32>
    %265 = math.tanh %264 : vector<2x128xf32>
    %266 = vector.extract_strided_slice %251 {offsets = [0, 384], sizes = [2, 128], strides = [1, 1]} : vector<2x512xf32> to vector<2x128xf32>
    %267 = arith.negf %266 : vector<2x128xf32>
    %268 = math.exp %267 : vector<2x128xf32>
    %cst_149 = arith.constant 1.000000e+00 : f32
    %269 = vector.broadcast %cst_149 : f32 to vector<2x128xf32>
    %270 = arith.addf %269, %268 : vector<2x128xf32>
    %271 = arith.divf %269, %270 : vector<2x128xf32>
    %272 = arith.mulf %263, %241 : vector<2x128xf32>
    %273 = arith.mulf %257, %265 : vector<2x128xf32>
    %274 = arith.addf %272, %273 : vector<2x128xf32>
    %275 = math.tanh %274 : vector<2x128xf32>
    %276 = arith.mulf %271, %275 : vector<2x128xf32>
    %c5_150 = arith.constant 5 : index
    %c0_151 = arith.constant 0 : index
    %c0_152 = arith.constant 0 : index
    %277 = vector.load %arg12[%c5_150, %c0_151, %c0_152] : memref<8x2x128xf32, #tpu.memory_space<vmem>>, vector<1x2x128xf32>
    %278 = vector.shape_cast %277 : vector<1x2x128xf32> to vector<2x128xf32>
    %279 = vector.shape_cast %276 : vector<2x128xf32> to vector<1x2x128xf32>
    tpu.vector_store %arg12[%c5_150, %c0_151, %c0_152], %279 {strides = array<i32>} : memref<8x2x128xf32, #tpu.memory_space<vmem>>, vector<1x2x128xf32>,
    %c6_153 = arith.constant 6 : index
    %c0_154 = arith.constant 0 : index
    %c0_155 = arith.constant 0 : index
    %280 = vector.load %arg11[%c6_153, %c0_154, %c0_155] : memref<8x2x512xf32, #tpu.memory_space<vmem>>, vector<1x2x512xf32>
    %281 = vector.shape_cast %280 : vector<1x2x512xf32> to vector<2x512xf32>
    %c0_156 = arith.constant 0 : index
    %c0_157 = arith.constant 0 : index
    %282 = vector.load %arg3[%c0_156, %c0_157] : memref<128x512xf32, #tpu.memory_space<vmem>>, vector<128x512xf32>
    %cst_158 = arith.constant dense<0.000000e+00> : vector<2x512xf32>
    %283 = tpu.matmul %276, %282, %cst_158 {dimension_numbers = #tpu.dot_dimension_numbers<[1], [0], [0], [1], [0, 0, 1, 1], [], []>} : vector<2x128xf32>, vector<128x512xf32>, vector<2x512xf32> -> vector<2x512xf32>
    %284 = arith.addf %281, %283 : vector<2x512xf32>
    %285 = vector.extract_strided_slice %284 {offsets = [0, 0], sizes = [2, 128], strides = [1, 1]} : vector<2x512xf32> to vector<2x128xf32>
    %286 = arith.negf %285 : vector<2x128xf32>
    %287 = math.exp %286 : vector<2x128xf32>
    %cst_159 = arith.constant 1.000000e+00 : f32
    %288 = vector.broadcast %cst_159 : f32 to vector<2x128xf32>
    %289 = arith.addf %288, %287 : vector<2x128xf32>
    %290 = arith.divf %288, %289 : vector<2x128xf32>
    %291 = vector.extract_strided_slice %284 {offsets = [0, 128], sizes = [2, 128], strides = [1, 1]} : vector<2x512xf32> to vector<2x128xf32>
    %292 = arith.negf %291 : vector<2x128xf32>
    %293 = math.exp %292 : vector<2x128xf32>
    %cst_160 = arith.constant 1.000000e+00 : f32
    %294 = vector.broadcast %cst_160 : f32 to vector<2x128xf32>
    %295 = arith.addf %294, %293 : vector<2x128xf32>
    %296 = arith.divf %294, %295 : vector<2x128xf32>
    %297 = vector.extract_strided_slice %284 {offsets = [0, 256], sizes = [2, 128], strides = [1, 1]} : vector<2x512xf32> to vector<2x128xf32>
    %298 = math.tanh %297 : vector<2x128xf32>
    %299 = vector.extract_strided_slice %284 {offsets = [0, 384], sizes = [2, 128], strides = [1, 1]} : vector<2x512xf32> to vector<2x128xf32>
    %300 = arith.negf %299 : vector<2x128xf32>
    %301 = math.exp %300 : vector<2x128xf32>
    %cst_161 = arith.constant 1.000000e+00 : f32
    %302 = vector.broadcast %cst_161 : f32 to vector<2x128xf32>
    %303 = arith.addf %302, %301 : vector<2x128xf32>
    %304 = arith.divf %302, %303 : vector<2x128xf32>
    %305 = arith.mulf %296, %274 : vector<2x128xf32>
    %306 = arith.mulf %290, %298 : vector<2x128xf32>
    %307 = arith.addf %305, %306 : vector<2x128xf32>
    %308 = math.tanh %307 : vector<2x128xf32>
    %309 = arith.mulf %304, %308 : vector<2x128xf32>
    %c6_162 = arith.constant 6 : index
    %c0_163 = arith.constant 0 : index
    %c0_164 = arith.constant 0 : index
    %310 = vector.load %arg12[%c6_162, %c0_163, %c0_164] : memref<8x2x128xf32, #tpu.memory_space<vmem>>, vector<1x2x128xf32>
    %311 = vector.shape_cast %310 : vector<1x2x128xf32> to vector<2x128xf32>
    %312 = vector.shape_cast %309 : vector<2x128xf32> to vector<1x2x128xf32>
    tpu.vector_store %arg12[%c6_162, %c0_163, %c0_164], %312 {strides = array<i32>} : memref<8x2x128xf32, #tpu.memory_space<vmem>>, vector<1x2x128xf32>,
    %c7_165 = arith.constant 7 : index
    %c0_166 = arith.constant 0 : index
    %c0_167 = arith.constant 0 : index
    %313 = vector.load %arg11[%c7_165, %c0_166, %c0_167] : memref<8x2x512xf32, #tpu.memory_space<vmem>>, vector<1x2x512xf32>
    %314 = vector.shape_cast %313 : vector<1x2x512xf32> to vector<2x512xf32>
    %c0_168 = arith.constant 0 : index
    %c0_169 = arith.constant 0 : index
    %315 = vector.load %arg3[%c0_168, %c0_169] : memref<128x512xf32, #tpu.memory_space<vmem>>, vector<128x512xf32>
    %cst_170 = arith.constant dense<0.000000e+00> : vector<2x512xf32>
    %316 = tpu.matmul %309, %315, %cst_170 {dimension_numbers = #tpu.dot_dimension_numbers<[1], [0], [0], [1], [0, 0, 1, 1], [], []>} : vector<2x128xf32>, vector<128x512xf32>, vector<2x512xf32> -> vector<2x512xf32>
    %317 = arith.addf %314, %316 : vector<2x512xf32>
    %318 = vector.extract_strided_slice %317 {offsets = [0, 0], sizes = [2, 128], strides = [1, 1]} : vector<2x512xf32> to vector<2x128xf32>
    %319 = arith.negf %318 : vector<2x128xf32>
    %320 = math.exp %319 : vector<2x128xf32>
    %cst_171 = arith.constant 1.000000e+00 : f32
    %321 = vector.broadcast %cst_171 : f32 to vector<2x128xf32>
    %322 = arith.addf %321, %320 : vector<2x128xf32>
    %323 = arith.divf %321, %322 : vector<2x128xf32>
    %324 = vector.extract_strided_slice %317 {offsets = [0, 128], sizes = [2, 128], strides = [1, 1]} : vector<2x512xf32> to vector<2x128xf32>
    %325 = arith.negf %324 : vector<2x128xf32>
    %326 = math.exp %325 : vector<2x128xf32>
    %cst_172 = arith.constant 1.000000e+00 : f32
    %327 = vector.broadcast %cst_172 : f32 to vector<2x128xf32>
    %328 = arith.addf %327, %326 : vector<2x128xf32>
    %329 = arith.divf %327, %328 : vector<2x128xf32>
    %330 = vector.extract_strided_slice %317 {offsets = [0, 256], sizes = [2, 128], strides = [1, 1]} : vector<2x512xf32> to vector<2x128xf32>
    %331 = math.tanh %330 : vector<2x128xf32>
    %332 = vector.extract_strided_slice %317 {offsets = [0, 384], sizes = [2, 128], strides = [1, 1]} : vector<2x512xf32> to vector<2x128xf32>
    %333 = arith.negf %332 : vector<2x128xf32>
    %334 = math.exp %333 : vector<2x128xf32>
    %cst_173 = arith.constant 1.000000e+00 : f32
    %335 = vector.broadcast %cst_173 : f32 to vector<2x128xf32>
    %336 = arith.addf %335, %334 : vector<2x128xf32>
    %337 = arith.divf %335, %336 : vector<2x128xf32>
    %338 = arith.mulf %329, %307 : vector<2x128xf32>
    %339 = arith.mulf %323, %331 : vector<2x128xf32>
    %340 = arith.addf %338, %339 : vector<2x128xf32>
    %341 = math.tanh %340 : vector<2x128xf32>
    %342 = arith.mulf %337, %341 : vector<2x128xf32>
    %c7_174 = arith.constant 7 : index
    %c0_175 = arith.constant 0 : index
    %c0_176 = arith.constant 0 : index
    %343 = vector.load %arg12[%c7_174, %c0_175, %c0_176] : memref<8x2x128xf32, #tpu.memory_space<vmem>>, vector<1x2x128xf32>
    %344 = vector.shape_cast %343 : vector<1x2x128xf32> to vector<2x128xf32>
    %345 = vector.shape_cast %342 : vector<2x128xf32> to vector<1x2x128xf32>
    tpu.vector_store %arg12[%c7_174, %c0_175, %c0_176], %345 {strides = array<i32>} : memref<8x2x128xf32, #tpu.memory_space<vmem>>, vector<1x2x128xf32>,
    %c0_177 = arith.constant 0 : index
    %c0_178 = arith.constant 0 : index
    %c0_179 = arith.constant 0 : index
    %346 = vector.load %arg12[%c0_177, %c0_178, %c0_179] : memref<8x2x128xf32, #tpu.memory_space<vmem>>, vector<1x2x128xf32>
    %347 = vector.shape_cast %346 : vector<1x2x128xf32> to vector<2x128xf32>
    %c0_180 = arith.constant 0 : index
    %c0_181 = arith.constant 0 : index
    %348 = vector.load %arg5[%c0_180, %c0_181] : memref<128x512xf32, #tpu.memory_space<vmem>>, vector<128x512xf32>
    %cst_182 = arith.constant dense<0.000000e+00> : vector<2x512xf32>
    %349 = tpu.matmul %347, %348, %cst_182 {dimension_numbers = #tpu.dot_dimension_numbers<[1], [0], [0], [1], [0, 0, 1, 1], [], []>} : vector<2x128xf32>, vector<128x512xf32>, vector<2x512xf32> -> vector<2x512xf32>
    %c0_183 = arith.constant 0 : index
    %c0_184 = arith.constant 0 : index
    %350 = vector.load %arg7[%c0_183, %c0_184] : memref<1x512xf32, #tpu.memory_space<vmem>>, vector<1x512xf32>
    %351 = vector.broadcast %350 : vector<1x512xf32> to vector<2x512xf32>
    %352 = arith.addf %349, %351 : vector<2x512xf32>
    %c0_185 = arith.constant 0 : index
    %c0_186 = arith.constant 0 : index
    %c0_187 = arith.constant 0 : index
    %353 = vector.load %arg11[%c0_185, %c0_186, %c0_187] : memref<8x2x512xf32, #tpu.memory_space<vmem>>, vector<1x2x512xf32>
    %354 = vector.shape_cast %353 : vector<1x2x512xf32> to vector<2x512xf32>
    %355 = vector.shape_cast %352 : vector<2x512xf32> to vector<1x2x512xf32>
    tpu.vector_store %arg11[%c0_185, %c0_186, %c0_187], %355 {strides = array<i32>} : memref<8x2x512xf32, #tpu.memory_space<vmem>>, vector<1x2x512xf32>,
    %c1_188 = arith.constant 1 : index
    %c0_189 = arith.constant 0 : index
    %c0_190 = arith.constant 0 : index
    %356 = vector.load %arg12[%c1_188, %c0_189, %c0_190] : memref<8x2x128xf32, #tpu.memory_space<vmem>>, vector<1x2x128xf32>
    %357 = vector.shape_cast %356 : vector<1x2x128xf32> to vector<2x128xf32>
    %c0_191 = arith.constant 0 : index
    %c0_192 = arith.constant 0 : index
    %358 = vector.load %arg5[%c0_191, %c0_192] : memref<128x512xf32, #tpu.memory_space<vmem>>, vector<128x512xf32>
    %cst_193 = arith.constant dense<0.000000e+00> : vector<2x512xf32>
    %359 = tpu.matmul %357, %358, %cst_193 {dimension_numbers = #tpu.dot_dimension_numbers<[1], [0], [0], [1], [0, 0, 1, 1], [], []>} : vector<2x128xf32>, vector<128x512xf32>, vector<2x512xf32> -> vector<2x512xf32>
    %c0_194 = arith.constant 0 : index
    %c0_195 = arith.constant 0 : index
    %360 = vector.load %arg7[%c0_194, %c0_195] : memref<1x512xf32, #tpu.memory_space<vmem>>, vector<1x512xf32>
    %361 = vector.broadcast %360 : vector<1x512xf32> to vector<2x512xf32>
    %362 = arith.addf %359, %361 : vector<2x512xf32>
    %c1_196 = arith.constant 1 : index
    %c0_197 = arith.constant 0 : index
    %c0_198 = arith.constant 0 : index
    %363 = vector.load %arg11[%c1_196, %c0_197, %c0_198] : memref<8x2x512xf32, #tpu.memory_space<vmem>>, vector<1x2x512xf32>
    %364 = vector.shape_cast %363 : vector<1x2x512xf32> to vector<2x512xf32>
    %365 = vector.shape_cast %362 : vector<2x512xf32> to vector<1x2x512xf32>
    tpu.vector_store %arg11[%c1_196, %c0_197, %c0_198], %365 {strides = array<i32>} : memref<8x2x512xf32, #tpu.memory_space<vmem>>, vector<1x2x512xf32>,
    %c2_199 = arith.constant 2 : index
    %c0_200 = arith.constant 0 : index
    %c0_201 = arith.constant 0 : index
    %366 = vector.load %arg12[%c2_199, %c0_200, %c0_201] : memref<8x2x128xf32, #tpu.memory_space<vmem>>, vector<1x2x128xf32>
    %367 = vector.shape_cast %366 : vector<1x2x128xf32> to vector<2x128xf32>
    %c0_202 = arith.constant 0 : index
    %c0_203 = arith.constant 0 : index
    %368 = vector.load %arg5[%c0_202, %c0_203] : memref<128x512xf32, #tpu.memory_space<vmem>>, vector<128x512xf32>
    %cst_204 = arith.constant dense<0.000000e+00> : vector<2x512xf32>
    %369 = tpu.matmul %367, %368, %cst_204 {dimension_numbers = #tpu.dot_dimension_numbers<[1], [0], [0], [1], [0, 0, 1, 1], [], []>} : vector<2x128xf32>, vector<128x512xf32>, vector<2x512xf32> -> vector<2x512xf32>
    %c0_205 = arith.constant 0 : index
    %c0_206 = arith.constant 0 : index
    %370 = vector.load %arg7[%c0_205, %c0_206] : memref<1x512xf32, #tpu.memory_space<vmem>>, vector<1x512xf32>
    %371 = vector.broadcast %370 : vector<1x512xf32> to vector<2x512xf32>
    %372 = arith.addf %369, %371 : vector<2x512xf32>
    %c2_207 = arith.constant 2 : index
    %c0_208 = arith.constant 0 : index
    %c0_209 = arith.constant 0 : index
    %373 = vector.load %arg11[%c2_207, %c0_208, %c0_209] : memref<8x2x512xf32, #tpu.memory_space<vmem>>, vector<1x2x512xf32>
    %374 = vector.shape_cast %373 : vector<1x2x512xf32> to vector<2x512xf32>
    %375 = vector.shape_cast %372 : vector<2x512xf32> to vector<1x2x512xf32>
    tpu.vector_store %arg11[%c2_207, %c0_208, %c0_209], %375 {strides = array<i32>} : memref<8x2x512xf32, #tpu.memory_space<vmem>>, vector<1x2x512xf32>,
    %c3_210 = arith.constant 3 : index
    %c0_211 = arith.constant 0 : index
    %c0_212 = arith.constant 0 : index
    %376 = vector.load %arg12[%c3_210, %c0_211, %c0_212] : memref<8x2x128xf32, #tpu.memory_space<vmem>>, vector<1x2x128xf32>
    %377 = vector.shape_cast %376 : vector<1x2x128xf32> to vector<2x128xf32>
    %c0_213 = arith.constant 0 : index
    %c0_214 = arith.constant 0 : index
    %378 = vector.load %arg5[%c0_213, %c0_214] : memref<128x512xf32, #tpu.memory_space<vmem>>, vector<128x512xf32>
    %cst_215 = arith.constant dense<0.000000e+00> : vector<2x512xf32>
    %379 = tpu.matmul %377, %378, %cst_215 {dimension_numbers = #tpu.dot_dimension_numbers<[1], [0], [0], [1], [0, 0, 1, 1], [], []>} : vector<2x128xf32>, vector<128x512xf32>, vector<2x512xf32> -> vector<2x512xf32>
    %c0_216 = arith.constant 0 : index
    %c0_217 = arith.constant 0 : index
    %380 = vector.load %arg7[%c0_216, %c0_217] : memref<1x512xf32, #tpu.memory_space<vmem>>, vector<1x512xf32>
    %381 = vector.broadcast %380 : vector<1x512xf32> to vector<2x512xf32>
    %382 = arith.addf %379, %381 : vector<2x512xf32>
    %c3_218 = arith.constant 3 : index
    %c0_219 = arith.constant 0 : index
    %c0_220 = arith.constant 0 : index
    %383 = vector.load %arg11[%c3_218, %c0_219, %c0_220] : memref<8x2x512xf32, #tpu.memory_space<vmem>>, vector<1x2x512xf32>
    %384 = vector.shape_cast %383 : vector<1x2x512xf32> to vector<2x512xf32>
    %385 = vector.shape_cast %382 : vector<2x512xf32> to vector<1x2x512xf32>
    tpu.vector_store %arg11[%c3_218, %c0_219, %c0_220], %385 {strides = array<i32>} : memref<8x2x512xf32, #tpu.memory_space<vmem>>, vector<1x2x512xf32>,
    %c4_221 = arith.constant 4 : index
    %c0_222 = arith.constant 0 : index
    %c0_223 = arith.constant 0 : index
    %386 = vector.load %arg12[%c4_221, %c0_222, %c0_223] : memref<8x2x128xf32, #tpu.memory_space<vmem>>, vector<1x2x128xf32>
    %387 = vector.shape_cast %386 : vector<1x2x128xf32> to vector<2x128xf32>
    %c0_224 = arith.constant 0 : index
    %c0_225 = arith.constant 0 : index
    %388 = vector.load %arg5[%c0_224, %c0_225] : memref<128x512xf32, #tpu.memory_space<vmem>>, vector<128x512xf32>
    %cst_226 = arith.constant dense<0.000000e+00> : vector<2x512xf32>
    %389 = tpu.matmul %387, %388, %cst_226 {dimension_numbers = #tpu.dot_dimension_numbers<[1], [0], [0], [1], [0, 0, 1, 1], [], []>} : vector<2x128xf32>, vector<128x512xf32>, vector<2x512xf32> -> vector<2x512xf32>
    %c0_227 = arith.constant 0 : index
    %c0_228 = arith.constant 0 : index
    %390 = vector.load %arg7[%c0_227, %c0_228] : memref<1x512xf32, #tpu.memory_space<vmem>>, vector<1x512xf32>
    %391 = vector.broadcast %390 : vector<1x512xf32> to vector<2x512xf32>
    %392 = arith.addf %389, %391 : vector<2x512xf32>
    %c4_229 = arith.constant 4 : index
    %c0_230 = arith.constant 0 : index
    %c0_231 = arith.constant 0 : index
    %393 = vector.load %arg11[%c4_229, %c0_230, %c0_231] : memref<8x2x512xf32, #tpu.memory_space<vmem>>, vector<1x2x512xf32>
    %394 = vector.shape_cast %393 : vector<1x2x512xf32> to vector<2x512xf32>
    %395 = vector.shape_cast %392 : vector<2x512xf32> to vector<1x2x512xf32>
    tpu.vector_store %arg11[%c4_229, %c0_230, %c0_231], %395 {strides = array<i32>} : memref<8x2x512xf32, #tpu.memory_space<vmem>>, vector<1x2x512xf32>,
    %c5_232 = arith.constant 5 : index
    %c0_233 = arith.constant 0 : index
    %c0_234 = arith.constant 0 : index
    %396 = vector.load %arg12[%c5_232, %c0_233, %c0_234] : memref<8x2x128xf32, #tpu.memory_space<vmem>>, vector<1x2x128xf32>
    %397 = vector.shape_cast %396 : vector<1x2x128xf32> to vector<2x128xf32>
    %c0_235 = arith.constant 0 : index
    %c0_236 = arith.constant 0 : index
    %398 = vector.load %arg5[%c0_235, %c0_236] : memref<128x512xf32, #tpu.memory_space<vmem>>, vector<128x512xf32>
    %cst_237 = arith.constant dense<0.000000e+00> : vector<2x512xf32>
    %399 = tpu.matmul %397, %398, %cst_237 {dimension_numbers = #tpu.dot_dimension_numbers<[1], [0], [0], [1], [0, 0, 1, 1], [], []>} : vector<2x128xf32>, vector<128x512xf32>, vector<2x512xf32> -> vector<2x512xf32>
    %c0_238 = arith.constant 0 : index
    %c0_239 = arith.constant 0 : index
    %400 = vector.load %arg7[%c0_238, %c0_239] : memref<1x512xf32, #tpu.memory_space<vmem>>, vector<1x512xf32>
    %401 = vector.broadcast %400 : vector<1x512xf32> to vector<2x512xf32>
    %402 = arith.addf %399, %401 : vector<2x512xf32>
    %c5_240 = arith.constant 5 : index
    %c0_241 = arith.constant 0 : index
    %c0_242 = arith.constant 0 : index
    %403 = vector.load %arg11[%c5_240, %c0_241, %c0_242] : memref<8x2x512xf32, #tpu.memory_space<vmem>>, vector<1x2x512xf32>
    %404 = vector.shape_cast %403 : vector<1x2x512xf32> to vector<2x512xf32>
    %405 = vector.shape_cast %402 : vector<2x512xf32> to vector<1x2x512xf32>
    tpu.vector_store %arg11[%c5_240, %c0_241, %c0_242], %405 {strides = array<i32>} : memref<8x2x512xf32, #tpu.memory_space<vmem>>, vector<1x2x512xf32>,
    %c6_243 = arith.constant 6 : index
    %c0_244 = arith.constant 0 : index
    %c0_245 = arith.constant 0 : index
    %406 = vector.load %arg12[%c6_243, %c0_244, %c0_245] : memref<8x2x128xf32, #tpu.memory_space<vmem>>, vector<1x2x128xf32>
    %407 = vector.shape_cast %406 : vector<1x2x128xf32> to vector<2x128xf32>
    %c0_246 = arith.constant 0 : index
    %c0_247 = arith.constant 0 : index
    %408 = vector.load %arg5[%c0_246, %c0_247] : memref<128x512xf32, #tpu.memory_space<vmem>>, vector<128x512xf32>
    %cst_248 = arith.constant dense<0.000000e+00> : vector<2x512xf32>
    %409 = tpu.matmul %407, %408, %cst_248 {dimension_numbers = #tpu.dot_dimension_numbers<[1], [0], [0], [1], [0, 0, 1, 1], [], []>} : vector<2x128xf32>, vector<128x512xf32>, vector<2x512xf32> -> vector<2x512xf32>
    %c0_249 = arith.constant 0 : index
    %c0_250 = arith.constant 0 : index
    %410 = vector.load %arg7[%c0_249, %c0_250] : memref<1x512xf32, #tpu.memory_space<vmem>>, vector<1x512xf32>
    %411 = vector.broadcast %410 : vector<1x512xf32> to vector<2x512xf32>
    %412 = arith.addf %409, %411 : vector<2x512xf32>
    %c6_251 = arith.constant 6 : index
    %c0_252 = arith.constant 0 : index
    %c0_253 = arith.constant 0 : index
    %413 = vector.load %arg11[%c6_251, %c0_252, %c0_253] : memref<8x2x512xf32, #tpu.memory_space<vmem>>, vector<1x2x512xf32>
    %414 = vector.shape_cast %413 : vector<1x2x512xf32> to vector<2x512xf32>
    %415 = vector.shape_cast %412 : vector<2x512xf32> to vector<1x2x512xf32>
    tpu.vector_store %arg11[%c6_251, %c0_252, %c0_253], %415 {strides = array<i32>} : memref<8x2x512xf32, #tpu.memory_space<vmem>>, vector<1x2x512xf32>,
    %c7_254 = arith.constant 7 : index
    %c0_255 = arith.constant 0 : index
    %c0_256 = arith.constant 0 : index
    %416 = vector.load %arg12[%c7_254, %c0_255, %c0_256] : memref<8x2x128xf32, #tpu.memory_space<vmem>>, vector<1x2x128xf32>
    %417 = vector.shape_cast %416 : vector<1x2x128xf32> to vector<2x128xf32>
    %c0_257 = arith.constant 0 : index
    %c0_258 = arith.constant 0 : index
    %418 = vector.load %arg5[%c0_257, %c0_258] : memref<128x512xf32, #tpu.memory_space<vmem>>, vector<128x512xf32>
    %cst_259 = arith.constant dense<0.000000e+00> : vector<2x512xf32>
    %419 = tpu.matmul %417, %418, %cst_259 {dimension_numbers = #tpu.dot_dimension_numbers<[1], [0], [0], [1], [0, 0, 1, 1], [], []>} : vector<2x128xf32>, vector<128x512xf32>, vector<2x512xf32> -> vector<2x512xf32>
    %c0_260 = arith.constant 0 : index
    %c0_261 = arith.constant 0 : index
    %420 = vector.load %arg7[%c0_260, %c0_261] : memref<1x512xf32, #tpu.memory_space<vmem>>, vector<1x512xf32>
    %421 = vector.broadcast %420 : vector<1x512xf32> to vector<2x512xf32>
    %422 = arith.addf %419, %421 : vector<2x512xf32>
    %c7_262 = arith.constant 7 : index
    %c0_263 = arith.constant 0 : index
    %c0_264 = arith.constant 0 : index
    %423 = vector.load %arg11[%c7_262, %c0_263, %c0_264] : memref<8x2x512xf32, #tpu.memory_space<vmem>>, vector<1x2x512xf32>
    %424 = vector.shape_cast %423 : vector<1x2x512xf32> to vector<2x512xf32>
    %425 = vector.shape_cast %422 : vector<2x512xf32> to vector<1x2x512xf32>
    tpu.vector_store %arg11[%c7_262, %c0_263, %c0_264], %425 {strides = array<i32>} : memref<8x2x512xf32, #tpu.memory_space<vmem>>, vector<1x2x512xf32>,
    %cst_265 = arith.constant 0.000000e+00 : f32
    %426 = vector.broadcast %cst_265 : f32 to vector<2x128xf32>
    %cst_266 = arith.constant 0.000000e+00 : f32
    %427 = vector.broadcast %cst_266 : f32 to vector<2x128xf32>
    %c0_267 = arith.constant 0 : index
    %c0_268 = arith.constant 0 : index
    %c0_269 = arith.constant 0 : index
    %428 = vector.load %arg11[%c0_267, %c0_268, %c0_269] : memref<8x2x512xf32, #tpu.memory_space<vmem>>, vector<1x2x512xf32>
    %429 = vector.shape_cast %428 : vector<1x2x512xf32> to vector<2x512xf32>
    %c0_270 = arith.constant 0 : index
    %c0_271 = arith.constant 0 : index
    %430 = vector.load %arg6[%c0_270, %c0_271] : memref<128x512xf32, #tpu.memory_space<vmem>>, vector<128x512xf32>
    %cst_272 = arith.constant dense<0.000000e+00> : vector<2x512xf32>
    %431 = tpu.matmul %426, %430, %cst_272 {dimension_numbers = #tpu.dot_dimension_numbers<[1], [0], [0], [1], [0, 0, 1, 1], [], []>} : vector<2x128xf32>, vector<128x512xf32>, vector<2x512xf32> -> vector<2x512xf32>
    %432 = arith.addf %429, %431 : vector<2x512xf32>
    %433 = vector.extract_strided_slice %432 {offsets = [0, 0], sizes = [2, 128], strides = [1, 1]} : vector<2x512xf32> to vector<2x128xf32>
    %434 = arith.negf %433 : vector<2x128xf32>
    %435 = math.exp %434 : vector<2x128xf32>
    %cst_273 = arith.constant 1.000000e+00 : f32
    %436 = vector.broadcast %cst_273 : f32 to vector<2x128xf32>
    %437 = arith.addf %436, %435 : vector<2x128xf32>
    %438 = arith.divf %436, %437 : vector<2x128xf32>
    %439 = vector.extract_strided_slice %432 {offsets = [0, 128], sizes = [2, 128], strides = [1, 1]} : vector<2x512xf32> to vector<2x128xf32>
    %440 = arith.negf %439 : vector<2x128xf32>
    %441 = math.exp %440 : vector<2x128xf32>
    %cst_274 = arith.constant 1.000000e+00 : f32
    %442 = vector.broadcast %cst_274 : f32 to vector<2x128xf32>
    %443 = arith.addf %442, %441 : vector<2x128xf32>
    %444 = arith.divf %442, %443 : vector<2x128xf32>
    %445 = vector.extract_strided_slice %432 {offsets = [0, 256], sizes = [2, 128], strides = [1, 1]} : vector<2x512xf32> to vector<2x128xf32>
    %446 = math.tanh %445 : vector<2x128xf32>
    %447 = vector.extract_strided_slice %432 {offsets = [0, 384], sizes = [2, 128], strides = [1, 1]} : vector<2x512xf32> to vector<2x128xf32>
    %448 = arith.negf %447 : vector<2x128xf32>
    %449 = math.exp %448 : vector<2x128xf32>
    %cst_275 = arith.constant 1.000000e+00 : f32
    %450 = vector.broadcast %cst_275 : f32 to vector<2x128xf32>
    %451 = arith.addf %450, %449 : vector<2x128xf32>
    %452 = arith.divf %450, %451 : vector<2x128xf32>
    %453 = arith.mulf %444, %427 : vector<2x128xf32>
    %454 = arith.mulf %438, %446 : vector<2x128xf32>
    %455 = arith.addf %453, %454 : vector<2x128xf32>
    %456 = math.tanh %455 : vector<2x128xf32>
    %457 = arith.mulf %452, %456 : vector<2x128xf32>
    %c1_276 = arith.constant 1 : index
    %c0_277 = arith.constant 0 : index
    %c0_278 = arith.constant 0 : index
    %458 = vector.load %arg11[%c1_276, %c0_277, %c0_278] : memref<8x2x512xf32, #tpu.memory_space<vmem>>, vector<1x2x512xf32>
    %459 = vector.shape_cast %458 : vector<1x2x512xf32> to vector<2x512xf32>
    %c0_279 = arith.constant 0 : index
    %c0_280 = arith.constant 0 : index
    %460 = vector.load %arg6[%c0_279, %c0_280] : memref<128x512xf32, #tpu.memory_space<vmem>>, vector<128x512xf32>
    %cst_281 = arith.constant dense<0.000000e+00> : vector<2x512xf32>
    %461 = tpu.matmul %457, %460, %cst_281 {dimension_numbers = #tpu.dot_dimension_numbers<[1], [0], [0], [1], [0, 0, 1, 1], [], []>} : vector<2x128xf32>, vector<128x512xf32>, vector<2x512xf32> -> vector<2x512xf32>
    %462 = arith.addf %459, %461 : vector<2x512xf32>
    %463 = vector.extract_strided_slice %462 {offsets = [0, 0], sizes = [2, 128], strides = [1, 1]} : vector<2x512xf32> to vector<2x128xf32>
    %464 = arith.negf %463 : vector<2x128xf32>
    %465 = math.exp %464 : vector<2x128xf32>
    %cst_282 = arith.constant 1.000000e+00 : f32
    %466 = vector.broadcast %cst_282 : f32 to vector<2x128xf32>
    %467 = arith.addf %466, %465 : vector<2x128xf32>
    %468 = arith.divf %466, %467 : vector<2x128xf32>
    %469 = vector.extract_strided_slice %462 {offsets = [0, 128], sizes = [2, 128], strides = [1, 1]} : vector<2x512xf32> to vector<2x128xf32>
    %470 = arith.negf %469 : vector<2x128xf32>
    %471 = math.exp %470 : vector<2x128xf32>
    %cst_283 = arith.constant 1.000000e+00 : f32
    %472 = vector.broadcast %cst_283 : f32 to vector<2x128xf32>
    %473 = arith.addf %472, %471 : vector<2x128xf32>
    %474 = arith.divf %472, %473 : vector<2x128xf32>
    %475 = vector.extract_strided_slice %462 {offsets = [0, 256], sizes = [2, 128], strides = [1, 1]} : vector<2x512xf32> to vector<2x128xf32>
    %476 = math.tanh %475 : vector<2x128xf32>
    %477 = vector.extract_strided_slice %462 {offsets = [0, 384], sizes = [2, 128], strides = [1, 1]} : vector<2x512xf32> to vector<2x128xf32>
    %478 = arith.negf %477 : vector<2x128xf32>
    %479 = math.exp %478 : vector<2x128xf32>
    %cst_284 = arith.constant 1.000000e+00 : f32
    %480 = vector.broadcast %cst_284 : f32 to vector<2x128xf32>
    %481 = arith.addf %480, %479 : vector<2x128xf32>
    %482 = arith.divf %480, %481 : vector<2x128xf32>
    %483 = arith.mulf %474, %455 : vector<2x128xf32>
    %484 = arith.mulf %468, %476 : vector<2x128xf32>
    %485 = arith.addf %483, %484 : vector<2x128xf32>
    %486 = math.tanh %485 : vector<2x128xf32>
    %487 = arith.mulf %482, %486 : vector<2x128xf32>
    %c2_285 = arith.constant 2 : index
    %c0_286 = arith.constant 0 : index
    %c0_287 = arith.constant 0 : index
    %488 = vector.load %arg11[%c2_285, %c0_286, %c0_287] : memref<8x2x512xf32, #tpu.memory_space<vmem>>, vector<1x2x512xf32>
    %489 = vector.shape_cast %488 : vector<1x2x512xf32> to vector<2x512xf32>
    %c0_288 = arith.constant 0 : index
    %c0_289 = arith.constant 0 : index
    %490 = vector.load %arg6[%c0_288, %c0_289] : memref<128x512xf32, #tpu.memory_space<vmem>>, vector<128x512xf32>
    %cst_290 = arith.constant dense<0.000000e+00> : vector<2x512xf32>
    %491 = tpu.matmul %487, %490, %cst_290 {dimension_numbers = #tpu.dot_dimension_numbers<[1], [0], [0], [1], [0, 0, 1, 1], [], []>} : vector<2x128xf32>, vector<128x512xf32>, vector<2x512xf32> -> vector<2x512xf32>
    %492 = arith.addf %489, %491 : vector<2x512xf32>
    %493 = vector.extract_strided_slice %492 {offsets = [0, 0], sizes = [2, 128], strides = [1, 1]} : vector<2x512xf32> to vector<2x128xf32>
    %494 = arith.negf %493 : vector<2x128xf32>
    %495 = math.exp %494 : vector<2x128xf32>
    %cst_291 = arith.constant 1.000000e+00 : f32
    %496 = vector.broadcast %cst_291 : f32 to vector<2x128xf32>
    %497 = arith.addf %496, %495 : vector<2x128xf32>
    %498 = arith.divf %496, %497 : vector<2x128xf32>
    %499 = vector.extract_strided_slice %492 {offsets = [0, 128], sizes = [2, 128], strides = [1, 1]} : vector<2x512xf32> to vector<2x128xf32>
    %500 = arith.negf %499 : vector<2x128xf32>
    %501 = math.exp %500 : vector<2x128xf32>
    %cst_292 = arith.constant 1.000000e+00 : f32
    %502 = vector.broadcast %cst_292 : f32 to vector<2x128xf32>
    %503 = arith.addf %502, %501 : vector<2x128xf32>
    %504 = arith.divf %502, %503 : vector<2x128xf32>
    %505 = vector.extract_strided_slice %492 {offsets = [0, 256], sizes = [2, 128], strides = [1, 1]} : vector<2x512xf32> to vector<2x128xf32>
    %506 = math.tanh %505 : vector<2x128xf32>
    %507 = vector.extract_strided_slice %492 {offsets = [0, 384], sizes = [2, 128], strides = [1, 1]} : vector<2x512xf32> to vector<2x128xf32>
    %508 = arith.negf %507 : vector<2x128xf32>
    %509 = math.exp %508 : vector<2x128xf32>
    %cst_293 = arith.constant 1.000000e+00 : f32
    %510 = vector.broadcast %cst_293 : f32 to vector<2x128xf32>
    %511 = arith.addf %510, %509 : vector<2x128xf32>
    %512 = arith.divf %510, %511 : vector<2x128xf32>
    %513 = arith.mulf %504, %485 : vector<2x128xf32>
    %514 = arith.mulf %498, %506 : vector<2x128xf32>
    %515 = arith.addf %513, %514 : vector<2x128xf32>
    %516 = math.tanh %515 : vector<2x128xf32>
    %517 = arith.mulf %512, %516 : vector<2x128xf32>
    %c3_294 = arith.constant 3 : index
    %c0_295 = arith.constant 0 : index
    %c0_296 = arith.constant 0 : index
    %518 = vector.load %arg11[%c3_294, %c0_295, %c0_296] : memref<8x2x512xf32, #tpu.memory_space<vmem>>, vector<1x2x512xf32>
    %519 = vector.shape_cast %518 : vector<1x2x512xf32> to vector<2x512xf32>
    %c0_297 = arith.constant 0 : index
    %c0_298 = arith.constant 0 : index
    %520 = vector.load %arg6[%c0_297, %c0_298] : memref<128x512xf32, #tpu.memory_space<vmem>>, vector<128x512xf32>
    %cst_299 = arith.constant dense<0.000000e+00> : vector<2x512xf32>
    %521 = tpu.matmul %517, %520, %cst_299 {dimension_numbers = #tpu.dot_dimension_numbers<[1], [0], [0], [1], [0, 0, 1, 1], [], []>} : vector<2x128xf32>, vector<128x512xf32>, vector<2x512xf32> -> vector<2x512xf32>
    %522 = arith.addf %519, %521 : vector<2x512xf32>
    %523 = vector.extract_strided_slice %522 {offsets = [0, 0], sizes = [2, 128], strides = [1, 1]} : vector<2x512xf32> to vector<2x128xf32>
    %524 = arith.negf %523 : vector<2x128xf32>
    %525 = math.exp %524 : vector<2x128xf32>
    %cst_300 = arith.constant 1.000000e+00 : f32
    %526 = vector.broadcast %cst_300 : f32 to vector<2x128xf32>
    %527 = arith.addf %526, %525 : vector<2x128xf32>
    %528 = arith.divf %526, %527 : vector<2x128xf32>
    %529 = vector.extract_strided_slice %522 {offsets = [0, 128], sizes = [2, 128], strides = [1, 1]} : vector<2x512xf32> to vector<2x128xf32>
    %530 = arith.negf %529 : vector<2x128xf32>
    %531 = math.exp %530 : vector<2x128xf32>
    %cst_301 = arith.constant 1.000000e+00 : f32
    %532 = vector.broadcast %cst_301 : f32 to vector<2x128xf32>
    %533 = arith.addf %532, %531 : vector<2x128xf32>
    %534 = arith.divf %532, %533 : vector<2x128xf32>
    %535 = vector.extract_strided_slice %522 {offsets = [0, 256], sizes = [2, 128], strides = [1, 1]} : vector<2x512xf32> to vector<2x128xf32>
    %536 = math.tanh %535 : vector<2x128xf32>
    %537 = vector.extract_strided_slice %522 {offsets = [0, 384], sizes = [2, 128], strides = [1, 1]} : vector<2x512xf32> to vector<2x128xf32>
    %538 = arith.negf %537 : vector<2x128xf32>
    %539 = math.exp %538 : vector<2x128xf32>
    %cst_302 = arith.constant 1.000000e+00 : f32
    %540 = vector.broadcast %cst_302 : f32 to vector<2x128xf32>
    %541 = arith.addf %540, %539 : vector<2x128xf32>
    %542 = arith.divf %540, %541 : vector<2x128xf32>
    %543 = arith.mulf %534, %515 : vector<2x128xf32>
    %544 = arith.mulf %528, %536 : vector<2x128xf32>
    %545 = arith.addf %543, %544 : vector<2x128xf32>
    %546 = math.tanh %545 : vector<2x128xf32>
    %547 = arith.mulf %542, %546 : vector<2x128xf32>
    %c4_303 = arith.constant 4 : index
    %c0_304 = arith.constant 0 : index
    %c0_305 = arith.constant 0 : index
    %548 = vector.load %arg11[%c4_303, %c0_304, %c0_305] : memref<8x2x512xf32, #tpu.memory_space<vmem>>, vector<1x2x512xf32>
    %549 = vector.shape_cast %548 : vector<1x2x512xf32> to vector<2x512xf32>
    %c0_306 = arith.constant 0 : index
    %c0_307 = arith.constant 0 : index
    %550 = vector.load %arg6[%c0_306, %c0_307] : memref<128x512xf32, #tpu.memory_space<vmem>>, vector<128x512xf32>
    %cst_308 = arith.constant dense<0.000000e+00> : vector<2x512xf32>
    %551 = tpu.matmul %547, %550, %cst_308 {dimension_numbers = #tpu.dot_dimension_numbers<[1], [0], [0], [1], [0, 0, 1, 1], [], []>} : vector<2x128xf32>, vector<128x512xf32>, vector<2x512xf32> -> vector<2x512xf32>
    %552 = arith.addf %549, %551 : vector<2x512xf32>
    %553 = vector.extract_strided_slice %552 {offsets = [0, 0], sizes = [2, 128], strides = [1, 1]} : vector<2x512xf32> to vector<2x128xf32>
    %554 = arith.negf %553 : vector<2x128xf32>
    %555 = math.exp %554 : vector<2x128xf32>
    %cst_309 = arith.constant 1.000000e+00 : f32
    %556 = vector.broadcast %cst_309 : f32 to vector<2x128xf32>
    %557 = arith.addf %556, %555 : vector<2x128xf32>
    %558 = arith.divf %556, %557 : vector<2x128xf32>
    %559 = vector.extract_strided_slice %552 {offsets = [0, 128], sizes = [2, 128], strides = [1, 1]} : vector<2x512xf32> to vector<2x128xf32>
    %560 = arith.negf %559 : vector<2x128xf32>
    %561 = math.exp %560 : vector<2x128xf32>
    %cst_310 = arith.constant 1.000000e+00 : f32
    %562 = vector.broadcast %cst_310 : f32 to vector<2x128xf32>
    %563 = arith.addf %562, %561 : vector<2x128xf32>
    %564 = arith.divf %562, %563 : vector<2x128xf32>
    %565 = vector.extract_strided_slice %552 {offsets = [0, 256], sizes = [2, 128], strides = [1, 1]} : vector<2x512xf32> to vector<2x128xf32>
    %566 = math.tanh %565 : vector<2x128xf32>
    %567 = vector.extract_strided_slice %552 {offsets = [0, 384], sizes = [2, 128], strides = [1, 1]} : vector<2x512xf32> to vector<2x128xf32>
    %568 = arith.negf %567 : vector<2x128xf32>
    %569 = math.exp %568 : vector<2x128xf32>
    %cst_311 = arith.constant 1.000000e+00 : f32
    %570 = vector.broadcast %cst_311 : f32 to vector<2x128xf32>
    %571 = arith.addf %570, %569 : vector<2x128xf32>
    %572 = arith.divf %570, %571 : vector<2x128xf32>
    %573 = arith.mulf %564, %545 : vector<2x128xf32>
    %574 = arith.mulf %558, %566 : vector<2x128xf32>
    %575 = arith.addf %573, %574 : vector<2x128xf32>
    %576 = math.tanh %575 : vector<2x128xf32>
    %577 = arith.mulf %572, %576 : vector<2x128xf32>
    %c5_312 = arith.constant 5 : index
    %c0_313 = arith.constant 0 : index
    %c0_314 = arith.constant 0 : index
    %578 = vector.load %arg11[%c5_312, %c0_313, %c0_314] : memref<8x2x512xf32, #tpu.memory_space<vmem>>, vector<1x2x512xf32>
    %579 = vector.shape_cast %578 : vector<1x2x512xf32> to vector<2x512xf32>
    %c0_315 = arith.constant 0 : index
    %c0_316 = arith.constant 0 : index
    %580 = vector.load %arg6[%c0_315, %c0_316] : memref<128x512xf32, #tpu.memory_space<vmem>>, vector<128x512xf32>
    %cst_317 = arith.constant dense<0.000000e+00> : vector<2x512xf32>
    %581 = tpu.matmul %577, %580, %cst_317 {dimension_numbers = #tpu.dot_dimension_numbers<[1], [0], [0], [1], [0, 0, 1, 1], [], []>} : vector<2x128xf32>, vector<128x512xf32>, vector<2x512xf32> -> vector<2x512xf32>
    %582 = arith.addf %579, %581 : vector<2x512xf32>
    %583 = vector.extract_strided_slice %582 {offsets = [0, 0], sizes = [2, 128], strides = [1, 1]} : vector<2x512xf32> to vector<2x128xf32>
    %584 = arith.negf %583 : vector<2x128xf32>
    %585 = math.exp %584 : vector<2x128xf32>
    %cst_318 = arith.constant 1.000000e+00 : f32
    %586 = vector.broadcast %cst_318 : f32 to vector<2x128xf32>
    %587 = arith.addf %586, %585 : vector<2x128xf32>
    %588 = arith.divf %586, %587 : vector<2x128xf32>
    %589 = vector.extract_strided_slice %582 {offsets = [0, 128], sizes = [2, 128], strides = [1, 1]} : vector<2x512xf32> to vector<2x128xf32>
    %590 = arith.negf %589 : vector<2x128xf32>
    %591 = math.exp %590 : vector<2x128xf32>
    %cst_319 = arith.constant 1.000000e+00 : f32
    %592 = vector.broadcast %cst_319 : f32 to vector<2x128xf32>
    %593 = arith.addf %592, %591 : vector<2x128xf32>
    %594 = arith.divf %592, %593 : vector<2x128xf32>
    %595 = vector.extract_strided_slice %582 {offsets = [0, 256], sizes = [2, 128], strides = [1, 1]} : vector<2x512xf32> to vector<2x128xf32>
    %596 = math.tanh %595 : vector<2x128xf32>
    %597 = vector.extract_strided_slice %582 {offsets = [0, 384], sizes = [2, 128], strides = [1, 1]} : vector<2x512xf32> to vector<2x128xf32>
    %598 = arith.negf %597 : vector<2x128xf32>
    %599 = math.exp %598 : vector<2x128xf32>
    %cst_320 = arith.constant 1.000000e+00 : f32
    %600 = vector.broadcast %cst_320 : f32 to vector<2x128xf32>
    %601 = arith.addf %600, %599 : vector<2x128xf32>
    %602 = arith.divf %600, %601 : vector<2x128xf32>
    %603 = arith.mulf %594, %575 : vector<2x128xf32>
    %604 = arith.mulf %588, %596 : vector<2x128xf32>
    %605 = arith.addf %603, %604 : vector<2x128xf32>
    %606 = math.tanh %605 : vector<2x128xf32>
    %607 = arith.mulf %602, %606 : vector<2x128xf32>
    %c6_321 = arith.constant 6 : index
    %c0_322 = arith.constant 0 : index
    %c0_323 = arith.constant 0 : index
    %608 = vector.load %arg11[%c6_321, %c0_322, %c0_323] : memref<8x2x512xf32, #tpu.memory_space<vmem>>, vector<1x2x512xf32>
    %609 = vector.shape_cast %608 : vector<1x2x512xf32> to vector<2x512xf32>
    %c0_324 = arith.constant 0 : index
    %c0_325 = arith.constant 0 : index
    %610 = vector.load %arg6[%c0_324, %c0_325] : memref<128x512xf32, #tpu.memory_space<vmem>>, vector<128x512xf32>
    %cst_326 = arith.constant dense<0.000000e+00> : vector<2x512xf32>
    %611 = tpu.matmul %607, %610, %cst_326 {dimension_numbers = #tpu.dot_dimension_numbers<[1], [0], [0], [1], [0, 0, 1, 1], [], []>} : vector<2x128xf32>, vector<128x512xf32>, vector<2x512xf32> -> vector<2x512xf32>
    %612 = arith.addf %609, %611 : vector<2x512xf32>
    %613 = vector.extract_strided_slice %612 {offsets = [0, 0], sizes = [2, 128], strides = [1, 1]} : vector<2x512xf32> to vector<2x128xf32>
    %614 = arith.negf %613 : vector<2x128xf32>
    %615 = math.exp %614 : vector<2x128xf32>
    %cst_327 = arith.constant 1.000000e+00 : f32
    %616 = vector.broadcast %cst_327 : f32 to vector<2x128xf32>
    %617 = arith.addf %616, %615 : vector<2x128xf32>
    %618 = arith.divf %616, %617 : vector<2x128xf32>
    %619 = vector.extract_strided_slice %612 {offsets = [0, 128], sizes = [2, 128], strides = [1, 1]} : vector<2x512xf32> to vector<2x128xf32>
    %620 = arith.negf %619 : vector<2x128xf32>
    %621 = math.exp %620 : vector<2x128xf32>
    %cst_328 = arith.constant 1.000000e+00 : f32
    %622 = vector.broadcast %cst_328 : f32 to vector<2x128xf32>
    %623 = arith.addf %622, %621 : vector<2x128xf32>
    %624 = arith.divf %622, %623 : vector<2x128xf32>
    %625 = vector.extract_strided_slice %612 {offsets = [0, 256], sizes = [2, 128], strides = [1, 1]} : vector<2x512xf32> to vector<2x128xf32>
    %626 = math.tanh %625 : vector<2x128xf32>
    %627 = vector.extract_strided_slice %612 {offsets = [0, 384], sizes = [2, 128], strides = [1, 1]} : vector<2x512xf32> to vector<2x128xf32>
    %628 = arith.negf %627 : vector<2x128xf32>
    %629 = math.exp %628 : vector<2x128xf32>
    %cst_329 = arith.constant 1.000000e+00 : f32
    %630 = vector.broadcast %cst_329 : f32 to vector<2x128xf32>
    %631 = arith.addf %630, %629 : vector<2x128xf32>
    %632 = arith.divf %630, %631 : vector<2x128xf32>
    %633 = arith.mulf %624, %605 : vector<2x128xf32>
    %634 = arith.mulf %618, %626 : vector<2x128xf32>
    %635 = arith.addf %633, %634 : vector<2x128xf32>
    %636 = math.tanh %635 : vector<2x128xf32>
    %637 = arith.mulf %632, %636 : vector<2x128xf32>
    %c7_330 = arith.constant 7 : index
    %c0_331 = arith.constant 0 : index
    %c0_332 = arith.constant 0 : index
    %638 = vector.load %arg11[%c7_330, %c0_331, %c0_332] : memref<8x2x512xf32, #tpu.memory_space<vmem>>, vector<1x2x512xf32>
    %639 = vector.shape_cast %638 : vector<1x2x512xf32> to vector<2x512xf32>
    %c0_333 = arith.constant 0 : index
    %c0_334 = arith.constant 0 : index
    %640 = vector.load %arg6[%c0_333, %c0_334] : memref<128x512xf32, #tpu.memory_space<vmem>>, vector<128x512xf32>
    %cst_335 = arith.constant dense<0.000000e+00> : vector<2x512xf32>
    %641 = tpu.matmul %637, %640, %cst_335 {dimension_numbers = #tpu.dot_dimension_numbers<[1], [0], [0], [1], [0, 0, 1, 1], [], []>} : vector<2x128xf32>, vector<128x512xf32>, vector<2x512xf32> -> vector<2x512xf32>
    %642 = arith.addf %639, %641 : vector<2x512xf32>
    %643 = vector.extract_strided_slice %642 {offsets = [0, 0], sizes = [2, 128], strides = [1, 1]} : vector<2x512xf32> to vector<2x128xf32>
    %644 = arith.negf %643 : vector<2x128xf32>
    %645 = math.exp %644 : vector<2x128xf32>
    %cst_336 = arith.constant 1.000000e+00 : f32
    %646 = vector.broadcast %cst_336 : f32 to vector<2x128xf32>
    %647 = arith.addf %646, %645 : vector<2x128xf32>
    %648 = arith.divf %646, %647 : vector<2x128xf32>
    %649 = vector.extract_strided_slice %642 {offsets = [0, 128], sizes = [2, 128], strides = [1, 1]} : vector<2x512xf32> to vector<2x128xf32>
    %650 = arith.negf %649 : vector<2x128xf32>
    %651 = math.exp %650 : vector<2x128xf32>
    %cst_337 = arith.constant 1.000000e+00 : f32
    %652 = vector.broadcast %cst_337 : f32 to vector<2x128xf32>
    %653 = arith.addf %652, %651 : vector<2x128xf32>
    %654 = arith.divf %652, %653 : vector<2x128xf32>
    %655 = vector.extract_strided_slice %642 {offsets = [0, 256], sizes = [2, 128], strides = [1, 1]} : vector<2x512xf32> to vector<2x128xf32>
    %656 = math.tanh %655 : vector<2x128xf32>
    %657 = vector.extract_strided_slice %642 {offsets = [0, 384], sizes = [2, 128], strides = [1, 1]} : vector<2x512xf32> to vector<2x128xf32>
    %658 = arith.negf %657 : vector<2x128xf32>
    %659 = math.exp %658 : vector<2x128xf32>
    %cst_338 = arith.constant 1.000000e+00 : f32
    %660 = vector.broadcast %cst_338 : f32 to vector<2x128xf32>
    %661 = arith.addf %660, %659 : vector<2x128xf32>
    %662 = arith.divf %660, %661 : vector<2x128xf32>
    %663 = arith.mulf %654, %635 : vector<2x128xf32>
    %664 = arith.mulf %648, %656 : vector<2x128xf32>
    %665 = arith.addf %663, %664 : vector<2x128xf32>
    %666 = math.tanh %665 : vector<2x128xf32>
    %667 = arith.mulf %662, %666 : vector<2x128xf32>
    %c0_339 = arith.constant 0 : index
    %c0_340 = arith.constant 0 : index
    %668 = vector.load %arg8[%c0_339, %c0_340] : memref<128x128xf32, #tpu.memory_space<vmem>>, vector<128x128xf32>
    %cst_341 = arith.constant dense<0.000000e+00> : vector<2x128xf32>
    %669 = tpu.matmul %667, %668, %cst_341 {dimension_numbers = #tpu.dot_dimension_numbers<[1], [0], [0], [1], [0, 0, 1, 1], [], []>} : vector<2x128xf32>, vector<128x128xf32>, vector<2x128xf32> -> vector<2x128xf32>
    %c0_342 = arith.constant 0 : index
    %c0_343 = arith.constant 0 : index
    %670 = vector.load %arg9[%c0_342, %c0_343] : memref<1x128xf32, #tpu.memory_space<vmem>>, vector<1x128xf32>
    %671 = vector.broadcast %670 : vector<1x128xf32> to vector<2x128xf32>
    %672 = arith.addf %669, %671 : vector<2x128xf32>
    %c0_344 = arith.constant 0 : index
    %c0_345 = arith.constant 0 : index
    %673 = vector.load %arg10[%c0_344, %c0_345] : memref<2x128xf32, #tpu.memory_space<vmem>>, vector<2x128xf32>
    tpu.vector_store %arg10[%c0_344, %c0_345], %672 {strides = array<i32>} : memref<2x128xf32, #tpu.memory_space<vmem>>, vector<2x128xf32>,
    return
  }
  func.func @transform_0(%arg0: i32) -> (i32, i32, i32) {
    %c0_i32 = arith.constant 0 : i32
    %c0_i32_0 = arith.constant 0 : i32
    %c0_i32_1 = arith.constant 0 : i32
    return %c0_i32, %arg0, %c0_i32_0 : i32, i32, i32
  }
  func.func @transform_1(%arg0: i32) -> (i32, i32) {
    %c0_i32 = arith.constant 0 : i32
    %c0_i32_0 = arith.constant 0 : i32
    %c0_i32_1 = arith.constant 0 : i32
    return %c0_i32, %c0_i32_0 : i32, i32
  }
  func.func @transform_2(%arg0: i32) -> (i32, i32) {
    %c0_i32 = arith.constant 0 : i32
    %c0_i32_0 = arith.constant 0 : i32
    %c0_i32_1 = arith.constant 0 : i32
    return %c0_i32, %c0_i32_0 : i32, i32
  }
  func.func @transform_3(%arg0: i32) -> (i32, i32) {
    %c0_i32 = arith.constant 0 : i32
    %c0_i32_0 = arith.constant 0 : i32
    %c0_i32_1 = arith.constant 0 : i32
    return %c0_i32, %c0_i32_0 : i32, i32
  }
  func.func @transform_4(%arg0: i32) -> (i32, i32) {
    %c0_i32 = arith.constant 0 : i32
    %c0_i32_0 = arith.constant 0 : i32
    %c0_i32_1 = arith.constant 0 : i32
    return %c0_i32, %c0_i32_0 : i32, i32
  }
  func.func @transform_5(%arg0: i32) -> (i32, i32) {
    %c0_i32 = arith.constant 0 : i32
    %c0_i32_0 = arith.constant 0 : i32
    %c0_i32_1 = arith.constant 0 : i32
    return %c0_i32, %c0_i32_0 : i32, i32
  }
  func.func @transform_6(%arg0: i32) -> (i32, i32) {
    %c0_i32 = arith.constant 0 : i32
    %c0_i32_0 = arith.constant 0 : i32
    %c0_i32_1 = arith.constant 0 : i32
    return %c0_i32, %c0_i32_0 : i32, i32
  }
  func.func @transform_7(%arg0: i32) -> (i32, i32) {
    %c0_i32 = arith.constant 0 : i32
    %c0_i32_0 = arith.constant 0 : i32
    %c0_i32_1 = arith.constant 0 : i32
    return %c0_i32, %c0_i32_0 : i32, i32
  }
  func.func @transform_8(%arg0: i32) -> (i32, i32) {
    %c0_i32 = arith.constant 0 : i32
    %c0_i32_0 = arith.constant 0 : i32
    %c0_i32_1 = arith.constant 0 : i32
    return %c0_i32, %c0_i32_0 : i32, i32
  }
  func.func @transform_9(%arg0: i32) -> (i32, i32) {
    %c0_i32 = arith.constant 0 : i32
    %c0_i32_0 = arith.constant 0 : i32
    return %arg0, %c0_i32 : i32, i32
  }
}

</mosaic_0001>

<bundles_post_ra>
// kernel: net_forward.1
= control target key start
LH: loop header
LB: loop body
LE: loop exit
PB: predicated region body
PF: predicated region fallthrough
CT: control target
= control target key end

     0   :  { %14 = vsyncpa [#allocation5], 0  ;;  %s11162_s0 = inlined_call_operand.vmem [shape: f32[8,2,4], index: 0, kind: input, shape index: {}]   ;;  %s11163_s1 = inlined_call_operand.vmem [shape: f32[4,512], index: 1, kind: input, shape index: {}]   ;;  %s11164_s2 = inlined_call_operand.hbm [shape: f32[128,512], index: 2, kind: input, shape index: {}]   ;;  %s11165_s3 = inlined_call_operand.vmem [shape: f32[1,512], index: 3, kind: input, shape index: {}]   ;;  %s11166_s4 = inlined_call_operand.hbm [shape: f32[128,512], index: 4, kind: input, shape index: {}]   ;;  %s11167_s5 = inlined_call_operand.hbm [shape: f32[128,512], index: 5, kind: input, shape index: {}]   ;;  %s11168_s6 = inlined_call_operand.vmem [shape: f32[1,512], index: 6, kind: input, shape index: {}]   ;;  %s11169_s7 = inlined_call_operand.hbm [shape: f32[128,128], index: 7, kind: input, shape index: {}]   ;;  %s11170_s8 = inlined_call_operand.vmem [shape: f32[1,128], index: 8, kind: input, shape index: {}]   ;;  %s11171_s9 = inlined_call_operand.vmem [shape: f32[2,128], index: 9, kind: output, shape index: {}]  }
   0x1   :  { %15 = vsyncpa [#allocation7], 0 }
   0x2   :  { %16 = vsyncpa [#allocation10], 0  ;;  %s8178_s30 = smov [#allocation6]   ;;  %s8179_s11 = smov [#allocation4]  }
   0x3   :  { %s40_s10 = sshll.u32 %s8178_s30, 4  ;;  %s26_s12 = sshll.u32 %s8179_s11, 4  ;;  %s41_s10 = int_to_ptr.vmem [resolvable:$true] %s40_s10  ;;  %s27_s12 = int_to_ptr.vmem [resolvable:$true] %s26_s12 }
   0x4   :  { %s8100_s13 = scalar_lea.vmem %s41_s10, 8192  ;;  %p8105_p1 = scmp.lt.s32.totalorder %s41_s10, %s41_s10 }
   0x5   :  { %p8101_p0 = scmp.ne.s32.totalorder %s41_s10, %s8100_s13  ;;  %p8106_p2 = scmp.lt.s32.totalorder %s8100_s13, %s8100_s13 }
   0x7   :  { %p8107_p3 = por %p8106_p2, %p8105_p1 }
   0x9   :  { %p8108_p4 = pnand %p8107_p3, %p8101_p0 }
   0xb   :  { %8111 = shalt.err (!%p8108_p4)
}
   0xc   :  { %s8180_s14 = smov 512   ;;  %s8181_s15 = smov 32  }
   0xd   :  { %46 = dma.hbm_to_vmem [thread:$0]  %s11166_s4, 8192, %s41_s10, [#allocation7], %s8180_s14, %s8180_s14, %s8181_s15  }
   0xe   :  { %s8120_s18 = scalar_lea.vmem %s27_s12, 8192  ;;  %p8125_p6 = scmp.lt.s32.totalorder %s27_s12, %s27_s12 }
   0xf   :  { %p8121_p5 = scmp.ne.s32.totalorder %s27_s12, %s8120_s18  ;;  %p8126_p7 = scmp.lt.s32.totalorder %s8120_s18, %s8120_s18 }
  0x11   :  { %p8127_p8 = por %p8126_p7, %p8125_p6 }
  0x13   :  { %p8128_p9 = pnand %p8127_p8, %p8121_p5 }
  0x15   :  { %8131 = shalt.err (!%p8128_p9)
}
  0x16   :  { %32 = dma.hbm_to_vmem [thread:$0]  %s11164_s2, 8192, %s27_s12, [#allocation5], %s8180_s14, %s8180_s14, %s8181_s15  }
  0x17   :  { %s8182_s21 = smov [#allocation8]   ;;  %s8183_s23 = smov [#allocation9]  }
  0x18   :  { %s52_s22 = sshll.u32 %s8182_s21, 4  ;;  %s66_s24 = sshll.u32 %s8183_s23, 4  ;;  %s53_s22 = int_to_ptr.vmem [resolvable:$true] %s52_s22  ;;  %s67_s24 = int_to_ptr.vmem [resolvable:$true] %s66_s24 }
  0x19   :  { %s8140_s25 = scalar_lea.vmem %s53_s22, 8192  ;;  %p8145_p11 = scmp.lt.s32.totalorder %s53_s22, %s53_s22 }
  0x1a   :  { %p8141_p10 = scmp.ne.s32.totalorder %s53_s22, %s8140_s25  ;;  %p8146_p12 = scmp.lt.s32.totalorder %s8140_s25, %s8140_s25 }
  0x1c   :  { %p8147_p13 = por %p8146_p12, %p8145_p11 }
  0x1e   :  { %p8148_p0 = pnand %p8147_p13, %p8141_p10 }
  0x20   :  { %8151 = shalt.err (!%p8148_p0)
}
  0x21   :  { %58 = dma.hbm_to_vmem [thread:$0]  %s11167_s5, 8192, %s53_s22, [#allocation7], %s8180_s14, %s8180_s14, %s8181_s15  }
  0x22   :  { %s8160_s27 = scalar_lea.vmem %s67_s24, 2048  ;;  %p8165_p2 = scmp.lt.s32.totalorder %s67_s24, %s67_s24 }
  0x23   :  { %p8161_p1 = scmp.ne.s32.totalorder %s67_s24, %s8160_s27  ;;  %p8166_p3 = scmp.lt.s32.totalorder %s8160_s27, %s8160_s27 }
  0x25   :  { %p8167_p4 = por %p8166_p3, %p8165_p2 }
  0x27   :  { %p8168_p5 = pnand %p8167_p4, %p8161_p1 }
  0x29   :  { %8171 = shalt.err (!%p8168_p5)
}
  0x2a   :  { %s8184_s2 = smov 128   ;;  %s8185_s28 = smov 8  }
  0x2b   :  { %72 = dma.hbm_to_vmem [thread:$0]  %s11169_s7, 2048, %s67_s24, [#allocation10], %s8184_s2, %s8184_s2, %s8185_s28  }
  0x2c   :  { %8172 = dma.done.wait [#allocation5], 8192  }
  0x2d   :  { %8173 = vsyncadd [#allocation5], 4294959104 }
  0x2e   :  { %8174 = dma.done.wait [#allocation7], 16384  }
  0x2f   :  { %8175 = vsyncadd [#allocation7], 4294950912 }
  0x30   :  { %8176 = dma.done.wait [#allocation10], 2048  }
  0x31   :  { %8177 = vsyncadd [#allocation10], 4294965248  ;;  %v11172_v0 = vmov 0.0   ;;  %v8256_v1 = vld [vmem:[%s11163_s1] sm:$0xff]  ;;  %vm120_vm0 = vcmask 1043456   ;;  %v8261_v2 = vld [vmem:[%s11163_s1 + $0x8] sm:$0xff] }
  0x32   :  { %193 = vmatprep.mubr.f32.mxu1 %v11172_v0  ;;  %1020 = vmatprep.mubr.f32.mxu0 %v11172_v0  ;;  %v114_v3 = vcombine.high %v8256_v1, %v8256_v1  ;;  %v8267_v4 = vcombine.high %v8261_v2, %v8261_v2  ;;  %v87_v5 = vld [vmem:[%s11162_s0] sm:$0x3]  ;;  %vm116_vm1 = vcmask 31744   ;;  %v8281_v6 = vld [vmem:[%s11162_s0 + $0x8] sm:$0x3]  ;;  %v8330_v10 = vld [vmem:[#allocation4 + $0x1e8] sm:$0xff] }
  0x33   :  { %v8297_v7 = vld [vmem:[%s11162_s0 + $0xa] sm:$0x3]  ;;  %v7609_v8 = vld [vmem:[%s11162_s0 + $0x2] sm:$0x3]  ;;  %v8317_v9 = vld [vmem:[%s11162_s0 + $0xc] sm:$0x3] }
  0x34   :  { %7603 = vmatprep.subr.msk.mxu1 %vm120_vm0, %v114_v3  ;;  %7631 = vmatprep.subr.msk.mxu0 %vm120_vm0, %v114_v3  ;;  %v8338_v11 = vld [vmem:[%s11162_s0 + $0xe] sm:$0x3]  ;;  %v7616_v12 = vld [vmem:[%s11162_s0 + $0x4] sm:$0x3]  ;;  %v8346_v13 = vld [vmem:[#allocation4 + $0x1e0] sm:$0xff]  ;;  %vm8188_vm2 = vmmov 0  }
  0x35   :  { %7604 = vmatpush1.msk.msra.mxu1 %vm120_vm0, %v8256_v1  ;;  %7632 = vmatpush1.msk.msra.mxu0 %vm120_vm0, %v8256_v1  ;;  %v8353_v14 = vld [vmem:[#allocation4 + $0x1c8] sm:$0xff]  ;;  %v8357_v15 = vld [vmem:[#allocation4 + $0x1c0] sm:$0xff]  ;;  %v7623_v19 = vld [vmem:[%s11162_s0 + $0x6] sm:$0x3] }
  0x36   :  { %7605 = vmatmul.mubr.msk.f32.vlgmr.msra.gmra.mxu1 %vm116_vm1, %v87_v5  ;;  %7606 = vmatprep.subr.msk.mxu1 %vm120_vm0, %v8267_v4  ;;  %v8362_v16 = vld [vmem:[#allocation4 + $0x1a8] sm:$0xff]  ;;  %v8367_v17 = vld [vmem:[#allocation4 + $0x1a0] sm:$0xff]  ;;  %v8447_v33 = vld [vmem:[#allocation4 + $0x1f8] sm:$0xff] }
  0x37   :  { %7607 = vmatpush1.msk.msra.mxu1 %vm120_vm0, %v8261_v2  ;;  %264 = vmatprep.mubr.f32.mxu1 %v11172_v0  ;;  %v8372_v18 = vld [vmem:[#allocation4 + $0x188] sm:$0xff]  ;;  %v8380_v20 = vld [vmem:[#allocation4 + $0x180] sm:$0xff]  ;;  %v8463_v37 = vld [vmem:[#allocation4 + $0x1f0] sm:$0xff] }
  0x38   :  { %7610 = vmatprep.subr.msk.mxu1 %vm120_vm0, %v114_v3  ;;  %7633 = vmatmul.mubr.msk.f32.vlgmr.msra.gmra.mxu0 %vm116_vm1, %v8281_v6  ;;  %v8386_v21 = vld [vmem:[#allocation4 + $0x168] sm:$0xff]  ;;  %v8390_v22 = vld [vmem:[#allocation4 + $0x160] sm:$0xff]  ;;  %v8468_v39 = vld [vmem:[#allocation4 + $0x1d8] sm:$0xff] }
  0x39   :  { %7638 = vmatprep.subr.msk.mxu0 %vm120_vm0, %v114_v3  ;;  %1227 = vmatprep.mubr.f32.mxu0 %v11172_v0  ;;  %v8395_v23 = vld [vmem:[#allocation4 + $0x148] sm:$0xff]  ;;  %v8401_v24 = vld [vmem:[#allocation4 + $0x140] sm:$0xff]  ;;  %v8475_v41 = vld [vmem:[#allocation4 + $0x1d0] sm:$0xff] }
  0x3a   :  { %7608 = vmatmul.mubr.msk.f32.vlgmr.msra.gmra.mxu1 %vm116_vm1, %v87_v5  ;;  %7639 = vmatpush1.msk.msra.mxu0 %vm120_vm0, %v8256_v1  ;;  %v8405_v25 = vld [vmem:[#allocation4 + $0x128] sm:$0xff]  ;;  %v8410_v26 = vld [vmem:[#allocation4 + $0x120] sm:$0xff]  ;;  %v8481_v43 = vld [vmem:[#allocation4 + $0x1b8] sm:$0xff] }
  0x3b   :  { %7611 = vmatpush1.msk.msra.mxu1 %vm120_vm0, %v8256_v1  ;;  %399 = vmatprep.mubr.f32.mxu1 %v11172_v0  ;;  %11471 = vst [vmem:[#allocation14_spill] sm:$0xff] %v8405_v25  ;;  %11472 = vst [vmem:[#allocation15_spill] sm:$0xff] %v8410_v26  ;;  %v8416_v27 = vld [vmem:[#allocation4 + $0x108] sm:$0xff]  ;;  %v8421_v28 = vld [vmem:[#allocation4 + $0x100] sm:$0xff] }
  0x3c   :  { %7613 = vmatprep.subr.msk.mxu1 %vm120_vm0, %v8267_v4  ;;  %7640 = vmatmul.mubr.msk.f32.vlgmr.msra.gmra.mxu0 %vm116_vm1, %v8297_v7  ;;  %11473 = vst [vmem:[#allocation16_spill] sm:$0xff] %v8416_v27  ;;  %11474 = vst [vmem:[#allocation17_spill] sm:$0xff] %v8421_v28  ;;  %v8426_v29 = vld [vmem:[#allocation4 + $0xe8] sm:$0xff]  ;;  %v8432_v30 = vld [vmem:[#allocation4 + $0xe0] sm:$0xff] }
  0x3d   :  { %7645 = vmatprep.subr.msk.mxu0 %vm120_vm0, %v114_v3  ;;  %1434 = vmatprep.mubr.f32.mxu0 %v11172_v0  ;;  %11475 = vst [vmem:[#allocation18_spill] sm:$0xff] %v8426_v29  ;;  %11476 = vst [vmem:[#allocation19_spill] sm:$0xff] %v8432_v30  ;;  %v8437_v31 = vld [vmem:[#allocation4 + $0xc8] sm:$0xff]  ;;  %v8442_v32 = vld [vmem:[#allocation4 + $0xc0] sm:$0xff] }
  0x3e   :  { %7612 = vmatmul.mubr.msk.f32.vlgmr.msra.gmra.mxu1 %vm116_vm1, %v7609_v8  ;;  %7646 = vmatpush1.msk.msra.mxu0 %vm120_vm0, %v8256_v1  ;;  %11477 = vst [vmem:[#allocation20_spill] sm:$0xff] %v8437_v31  ;;  %11478 = vst [vmem:[#allocation21_spill] sm:$0xff] %v8442_v32  ;;  %v8450_v34 = vld [vmem:[#allocation4 + $0xa8] sm:$0xff]  ;;  %v8455_v35 = vld [vmem:[#allocation4 + $0xa0] sm:$0xff] }
  0x3f   :  { %7614 = vmatpush1.msk.msra.mxu1 %vm120_vm0, %v8261_v2  ;;  %470 = vmatprep.mubr.f32.mxu1 %v11172_v0  ;;  %11479 = vst [vmem:[#allocation22_spill] sm:$0xff] %v8450_v34  ;;  %11480 = vst [vmem:[#allocation23_spill] sm:$0xff] %v8455_v35  ;;  %v8460_v36 = vld [vmem:[#allocation4 + $0x88] sm:$0xff]  ;;  %v8466_v38 = vld [vmem:[#allocation4 + $0x80] sm:$0xff] }
  0x40   :  { %7617 = vmatprep.subr.msk.mxu1 %vm120_vm0, %v114_v3  ;;  %7647 = vmatmul.mubr.msk.f32.vlgmr.msra.gmra.mxu0 %vm116_vm1, %v8317_v9  ;;  %11481 = vst [vmem:[#allocation24_spill] sm:$0xff] %v8460_v36  ;;  %11482 = vst [vmem:[#allocation25_spill] sm:$0xff] %v8466_v38  ;;  %v8471_v40 = vld [vmem:[#allocation4 + $0x68] sm:$0xff]  ;;  %v8478_v42 = vld [vmem:[#allocation4 + $0x60] sm:$0xff] }
  0x41   :  { %7652 = vmatprep.subr.msk.mxu0 %vm120_vm0, %v114_v3  ;;  %1641 = vmatprep.mubr.f32.mxu0 %v11172_v0  ;;  %11483 = vst [vmem:[#allocation26_spill] sm:$0xff] %v8471_v40  ;;  %11484 = vst [vmem:[#allocation27_spill] sm:$0xff] %v8478_v42  ;;  %v8484_v44 = vld [vmem:[#allocation4 + $0x48] sm:$0xff]  ;;  %v8487_v45 = vld [vmem:[#allocation4 + $0x1b0] sm:$0xff] }
  0x42   :  { %7615 = vmatmul.mubr.msk.f32.vlgmr.msra.gmra.mxu1 %vm116_vm1, %v7609_v8  ;;  %7653 = vmatpush1.msk.msra.mxu0 %vm120_vm0, %v8256_v1  ;;  %11485 = vst [vmem:[#allocation28_spill] sm:$0xff] %v8484_v44  ;;  %v8490_v46 = vld [vmem:[#allocation4 + $0x40] sm:$0xff]  ;;  %v8493_v47 = vld [vmem:[#allocation4 + $0x198] sm:$0xff]  ;;  %v8496_v48 = vld [vmem:[#allocation4 + $0x28] sm:$0xff] }
  0x43   :  { %7618 = vmatpush1.msk.msra.mxu1 %vm120_vm0, %v8256_v1  ;;  %606 = vmatprep.mubr.f32.mxu1 %v11172_v0  ;;  %11486 = vst [vmem:[#allocation29_spill] sm:$0xff] %v8490_v46  ;;  %11487 = vst [vmem:[#allocation30_spill] sm:$0xff] %v8496_v48  ;;  %v8499_v49 = vld [vmem:[#allocation4 + $0x190] sm:$0xff]  ;;  %v8502_v50 = vld [vmem:[#allocation4 + $0x20] sm:$0xff] }
  0x44   :  { %7620 = vmatprep.subr.msk.mxu1 %vm120_vm0, %v8267_v4  ;;  %1808 = vmatprep.subr.mxu0 %v8330_v10  ;;  %11488 = vst [vmem:[#allocation31_spill] sm:$0xff] %v8502_v50  ;;  %v8505_v51 = vld [vmem:[#allocation4 + $0x178] sm:$0xff]  ;;  %v8508_v52 = vld [vmem:[#allocation4 + $0x8] sm:$0xff]  ;;  %v8511_v53 = vld [vmem:[#allocation4 + $0x170] sm:$0xff] }
  0x45   :  { %7654 = vmatmul.mubr.msk.f32.vlgmr.msra.gmra.mxu0 %vm116_vm1, %v8338_v11  ;;  %11489 = vst [vmem:[#allocation32_spill] sm:$0xff] %v8508_v52  ;;  %v8514_v54 = vld [vmem:[#allocation4] sm:$0xff]  ;;  %v8517_v55 = vld [vmem:[#allocation4 + $0x158] sm:$0xff]  ;;  %v8521_v56 = vld [vmem:[#allocation4 + $0x150] sm:$0xff] }
  0x46   :  { %7619 = vmatmul.mubr.msk.f32.vlgmr.msra.gmra.mxu1 %vm116_vm1, %v7616_v12  ;;  %1809 = vmatpush1.msra.mxu0 %v8346_v13  ;;  %11490 = vst [vmem:[#allocation33_spill] sm:$0xff] %v8514_v54  ;;  %v8525_v57 = vld [vmem:[#allocation4 + $0x138] sm:$0xff]  ;;  %v8529_v58 = vld [vmem:[#allocation4 + $0x130] sm:$0xff] }
  0x47   :  { %7621 = vmatpush1.msk.msra.mxu1 %vm120_vm0, %v8261_v2  ;;  %677 = vmatprep.mubr.f32.mxu1 %v11172_v0  ;;  %11491 = vst [vmem:[#allocation34_spill] sm:$0xff] %v8525_v57  ;;  %11492 = vst [vmem:[#allocation35_spill] sm:$0xff] %v8529_v58  ;;  %v8533_v59 = vld [vmem:[#allocation4 + $0x118] sm:$0xff]  ;;  %v8537_v60 = vld [vmem:[#allocation4 + $0x110] sm:$0xff] }
  0x48   :  { %7624 = vmatprep.subr.msk.mxu1 %vm120_vm0, %v114_v3  ;;  %1810 = vmatprep.subr.mxu0 %v8353_v14  ;;  %11493 = vst [vmem:[#allocation36_spill] sm:$0xff] %v8533_v59  ;;  %11494 = vst [vmem:[#allocation37_spill] sm:$0xff] %v8537_v60  ;;  %v8541_v61 = vld [vmem:[#allocation4 + $0xf8] sm:$0xff]  ;;  %v8545_v62 = vld [vmem:[#allocation4 + $0xf0] sm:$0xff] }
  0x49   :  { %1811 = vmatpush1.msra.mxu0 %v8357_v15  ;;  %1872 = vmatprep.mubr.f32.mxu0 %v11172_v0  ;;  %11495 = vst [vmem:[#allocation38_spill] sm:$0xff] %v8541_v61  ;;  %11496 = vst [vmem:[#allocation39_spill] sm:$0xff] %v8545_v62  ;;  %v8549_v63 = vld [vmem:[#allocation4 + $0xd8] sm:$0xff]  ;;  %v8561_v3 = vld [vmem:[#allocation4 + $0xb0] sm:$0xff] }
  0x4a   :  { %7622 = vmatmul.mubr.msk.f32.vlgmr.msra.gmra.mxu1 %vm116_vm1, %v7616_v12  ;;  %1812 = vmatprep.subr.mxu0 %v8362_v16  ;;  %11497 = vst [vmem:[#allocation40_spill] sm:$0xff] %v8549_v63  ;;  %11500 = vst [vmem:[#allocation43_spill] sm:$0xff] %v8561_v3  ;;  %v8569_v5 = vld [vmem:[#allocation4 + $0x90] sm:$0xff]  ;;  %v8581_v8 = vld [vmem:[#allocation4 + $0x58] sm:$0xff] }
  0x4b   :  { %7625 = vmatpush1.msk.msra.mxu1 %vm120_vm0, %v8256_v1  ;;  %813 = vmatprep.mubr.f32.mxu1 %v11172_v0  ;;  %v8553_v1 = vld [vmem:[#allocation4 + $0xd0] sm:$0xff]  ;;  %11502 = vst [vmem:[#allocation45_spill] sm:$0xff] %v8569_v5  ;;  %11505 = vst [vmem:[#allocation48_spill] sm:$0xff] %v8581_v8 }
  0x4c   :  { %7627 = vmatprep.subr.msk.mxu1 %vm120_vm0, %v8267_v4  ;;  %1813 = vmatpush1.msra.mxu0 %v8367_v17  ;;  %11498 = vst [vmem:[#allocation41_spill] sm:$0xff] %v8553_v1  ;;  %v8593_v12 = vld [vmem:[#allocation4 + $0x30] sm:$0xff] }
  0x4d   :  { %1814 = vmatprep.subr.mxu0 %v8372_v18  ;;  %11508 = vst [vmem:[#allocation51_spill] sm:$0xff] %v8593_v12 }
  0x4e   :  { %7626 = vmatmul.mubr.msk.f32.vlgmr.msra.gmra.mxu1 %vm116_vm1, %v7623_v19  ;;  %1815 = vmatpush1.msra.mxu0 %v8380_v20 }
  0x4f   :  { %7628 = vmatpush1.msk.msra.mxu1 %vm120_vm0, %v8261_v2  ;;  %884 = vmatprep.mubr.f32.mxu1 %v11172_v0 }
  0x50   :  { %7634 = vmatprep.subr.msk.mxu1 %vm120_vm0, %v8267_v4  ;;  %1816 = vmatprep.subr.mxu0 %v8386_v21 }
  0x51   :  { %1817 = vmatpush1.msra.mxu0 %v8390_v22 }
  0x52   :  { %7629 = vmatmul.mubr.msk.f32.vlgmr.msra.gmra.mxu1 %vm116_vm1, %v7623_v19  ;;  %1818 = vmatprep.subr.mxu0 %v8395_v23  ;;  %v8597_v19 = vld [vmem:[#allocation4 + $0x18] sm:$0xff] }
  0x53   :  { %7635 = vmatpush1.msk.msra.mxu1 %vm120_vm0, %v8261_v2  ;;  %1091 = vmatprep.mubr.f32.mxu1 %v11172_v0  ;;  %11509 = vst [vmem:[#allocation52_spill] sm:$0xff] %v8597_v19 }
  0x54   :  { %7641 = vmatprep.subr.msk.mxu1 %vm120_vm0, %v8267_v4  ;;  %1819 = vmatpush1.msra.mxu0 %v8401_v24 }
  0x55   :  { %1820 = vmatprep.subr.mxu0 %v8405_v25 }
  0x56   :  { %7636 = vmatmul.mubr.msk.f32.vlgmr.msra.gmra.mxu1 %vm116_vm1, %v8281_v6  ;;  %1821 = vmatpush1.msra.mxu0 %v8410_v26  ;;  %v8573_v6 = vld [vmem:[#allocation4 + $0x78] sm:$0xff] }
  0x57   :  { %7642 = vmatpush1.msk.msra.mxu1 %vm120_vm0, %v8261_v2  ;;  %1298 = vmatprep.mubr.f32.mxu1 %v11172_v0  ;;  %11503 = vst [vmem:[#allocation46_spill] sm:$0xff] %v8573_v6 }
  0x58   :  { %7648 = vmatprep.subr.msk.mxu1 %vm120_vm0, %v8267_v4  ;;  %1822 = vmatprep.subr.mxu0 %v8416_v27 }
  0x59   :  { %1823 = vmatpush1.msra.mxu0 %v8421_v28 }
  0x5a   :  { %7643 = vmatmul.mubr.msk.f32.vlgmr.msra.gmra.mxu1 %vm116_vm1, %v8297_v7  ;;  %1824 = vmatprep.subr.mxu0 %v8426_v29  ;;  %v8577_v7 = vld [vmem:[#allocation4 + $0x70] sm:$0xff] }
  0x5b   :  { %7649 = vmatpush1.msk.msra.mxu1 %vm120_vm0, %v8261_v2  ;;  %1505 = vmatprep.mubr.f32.mxu1 %v11172_v0  ;;  %11504 = vst [vmem:[#allocation47_spill] sm:$0xff] %v8577_v7 }
  0x5c   :  { %7655 = vmatprep.subr.msk.mxu1 %vm120_vm0, %v8267_v4  ;;  %1825 = vmatpush1.msra.mxu0 %v8432_v30  ;;  %v8565_v4 = vld [vmem:[#allocation4 + $0x98] sm:$0xff] }
  0x5d   :  { %1826 = vmatprep.subr.mxu0 %v8437_v31  ;;  %11501 = vst [vmem:[#allocation44_spill] sm:$0xff] %v8565_v4 }
  0x5e   :  { %7650 = vmatmul.mubr.msk.f32.vlgmr.msra.gmra.mxu1 %vm116_vm1, %v8317_v9  ;;  %1827 = vmatpush1.msra.mxu0 %v8442_v32  ;;  %v8585_v9 = vld [vmem:[#allocation4 + $0x50] sm:$0xff] }
  0x5f   :  { %7656 = vmatpush1.msk.msra.mxu1 %vm120_vm0, %v8261_v2  ;;  %1712 = vmatprep.mubr.f32.mxu1 %v11172_v0  ;;  %v8557_v2 = vld [vmem:[#allocation4 + $0xb8] sm:$0xff]  ;;  %11506 = vst [vmem:[#allocation49_spill] sm:$0xff] %v8585_v9 }
  0x60   :  { %1879 = vmatprep.subr.mxu1 %v8447_v33  ;;  %1828 = vmatprep.subr.mxu0 %v8450_v34  ;;  %11499 = vst [vmem:[#allocation42_spill] sm:$0xff] %v8557_v2 }
  0x61   :  { %1829 = vmatpush1.msra.mxu0 %v8455_v35 }
  0x62   :  { %7657 = vmatmul.mubr.msk.f32.vlgmr.msra.gmra.mxu1 %vm116_vm1, %v8338_v11  ;;  %1830 = vmatprep.subr.mxu0 %v8460_v36  ;;  %v8589_v11 = vld [vmem:[#allocation4 + $0x38] sm:$0xff] }
  0x63   :  { %1880 = vmatpush1.msra.mxu1 %v8463_v37  ;;  %1831 = vmatpush1.msra.mxu0 %v8466_v38  ;;  %11507 = vst [vmem:[#allocation50_spill] sm:$0xff] %v8589_v11 }
  0x64   :  { %1881 = vmatprep.subr.mxu1 %v8468_v39  ;;  %1832 = vmatprep.subr.mxu0 %v8471_v40 }
  0x65   :  { %1882 = vmatpush1.msra.mxu1 %v8475_v41  ;;  %1833 = vmatpush1.msra.mxu0 %v8478_v42 }
  0x66   :  { %1883 = vmatprep.subr.mxu1 %v8481_v43  ;;  %1834 = vmatprep.subr.mxu0 %v8484_v44 }
  0x67   :  { %1884 = vmatpush1.msra.mxu1 %v8487_v45  ;;  %1835 = vmatpush1.msra.mxu0 %v8490_v46 }
  0x68   :  { %1885 = vmatprep.subr.mxu1 %v8493_v47  ;;  %1836 = vmatprep.subr.mxu0 %v8496_v48 }
  0x69   :  { %1886 = vmatpush1.msra.mxu1 %v8499_v49  ;;  %1837 = vmatpush1.msra.mxu0 %v8502_v50 }
  0x6a   :  { %1887 = vmatprep.subr.mxu1 %v8505_v51  ;;  %1838 = vmatprep.subr.mxu0 %v8508_v52 }
  0x6b   :  { %1888 = vmatpush1.msra.mxu1 %v8511_v53  ;;  %1839 = vmatpush1.msra.mxu0 %v8514_v54 }
  0x6c   :  { %1889 = vmatprep.subr.mxu1 %v8517_v55  ;;  %1873 = vmatmul.mubr.f32.vlgmr.msra.gmra.mxu0 %v11172_v0 }
  0x6d   :  { %1890 = vmatpush1.msra.mxu1 %v8521_v56  ;;  %1943 = vmatprep.mubr.f32.mxu1 %v11172_v0  ;;  %v8601_v0 = vld [vmem:[#allocation4 + $0x10] sm:$0xff] }
  0x6e   :  { %1891 = vmatprep.subr.mxu1 %v8525_v57  ;;  %2070 = vmatprep.subr.mxu0 %v8330_v10  ;;  %11510 = vst [vmem:[#allocation53_spill] sm:$0xff] %v8601_v0 }
  0x6f   :  { %1892 = vmatpush1.msra.mxu1 %v8529_v58  ;;  %2071 = vmatpush1.msra.mxu0 %v8346_v13 }
  0x70   :  { %1893 = vmatprep.subr.mxu1 %v8533_v59  ;;  %2072 = vmatprep.subr.mxu0 %v8353_v14 }
  0x71   :  { %1894 = vmatpush1.msra.mxu1 %v8537_v60  ;;  %2073 = vmatpush1.msra.mxu0 %v8357_v15 }
  0x72   :  { %1895 = vmatprep.subr.mxu1 %v8541_v61  ;;  %2074 = vmatprep.subr.mxu0 %v8362_v16 }
  0x73   :  { %1896 = vmatpush1.msra.mxu1 %v8545_v62  ;;  %2075 = vmatpush1.msra.mxu0 %v8367_v17 }
  0x74   :  { %1897 = vmatprep.subr.mxu1 %v8549_v63  ;;  %2076 = vmatprep.subr.mxu0 %v8372_v18 }
  0x75   :  { %1898 = vmatpush1.msra.mxu1 %v8553_v1  ;;  %2077 = vmatpush1.msra.mxu0 %v8380_v20 }
  0x76   :  { %1899 = vmatprep.subr.mxu1 %v8557_v2  ;;  %2078 = vmatprep.subr.mxu0 %v8386_v21 }
  0x77   :  { %1900 = vmatpush1.msra.mxu1 %v8561_v3  ;;  %2079 = vmatpush1.msra.mxu0 %v8390_v22 }
  0x78   :  { %1901 = vmatprep.subr.mxu1 %v8565_v4  ;;  %2080 = vmatprep.subr.mxu0 %v8395_v23 }
  0x79   :  { %1902 = vmatpush1.msra.mxu1 %v8569_v5  ;;  %2081 = vmatpush1.msra.mxu0 %v8401_v24 }
  0x7a   :  { %1903 = vmatprep.subr.mxu1 %v8573_v6  ;;  %2082 = vmatprep.subr.mxu0 %v8405_v25 }
  0x7b   :  { %1904 = vmatpush1.msra.mxu1 %v8577_v7  ;;  %2083 = vmatpush1.msra.mxu0 %v8410_v26 }
  0x7c   :  { %1905 = vmatprep.subr.mxu1 %v8581_v8  ;;  %2084 = vmatprep.subr.mxu0 %v8416_v27  ;;  %v11511_v27 = vmov 0.0  }
  0x7d   :  { %1906 = vmatpush1.msra.mxu1 %v8585_v9  ;;  %2085 = vmatpush1.msra.mxu0 %v8421_v28 }
  0x7e   :  { %1907 = vmatprep.subr.mxu1 %v8589_v11  ;;  %2086 = vmatprep.subr.mxu0 %v8426_v29 }
  0x7f   :  { %1908 = vmatpush1.msra.mxu1 %v8593_v12  ;;  %2087 = vmatpush1.msra.mxu0 %v8432_v30  ;;  %v505_v30 = vld [vmem:[%s11165_s3] sm:$0xf] }
  0x80   :  { %1909 = vmatprep.subr.mxu1 %v8597_v19  ;;  %2088 = vmatprep.subr.mxu0 %v8437_v31 }
  0x81   :  { %1910 = vmatpush1.msra.mxu1 %v8601_v0  ;;  %2089 = vmatpush1.msra.mxu0 %v8442_v32  ;;  %v8718_v32 = vld [vmem:[%s11165_s3] sm:$0xf] }
  0x82   :  { %1944 = vmatmul.mubr.f32.vlgmr.msra.gmra.mxu1 %v11511_v27  ;;  %2141 = vmatprep.subr.mxu1 %v8447_v33 }
  0x83   :  { %2142 = vmatpush1.msra.mxu1 %v8463_v37  ;;  %2090 = vmatprep.subr.mxu0 %v8450_v34 }
  0x84   :  { %2143 = vmatprep.subr.mxu1 %v8468_v39  ;;  %2091 = vmatpush1.msra.mxu0 %v8455_v35  ;;  %v8187_v35 = vmov 1983009808  }
  0x85   :  { %2144 = vmatpush1.msra.mxu1 %v8475_v41  ;;  %2092 = vmatprep.subr.mxu0 %v8460_v36 }
  0x86   :  { %2145 = vmatprep.subr.mxu1 %v8481_v43  ;;  %2093 = vmatpush1.msra.mxu0 %v8466_v38 }
  0x87   :  { %2146 = vmatpush1.msra.mxu1 %v8487_v45  ;;  %2094 = vmatprep.subr.mxu0 %v8471_v40 }
  0x88   :  { %2147 = vmatprep.subr.mxu1 %v8493_v47  ;;  %2095 = vmatpush1.msra.mxu0 %v8478_v42 }
  0x89   :  { %2148 = vmatpush1.msra.mxu1 %v8499_v49  ;;  %2096 = vmatprep.subr.mxu0 %v8484_v44 }
  0x8a   :  { %2149 = vmatprep.subr.mxu1 %v8505_v51  ;;  %2097 = vmatpush1.msra.mxu0 %v8490_v46 }
  0x8b   :  { %2150 = vmatpush1.msra.mxu1 %v8511_v53  ;;  %2098 = vmatprep.subr.mxu0 %v8496_v48 }
  0x8c   :  { %2151 = vmatprep.subr.mxu1 %v8517_v55  ;;  %2099 = vmatpush1.msra.mxu0 %v8502_v50 }
  0x8d   :  { %2152 = vmatpush1.msra.mxu1 %v8521_v56  ;;  %2100 = vmatprep.subr.mxu0 %v8508_v52 }
  0x8e   :  { %2153 = vmatprep.subr.mxu1 %v8525_v57  ;;  %2101 = vmatpush1.msra.mxu0 %v8514_v54  ;;  %v8662_v54 = vld [vmem:[%s11165_s3] sm:$0xf] }
  0x8f   :  { %2154 = vmatpush1.msra.mxu1 %v8529_v58  ;;  %2134 = vmatprep.mubr.f32.mxu0 %v11511_v27 }
  0x90   :  { %2155 = vmatprep.subr.mxu1 %v8533_v59  ;;  %2205 = vmatprep.mubr.f32.mxu1 %v11511_v27 }
  0x91   :  { %2156 = vmatpush1.msra.mxu1 %v8537_v60  ;;  %2333 = vmatprep.subr.mxu0 %v8330_v10  ;;  %v92_v10 = vlaneseq }
  0x92   :  { %2157 = vmatprep.subr.mxu1 %v8541_v61 }
  0x93   :  { %2158 = vmatpush1.msra.mxu1 %v8545_v62  ;;  %v93_v27 = vshrl.u32 %v92_v10, 7 }
  0x94   :  { %2159 = vmatprep.subr.mxu1 %v8549_v63 }
  0x95   :  { %2160 = vmatpush1.msra.mxu1 %v8553_v1  ;;  %v8664_v52 = vsub.s32 0, %v93_v27  ;;  %v8666_v50 = vsub.s32 1, %v93_v27  ;;  %v8711_v34 = vsub.s32 3, %v93_v27 }
  0x96   :  { %2161 = vmatprep.subr.mxu1 %v8557_v2  ;;  %v278_v2 = vunpack.c.l.s4 %v8187_v35 }
  0x97   :  { %2162 = vmatpush1.msra.mxu1 %v8561_v3  ;;  %11512 = vst [vmem:[#allocation54_spill] sm:$0xff] %v8664_v52  ;;  %11513 = vst [vmem:[#allocation55_spill] sm:$0xff] %v8666_v50  ;;  %v928_v10 = vrot.slane %v8662_v54, %v8666_v50  ;;  %v1545_v60 = vrot.slane %v8718_v32, %v8664_v52  ;;  %v514_v58 = vrot.slane %v505_v30, %v8666_v50 }
  0x98   :  { %2163 = vmatprep.subr.mxu1 %v8565_v4  ;;  %11515 = vst [vmem:[#allocation57_spill] sm:$0xff] %v8711_v34  ;;  %v279_v28 = vunpack.c.0.s8 %v278_v2 }
  0x99   :  { %2164 = vmatpush1.msra.mxu1 %v8569_v5 }
  0x9a   :  { %2165 = vmatprep.subr.mxu1 %v8573_v6 }
  0x9b   :  { %2166 = vmatpush1.msra.mxu1 %v8577_v7 }
  0x9c   :  { %2167 = vmatprep.subr.mxu1 %v8581_v8  ;;  %v298_v8 = vld [vmem:[%s11165_s3] sm:$0xf] }
  0x9d   :  { %2168 = vmatpush1.msra.mxu1 %v8585_v9  ;;  %v303_v40 = vrot.slane %v298_v8, %v8664_v52  ;;  %v307_v5 = vrot.slane %v298_v8, %v8666_v50  ;;  %v315_v35 = vrot.slane %v298_v8, %v8711_v34 }
  0x9e   :  { %2169 = vmatprep.subr.mxu1 %v8589_v11 }
  0x9f   :  { %2170 = vmatpush1.msra.mxu1 %v8593_v12  ;;  %v924_v12 = vrot.slane %v8662_v54, %v8664_v52 }
  0xa0   :  { %2171 = vmatprep.subr.mxu1 %v8597_v19 }
  0xa1   :  { %2172 = vmatpush1.msra.mxu1 %v8601_v0 }
  0xa2   :  { %2404 = vmatprep.subr.mxu1 %v8447_v33  ;;  %v8675_v33 = vld [vmem:[%s11165_s3] sm:$0xf] }
  0xa3   :  { %v1131_v9 = vrot.slane %v8675_v33, %v8664_v52  ;;  %v1135_v42 = vrot.slane %v8675_v33, %v8666_v50 }
  0xf6   :  { %v8670_v11 = vpop.f32.mrf.mxu1 }
  0xf8   :  { %v8679_v0 = vpop.f32.mrf.mxu1  ;;  %v1022_v19 = vpop.f32.mrf.mxu0 }
  0xf9   :  { %v8681_v48 = vadd.f32 %v1022_v19, %v924_v12  ;;  %v8697_v12 = vld [vmem:[%s11165_s3] sm:$0xf] }
  0xfa   :  { %v8685_v46 = vpop.f32.mrf.mxu1  ;;  %v1024_v44 = vpop.f32.mrf.mxu0  ;;  %v1338_v3 = vrot.slane %v8697_v12, %v8664_v52  ;;  %v1342_v63 = vrot.slane %v8697_v12, %v8666_v50 }
  0xfb   :  { %v8690_v7 = vadd.f32 %v1024_v44, %v928_v10  ;;  %v8707_v10 = vsub.s32 2, %v93_v27 }
  0xfc   :  { %v8699_v19 = vpop.f32.mrf.mxu1  ;;  %v1229_v6 = vpop.f32.mrf.mxu0 }
  0xfd   :  { %v8705_v44 = vadd.f32 %v1229_v6, %v1131_v9  ;;  %11514 = vst [vmem:[#allocation56_spill] sm:$0xff] %v8707_v10  ;;  %v311_v9 = vrot.slane %v298_v8, %v8707_v10  ;;  %v518_v2 = vrot.slane %v505_v30, %v8707_v10 }
  0xfe   :  { %v401_v4 = vpop.f32.mrf.mxu1  ;;  %v1231_v36 = vpop.f32.mrf.mxu0 }
  0xff   :  { %v8713_v1 = vadd.f32 %v1231_v36, %v1135_v42  ;;  %v402_v31 = vadd.f32 %v401_v4, %v303_v40  ;;  %v510_v36 = vrot.slane %v505_v30, %v8664_v52 }
 0x100   :  { %v403_v6 = vpop.f32.mrf.mxu1  ;;  %v1436_v38 = vpop.f32.mrf.mxu0 }
 0x101   :  { %v404_v62 = vadd.f32 %v403_v6, %v307_v5  ;;  %v8729_v61 = vadd.f32 %v1436_v38, %v1338_v3  ;;  %v1549_v5 = vrot.slane %v8718_v32, %v8666_v50 }
 0x102   :  { %v472_v42 = vpop.f32.mrf.mxu1  ;;  %v1438_v29 = vpop.f32.mrf.mxu0 }
 0x103   :  { %v481_v59 = vcombine.low %v402_v31, %v404_v62  ;;  %v8733_v4 = vadd.f32 %v1438_v29, %v1342_v63  ;;  %v473_v8 = vadd.f32 %v472_v42, %v311_v9  ;;  %v8743_v31 = vsub.s32 %v279_v28, %v93_v27  ;;  %v712_v27 = vld [vmem:[%s11165_s3] sm:$0xf] }
 0x104   :  { %v474_v40 = vpop.f32.mrf.mxu1  ;;  %v522_v9 = vrot.slane %v505_v30, %v8711_v34  ;;  %v729_v25 = vrot.slane %v712_v27, %v8711_v34 }
 0x105   :  { %v475_v6 = vadd.f32 %v474_v40, %v315_v35  ;;  %v1643_v38 = vpop.f32.mrf.mxu0  ;;  %11516 = vst [vmem:[#allocation58_spill] sm:$0xff] %v8743_v31  ;;  %v8750_v42 = vrot.slane %v481_v59, %v8743_v31 }
 0x106   :  { %v608_v3 = vpop.f32.mrf.mxu1  ;;  %v8741_v57 = vadd.f32 %v1643_v38, %v1545_v60 }
 0x107   :  { %v482_v29 = vcombine.low %v473_v8, %v475_v6  ;;  %v1645_v62 = vpop.f32.mrf.mxu0  ;;  %11517 = vst [vmem:[#allocation59_spill] sm:$0xff] %v8750_v42  ;;  %v609_v26 = vadd.f32 %v608_v3, %v510_v36  ;;  %v721_v36 = vrot.slane %v712_v27, %v8666_v50 }
 0x108   :  { %v610_v63 = vpop.f32.mrf.mxu1  ;;  %v8747_v35 = vadd.f32 %v1645_v62, %v1549_v5 }
 0x109   :  { %v8753_v40 = vrot.slane %v482_v29, %v8743_v31  ;;  %v611_v60 = vadd.f32 %v610_v63, %v514_v58  ;;  %v717_v29 = vrot.slane %v712_v27, %v8664_v52  ;;  %v725_v63 = vrot.slane %v712_v27, %v8707_v10 }
 0x10a   :  { %v679_v38 = vpop.f32.mrf.mxu1  ;;  %v936_v27 = vrot.slane %v8662_v54, %v8711_v34 }
 0x10b   :  { %11518 = vst [vmem:[#allocation60_spill] sm:$0xff] %v8753_v40  ;;  %v688_v5 = vcombine.low %v609_v26, %v611_v60  ;;  %v680_v59 = vadd.f32 %v679_v38, %v518_v2  ;;  %v932_v40 = vrot.slane %v8662_v54, %v8707_v10  ;;  %v9059_v54 = vld [vmem:[#allocation4 + $0xb0] sm:$0xff]  ;;  %v9063_v60 = vld [vmem:[#allocation4 + $0x88] sm:$0xff] }
 0x10c   :  { %v681_v8 = vpop.f32.mrf.mxu1 }
 0x10d   :  { %v682_v6 = vadd.f32 %v681_v8, %v522_v9  ;;  %v8767_v28 = vrot.slane %v688_v5, %v8743_v31 }
 0x10e   :  { %v815_v58 = vpop.f32.mrf.mxu1 }
 0x10f   :  { %v689_v3 = vcombine.low %v680_v59, %v682_v6  ;;  %v816_v26 = vadd.f32 %v815_v58, %v717_v29  ;;  %v1139_v29 = vrot.slane %v8675_v33, %v8707_v10 }
 0x110   :  { %v817_v62 = vpop.f32.mrf.mxu1 }
 0x111   :  { %v8770_v30 = vrot.slane %v689_v3, %v8743_v31  ;;  %v818_v2 = vadd.f32 %v817_v62, %v721_v36  ;;  %v1143_v36 = vrot.slane %v8675_v33, %v8711_v34  ;;  %v1350_v33 = vrot.slane %v8697_v12, %v8711_v34 }
 0x112   :  { %v886_v9 = vpop.f32.mrf.mxu1 }
 0x113   :  { %v895_v38 = vcombine.low %v816_v26, %v818_v2  ;;  %v887_v59 = vadd.f32 %v886_v9, %v725_v63 }
 0x114   :  { %v888_v8 = vpop.f32.mrf.mxu1 }
 0x115   :  { %v889_v6 = vadd.f32 %v888_v8, %v729_v25  ;;  %v8783_v58 = vrot.slane %v895_v38, %v8743_v31  ;;  %v1346_v8 = vrot.slane %v8697_v12, %v8707_v10  ;;  %v11521_v38 = vcombine.low %v8681_v48, %v8690_v7 }
 0x116   :  { %v1093_v5 = vpop.f32.mrf.mxu1  ;;  %v1553_v12 = vrot.slane %v8718_v32, %v8707_v10  ;;  %v11524_v48 = vcombine.low %v8705_v44, %v8713_v1 }
 0x117   :  { %v896_v42 = vcombine.low %v887_v59, %v889_v6  ;;  %11519 = vst [vmem:[#allocation61_spill] sm:$0xff] %v8783_v58  ;;  %v1094_v62 = vadd.f32 %v1093_v5, %v932_v40  ;;  %v9105_v58 = vld [vmem:[#allocation4 + $0x20] sm:$0xff] }
 0x118   :  { %v1095_v3 = vpop.f32.mrf.mxu1  ;;  %v8813_v7 = vrot.slane %v11524_v48, %v8743_v31 }
 0x119   :  { %v8786_v25 = vrot.slane %v896_v42, %v8743_v31  ;;  %v1096_v63 = vadd.f32 %v1095_v3, %v936_v27  ;;  %v8798_v42 = vrot.slane %v11521_v38, %v8743_v31 }
 0x11a   :  { %v1300_v26 = vpop.f32.mrf.mxu1  ;;  %11525 = vst [vmem:[#allocation65_spill] sm:$0xff] %v8813_v7  ;;  %v9093_v7 = vld [vmem:[#allocation4 + $0x40] sm:$0xff] }
 0x11b   :  { %11520 = vst [vmem:[#allocation62_spill] sm:$0xff] %v8786_v25  ;;  %v1103_v2 = vcombine.low %v1094_v62, %v1096_v63  ;;  %11522 = vst [vmem:[#allocation63_spill] sm:$0xff] %v8798_v42  ;;  %v1301_v59 = vadd.f32 %v1300_v26, %v1139_v29  ;;  %v1557_v63 = vrot.slane %v8718_v32, %v8711_v34  ;;  %v9099_v42 = vld [vmem:[#allocation4 + $0x28] sm:$0xff]  ;;  %v9101_v25 = vld [vmem:[#allocation4 + $0x38] sm:$0xff] }
 0x11c   :  { %v1302_v9 = vpop.f32.mrf.mxu1  ;;  %v11527_v32 = vcombine.low %v8729_v61, %v8733_v4  ;;  %v90_v4 = vld [vmem:[%s11165_s3] sm:$0xf] }
 0x11d   :  { %v8801_v40 = vrot.slane %v1103_v2, %v8743_v31  ;;  %v1303_v6 = vadd.f32 %v1302_v9, %v1143_v36 }
 0x11e   :  { %v1507_v27 = vpop.f32.mrf.mxu1 }
 0x11f   :  { %11523 = vst [vmem:[#allocation64_spill] sm:$0xff] %v8801_v40  ;;  %v1310_v3 = vcombine.low %v1301_v59, %v1303_v6  ;;  %v1508_v36 = vadd.f32 %v1507_v27, %v1346_v8  ;;  %v8824_v6 = vrot.slane %v11527_v32, %v8743_v31  ;;  %v11530_v27 = vcombine.low %v8741_v57, %v8747_v35  ;;  %v9095_v40 = vld [vmem:[#allocation4 + $0x50] sm:$0xff] }
 0x120   :  { %v1509_v62 = vpop.f32.mrf.mxu1  ;;  %v95_v57 = vrot.slane %v90_v4, %v8664_v52  ;;  %v9075_v52 = vld [vmem:[#allocation4 + $0x68] sm:$0xff] }
 0x121   :  { %v8816_v29 = vrot.slane %v1310_v3, %v8743_v31  ;;  %v1510_v26 = vadd.f32 %v1509_v62, %v1350_v33  ;;  %11528 = vst [vmem:[#allocation67_spill] sm:$0xff] %v8824_v6  ;;  %v8835_v62 = vrot.slane %v11530_v27, %v8743_v31  ;;  %v9087_v6 = vld [vmem:[#allocation4 + $0x48] sm:$0xff] }
 0x122   :  { %v1714_v2 = vpop.f32.mrf.mxu1  ;;  %v196_v32 = vadd.f32 %v8670_v11, %v95_v57 }
 0x123   :  { %11526 = vst [vmem:[#allocation66_spill] sm:$0xff] %v8816_v29  ;;  %v1517_v38 = vcombine.low %v1508_v36, %v1510_v26  ;;  %v1715_v44 = vadd.f32 %v1714_v2, %v1553_v12  ;;  %11531 = vst [vmem:[#allocation69_spill] sm:$0xff] %v8835_v62  ;;  %v107_v12 = vrot.slane %v90_v4, %v8711_v34  ;;  %v9065_v34 = vld [vmem:[#allocation4 + $0x98] sm:$0xff]  ;;  %v9081_v62 = vld [vmem:[#allocation4 + $0x60] sm:$0xff] }
 0x124   :  { %v1716_v59 = vpop.f32.mrf.mxu1  ;;  %v103_v36 = vrot.slane %v90_v4, %v8707_v10  ;;  %v9071_v10 = vld [vmem:[#allocation4 + $0x90] sm:$0xff]  ;;  %v9089_v29 = vld [vmem:[#allocation4 + $0x58] sm:$0xff] }
 0x125   :  { %v8827_v1 = vrot.slane %v1517_v38, %v8743_v31  ;;  %v1717_v3 = vadd.f32 %v1716_v59, %v1557_v63  ;;  %v99_v63 = vrot.slane %v90_v4, %v8666_v50  ;;  %v269_v35 = vadd.f32 %v8699_v19, %v107_v12  ;;  %v9069_v50 = vld [vmem:[#allocation4 + $0x80] sm:$0xff] }
 0x126   :  { %v267_v38 = vadd.f32 %v8685_v46, %v103_v36 }
 0x127   :  { %11529 = vst [vmem:[#allocation68_spill] sm:$0xff] %v8827_v1  ;;  %v1724_v33 = vcombine.low %v1715_v44, %v1717_v3  ;;  %v198_v2 = vadd.f32 %v8679_v0, %v99_v63  ;;  %v9083_v1 = vld [vmem:[#allocation4 + $0x70] sm:$0xff] }
 0x128   :  { %v276_v44 = vcombine.low %v267_v38, %v269_v35 }
 0x129   :  { %v8838_v48 = vrot.slane %v1724_v33, %v8743_v31  ;;  %v275_v33 = vcombine.low %v196_v32, %v198_v2 }
 0x12a   :  { %v290_v8 = vrot.slane %v276_v44, %v8743_v31 }
 0x12b   :  { %11532 = vst [vmem:[#allocation70_spill] sm:$0xff] %v8838_v48  ;;  %v283_v5 = vrot.slane %v275_v33, %v8743_v31  ;;  %v9077_v48 = vld [vmem:[#allocation4 + $0x78] sm:$0xff] }
 0x12c   :  { %v1874_v26 = vpop.f32.mrf.mxu0 }
 0x12d   :  { %v291_v0 = vcombine.low %v283_v5, %v290_v8 }
 0x12e   :  { %v1876_v59 = vpop.f32.mrf.mxu0 }
 0x12f   :  { %v1954_v27 = vcombine.low %v1874_v26, %v1876_v59 }
 0x131   :  { %v1962_v4 = vrot.slane %v1954_v27, %v8743_v31 }
 0x142   :  { %v1945_v3 = vpop.f32.mrf.mxu1 }
 0x144   :  { %v1947_v61 = vpop.f32.mrf.mxu1 }
 0x145   :  { %v1955_v9 = vcombine.low %v1945_v3, %v1947_v61 }
 0x147   :  { %v1969_v19 = vrot.slane %v1955_v9, %v8743_v31 }
 0x149   :  { %v1970_v12 = vcombine.low %v1962_v4, %v1969_v19 }
 0x14b   :  { %v1972_v46 = vadd.f32 %v1970_v12, %v291_v0  ;;  %v11555_v12 = vld [vmem:[#allocation25_spill] sm:$0xff] }
 0x14d   :  { %v7658_v63 = vmul.f32 -1.442695, %v1972_v46  ;;  %v1980_v36 = vrot.slane %v1972_v46, 2  ;;  %v1991_v57 = vrot.slane %v1972_v46, 6  ;;  %v1988_v2 = vrot.slane %v1972_v46, 4  ;;  %v11556_v46 = vld [vmem:[#allocation45_spill] sm:$0xff] }
 0x14f   :  { %7772 = vpow2.f32 %v7658_v63  ;;  %v7659_v11 = vmul.f32 -1.442695, %v1980_v36  ;;  %v7660_v26 = vmul.f32 -1.442695, %v1991_v57  ;;  %v11557_v63 = vld [vmem:[#allocation26_spill] sm:$0xff]  ;;  %v11560_v57 = vld [vmem:[#allocation47_spill] sm:$0xff] }
 0x150   :  { %v11558_v36 = vld [vmem:[#allocation46_spill] sm:$0xff] }
 0x151   :  { %7774 = vpow2.f32 %v7659_v11  ;;  %v11559_v11 = vld [vmem:[#allocation27_spill] sm:$0xff] }
 0x152   :  { %7776 = vpow2.f32 %v7660_v26  ;;  %v11561_v26 = vld [vmem:[#allocation28_spill] sm:$0xff] }
 0x15c   :  { %v7773_v35 = vpop.eup %7772 }
 0x15d   :  { %v1976_v38 = vadd.f32 1.0, %v7773_v35  ;;  %v11562_v35 = vld [vmem:[#allocation48_spill] sm:$0xff] }
 0x15e   :  { %v7775_v61 = vpop.eup %7774 }
 0x15f   :  { %7778 = vrcp.f32 %v1976_v38  ;;  %v1985_v59 = vadd.f32 1.0, %v7775_v61  ;;  %v7777_v9 = vpop.eup %7776  ;;  %v11564_v38 = vld [vmem:[#allocation49_spill] sm:$0xff]  ;;  %v11565_v61 = vld [vmem:[#allocation30_spill] sm:$0xff] }
 0x160   :  { %7780 = vtanh.f32 %v1988_v2  ;;  %v1996_v44 = vadd.f32 1.0, %v7777_v9  ;;  %v11563_v2 = vld [vmem:[#allocation29_spill] sm:$0xff]  ;;  %v11567_v9 = vld [vmem:[#allocation31_spill] sm:$0xff] }
 0x161   :  { %7782 = vrcp.f32 %v1985_v59  ;;  %v11566_v59 = vld [vmem:[#allocation50_spill] sm:$0xff] }
 0x162   :  { %7784 = vrcp.f32 %v1996_v44  ;;  %v11571_v44 = vld [vmem:[#allocation33_spill] sm:$0xff] }
 0x16c   :  { %v7779_v5 = vpop.eup %7778 }
 0x16d   :  { %v7781_v8 = vpop.eup %7780 }
 0x16e   :  { %v7783_v32 = vpop.eup %7782  ;;  %v2000_v33 = vmul.f32 %v7781_v8, %v7779_v5  ;;  %v11568_v5 = vld [vmem:[#allocation51_spill] sm:$0xff]  ;;  %v11569_v8 = vld [vmem:[#allocation32_spill] sm:$0xff] }
 0x16f   :  { %v1999_v3 = vmul.f32 0.0, %v7783_v32  ;;  %v7785_v4 = vpop.eup %7784  ;;  %v11570_v32 = vld [vmem:[#allocation52_spill] sm:$0xff] }
 0x171   :  { %v8857_v27 = vadd.f32 %v2000_v33, %v1999_v3  ;;  %v11572_v3 = vmov 0.0   ;;  %v11573_v33 = vld [vmem:[#allocation53_spill] sm:$0xff] }
 0x173   :  { %7786 = vtanh.f32 %v8857_v27 }
 0x180   :  { %v7787_v19 = vpop.eup %7786 }
 0x181   :  { %v2003_v0 = vmul.f32 %v7787_v19, %v7785_v4 }
 0x183   :  { %2004 = vst [vmem:[#allocation3] sm:$0x3] %v2003_v0  ;;  %2135 = vmatmul.mubr.f32.vlgmr.msra.gmra.mxu0 %v2003_v0  ;;  %2206 = vmatmul.mubr.f32.vlgmr.msra.gmra.mxu1 %v2003_v0 }
 0x184   :  { %2334 = vmatpush1.msra.mxu0 %v8346_v13  ;;  %2405 = vmatpush1.msra.mxu1 %v8463_v37  ;;  %v11533_v13 = vld [vmem:[#allocation14_spill] sm:$0xff]  ;;  %v11544_v37 = vld [vmem:[#allocation39_spill] sm:$0xff] }
 0x185   :  { %2335 = vmatprep.subr.mxu0 %v8353_v14  ;;  %2406 = vmatprep.subr.mxu1 %v8468_v39  ;;  %v11534_v14 = vld [vmem:[#allocation34_spill] sm:$0xff]  ;;  %v11545_v39 = vld [vmem:[#allocation20_spill] sm:$0xff]  ;;  %11588 = vst [vmem:[#allocation39_spill] sm:$0xff] %v9089_v29 }
 0x186   :  { %2336 = vmatpush1.msra.mxu0 %v8357_v15  ;;  %2407 = vmatpush1.msra.mxu1 %v8475_v41  ;;  %v11535_v15 = vld [vmem:[#allocation15_spill] sm:$0xff]  ;;  %v11546_v41 = vld [vmem:[#allocation40_spill] sm:$0xff]  ;;  %11589 = vst [vmem:[#allocation20_spill] sm:$0xff] %v9093_v7 }
 0x187   :  { %2337 = vmatprep.subr.mxu0 %v8362_v16  ;;  %2408 = vmatprep.subr.mxu1 %v8481_v43  ;;  %v11536_v16 = vld [vmem:[#allocation35_spill] sm:$0xff]  ;;  %v11547_v43 = vld [vmem:[#allocation21_spill] sm:$0xff]  ;;  %11579 = vst [vmem:[#allocation15_spill] sm:$0xff] %v9063_v60  ;;  %11590 = vst [vmem:[#allocation40_spill] sm:$0xff] %v9095_v40 }
 0x188   :  { %2338 = vmatpush1.msra.mxu0 %v8367_v17  ;;  %2409 = vmatpush1.msra.mxu1 %v8487_v45  ;;  %v11537_v17 = vld [vmem:[#allocation16_spill] sm:$0xff]  ;;  %v11548_v45 = vld [vmem:[#allocation41_spill] sm:$0xff]  ;;  %11580 = vst [vmem:[#allocation35_spill] sm:$0xff] %v9065_v34  ;;  %11591 = vst [vmem:[#allocation21_spill] sm:$0xff] %v9099_v42 }
 0x189   :  { %2339 = vmatprep.subr.mxu0 %v8372_v18  ;;  %2410 = vmatprep.subr.mxu1 %v8493_v47  ;;  %v11538_v18 = vld [vmem:[#allocation36_spill] sm:$0xff]  ;;  %v11549_v47 = vld [vmem:[#allocation22_spill] sm:$0xff]  ;;  %11581 = vst [vmem:[#allocation16_spill] sm:$0xff] %v9069_v50  ;;  %11592 = vst [vmem:[#allocation41_spill] sm:$0xff] %v9101_v25 }
 0x18a   :  { %2340 = vmatpush1.msra.mxu0 %v8380_v20  ;;  %2411 = vmatpush1.msra.mxu1 %v8499_v49  ;;  %v11539_v20 = vld [vmem:[#allocation17_spill] sm:$0xff]  ;;  %v11550_v49 = vld [vmem:[#allocation42_spill] sm:$0xff]  ;;  %11582 = vst [vmem:[#allocation36_spill] sm:$0xff] %v9071_v10  ;;  %11593 = vst [vmem:[#allocation22_spill] sm:$0xff] %v9105_v58 }
 0x18b   :  { %2341 = vmatprep.subr.mxu0 %v8386_v21  ;;  %2412 = vmatprep.subr.mxu1 %v8505_v51  ;;  %v11540_v21 = vld [vmem:[#allocation37_spill] sm:$0xff]  ;;  %v11551_v51 = vld [vmem:[#allocation23_spill] sm:$0xff]  ;;  %11583 = vst [vmem:[#allocation17_spill] sm:$0xff] %v9075_v52 }
 0x18c   :  { %2342 = vmatpush1.msra.mxu0 %v8390_v22  ;;  %2413 = vmatpush1.msra.mxu1 %v8511_v53  ;;  %v11541_v22 = vld [vmem:[#allocation18_spill] sm:$0xff]  ;;  %v11552_v53 = vld [vmem:[#allocation43_spill] sm:$0xff]  ;;  %11584 = vst [vmem:[#allocation37_spill] sm:$0xff] %v9077_v48 }
 0x18d   :  { %2343 = vmatprep.subr.mxu0 %v8395_v23  ;;  %2414 = vmatprep.subr.mxu1 %v8517_v55  ;;  %v11542_v23 = vld [vmem:[#allocation38_spill] sm:$0xff]  ;;  %v11553_v55 = vld [vmem:[#allocation24_spill] sm:$0xff]  ;;  %11585 = vst [vmem:[#allocation18_spill] sm:$0xff] %v9081_v62 }
 0x18e   :  { %2344 = vmatpush1.msra.mxu0 %v8401_v24  ;;  %2415 = vmatpush1.msra.mxu1 %v8521_v56  ;;  %v11543_v24 = vld [vmem:[#allocation19_spill] sm:$0xff]  ;;  %v11554_v56 = vld [vmem:[#allocation44_spill] sm:$0xff]  ;;  %11586 = vst [vmem:[#allocation38_spill] sm:$0xff] %v9083_v1 }
 0x18f   :  { %2345 = vmatprep.subr.mxu0 %v11533_v13  ;;  %2416 = vmatprep.subr.mxu1 %v11534_v14  ;;  %11587 = vst [vmem:[#allocation19_spill] sm:$0xff] %v9087_v6 }
 0x190   :  { %2346 = vmatpush1.msra.mxu0 %v11535_v15  ;;  %2417 = vmatpush1.msra.mxu1 %v11536_v16 }
 0x191   :  { %2347 = vmatprep.subr.mxu0 %v11537_v17  ;;  %2418 = vmatprep.subr.mxu1 %v11538_v18 }
 0x192   :  { %2348 = vmatpush1.msra.mxu0 %v11539_v20  ;;  %2419 = vmatpush1.msra.mxu1 %v11540_v21  ;;  %v11574_v20 = vld [vmem:[#allocation59_spill] sm:$0xff]  ;;  %v11575_v21 = vld [vmem:[#allocation60_spill] sm:$0xff] }
 0x193   :  { %2349 = vmatprep.subr.mxu0 %v11541_v22  ;;  %2420 = vmatprep.subr.mxu1 %v11542_v23  ;;  %v11576_v22 = vcombine.low %v11574_v20, %v11575_v21  ;;  %v8987_v20 = vld [vmem:[#allocation4 + $0x170] sm:$0xff]  ;;  %v8991_v21 = vld [vmem:[#allocation4 + $0x148] sm:$0xff] }
 0x194   :  { %2350 = vmatpush1.msra.mxu0 %v11543_v24  ;;  %2421 = vmatpush1.msra.mxu1 %v11544_v37 }
 0x195   :  { %2351 = vmatprep.subr.mxu0 %v11545_v39  ;;  %2422 = vmatprep.subr.mxu1 %v11546_v41 }
 0x196   :  { %2352 = vmatpush1.msra.mxu0 %v11547_v43  ;;  %2423 = vmatpush1.msra.mxu1 %v11548_v45 }
 0x197   :  { %2353 = vmatprep.subr.mxu0 %v11549_v47  ;;  %2424 = vmatprep.subr.mxu1 %v11550_v49 }
 0x198   :  { %2354 = vmatpush1.msra.mxu0 %v11551_v51  ;;  %2425 = vmatpush1.msra.mxu1 %v11552_v53 }
 0x199   :  { %2355 = vmatprep.subr.mxu0 %v11553_v55  ;;  %2426 = vmatprep.subr.mxu1 %v11554_v56 }
 0x19a   :  { %2356 = vmatpush1.msra.mxu0 %v11555_v12  ;;  %2427 = vmatpush1.msra.mxu1 %v11556_v46 }
 0x19b   :  { %2357 = vmatprep.subr.mxu0 %v11557_v63  ;;  %2428 = vmatprep.subr.mxu1 %v11558_v36 }
 0x19c   :  { %2358 = vmatpush1.msra.mxu0 %v11559_v11  ;;  %2429 = vmatpush1.msra.mxu1 %v11560_v57 }
 0x19d   :  { %2359 = vmatprep.subr.mxu0 %v11561_v26  ;;  %2430 = vmatprep.subr.mxu1 %v11562_v35 }
 0x19e   :  { %2360 = vmatpush1.msra.mxu0 %v11563_v2  ;;  %2431 = vmatpush1.msra.mxu1 %v11564_v38  ;;  %v8935_v38 = vld [vmem:[#allocation4 + $0x1e8] sm:$0xff] }
 0x19f   :  { %2361 = vmatprep.subr.mxu0 %v11565_v61  ;;  %2432 = vmatprep.subr.mxu1 %v11566_v59  ;;  %11577 = vst [vmem:[#allocation14_spill] sm:$0xff] %v8935_v38  ;;  %v8937_v61 = vld [vmem:[#allocation4 + $0x1f8] sm:$0xff]  ;;  %v8943_v59 = vld [vmem:[#allocation4 + $0x1f0] sm:$0xff] }
 0x1a0   :  { %2362 = vmatpush1.msra.mxu0 %v11567_v9  ;;  %2433 = vmatpush1.msra.mxu1 %v11568_v5  ;;  %11578 = vst [vmem:[#allocation34_spill] sm:$0xff] %v8937_v61  ;;  %v8945_v9 = vld [vmem:[#allocation4 + $0x1c8] sm:$0xff]  ;;  %v8947_v5 = vld [vmem:[#allocation4 + $0x1d8] sm:$0xff] }
 0x1a1   :  { %2363 = vmatprep.subr.mxu0 %v11569_v8  ;;  %2434 = vmatprep.subr.mxu1 %v11570_v32  ;;  %v8951_v8 = vld [vmem:[#allocation4 + $0x1c0] sm:$0xff]  ;;  %v8953_v32 = vld [vmem:[#allocation4 + $0x1d0] sm:$0xff] }
 0x1a2   :  { %2364 = vmatpush1.msra.mxu0 %v11571_v44  ;;  %2397 = vmatprep.mubr.f32.mxu0 %v11572_v3  ;;  %v8955_v44 = vld [vmem:[#allocation4 + $0x1a8] sm:$0xff] }
 0x1a3   :  { %2435 = vmatpush1.msra.mxu1 %v11573_v33  ;;  %2468 = vmatprep.mubr.f32.mxu1 %v11572_v3  ;;  %v8959_v33 = vld [vmem:[#allocation4 + $0x1b8] sm:$0xff] }
 0x1a4   :  { %2596 = vmatprep.subr.mxu0 %v8935_v38  ;;  %2667 = vmatprep.subr.mxu1 %v8937_v61 }
 0x243   :  { %v2136_v4 = vpop.f32.mrf.mxu0  ;;  %v2207_v19 = vpop.f32.mrf.mxu1 }
 0x245   :  { %v2138_v0 = vpop.f32.mrf.mxu0  ;;  %v2209_v13 = vpop.f32.mrf.mxu1 }
 0x246   :  { %v2216_v14 = vcombine.low %v2136_v4, %v2138_v0  ;;  %v2217_v15 = vcombine.low %v2207_v19, %v2209_v13  ;;  %v8961_v4 = vld [vmem:[#allocation4 + $0x1a0] sm:$0xff]  ;;  %v8963_v19 = vld [vmem:[#allocation4 + $0x1b0] sm:$0xff]  ;;  %v8967_v0 = vld [vmem:[#allocation4 + $0x188] sm:$0xff] }
 0x247   :  { %v8969_v13 = vld [vmem:[#allocation4 + $0x198] sm:$0xff] }
 0x248   :  { %v2224_v16 = vrot.slane %v2216_v14, %v8743_v31  ;;  %v2231_v17 = vrot.slane %v2217_v15, %v8743_v31  ;;  %v8973_v14 = vld [vmem:[#allocation4 + $0x180] sm:$0xff]  ;;  %v8975_v15 = vld [vmem:[#allocation4 + $0x190] sm:$0xff] }
 0x24a   :  { %v2232_v18 = vcombine.low %v2224_v16, %v2231_v17  ;;  %v8979_v16 = vld [vmem:[#allocation4 + $0x168] sm:$0xff]  ;;  %v8981_v17 = vld [vmem:[#allocation4 + $0x178] sm:$0xff] }
 0x24c   :  { %v2234_v23 = vadd.f32 %v2232_v18, %v11576_v22  ;;  %v8985_v18 = vld [vmem:[#allocation4 + $0x160] sm:$0xff]  ;;  %v8993_v22 = vld [vmem:[#allocation4 + $0x158] sm:$0xff] }
 0x24e   :  { %v7661_v24 = vmul.f32 -1.442695, %v2234_v23  ;;  %v2242_v37 = vrot.slane %v2234_v23, 2  ;;  %v2253_v41 = vrot.slane %v2234_v23, 6  ;;  %v2250_v47 = vrot.slane %v2234_v23, 4  ;;  %v8997_v23 = vld [vmem:[#allocation4 + $0x140] sm:$0xff] }
 0x250   :  { %7788 = vpow2.f32 %v7661_v24  ;;  %v7662_v39 = vmul.f32 -1.442695, %v2242_v37  ;;  %v7663_v43 = vmul.f32 -1.442695, %v2253_v41  ;;  %v8999_v24 = vld [vmem:[#allocation4 + $0x150] sm:$0xff]  ;;  %v9003_v37 = vld [vmem:[#allocation4 + $0x128] sm:$0xff] }
 0x251   :  { %v9009_v41 = vld [vmem:[#allocation4 + $0x120] sm:$0xff] }
 0x252   :  { %7790 = vpow2.f32 %v7662_v39  ;;  %v9005_v39 = vld [vmem:[#allocation4 + $0x138] sm:$0xff] }
 0x253   :  { %7792 = vpow2.f32 %v7663_v43  ;;  %v9011_v43 = vld [vmem:[#allocation4 + $0x130] sm:$0xff] }
 0x25d   :  { %v7789_v45 = vpop.eup %7788 }
 0x25e   :  { %v2238_v49 = vadd.f32 1.0, %v7789_v45  ;;  %v9015_v45 = vld [vmem:[#allocation4 + $0x108] sm:$0xff] }
 0x25f   :  { %v7791_v51 = vpop.eup %7790 }
 0x260   :  { %7794 = vrcp.f32 %v2238_v49  ;;  %v2247_v53 = vadd.f32 1.0, %v7791_v51  ;;  %v7793_v55 = vpop.eup %7792  ;;  %v9021_v49 = vld [vmem:[#allocation4 + $0x100] sm:$0xff]  ;;  %v9023_v51 = vld [vmem:[#allocation4 + $0x110] sm:$0xff] }
 0x261   :  { %7796 = vtanh.f32 %v2250_v47  ;;  %v2258_v63 = vadd.f32 1.0, %v7793_v55  ;;  %v9017_v47 = vld [vmem:[#allocation4 + $0x118] sm:$0xff] }
 0x262   :  { %7798 = vrcp.f32 %v2247_v53  ;;  %v9027_v53 = vld [vmem:[#allocation4 + $0xe8] sm:$0xff]  ;;  %v9029_v55 = vld [vmem:[#allocation4 + $0xf8] sm:$0xff] }
 0x263   :  { %7800 = vrcp.f32 %v2258_v63  ;;  %v9041_v63 = vld [vmem:[#allocation4 + $0xd8] sm:$0xff] }
 0x26d   :  { %v7795_v56 = vpop.eup %7794 }
 0x26e   :  { %v7797_v12 = vpop.eup %7796 }
 0x26f   :  { %v7799_v46 = vpop.eup %7798  ;;  %v2262_v11 = vmul.f32 %v7797_v12, %v7795_v56  ;;  %v9033_v56 = vld [vmem:[#allocation4 + $0xe0] sm:$0xff]  ;;  %v9035_v12 = vld [vmem:[#allocation4 + $0xf0] sm:$0xff] }
 0x270   :  { %v2261_v36 = vmul.f32 %v7799_v46, %v8857_v27  ;;  %v7801_v26 = vpop.eup %7800  ;;  %v8939_v27 = vld [vmem:[#allocation4 + $0x1e0] sm:$0xff]  ;;  %v9039_v46 = vld [vmem:[#allocation4 + $0xc8] sm:$0xff] }
 0x272   :  { %v8930_v57 = vadd.f32 %v2262_v11, %v2261_v36  ;;  %v9045_v36 = vld [vmem:[#allocation4 + $0xc0] sm:$0xff]  ;;  %v9047_v11 = vld [vmem:[#allocation4 + $0xd0] sm:$0xff] }
 0x274   :  { %7802 = vtanh.f32 %v8930_v57 }
 0x281   :  { %v7803_v35 = vpop.eup %7802 }
 0x282   :  { %v2265_v2 = vmul.f32 %v7803_v35, %v7801_v26  ;;  %v9051_v26 = vld [vmem:[#allocation4 + $0xa8] sm:$0xff]  ;;  %v9053_v35 = vld [vmem:[#allocation4 + $0xb8] sm:$0xff] }
 0x284   :  { %2267 = vst [vmem:[#allocation3 + $0x2] sm:$0x3] %v2265_v2  ;;  %2398 = vmatmul.mubr.f32.vlgmr.msra.gmra.mxu0 %v2265_v2  ;;  %2469 = vmatmul.mubr.f32.vlgmr.msra.gmra.mxu1 %v2265_v2  ;;  %v9057_v2 = vld [vmem:[#allocation4 + $0xa0] sm:$0xff] }
 0x285   :  { %2660 = vmatprep.mubr.f32.mxu0 %v11572_v3  ;;  %2731 = vmatprep.mubr.f32.mxu1 %v11572_v3  ;;  %v9107_v3 = vld [vmem:[#allocation4 + $0x30] sm:$0xff] }
 0x286   :  { %2597 = vmatpush1.msra.mxu0 %v8939_v27  ;;  %2668 = vmatpush1.msra.mxu1 %v8943_v59  ;;  %11594 = vst [vmem:[#allocation42_spill] sm:$0xff] %v9107_v3 }
 0x287   :  { %2598 = vmatprep.subr.mxu0 %v8945_v9  ;;  %2669 = vmatprep.subr.mxu1 %v8947_v5 }
 0x288   :  { %2599 = vmatpush1.msra.mxu0 %v8951_v8  ;;  %2670 = vmatpush1.msra.mxu1 %v8953_v32 }
 0x289   :  { %2600 = vmatprep.subr.mxu0 %v8955_v44  ;;  %2671 = vmatprep.subr.mxu1 %v8959_v33 }
 0x28a   :  { %2601 = vmatpush1.msra.mxu0 %v8961_v4  ;;  %2672 = vmatpush1.msra.mxu1 %v8963_v19 }
 0x28b   :  { %2602 = vmatprep.subr.mxu0 %v8967_v0  ;;  %2673 = vmatprep.subr.mxu1 %v8969_v13 }
 0x28c   :  { %2603 = vmatpush1.msra.mxu0 %v8973_v14  ;;  %2674 = vmatpush1.msra.mxu1 %v8975_v15 }
 0x28d   :  { %2604 = vmatprep.subr.mxu0 %v8979_v16  ;;  %2675 = vmatprep.subr.mxu1 %v8981_v17 }
 0x28e   :  { %2605 = vmatpush1.msra.mxu0 %v8985_v18  ;;  %2676 = vmatpush1.msra.mxu1 %v8987_v20 }
 0x28f   :  { %2606 = vmatprep.subr.mxu0 %v8991_v21  ;;  %2677 = vmatprep.subr.mxu1 %v8993_v22 }
 0x290   :  { %2607 = vmatpush1.msra.mxu0 %v8997_v23  ;;  %2678 = vmatpush1.msra.mxu1 %v8999_v24 }
 0x291   :  { %2608 = vmatprep.subr.mxu0 %v9003_v37  ;;  %2679 = vmatprep.subr.mxu1 %v9005_v39 }
 0x292   :  { %2609 = vmatpush1.msra.mxu0 %v9009_v41  ;;  %2680 = vmatpush1.msra.mxu1 %v9011_v43 }
 0x293   :  { %2610 = vmatprep.subr.mxu0 %v9015_v45  ;;  %2681 = vmatprep.subr.mxu1 %v9017_v47 }
 0x294   :  { %2611 = vmatpush1.msra.mxu0 %v9021_v49  ;;  %2682 = vmatpush1.msra.mxu1 %v9023_v51 }
 0x295   :  { %2612 = vmatprep.subr.mxu0 %v9027_v53  ;;  %2683 = vmatprep.subr.mxu1 %v9029_v55 }
 0x296   :  { %2613 = vmatpush1.msra.mxu0 %v9033_v56  ;;  %2684 = vmatpush1.msra.mxu1 %v9035_v12 }
 0x297   :  { %2614 = vmatprep.subr.mxu0 %v9039_v46  ;;  %2685 = vmatprep.subr.mxu1 %v9041_v63 }
 0x298   :  { %2615 = vmatpush1.msra.mxu0 %v9045_v36  ;;  %2686 = vmatpush1.msra.mxu1 %v9047_v11 }
 0x299   :  { %2616 = vmatprep.subr.mxu0 %v9051_v26  ;;  %2687 = vmatprep.subr.mxu1 %v9053_v35 }
 0x29a   :  { %2617 = vmatpush1.msra.mxu0 %v9057_v2  ;;  %2688 = vmatpush1.msra.mxu1 %v9059_v54 }
 0x29b   :  { %2618 = vmatprep.subr.mxu0 %v9063_v60  ;;  %2689 = vmatprep.subr.mxu1 %v9065_v34 }
 0x29c   :  { %2619 = vmatpush1.msra.mxu0 %v9069_v50  ;;  %2690 = vmatpush1.msra.mxu1 %v9071_v10 }
 0x29d   :  { %2620 = vmatprep.subr.mxu0 %v9075_v52  ;;  %2691 = vmatprep.subr.mxu1 %v9077_v48  ;;  %v9111_v48 = vld [vmem:[#allocation4 + $0x8] sm:$0xff] }
 0x29e   :  { %2621 = vmatpush1.msra.mxu0 %v9081_v62  ;;  %2692 = vmatpush1.msra.mxu1 %v9083_v1  ;;  %11595 = vst [vmem:[#allocation23_spill] sm:$0xff] %v9111_v48  ;;  %v9113_v62 = vld [vmem:[#allocation4 + $0x18] sm:$0xff]  ;;  %v9117_v1 = vld [vmem:[#allocation4] sm:$0xff] }
 0x29f   :  { %2622 = vmatprep.subr.mxu0 %v9087_v6  ;;  %2693 = vmatprep.subr.mxu1 %v9089_v29  ;;  %11596 = vst [vmem:[#allocation43_spill] sm:$0xff] %v9113_v62  ;;  %11597 = vst [vmem:[#allocation24_spill] sm:$0xff] %v9117_v1  ;;  %v9119_v6 = vld [vmem:[#allocation4 + $0x10] sm:$0xff] }
 0x2a0   :  { %2623 = vmatpush1.msra.mxu0 %v9093_v7  ;;  %2694 = vmatpush1.msra.mxu1 %v9095_v40  ;;  %11598 = vst [vmem:[#allocation44_spill] sm:$0xff] %v9119_v6 }
 0x2a1   :  { %2624 = vmatprep.subr.mxu0 %v9099_v42  ;;  %2695 = vmatprep.subr.mxu1 %v9101_v25 }
 0x2a2   :  { %2625 = vmatpush1.msra.mxu0 %v9105_v58  ;;  %2696 = vmatpush1.msra.mxu1 %v9107_v3 }
 0x2a3   :  { %2626 = vmatprep.subr.mxu0 %v9111_v48  ;;  %2697 = vmatprep.subr.mxu1 %v9113_v62 }
 0x2a4   :  { %2627 = vmatpush1.msra.mxu0 %v9117_v1  ;;  %2698 = vmatpush1.msra.mxu1 %v9119_v6  ;;  %v11599_v1 = vcombine.low %v8767_v28, %v8770_v30 }
 0x2a5   :  { %2859 = vmatprep.subr.mxu0 %v8935_v38  ;;  %2930 = vmatprep.subr.mxu1 %v8937_v61 }
 0x344   :  { %v2399_v25 = vpop.f32.mrf.mxu0  ;;  %v2470_v42 = vpop.f32.mrf.mxu1 }
 0x346   :  { %v2401_v40 = vpop.f32.mrf.mxu0  ;;  %v2472_v7 = vpop.f32.mrf.mxu1 }
 0x347   :  { %v2479_v29 = vcombine.low %v2399_v25, %v2401_v40  ;;  %v2480_v58 = vcombine.low %v2470_v42, %v2472_v7 }
 0x349   :  { %v2487_v3 = vrot.slane %v2479_v29, %v8743_v31  ;;  %v2494_v48 = vrot.slane %v2480_v58, %v8743_v31 }
 0x34b   :  { %v2495_v52 = vcombine.low %v2487_v3, %v2494_v48  ;;  %v11602_v48 = vld [vmem:[#allocation16_spill] sm:$0xff] }
 0x34c   :  { %v11603_v3 = vld [vmem:[#allocation36_spill] sm:$0xff] }
 0x34d   :  { %v2497_v62 = vadd.f32 %v2495_v52, %v11599_v1 }
 0x34f   :  { %v7664_v6 = vmul.f32 -1.442695, %v2497_v62  ;;  %v2505_v10 = vrot.slane %v2497_v62, 2  ;;  %v2516_v61 = vrot.slane %v2497_v62, 6  ;;  %v2513_v60 = vrot.slane %v2497_v62, 4  ;;  %v11601_v62 = vld [vmem:[#allocation35_spill] sm:$0xff] }
 0x351   :  { %7804 = vpow2.f32 %v7664_v6  ;;  %v7665_v38 = vmul.f32 -1.442695, %v2505_v10  ;;  %v7666_v50 = vmul.f32 -1.442695, %v2516_v61  ;;  %v11606_v61 = vld [vmem:[#allocation18_spill] sm:$0xff] }
 0x353   :  { %7806 = vpow2.f32 %v7665_v38  ;;  %v11605_v38 = vld [vmem:[#allocation37_spill] sm:$0xff] }
 0x354   :  { %7808 = vpow2.f32 %v7666_v50 }
 0x35e   :  { %v7805_v34 = vpop.eup %7804 }
 0x35f   :  { %v2501_v25 = vadd.f32 1.0, %v7805_v34 }
 0x360   :  { %v7807_v42 = vpop.eup %7806 }
 0x361   :  { %7810 = vrcp.f32 %v2501_v25  ;;  %v2510_v40 = vadd.f32 1.0, %v7807_v42  ;;  %v7809_v58 = vpop.eup %7808  ;;  %v11607_v25 = vld [vmem:[#allocation38_spill] sm:$0xff]  ;;  %v11608_v42 = vld [vmem:[#allocation19_spill] sm:$0xff] }
 0x362   :  { %7812 = vtanh.f32 %v2513_v60  ;;  %v2521_v30 = vadd.f32 1.0, %v7809_v58  ;;  %v11600_v60 = vld [vmem:[#allocation15_spill] sm:$0xff]  ;;  %v11610_v58 = vld [vmem:[#allocation20_spill] sm:$0xff] }
 0x363   :  { %7814 = vrcp.f32 %v2510_v40  ;;  %v11609_v40 = vld [vmem:[#allocation39_spill] sm:$0xff] }
 0x364   :  { %7816 = vrcp.f32 %v2521_v30  ;;  %v11614_v30 = vld [vmem:[#allocation22_spill] sm:$0xff] }
 0x36e   :  { %v7811_v7 = vpop.eup %7810 }
 0x36f   :  { %v7813_v28 = vpop.eup %7812 }
 0x370   :  { %v7815_v52 = vpop.eup %7814  ;;  %v2525_v10 = vmul.f32 %v7813_v28, %v7811_v7  ;;  %v11611_v7 = vld [vmem:[#allocation40_spill] sm:$0xff]  ;;  %v11612_v28 = vld [vmem:[#allocation21_spill] sm:$0xff] }
 0x371   :  { %v2524_v29 = vmul.f32 %v7815_v52, %v8930_v57  ;;  %v7817_v34 = vpop.eup %7816  ;;  %v11604_v57 = vld [vmem:[#allocation17_spill] sm:$0xff] }
 0x372   :  { %v11613_v52 = vld [vmem:[#allocation41_spill] sm:$0xff] }
 0x373   :  { %v9135_v6 = vadd.f32 %v2525_v10, %v2524_v29  ;;  %v11615_v29 = vld [vmem:[#allocation42_spill] sm:$0xff]  ;;  %v11616_v10 = vld [vmem:[#allocation23_spill] sm:$0xff] }
 0x375   :  { %7818 = vtanh.f32 %v9135_v6 }
 0x382   :  { %v7819_v1 = vpop.eup %7818 }
 0x383   :  { %v2528_v50 = vmul.f32 %v7819_v1, %v7817_v34  ;;  %v11617_v34 = vld [vmem:[#allocation43_spill] sm:$0xff]  ;;  %v11618_v1 = vld [vmem:[#allocation24_spill] sm:$0xff] }
 0x385   :  { %2530 = vst [vmem:[#allocation3 + $0x4] sm:$0x3] %v2528_v50  ;;  %2661 = vmatmul.mubr.f32.vlgmr.msra.gmra.mxu0 %v2528_v50  ;;  %2732 = vmatmul.mubr.f32.vlgmr.msra.gmra.mxu1 %v2528_v50  ;;  %v11619_v50 = vmov 0.0  }
 0x386   :  { %2860 = vmatpush1.msra.mxu0 %v8939_v27  ;;  %2931 = vmatpush1.msra.mxu1 %v8943_v59 }
 0x387   :  { %2861 = vmatprep.subr.mxu0 %v8945_v9  ;;  %2932 = vmatprep.subr.mxu1 %v8947_v5 }
 0x388   :  { %2862 = vmatpush1.msra.mxu0 %v8951_v8  ;;  %2933 = vmatpush1.msra.mxu1 %v8953_v32 }
 0x389   :  { %2863 = vmatprep.subr.mxu0 %v8955_v44  ;;  %2934 = vmatprep.subr.mxu1 %v8959_v33 }
 0x38a   :  { %2864 = vmatpush1.msra.mxu0 %v8961_v4  ;;  %2935 = vmatpush1.msra.mxu1 %v8963_v19 }
 0x38b   :  { %2865 = vmatprep.subr.mxu0 %v8967_v0  ;;  %2936 = vmatprep.subr.mxu1 %v8969_v13 }
 0x38c   :  { %2866 = vmatpush1.msra.mxu0 %v8973_v14  ;;  %2937 = vmatpush1.msra.mxu1 %v8975_v15 }
 0x38d   :  { %2867 = vmatprep.subr.mxu0 %v8979_v16  ;;  %2938 = vmatprep.subr.mxu1 %v8981_v17 }
 0x38e   :  { %2868 = vmatpush1.msra.mxu0 %v8985_v18  ;;  %2939 = vmatpush1.msra.mxu1 %v8987_v20 }
 0x38f   :  { %2869 = vmatprep.subr.mxu0 %v8991_v21  ;;  %2940 = vmatprep.subr.mxu1 %v8993_v22 }
 0x390   :  { %2870 = vmatpush1.msra.mxu0 %v8997_v23  ;;  %2941 = vmatpush1.msra.mxu1 %v8999_v24 }
 0x391   :  { %2871 = vmatprep.subr.mxu0 %v9003_v37  ;;  %2942 = vmatprep.subr.mxu1 %v9005_v39 }
 0x392   :  { %2872 = vmatpush1.msra.mxu0 %v9009_v41  ;;  %2943 = vmatpush1.msra.mxu1 %v9011_v43 }
 0x393   :  { %2873 = vmatprep.subr.mxu0 %v9015_v45  ;;  %2944 = vmatprep.subr.mxu1 %v9017_v47 }
 0x394   :  { %2874 = vmatpush1.msra.mxu0 %v9021_v49  ;;  %2945 = vmatpush1.msra.mxu1 %v9023_v51 }
 0x395   :  { %2875 = vmatprep.subr.mxu0 %v9027_v53  ;;  %2946 = vmatprep.subr.mxu1 %v9029_v55 }
 0x396   :  { %2876 = vmatpush1.msra.mxu0 %v9033_v56  ;;  %2947 = vmatpush1.msra.mxu1 %v9035_v12 }
 0x397   :  { %2877 = vmatprep.subr.mxu0 %v9039_v46  ;;  %2948 = vmatprep.subr.mxu1 %v9041_v63 }
 0x398   :  { %2878 = vmatpush1.msra.mxu0 %v9045_v36  ;;  %2949 = vmatpush1.msra.mxu1 %v9047_v11 }
 0x399   :  { %2879 = vmatprep.subr.mxu0 %v9051_v26  ;;  %2950 = vmatprep.subr.mxu1 %v9053_v35 }
 0x39a   :  { %2880 = vmatpush1.msra.mxu0 %v9057_v2  ;;  %2951 = vmatpush1.msra.mxu1 %v9059_v54 }
 0x39b   :  { %2881 = vmatprep.subr.mxu0 %v11600_v60  ;;  %2952 = vmatprep.subr.mxu1 %v11601_v62 }
 0x39c   :  { %2882 = vmatpush1.msra.mxu0 %v11602_v48  ;;  %2953 = vmatpush1.msra.mxu1 %v11603_v3 }
 0x39d   :  { %2883 = vmatprep.subr.mxu0 %v11604_v57  ;;  %2954 = vmatprep.subr.mxu1 %v11605_v38  ;;  %v11624_v38 = vld [vmem:[#allocation62_spill] sm:$0xff] }
 0x39e   :  { %2884 = vmatpush1.msra.mxu0 %v11606_v61  ;;  %2955 = vmatpush1.msra.mxu1 %v11607_v25  ;;  %v11623_v61 = vld [vmem:[#allocation61_spill] sm:$0xff] }
 0x39f   :  { %2885 = vmatprep.subr.mxu0 %v11608_v42  ;;  %2956 = vmatprep.subr.mxu1 %v11609_v40  ;;  %v11620_v40 = vld [vmem:[#allocation44_spill] sm:$0xff] }
 0x3a0   :  { %2886 = vmatpush1.msra.mxu0 %v11610_v58  ;;  %2957 = vmatpush1.msra.mxu1 %v11611_v7  ;;  %v11621_v7 = vld [vmem:[#allocation14_spill] sm:$0xff] }
 0x3a1   :  { %2887 = vmatprep.subr.mxu0 %v11612_v28  ;;  %2958 = vmatprep.subr.mxu1 %v11613_v52  ;;  %v11622_v28 = vld [vmem:[#allocation34_spill] sm:$0xff] }
 0x3a2   :  { %2888 = vmatpush1.msra.mxu0 %v11614_v30  ;;  %2959 = vmatpush1.msra.mxu1 %v11615_v29 }
 0x3a3   :  { %2889 = vmatprep.subr.mxu0 %v11616_v10  ;;  %2960 = vmatprep.subr.mxu1 %v11617_v34 }
 0x3a4   :  { %2890 = vmatpush1.msra.mxu0 %v11618_v1  ;;  %2923 = vmatprep.mubr.f32.mxu0 %v11619_v50 }
 0x3a5   :  { %2961 = vmatpush1.msra.mxu1 %v11620_v40  ;;  %2994 = vmatprep.mubr.f32.mxu1 %v11619_v50  ;;  %v11625_v40 = vcombine.low %v11623_v61, %v11624_v38 }
 0x3a6   :  { %3122 = vmatprep.subr.mxu0 %v11621_v7  ;;  %3193 = vmatprep.subr.mxu1 %v11622_v28 }
 0x445   :  { %v2662_v52 = vpop.f32.mrf.mxu0  ;;  %v2733_v30 = vpop.f32.mrf.mxu1 }
 0x447   :  { %v2664_v58 = vpop.f32.mrf.mxu0  ;;  %v2735_v29 = vpop.f32.mrf.mxu1 }
 0x448   :  { %v2742_v42 = vcombine.low %v2662_v52, %v2664_v58  ;;  %v2743_v10 = vcombine.low %v2733_v30, %v2735_v29 }
 0x44a   :  { %v2750_v34 = vrot.slane %v2742_v42, %v8743_v31  ;;  %v2757_v1 = vrot.slane %v2743_v10, %v8743_v31  ;;  %v11629_v10 = vld [vmem:[#allocation36_spill] sm:$0xff] }
 0x44c   :  { %v2758_v25 = vcombine.low %v2750_v34, %v2757_v1  ;;  %v11630_v34 = vld [vmem:[#allocation17_spill] sm:$0xff] }
 0x44d   :  { %v11631_v1 = vld [vmem:[#allocation37_spill] sm:$0xff] }
 0x44e   :  { %v2760_v57 = vadd.f32 %v2758_v25, %v11625_v40 }
 0x450   :  { %v7667_v50 = vmul.f32 -1.442695, %v2760_v57  ;;  %v2768_v3 = vrot.slane %v2760_v57, 2  ;;  %v2779_v28 = vrot.slane %v2760_v57, 6  ;;  %v2776_v60 = vrot.slane %v2760_v57, 4 }
 0x452   :  { %7820 = vpow2.f32 %v7667_v50  ;;  %v7668_v7 = vmul.f32 -1.442695, %v2768_v3  ;;  %v7669_v48 = vmul.f32 -1.442695, %v2779_v28  ;;  %v11628_v28 = vld [vmem:[#allocation16_spill] sm:$0xff]  ;;  %v11632_v50 = vld [vmem:[#allocation18_spill] sm:$0xff] }
 0x454   :  { %7822 = vpow2.f32 %v7668_v7 }
 0x455   :  { %7824 = vpow2.f32 %v7669_v48 }
 0x45f   :  { %v7821_v62 = vpop.eup %7820 }
 0x460   :  { %v2764_v58 = vadd.f32 1.0, %v7821_v62 }
 0x461   :  { %v7823_v52 = vpop.eup %7822 }
 0x462   :  { %7826 = vrcp.f32 %v2764_v58  ;;  %v2773_v42 = vadd.f32 1.0, %v7823_v52  ;;  %v7825_v30 = vpop.eup %7824  ;;  %v11633_v58 = vld [vmem:[#allocation38_spill] sm:$0xff]  ;;  %v11634_v52 = vld [vmem:[#allocation19_spill] sm:$0xff] }
 0x463   :  { %7828 = vtanh.f32 %v2776_v60  ;;  %v2784_v25 = vadd.f32 1.0, %v7825_v30  ;;  %v11627_v60 = vld [vmem:[#allocation35_spill] sm:$0xff]  ;;  %v11636_v30 = vld [vmem:[#allocation20_spill] sm:$0xff] }
 0x464   :  { %7830 = vrcp.f32 %v2773_v42  ;;  %v11635_v42 = vld [vmem:[#allocation39_spill] sm:$0xff] }
 0x465   :  { %7832 = vrcp.f32 %v2784_v25  ;;  %v11640_v25 = vld [vmem:[#allocation22_spill] sm:$0xff] }
 0x46f   :  { %v7827_v29 = vpop.eup %7826 }
 0x470   :  { %v7829_v38 = vpop.eup %7828 }
 0x471   :  { %v7831_v61 = vpop.eup %7830  ;;  %v2788_v3 = vmul.f32 %v7829_v38, %v7827_v29  ;;  %v11637_v29 = vld [vmem:[#allocation40_spill] sm:$0xff]  ;;  %v11638_v38 = vld [vmem:[#allocation21_spill] sm:$0xff] }
 0x472   :  { %v2787_v40 = vmul.f32 %v7831_v61, %v9135_v6  ;;  %v7833_v62 = vpop.eup %7832  ;;  %v11626_v6 = vld [vmem:[#allocation15_spill] sm:$0xff]  ;;  %v11639_v61 = vld [vmem:[#allocation41_spill] sm:$0xff] }
 0x474   :  { %v9210_v7 = vadd.f32 %v2788_v3, %v2787_v40  ;;  %v11641_v40 = vld [vmem:[#allocation42_spill] sm:$0xff]  ;;  %v11642_v3 = vld [vmem:[#allocation23_spill] sm:$0xff] }
 0x476   :  { %7834 = vtanh.f32 %v9210_v7 }
 0x483   :  { %v7835_v57 = vpop.eup %7834 }
 0x484   :  { %v2791_v48 = vmul.f32 %v7835_v57, %v7833_v62  ;;  %v11643_v62 = vld [vmem:[#allocation43_spill] sm:$0xff]  ;;  %v11644_v57 = vld [vmem:[#allocation24_spill] sm:$0xff] }
 0x486   :  { %2793 = vst [vmem:[#allocation3 + $0x6] sm:$0x3] %v2791_v48  ;;  %2924 = vmatmul.mubr.f32.vlgmr.msra.gmra.mxu0 %v2791_v48  ;;  %2995 = vmatmul.mubr.f32.vlgmr.msra.gmra.mxu1 %v2791_v48  ;;  %v11645_v48 = vmov 0.0  }
 0x487   :  { %3123 = vmatpush1.msra.mxu0 %v8939_v27  ;;  %3194 = vmatpush1.msra.mxu1 %v8943_v59 }
 0x488   :  { %3124 = vmatprep.subr.mxu0 %v8945_v9  ;;  %3195 = vmatprep.subr.mxu1 %v8947_v5 }
 0x489   :  { %3125 = vmatpush1.msra.mxu0 %v8951_v8  ;;  %3196 = vmatpush1.msra.mxu1 %v8953_v32 }
 0x48a   :  { %3126 = vmatprep.subr.mxu0 %v8955_v44  ;;  %3197 = vmatprep.subr.mxu1 %v8959_v33 }
 0x48b   :  { %3127 = vmatpush1.msra.mxu0 %v8961_v4  ;;  %3198 = vmatpush1.msra.mxu1 %v8963_v19 }
 0x48c   :  { %3128 = vmatprep.subr.mxu0 %v8967_v0  ;;  %3199 = vmatprep.subr.mxu1 %v8969_v13 }
 0x48d   :  { %3129 = vmatpush1.msra.mxu0 %v8973_v14  ;;  %3200 = vmatpush1.msra.mxu1 %v8975_v15 }
 0x48e   :  { %3130 = vmatprep.subr.mxu0 %v8979_v16  ;;  %3201 = vmatprep.subr.mxu1 %v8981_v17 }
 0x48f   :  { %3131 = vmatpush1.msra.mxu0 %v8985_v18  ;;  %3202 = vmatpush1.msra.mxu1 %v8987_v20 }
 0x490   :  { %3132 = vmatprep.subr.mxu0 %v8991_v21  ;;  %3203 = vmatprep.subr.mxu1 %v8993_v22 }
 0x491   :  { %3133 = vmatpush1.msra.mxu0 %v8997_v23  ;;  %3204 = vmatpush1.msra.mxu1 %v8999_v24 }
 0x492   :  { %3134 = vmatprep.subr.mxu0 %v9003_v37  ;;  %3205 = vmatprep.subr.mxu1 %v9005_v39 }
 0x493   :  { %3135 = vmatpush1.msra.mxu0 %v9009_v41  ;;  %3206 = vmatpush1.msra.mxu1 %v9011_v43 }
 0x494   :  { %3136 = vmatprep.subr.mxu0 %v9015_v45  ;;  %3207 = vmatprep.subr.mxu1 %v9017_v47 }
 0x495   :  { %3137 = vmatpush1.msra.mxu0 %v9021_v49  ;;  %3208 = vmatpush1.msra.mxu1 %v9023_v51 }
 0x496   :  { %3138 = vmatprep.subr.mxu0 %v9027_v53  ;;  %3209 = vmatprep.subr.mxu1 %v9029_v55 }
 0x497   :  { %3139 = vmatpush1.msra.mxu0 %v9033_v56  ;;  %3210 = vmatpush1.msra.mxu1 %v9035_v12 }
 0x498   :  { %3140 = vmatprep.subr.mxu0 %v9039_v46  ;;  %3211 = vmatprep.subr.mxu1 %v9041_v63 }
 0x499   :  { %3141 = vmatpush1.msra.mxu0 %v9045_v36  ;;  %3212 = vmatpush1.msra.mxu1 %v9047_v11 }
 0x49a   :  { %3142 = vmatprep.subr.mxu0 %v9051_v26  ;;  %3213 = vmatprep.subr.mxu1 %v9053_v35 }
 0x49b   :  { %3143 = vmatpush1.msra.mxu0 %v9057_v2  ;;  %3214 = vmatpush1.msra.mxu1 %v9059_v54 }
 0x49c   :  { %3144 = vmatprep.subr.mxu0 %v11626_v6  ;;  %3215 = vmatprep.subr.mxu1 %v11627_v60 }
 0x49d   :  { %3145 = vmatpush1.msra.mxu0 %v11628_v28  ;;  %3216 = vmatpush1.msra.mxu1 %v11629_v10 }
 0x49e   :  { %3146 = vmatprep.subr.mxu0 %v11630_v34  ;;  %3217 = vmatprep.subr.mxu1 %v11631_v1  ;;  %v11650_v1 = vld [vmem:[#allocation64_spill] sm:$0xff] }
 0x49f   :  { %3147 = vmatpush1.msra.mxu0 %v11632_v50  ;;  %3218 = vmatpush1.msra.mxu1 %v11633_v58  ;;  %v11649_v50 = vld [vmem:[#allocation63_spill] sm:$0xff] }
 0x4a0   :  { %3148 = vmatprep.subr.mxu0 %v11634_v52  ;;  %3219 = vmatprep.subr.mxu1 %v11635_v42  ;;  %v11646_v42 = vld [vmem:[#allocation44_spill] sm:$0xff] }
 0x4a1   :  { %3149 = vmatpush1.msra.mxu0 %v11636_v30  ;;  %3220 = vmatpush1.msra.mxu1 %v11637_v29  ;;  %v11647_v29 = vld [vmem:[#allocation14_spill] sm:$0xff] }
 0x4a2   :  { %3150 = vmatprep.subr.mxu0 %v11638_v38  ;;  %3221 = vmatprep.subr.mxu1 %v11639_v61  ;;  %v11648_v38 = vld [vmem:[#allocation34_spill] sm:$0xff] }
 0x4a3   :  { %3151 = vmatpush1.msra.mxu0 %v11640_v25  ;;  %3222 = vmatpush1.msra.mxu1 %v11641_v40 }
 0x4a4   :  { %3152 = vmatprep.subr.mxu0 %v11642_v3  ;;  %3223 = vmatprep.subr.mxu1 %v11643_v62 }
 0x4a5   :  { %3153 = vmatpush1.msra.mxu0 %v11644_v57  ;;  %3186 = vmatprep.mubr.f32.mxu0 %v11645_v48 }
 0x4a6   :  { %3224 = vmatpush1.msra.mxu1 %v11646_v42  ;;  %3257 = vmatprep.mubr.f32.mxu1 %v11645_v48  ;;  %v11651_v42 = vcombine.low %v11649_v50, %v11650_v1 }
 0x4a7   :  { %3385 = vmatprep.subr.mxu0 %v11647_v29  ;;  %3456 = vmatprep.subr.mxu1 %v11648_v38 }
 0x546   :  { %v2925_v61 = vpop.f32.mrf.mxu0  ;;  %v2996_v25 = vpop.f32.mrf.mxu1 }
 0x548   :  { %v2927_v30 = vpop.f32.mrf.mxu0  ;;  %v2998_v40 = vpop.f32.mrf.mxu1 }
 0x549   :  { %v3005_v52 = vcombine.low %v2925_v61, %v2927_v30  ;;  %v3006_v3 = vcombine.low %v2996_v25, %v2998_v40 }
 0x54b   :  { %v3013_v62 = vrot.slane %v3005_v52, %v8743_v31  ;;  %v3020_v57 = vrot.slane %v3006_v3, %v8743_v31 }
 0x54d   :  { %v3021_v58 = vcombine.low %v3013_v62, %v3020_v57 }
 0x54f   :  { %v3023_v34 = vadd.f32 %v3021_v58, %v11651_v42 }
 0x551   :  { %v7670_v48 = vmul.f32 -1.442695, %v3023_v34  ;;  %v3031_v10 = vrot.slane %v3023_v34, 2  ;;  %v3042_v38 = vrot.slane %v3023_v34, 6  ;;  %v3039_v6 = vrot.slane %v3023_v34, 4 }
 0x553   :  { %7836 = vpow2.f32 %v7670_v48  ;;  %v7671_v29 = vmul.f32 -1.442695, %v3031_v10  ;;  %v7672_v28 = vmul.f32 -1.442695, %v3042_v38 }
 0x555   :  { %7838 = vpow2.f32 %v7671_v29 }
 0x556   :  { %7840 = vpow2.f32 %v7672_v28 }
 0x560   :  { %v7837_v60 = vpop.eup %7836 }
 0x561   :  { %v3027_v30 = vadd.f32 1.0, %v7837_v60 }
 0x562   :  { %v7839_v61 = vpop.eup %7838 }
 0x563   :  { %7842 = vrcp.f32 %v3027_v30  ;;  %v3036_v52 = vadd.f32 1.0, %v7839_v61  ;;  %v7841_v25 = vpop.eup %7840 }
 0x564   :  { %7844 = vtanh.f32 %v3039_v6  ;;  %v3047_v58 = vadd.f32 1.0, %v7841_v25 }
 0x565   :  { %7846 = vrcp.f32 %v3036_v52 }
 0x566   :  { %7848 = vrcp.f32 %v3047_v58  ;;  %v3647_v58 = vld [vmem:[#allocation4 + $0x1f8] sm:$0xff] }
 0x570   :  { %v7843_v40 = vpop.eup %7842 }
 0x571   :  { %v7845_v1 = vpop.eup %7844 }
 0x572   :  { %v7847_v50 = vpop.eup %7846  ;;  %v3051_v10 = vmul.f32 %v7845_v1, %v7843_v40 }
 0x573   :  { %v3050_v42 = vmul.f32 %v7847_v50, %v9210_v7  ;;  %v7849_v60 = vpop.eup %7848  ;;  %v3645_v50 = vld [vmem:[#allocation4 + $0x1e8] sm:$0xff] }
 0x575   :  { %v9285_v3 = vadd.f32 %v3051_v10, %v3050_v42  ;;  %v3644_v42 = vld [vmem:[#allocation4 + $0x1e0] sm:$0xff]  ;;  %v3646_v10 = vld [vmem:[#allocation4 + $0x1f0] sm:$0xff] }
 0x577   :  { %7850 = vtanh.f32 %v9285_v3 }
 0x584   :  { %v7851_v34 = vpop.eup %7850 }
 0x585   :  { %v3054_v28 = vmul.f32 %v7851_v34, %v7849_v60  ;;  %v3643_v60 = vld [vmem:[#allocation4 + $0x1d8] sm:$0xff]  ;;  %v3640_v34 = vld [vmem:[#allocation4 + $0x1c0] sm:$0xff] }
 0x587   :  { %3056 = vst [vmem:[#allocation3 + $0x8] sm:$0x3] %v3054_v28  ;;  %3187 = vmatmul.mubr.f32.vlgmr.msra.gmra.mxu0 %v3054_v28  ;;  %3258 = vmatmul.mubr.f32.vlgmr.msra.gmra.mxu1 %v3054_v28  ;;  %v3642_v28 = vld [vmem:[#allocation4 + $0x1d0] sm:$0xff] }
 0x588   :  { %3386 = vmatpush1.msra.mxu0 %v8939_v27  ;;  %3457 = vmatpush1.msra.mxu1 %v8943_v59  ;;  %v11652_v27 = vld [vmem:[#allocation15_spill] sm:$0xff] }
 0x589   :  { %3387 = vmatprep.subr.mxu0 %v8945_v9  ;;  %3458 = vmatprep.subr.mxu1 %v8947_v5  ;;  %v11653_v59 = vld [vmem:[#allocation35_spill] sm:$0xff]  ;;  %v11654_v9 = vld [vmem:[#allocation16_spill] sm:$0xff] }
 0x58a   :  { %3388 = vmatpush1.msra.mxu0 %v8951_v8  ;;  %3459 = vmatpush1.msra.mxu1 %v8953_v32  ;;  %v11655_v5 = vld [vmem:[#allocation36_spill] sm:$0xff]  ;;  %v11656_v8 = vld [vmem:[#allocation17_spill] sm:$0xff] }
 0x58b   :  { %3389 = vmatprep.subr.mxu0 %v8955_v44  ;;  %3460 = vmatprep.subr.mxu1 %v8959_v33  ;;  %v11657_v32 = vld [vmem:[#allocation37_spill] sm:$0xff]  ;;  %v11658_v44 = vld [vmem:[#allocation18_spill] sm:$0xff] }
 0x58c   :  { %3390 = vmatpush1.msra.mxu0 %v8961_v4  ;;  %3461 = vmatpush1.msra.mxu1 %v8963_v19  ;;  %v11659_v33 = vld [vmem:[#allocation38_spill] sm:$0xff]  ;;  %v11660_v4 = vld [vmem:[#allocation19_spill] sm:$0xff] }
 0x58d   :  { %3391 = vmatprep.subr.mxu0 %v8967_v0  ;;  %3462 = vmatprep.subr.mxu1 %v8969_v13  ;;  %v11661_v19 = vld [vmem:[#allocation39_spill] sm:$0xff]  ;;  %v11663_v0 = vld [vmem:[#allocation40_spill] sm:$0xff]  ;;  %v11664_v13 = vld [vmem:[#allocation21_spill] sm:$0xff] }
 0x58e   :  { %3392 = vmatpush1.msra.mxu0 %v8973_v14  ;;  %3463 = vmatpush1.msra.mxu1 %v8975_v15  ;;  %v11665_v14 = vld [vmem:[#allocation41_spill] sm:$0xff]  ;;  %v11666_v15 = vld [vmem:[#allocation22_spill] sm:$0xff] }
 0x58f   :  { %3393 = vmatprep.subr.mxu0 %v8979_v16  ;;  %3464 = vmatprep.subr.mxu1 %v8981_v17  ;;  %v11667_v16 = vld [vmem:[#allocation42_spill] sm:$0xff]  ;;  %v11668_v17 = vld [vmem:[#allocation23_spill] sm:$0xff] }
 0x590   :  { %3394 = vmatpush1.msra.mxu0 %v8985_v18  ;;  %3465 = vmatpush1.msra.mxu1 %v8987_v20  ;;  %v11669_v18 = vld [vmem:[#allocation43_spill] sm:$0xff]  ;;  %v11670_v20 = vld [vmem:[#allocation24_spill] sm:$0xff] }
 0x591   :  { %3395 = vmatprep.subr.mxu0 %v8991_v21  ;;  %3466 = vmatprep.subr.mxu1 %v8993_v22  ;;  %v11671_v21 = vmov 0.0   ;;  %v11672_v22 = vld [vmem:[#allocation44_spill] sm:$0xff] }
 0x592   :  { %3396 = vmatpush1.msra.mxu0 %v8997_v23  ;;  %3467 = vmatpush1.msra.mxu1 %v8999_v24 }
 0x593   :  { %3397 = vmatprep.subr.mxu0 %v9003_v37  ;;  %3468 = vmatprep.subr.mxu1 %v9005_v39 }
 0x594   :  { %3398 = vmatpush1.msra.mxu0 %v9009_v41  ;;  %3469 = vmatpush1.msra.mxu1 %v9011_v43 }
 0x595   :  { %3399 = vmatprep.subr.mxu0 %v9015_v45  ;;  %3470 = vmatprep.subr.mxu1 %v9017_v47 }
 0x596   :  { %3400 = vmatpush1.msra.mxu0 %v9021_v49  ;;  %3471 = vmatpush1.msra.mxu1 %v9023_v51  ;;  %v11673_v51 = vld [vmem:[#allocation65_spill] sm:$0xff] }
 0x597   :  { %3401 = vmatprep.subr.mxu0 %v9027_v53  ;;  %3472 = vmatprep.subr.mxu1 %v9029_v55  ;;  %v11674_v53 = vld [vmem:[#allocation66_spill] sm:$0xff] }
 0x598   :  { %3402 = vmatpush1.msra.mxu0 %v9033_v56  ;;  %3473 = vmatpush1.msra.mxu1 %v9035_v12  ;;  %v11675_v55 = vcombine.low %v11673_v51, %v11674_v53  ;;  %v3611_v51 = vld [vmem:[#allocation4 + $0xd8] sm:$0xff]  ;;  %v3608_v53 = vld [vmem:[#allocation4 + $0xc0] sm:$0xff] }
 0x599   :  { %3403 = vmatprep.subr.mxu0 %v9039_v46  ;;  %3474 = vmatprep.subr.mxu1 %v9041_v63 }
 0x59a   :  { %3404 = vmatpush1.msra.mxu0 %v9045_v36  ;;  %3475 = vmatpush1.msra.mxu1 %v9047_v11 }
 0x59b   :  { %3405 = vmatprep.subr.mxu0 %v9051_v26  ;;  %3476 = vmatprep.subr.mxu1 %v9053_v35 }
 0x59c   :  { %3406 = vmatpush1.msra.mxu0 %v9057_v2  ;;  %3477 = vmatpush1.msra.mxu1 %v9059_v54  ;;  %v11662_v54 = vld [vmem:[#allocation20_spill] sm:$0xff] }
 0x59d   :  { %3407 = vmatprep.subr.mxu0 %v11652_v27  ;;  %3478 = vmatprep.subr.mxu1 %v11653_v59  ;;  %v3637_v27 = vld [vmem:[#allocation4 + $0x1a8] sm:$0xff]  ;;  %v3639_v59 = vld [vmem:[#allocation4 + $0x1b8] sm:$0xff] }
 0x59e   :  { %3408 = vmatpush1.msra.mxu0 %v11654_v9  ;;  %3479 = vmatpush1.msra.mxu1 %v11655_v5  ;;  %v3636_v9 = vld [vmem:[#allocation4 + $0x1a0] sm:$0xff]  ;;  %v3638_v5 = vld [vmem:[#allocation4 + $0x1b0] sm:$0xff] }
 0x59f   :  { %3409 = vmatprep.subr.mxu0 %v11656_v8  ;;  %3480 = vmatprep.subr.mxu1 %v11657_v32  ;;  %v3633_v8 = vld [vmem:[#allocation4 + $0x188] sm:$0xff]  ;;  %v3635_v32 = vld [vmem:[#allocation4 + $0x198] sm:$0xff] }
 0x5a0   :  { %3410 = vmatpush1.msra.mxu0 %v11658_v44  ;;  %3481 = vmatpush1.msra.mxu1 %v11659_v33  ;;  %v3632_v44 = vld [vmem:[#allocation4 + $0x180] sm:$0xff]  ;;  %v3634_v33 = vld [vmem:[#allocation4 + $0x190] sm:$0xff] }
 0x5a1   :  { %3411 = vmatprep.subr.mxu0 %v11660_v4  ;;  %3482 = vmatprep.subr.mxu1 %v11661_v19  ;;  %v3629_v4 = vld [vmem:[#allocation4 + $0x168] sm:$0xff]  ;;  %v3631_v19 = vld [vmem:[#allocation4 + $0x178] sm:$0xff] }
 0x5a2   :  { %3412 = vmatpush1.msra.mxu0 %v11662_v54  ;;  %3483 = vmatpush1.msra.mxu1 %v11663_v0  ;;  %v3628_v54 = vld [vmem:[#allocation4 + $0x160] sm:$0xff]  ;;  %v3630_v0 = vld [vmem:[#allocation4 + $0x170] sm:$0xff] }
 0x5a3   :  { %3413 = vmatprep.subr.mxu0 %v11664_v13  ;;  %3484 = vmatprep.subr.mxu1 %v11665_v14  ;;  %v3625_v13 = vld [vmem:[#allocation4 + $0x148] sm:$0xff]  ;;  %v3627_v14 = vld [vmem:[#allocation4 + $0x158] sm:$0xff] }
 0x5a4   :  { %3414 = vmatpush1.msra.mxu0 %v11666_v15  ;;  %3485 = vmatpush1.msra.mxu1 %v11667_v16  ;;  %v3624_v15 = vld [vmem:[#allocation4 + $0x140] sm:$0xff]  ;;  %v3626_v16 = vld [vmem:[#allocation4 + $0x150] sm:$0xff] }
 0x5a5   :  { %3415 = vmatprep.subr.mxu0 %v11668_v17  ;;  %3486 = vmatprep.subr.mxu1 %v11669_v18  ;;  %v3621_v17 = vld [vmem:[#allocation4 + $0x128] sm:$0xff]  ;;  %v3623_v18 = vld [vmem:[#allocation4 + $0x138] sm:$0xff] }
 0x5a6   :  { %3416 = vmatpush1.msra.mxu0 %v11670_v20  ;;  %3449 = vmatprep.mubr.f32.mxu0 %v11671_v21  ;;  %v3620_v20 = vld [vmem:[#allocation4 + $0x120] sm:$0xff] }
 0x5a7   :  { %3487 = vmatpush1.msra.mxu1 %v11672_v22  ;;  %3520 = vmatprep.mubr.f32.mxu1 %v11671_v21  ;;  %v3622_v22 = vld [vmem:[#allocation4 + $0x130] sm:$0xff] }
 0x5a8   :  { %3648 = vmatprep.subr.mxu0 %v3645_v50  ;;  %3719 = vmatprep.subr.mxu1 %v3647_v58  ;;  %v3587_v50 = vld [vmem:[#allocation4 + $0x18] sm:$0xff]  ;;  %v3584_v58 = vld [vmem:[#allocation4] sm:$0xff] }
 0x647   :  { %v3188_v23 = vpop.f32.mrf.mxu0  ;;  %v3259_v24 = vpop.f32.mrf.mxu1 }
 0x649   :  { %v3190_v37 = vpop.f32.mrf.mxu0  ;;  %v3261_v39 = vpop.f32.mrf.mxu1 }
 0x64a   :  { %v3268_v41 = vcombine.low %v3188_v23, %v3190_v37  ;;  %v3269_v43 = vcombine.low %v3259_v24, %v3261_v39  ;;  %v3617_v23 = vld [vmem:[#allocation4 + $0x108] sm:$0xff]  ;;  %v3619_v24 = vld [vmem:[#allocation4 + $0x118] sm:$0xff]  ;;  %v3616_v37 = vld [vmem:[#allocation4 + $0x100] sm:$0xff] }
 0x64b   :  { %v3618_v39 = vld [vmem:[#allocation4 + $0x110] sm:$0xff] }
 0x64c   :  { %v3276_v45 = vrot.slane %v3268_v41, %v8743_v31  ;;  %v3283_v47 = vrot.slane %v3269_v43, %v8743_v31  ;;  %v3613_v41 = vld [vmem:[#allocation4 + $0xe8] sm:$0xff]  ;;  %v3615_v43 = vld [vmem:[#allocation4 + $0xf8] sm:$0xff] }
 0x64e   :  { %v3284_v49 = vcombine.low %v3276_v45, %v3283_v47  ;;  %v3612_v45 = vld [vmem:[#allocation4 + $0xe0] sm:$0xff]  ;;  %v3614_v47 = vld [vmem:[#allocation4 + $0xf0] sm:$0xff] }
 0x650   :  { %v3286_v56 = vadd.f32 %v3284_v49, %v11675_v55  ;;  %v3609_v49 = vld [vmem:[#allocation4 + $0xc8] sm:$0xff]  ;;  %v3610_v55 = vld [vmem:[#allocation4 + $0xd0] sm:$0xff] }
 0x652   :  { %v7673_v12 = vmul.f32 -1.442695, %v3286_v56  ;;  %v3294_v46 = vrot.slane %v3286_v56, 2  ;;  %v3305_v36 = vrot.slane %v3286_v56, 6  ;;  %v3302_v35 = vrot.slane %v3286_v56, 4  ;;  %v3605_v56 = vld [vmem:[#allocation4 + $0xa8] sm:$0xff] }
 0x654   :  { %7852 = vpow2.f32 %v7673_v12  ;;  %v7674_v63 = vmul.f32 -1.442695, %v3294_v46  ;;  %v7675_v11 = vmul.f32 -1.442695, %v3305_v36  ;;  %v3607_v12 = vld [vmem:[#allocation4 + $0xb8] sm:$0xff]  ;;  %v3604_v46 = vld [vmem:[#allocation4 + $0xa0] sm:$0xff] }
 0x655   :  { %v3601_v36 = vld [vmem:[#allocation4 + $0x88] sm:$0xff] }
 0x656   :  { %7854 = vpow2.f32 %v7674_v63  ;;  %v3606_v63 = vld [vmem:[#allocation4 + $0xb0] sm:$0xff] }
 0x657   :  { %7856 = vpow2.f32 %v7675_v11  ;;  %v3603_v11 = vld [vmem:[#allocation4 + $0x98] sm:$0xff] }
 0x661   :  { %v7853_v26 = vpop.eup %7852 }
 0x662   :  { %v3290_v2 = vadd.f32 1.0, %v7853_v26  ;;  %v3600_v26 = vld [vmem:[#allocation4 + $0x80] sm:$0xff] }
 0x663   :  { %v7855_v7 = vpop.eup %7854 }
 0x664   :  { %7858 = vrcp.f32 %v3290_v2  ;;  %v3299_v6 = vadd.f32 1.0, %v7855_v7  ;;  %v7857_v62 = vpop.eup %7856  ;;  %v3597_v2 = vld [vmem:[#allocation4 + $0x68] sm:$0xff]  ;;  %v3599_v7 = vld [vmem:[#allocation4 + $0x78] sm:$0xff] }
 0x665   :  { %7860 = vtanh.f32 %v3302_v35  ;;  %v3310_v38 = vadd.f32 1.0, %v7857_v62  ;;  %v3602_v35 = vld [vmem:[#allocation4 + $0x90] sm:$0xff] }
 0x666   :  { %7862 = vrcp.f32 %v3299_v6  ;;  %v3596_v6 = vld [vmem:[#allocation4 + $0x60] sm:$0xff]  ;;  %v3598_v62 = vld [vmem:[#allocation4 + $0x70] sm:$0xff] }
 0x667   :  { %7864 = vrcp.f32 %v3310_v38  ;;  %v3594_v38 = vld [vmem:[#allocation4 + $0x50] sm:$0xff] }
 0x671   :  { %v7859_v57 = vpop.eup %7858 }
 0x672   :  { %v7861_v48 = vpop.eup %7860 }
 0x673   :  { %v7863_v29 = vpop.eup %7862  ;;  %v3314_v61 = vmul.f32 %v7861_v48, %v7859_v57  ;;  %v3593_v57 = vld [vmem:[#allocation4 + $0x48] sm:$0xff]  ;;  %v3595_v48 = vld [vmem:[#allocation4 + $0x58] sm:$0xff] }
 0x674   :  { %v3313_v30 = vmul.f32 %v7863_v29, %v9285_v3  ;;  %v7865_v25 = vpop.eup %7864  ;;  %v3641_v3 = vld [vmem:[#allocation4 + $0x1c8] sm:$0xff]  ;;  %v3592_v29 = vld [vmem:[#allocation4 + $0x40] sm:$0xff] }
 0x676   :  { %v9358_v52 = vadd.f32 %v3314_v61, %v3313_v30  ;;  %v3589_v30 = vld [vmem:[#allocation4 + $0x28] sm:$0xff]  ;;  %v3591_v61 = vld [vmem:[#allocation4 + $0x38] sm:$0xff] }
 0x678   :  { %7866 = vtanh.f32 %v9358_v52 }
 0x685   :  { %v7867_v40 = vpop.eup %7866 }
 0x686   :  { %v3317_v1 = vmul.f32 %v7867_v40, %v7865_v25  ;;  %v3588_v25 = vld [vmem:[#allocation4 + $0x20] sm:$0xff]  ;;  %v3590_v40 = vld [vmem:[#allocation4 + $0x30] sm:$0xff] }
 0x688   :  { %3319 = vst [vmem:[#allocation3 + $0xa] sm:$0x3] %v3317_v1  ;;  %3450 = vmatmul.mubr.f32.vlgmr.msra.gmra.mxu0 %v3317_v1  ;;  %3521 = vmatmul.mubr.f32.vlgmr.msra.gmra.mxu1 %v3317_v1  ;;  %v3585_v1 = vld [vmem:[#allocation4 + $0x8] sm:$0xff] }
 0x689   :  { %3712 = vmatprep.mubr.f32.mxu0 %v11671_v21  ;;  %3783 = vmatprep.mubr.f32.mxu1 %v11671_v21 }
 0x68a   :  { %3649 = vmatpush1.msra.mxu0 %v3644_v42  ;;  %3720 = vmatpush1.msra.mxu1 %v3646_v10  ;;  %v3586_v42 = vld [vmem:[#allocation4 + $0x10] sm:$0xff]  ;;  %v9363_v10 = vld [vmem:[#allocation6 + $0x1e8] sm:$0xff] }
 0x68b   :  { %3650 = vmatprep.subr.mxu0 %v3641_v3  ;;  %3721 = vmatprep.subr.mxu1 %v3643_v60  ;;  %v9365_v3 = vld [vmem:[#allocation6 + $0x1f8] sm:$0xff] }
 0x68c   :  { %3651 = vmatpush1.msra.mxu0 %v3640_v34  ;;  %3722 = vmatpush1.msra.mxu1 %v3642_v28 }
 0x68d   :  { %3652 = vmatprep.subr.mxu0 %v3637_v27  ;;  %3723 = vmatprep.subr.mxu1 %v3639_v59 }
 0x68e   :  { %3653 = vmatpush1.msra.mxu0 %v3636_v9  ;;  %3724 = vmatpush1.msra.mxu1 %v3638_v5 }
 0x68f   :  { %3654 = vmatprep.subr.mxu0 %v3633_v8  ;;  %3725 = vmatprep.subr.mxu1 %v3635_v32 }
 0x690   :  { %3655 = vmatpush1.msra.mxu0 %v3632_v44  ;;  %3726 = vmatpush1.msra.mxu1 %v3634_v33  ;;  %v11676_v44 = vld [vmem:[#allocation67_spill] sm:$0xff]  ;;  %v11677_v33 = vld [vmem:[#allocation68_spill] sm:$0xff] }
 0x691   :  { %3656 = vmatprep.subr.mxu0 %v3629_v4  ;;  %3727 = vmatprep.subr.mxu1 %v3631_v19  ;;  %v11678_v4 = vcombine.low %v11676_v44, %v11677_v33  ;;  %v9478_v44 = vld [vmem:[#allocation6 + $0xd8] sm:$0xff]  ;;  %v9482_v33 = vld [vmem:[#allocation6 + $0xc0] sm:$0xff] }
 0x692   :  { %3657 = vmatpush1.msra.mxu0 %v3628_v54  ;;  %3728 = vmatpush1.msra.mxu1 %v3630_v0 }
 0x693   :  { %3658 = vmatprep.subr.mxu0 %v3625_v13  ;;  %3729 = vmatprep.subr.mxu1 %v3627_v14 }
 0x694   :  { %3659 = vmatpush1.msra.mxu0 %v3624_v15  ;;  %3730 = vmatpush1.msra.mxu1 %v3626_v16 }
 0x695   :  { %3660 = vmatprep.subr.mxu0 %v3621_v17  ;;  %3731 = vmatprep.subr.mxu1 %v3623_v18 }
 0x696   :  { %3661 = vmatpush1.msra.mxu0 %v3620_v20  ;;  %3732 = vmatpush1.msra.mxu1 %v3622_v22 }
 0x697   :  { %3662 = vmatprep.subr.mxu0 %v3617_v23  ;;  %3733 = vmatprep.subr.mxu1 %v3619_v24 }
 0x698   :  { %3663 = vmatpush1.msra.mxu0 %v3616_v37  ;;  %3734 = vmatpush1.msra.mxu1 %v3618_v39 }
 0x699   :  { %3664 = vmatprep.subr.mxu0 %v3613_v41  ;;  %3735 = vmatprep.subr.mxu1 %v3615_v43 }
 0x69a   :  { %3665 = vmatpush1.msra.mxu0 %v3612_v45  ;;  %3736 = vmatpush1.msra.mxu1 %v3614_v47 }
 0x69b   :  { %3666 = vmatprep.subr.mxu0 %v3609_v49  ;;  %3737 = vmatprep.subr.mxu1 %v3611_v51 }
 0x69c   :  { %3667 = vmatpush1.msra.mxu0 %v3608_v53  ;;  %3738 = vmatpush1.msra.mxu1 %v3610_v55  ;;  %v9378_v55 = vld [vmem:[#allocation6 + $0x1e0] sm:$0xff] }
 0x69d   :  { %3668 = vmatprep.subr.mxu0 %v3605_v56  ;;  %3739 = vmatprep.subr.mxu1 %v3607_v12  ;;  %v9380_v56 = vld [vmem:[#allocation6 + $0x1f0] sm:$0xff]  ;;  %v9382_v12 = vld [vmem:[#allocation6 + $0x1c8] sm:$0xff] }
 0x69e   :  { %3669 = vmatpush1.msra.mxu0 %v3604_v46  ;;  %3740 = vmatpush1.msra.mxu1 %v3606_v63  ;;  %v9384_v46 = vld [vmem:[#allocation6 + $0x1d8] sm:$0xff]  ;;  %v9388_v63 = vld [vmem:[#allocation6 + $0x1d0] sm:$0xff] }
 0x69f   :  { %3670 = vmatprep.subr.mxu0 %v3601_v36  ;;  %3741 = vmatprep.subr.mxu1 %v3603_v11  ;;  %v9392_v36 = vld [vmem:[#allocation6 + $0x1a8] sm:$0xff]  ;;  %v9394_v11 = vld [vmem:[#allocation6 + $0x1b8] sm:$0xff] }
 0x6a0   :  { %3671 = vmatpush1.msra.mxu0 %v3600_v26  ;;  %3742 = vmatpush1.msra.mxu1 %v3602_v35  ;;  %v9398_v26 = vld [vmem:[#allocation6 + $0x1a0] sm:$0xff]  ;;  %v9400_v35 = vld [vmem:[#allocation6 + $0x1b0] sm:$0xff] }
 0x6a1   :  { %3672 = vmatprep.subr.mxu0 %v3597_v2  ;;  %3743 = vmatprep.subr.mxu1 %v3599_v7  ;;  %v9404_v2 = vld [vmem:[#allocation6 + $0x188] sm:$0xff]  ;;  %v9406_v7 = vld [vmem:[#allocation6 + $0x198] sm:$0xff] }
 0x6a2   :  { %3673 = vmatpush1.msra.mxu0 %v3596_v6  ;;  %3744 = vmatpush1.msra.mxu1 %v3598_v62  ;;  %v9410_v6 = vld [vmem:[#allocation6 + $0x180] sm:$0xff]  ;;  %v9412_v62 = vld [vmem:[#allocation6 + $0x190] sm:$0xff] }
 0x6a3   :  { %3674 = vmatprep.subr.mxu0 %v3593_v57  ;;  %3745 = vmatprep.subr.mxu1 %v3595_v48  ;;  %v9416_v57 = vld [vmem:[#allocation6 + $0x168] sm:$0xff]  ;;  %v9418_v48 = vld [vmem:[#allocation6 + $0x178] sm:$0xff] }
 0x6a4   :  { %3675 = vmatpush1.msra.mxu0 %v3592_v29  ;;  %3746 = vmatpush1.msra.mxu1 %v3594_v38  ;;  %v9422_v29 = vld [vmem:[#allocation6 + $0x160] sm:$0xff]  ;;  %v9424_v38 = vld [vmem:[#allocation6 + $0x170] sm:$0xff] }
 0x6a5   :  { %3676 = vmatprep.subr.mxu0 %v3589_v30  ;;  %3747 = vmatprep.subr.mxu1 %v3591_v61  ;;  %v9428_v30 = vld [vmem:[#allocation6 + $0x148] sm:$0xff]  ;;  %v9430_v61 = vld [vmem:[#allocation6 + $0x158] sm:$0xff] }
 0x6a6   :  { %3677 = vmatpush1.msra.mxu0 %v3588_v25  ;;  %3748 = vmatpush1.msra.mxu1 %v3590_v40  ;;  %v9434_v25 = vld [vmem:[#allocation6 + $0x140] sm:$0xff]  ;;  %v9436_v40 = vld [vmem:[#allocation6 + $0x150] sm:$0xff] }
 0x6a7   :  { %3678 = vmatprep.subr.mxu0 %v3585_v1  ;;  %3749 = vmatprep.subr.mxu1 %v3587_v50  ;;  %v9440_v1 = vld [vmem:[#allocation6 + $0x128] sm:$0xff]  ;;  %v9442_v50 = vld [vmem:[#allocation6 + $0x138] sm:$0xff] }
 0x6a8   :  { %3679 = vmatpush1.msra.mxu0 %v3584_v58  ;;  %3750 = vmatpush1.msra.mxu1 %v3586_v42  ;;  %v9446_v58 = vld [vmem:[#allocation6 + $0x120] sm:$0xff]  ;;  %v9448_v42 = vld [vmem:[#allocation6 + $0x130] sm:$0xff] }
 0x6a9   :  { %3933 = vmatprep.subr.mxu0 %v9363_v10  ;;  %4004 = vmatprep.subr.mxu1 %v9365_v3 }
 0x748   :  { %v3451_v60 = vpop.f32.mrf.mxu0  ;;  %v3522_v34 = vpop.f32.mrf.mxu1 }
 0x74a   :  { %v3453_v28 = vpop.f32.mrf.mxu0  ;;  %v3524_v27 = vpop.f32.mrf.mxu1 }
 0x74b   :  { %v3531_v59 = vcombine.low %v3451_v60, %v3453_v28  ;;  %v3532_v9 = vcombine.low %v3522_v34, %v3524_v27  ;;  %v9452_v60 = vld [vmem:[#allocation6 + $0x108] sm:$0xff]  ;;  %v9454_v34 = vld [vmem:[#allocation6 + $0x118] sm:$0xff]  ;;  %v9458_v28 = vld [vmem:[#allocation6 + $0x100] sm:$0xff] }
 0x74c   :  { %v9460_v27 = vld [vmem:[#allocation6 + $0x110] sm:$0xff] }
 0x74d   :  { %v3539_v5 = vrot.slane %v3531_v59, %v8743_v31  ;;  %v3546_v8 = vrot.slane %v3532_v9, %v8743_v31  ;;  %v9464_v59 = vld [vmem:[#allocation6 + $0xe8] sm:$0xff]  ;;  %v9466_v9 = vld [vmem:[#allocation6 + $0xf8] sm:$0xff]  ;;  %v9554_v31 = vld [vmem:[#allocation6] sm:$0xff] }
 0x74f   :  { %v3547_v32 = vcombine.low %v3539_v5, %v3546_v8  ;;  %v9470_v5 = vld [vmem:[#allocation6 + $0xe0] sm:$0xff]  ;;  %v9472_v8 = vld [vmem:[#allocation6 + $0xf0] sm:$0xff] }
 0x751   :  { %v3549_v19 = vadd.f32 %v3547_v32, %v11678_v4  ;;  %v9476_v32 = vld [vmem:[#allocation6 + $0xc8] sm:$0xff]  ;;  %v9484_v4 = vld [vmem:[#allocation6 + $0xd0] sm:$0xff] }
 0x753   :  { %v7676_v54 = vmul.f32 -1.442695, %v3549_v19  ;;  %v3557_v0 = vrot.slane %v3549_v19, 2  ;;  %v3568_v14 = vrot.slane %v3549_v19, 6  ;;  %v3565_v17 = vrot.slane %v3549_v19, 4  ;;  %v9488_v19 = vld [vmem:[#allocation6 + $0xa8] sm:$0xff] }
 0x755   :  { %7868 = vpow2.f32 %v7676_v54  ;;  %v7677_v13 = vmul.f32 -1.442695, %v3557_v0  ;;  %v7678_v15 = vmul.f32 -1.442695, %v3568_v14  ;;  %v9490_v54 = vld [vmem:[#allocation6 + $0xb8] sm:$0xff]  ;;  %v9494_v0 = vld [vmem:[#allocation6 + $0xa0] sm:$0xff] }
 0x756   :  { %v9500_v14 = vld [vmem:[#allocation6 + $0x88] sm:$0xff] }
 0x757   :  { %7870 = vpow2.f32 %v7677_v13  ;;  %v9496_v13 = vld [vmem:[#allocation6 + $0xb0] sm:$0xff]  ;;  %11680 = vst [vmem:[#allocation45_spill] sm:$0xff] %v9500_v14 }
 0x758   :  { %7872 = vpow2.f32 %v7678_v15  ;;  %v9502_v15 = vld [vmem:[#allocation6 + $0x98] sm:$0xff] }
 0x762   :  { %v7869_v16 = vpop.eup %7868 }
 0x763   :  { %v3553_v18 = vadd.f32 1.0, %v7869_v16  ;;  %v9506_v16 = vld [vmem:[#allocation6 + $0x80] sm:$0xff] }
 0x764   :  { %v7871_v20 = vpop.eup %7870  ;;  %11681 = vst [vmem:[#allocation26_spill] sm:$0xff] %v9506_v16 }
 0x765   :  { %7874 = vrcp.f32 %v3553_v18  ;;  %v3562_v22 = vadd.f32 1.0, %v7871_v20  ;;  %v7873_v23 = vpop.eup %7872  ;;  %v9512_v18 = vld [vmem:[#allocation6 + $0x68] sm:$0xff]  ;;  %v9514_v20 = vld [vmem:[#allocation6 + $0x78] sm:$0xff] }
 0x766   :  { %7876 = vtanh.f32 %v3565_v17  ;;  %v3573_v41 = vadd.f32 1.0, %v7873_v23  ;;  %v9508_v17 = vld [vmem:[#allocation6 + $0x90] sm:$0xff] }
 0x767   :  { %7878 = vrcp.f32 %v3562_v22  ;;  %v9518_v22 = vld [vmem:[#allocation6 + $0x60] sm:$0xff]  ;;  %v9520_v23 = vld [vmem:[#allocation6 + $0x70] sm:$0xff] }
 0x768   :  { %7880 = vrcp.f32 %v3573_v41  ;;  %v9532_v41 = vld [vmem:[#allocation6 + $0x50] sm:$0xff] }
 0x769   :  { %11683 = vst [vmem:[#allocation27_spill] sm:$0xff] %v9532_v41 }
 0x772   :  { %v7875_v24 = vpop.eup %7874 }
 0x773   :  { %v7877_v37 = vpop.eup %7876 }
 0x774   :  { %v7879_v39 = vpop.eup %7878  ;;  %v3577_v45 = vmul.f32 %v7877_v37, %v7875_v24  ;;  %v9524_v24 = vld [vmem:[#allocation6 + $0x48] sm:$0xff]  ;;  %v9526_v37 = vld [vmem:[#allocation6 + $0x58] sm:$0xff] }
 0x775   :  { %v3576_v43 = vmul.f32 %v7879_v39, %v9358_v52  ;;  %v7881_v49 = vpop.eup %7880  ;;  %v9386_v52 = vld [vmem:[#allocation6 + $0x1c0] sm:$0xff]  ;;  %11682 = vst [vmem:[#allocation46_spill] sm:$0xff] %v9526_v37 }
 0x776   :  { %v9530_v39 = vld [vmem:[#allocation6 + $0x40] sm:$0xff] }
 0x777   :  { %v9375_v47 = vadd.f32 %v3577_v45, %v3576_v43  ;;  %v9536_v43 = vld [vmem:[#allocation6 + $0x28] sm:$0xff]  ;;  %v9538_v45 = vld [vmem:[#allocation6 + $0x38] sm:$0xff] }
 0x778   :  { %11684 = vst [vmem:[#allocation47_spill] sm:$0xff] %v9538_v45 }
 0x779   :  { %11679 = vst [vmem:[#allocation25_spill] sm:$0xff] %v9375_v47  ;;  %7882 = vtanh.f32 %v9375_v47  ;;  %v9550_v47 = vld [vmem:[#allocation6 + $0x18] sm:$0xff] }
 0x786   :  { %v7883_v51 = vpop.eup %7882 }
 0x787   :  { %v3580_v53 = vmul.f32 %v7883_v51, %v7881_v49  ;;  %v9542_v49 = vld [vmem:[#allocation6 + $0x20] sm:$0xff]  ;;  %v9544_v51 = vld [vmem:[#allocation6 + $0x30] sm:$0xff] }
 0x789   :  { %3582 = vst [vmem:[#allocation3 + $0xc] sm:$0x3] %v3580_v53  ;;  %3713 = vmatmul.mubr.f32.vlgmr.msra.gmra.mxu0 %v3580_v53  ;;  %3784 = vmatmul.mubr.f32.vlgmr.msra.gmra.mxu1 %v3580_v53  ;;  %v9548_v53 = vld [vmem:[#allocation6 + $0x8] sm:$0xff] }
 0x78a   :  { %3934 = vmatpush1.msra.mxu0 %v9378_v55  ;;  %4005 = vmatpush1.msra.mxu1 %v9380_v56 }
 0x78b   :  { %3935 = vmatprep.subr.mxu0 %v9382_v12  ;;  %4006 = vmatprep.subr.mxu1 %v9384_v46 }
 0x78c   :  { %3936 = vmatpush1.msra.mxu0 %v9386_v52  ;;  %4007 = vmatpush1.msra.mxu1 %v9388_v63 }
 0x78d   :  { %3937 = vmatprep.subr.mxu0 %v9392_v36  ;;  %4008 = vmatprep.subr.mxu1 %v9394_v11 }
 0x78e   :  { %3938 = vmatpush1.msra.mxu0 %v9398_v26  ;;  %4009 = vmatpush1.msra.mxu1 %v9400_v35 }
 0x78f   :  { %3939 = vmatprep.subr.mxu0 %v9404_v2  ;;  %4010 = vmatprep.subr.mxu1 %v9406_v7 }
 0x790   :  { %3940 = vmatpush1.msra.mxu0 %v9410_v6  ;;  %4011 = vmatpush1.msra.mxu1 %v9412_v62 }
 0x791   :  { %3941 = vmatprep.subr.mxu0 %v9416_v57  ;;  %4012 = vmatprep.subr.mxu1 %v9418_v48 }
 0x792   :  { %3942 = vmatpush1.msra.mxu0 %v9422_v29  ;;  %4013 = vmatpush1.msra.mxu1 %v9424_v38 }
 0x793   :  { %3943 = vmatprep.subr.mxu0 %v9428_v30  ;;  %4014 = vmatprep.subr.mxu1 %v9430_v61 }
 0x794   :  { %3944 = vmatpush1.msra.mxu0 %v9434_v25  ;;  %4015 = vmatpush1.msra.mxu1 %v9436_v40 }
 0x795   :  { %3945 = vmatprep.subr.mxu0 %v9440_v1  ;;  %4016 = vmatprep.subr.mxu1 %v9442_v50 }
 0x796   :  { %3946 = vmatpush1.msra.mxu0 %v9446_v58  ;;  %4017 = vmatpush1.msra.mxu1 %v9448_v42 }
 0x797   :  { %3947 = vmatprep.subr.mxu0 %v9452_v60  ;;  %4018 = vmatprep.subr.mxu1 %v9454_v34 }
 0x798   :  { %3948 = vmatpush1.msra.mxu0 %v9458_v28  ;;  %4019 = vmatpush1.msra.mxu1 %v9460_v27 }
 0x799   :  { %3949 = vmatprep.subr.mxu0 %v9464_v59  ;;  %4020 = vmatprep.subr.mxu1 %v9466_v9 }
 0x79a   :  { %3950 = vmatpush1.msra.mxu0 %v9470_v5  ;;  %4021 = vmatpush1.msra.mxu1 %v9472_v8 }
 0x79b   :  { %3951 = vmatprep.subr.mxu0 %v9476_v32  ;;  %4022 = vmatprep.subr.mxu1 %v9478_v44 }
 0x79c   :  { %3952 = vmatpush1.msra.mxu0 %v9482_v33  ;;  %4023 = vmatpush1.msra.mxu1 %v9484_v4 }
 0x79d   :  { %3953 = vmatprep.subr.mxu0 %v9488_v19  ;;  %4024 = vmatprep.subr.mxu1 %v9490_v54 }
 0x79e   :  { %3954 = vmatpush1.msra.mxu0 %v9494_v0  ;;  %4025 = vmatpush1.msra.mxu1 %v9496_v13 }
 0x79f   :  { %3955 = vmatprep.subr.mxu0 %v9500_v14  ;;  %4026 = vmatprep.subr.mxu1 %v9502_v15 }
 0x7a0   :  { %3956 = vmatpush1.msra.mxu0 %v9506_v16  ;;  %4027 = vmatpush1.msra.mxu1 %v9508_v17 }
 0x7a1   :  { %3957 = vmatprep.subr.mxu0 %v9512_v18  ;;  %4028 = vmatprep.subr.mxu1 %v9514_v20 }
 0x7a2   :  { %3958 = vmatpush1.msra.mxu0 %v9518_v22  ;;  %4029 = vmatpush1.msra.mxu1 %v9520_v23 }
 0x7a3   :  { %3959 = vmatprep.subr.mxu0 %v9524_v24  ;;  %4030 = vmatprep.subr.mxu1 %v9526_v37  ;;  %v9558_v37 = vld [vmem:[#allocation6 + $0x10] sm:$0xff] }
 0x7a4   :  { %3960 = vmatpush1.msra.mxu0 %v9530_v39  ;;  %4031 = vmatpush1.msra.mxu1 %v9532_v41 }
 0x7a5   :  { %3961 = vmatprep.subr.mxu0 %v9536_v43  ;;  %4032 = vmatprep.subr.mxu1 %v9538_v45  ;;  %v3846_v45 = vld [vmem:[#allocation3] sm:$0x3] }
 0x7a6   :  { %3962 = vmatpush1.msra.mxu0 %v9542_v49  ;;  %4033 = vmatpush1.msra.mxu1 %v9544_v51 }
 0x7a7   :  { %3963 = vmatprep.subr.mxu0 %v9548_v53  ;;  %4034 = vmatprep.subr.mxu1 %v9550_v47 }
 0x7a8   :  { %3964 = vmatpush1.msra.mxu0 %v9554_v31  ;;  %3997 = vmatprep.mubr.f32.mxu0 %v11671_v21 }
 0x7a9   :  { %4035 = vmatpush1.msra.mxu1 %v9558_v37  ;;  %4068 = vmatprep.mubr.f32.mxu1 %v11671_v21 }
 0x7aa   :  { %3998 = vmatmul.mubr.f32.vlgmr.msra.gmra.mxu0 %v3846_v45  ;;  %4069 = vmatmul.mubr.f32.vlgmr.msra.gmra.mxu1 %v3846_v45  ;;  %v11685_v45 = vld [vmem:[#allocation46_spill] sm:$0xff] }
 0x7ab   :  { %4185 = vmatprep.subr.mxu0 %v9363_v10  ;;  %4256 = vmatprep.subr.mxu1 %v9365_v3 }
 0x7ac   :  { %4186 = vmatpush1.msra.mxu0 %v9378_v55  ;;  %4257 = vmatpush1.msra.mxu1 %v9380_v56 }
 0x7ad   :  { %4187 = vmatprep.subr.mxu0 %v9382_v12  ;;  %4258 = vmatprep.subr.mxu1 %v9384_v46 }
 0x7ae   :  { %4188 = vmatpush1.msra.mxu0 %v9386_v52  ;;  %4259 = vmatpush1.msra.mxu1 %v9388_v63 }
 0x7af   :  { %4189 = vmatprep.subr.mxu0 %v9392_v36  ;;  %4260 = vmatprep.subr.mxu1 %v9394_v11 }
 0x7b0   :  { %4190 = vmatpush1.msra.mxu0 %v9398_v26  ;;  %4261 = vmatpush1.msra.mxu1 %v9400_v35 }
 0x7b1   :  { %4191 = vmatprep.subr.mxu0 %v9404_v2  ;;  %4262 = vmatprep.subr.mxu1 %v9406_v7 }
 0x7b2   :  { %4192 = vmatpush1.msra.mxu0 %v9410_v6  ;;  %4263 = vmatpush1.msra.mxu1 %v9412_v62 }
 0x7b3   :  { %4193 = vmatprep.subr.mxu0 %v9416_v57  ;;  %4264 = vmatprep.subr.mxu1 %v9418_v48 }
 0x7b4   :  { %4194 = vmatpush1.msra.mxu0 %v9422_v29  ;;  %4265 = vmatpush1.msra.mxu1 %v9424_v38 }
 0x7b5   :  { %4195 = vmatprep.subr.mxu0 %v9428_v30  ;;  %4266 = vmatprep.subr.mxu1 %v9430_v61 }
 0x7b6   :  { %4196 = vmatpush1.msra.mxu0 %v9434_v25  ;;  %4267 = vmatpush1.msra.mxu1 %v9436_v40 }
 0x7b7   :  { %4197 = vmatprep.subr.mxu0 %v9440_v1  ;;  %4268 = vmatprep.subr.mxu1 %v9442_v50 }
 0x7b8   :  { %4198 = vmatpush1.msra.mxu0 %v9446_v58  ;;  %4269 = vmatpush1.msra.mxu1 %v9448_v42 }
 0x7b9   :  { %4199 = vmatprep.subr.mxu0 %v9452_v60  ;;  %4270 = vmatprep.subr.mxu1 %v9454_v34 }
 0x7ba   :  { %4200 = vmatpush1.msra.mxu0 %v9458_v28  ;;  %4271 = vmatpush1.msra.mxu1 %v9460_v27 }
 0x7bb   :  { %4201 = vmatprep.subr.mxu0 %v9464_v59  ;;  %4272 = vmatprep.subr.mxu1 %v9466_v9 }
 0x7bc   :  { %4202 = vmatpush1.msra.mxu0 %v9470_v5  ;;  %4273 = vmatpush1.msra.mxu1 %v9472_v8 }
 0x7bd   :  { %4203 = vmatprep.subr.mxu0 %v9476_v32  ;;  %4274 = vmatprep.subr.mxu1 %v9478_v44 }
 0x7be   :  { %4204 = vmatpush1.msra.mxu0 %v9482_v33  ;;  %4275 = vmatpush1.msra.mxu1 %v9484_v4 }
 0x7bf   :  { %4205 = vmatprep.subr.mxu0 %v9488_v19  ;;  %4276 = vmatprep.subr.mxu1 %v9490_v54 }
 0x7c0   :  { %4206 = vmatpush1.msra.mxu0 %v9494_v0  ;;  %4277 = vmatpush1.msra.mxu1 %v9496_v13 }
 0x7c1   :  { %4207 = vmatprep.subr.mxu0 %v9500_v14  ;;  %4278 = vmatprep.subr.mxu1 %v9502_v15 }
 0x7c2   :  { %4208 = vmatpush1.msra.mxu0 %v9506_v16  ;;  %4279 = vmatpush1.msra.mxu1 %v9508_v17  ;;  %v11686_v16 = vld [vmem:[#allocation47_spill] sm:$0xff] }
 0x7c3   :  { %4209 = vmatprep.subr.mxu0 %v9512_v18  ;;  %4280 = vmatprep.subr.mxu1 %v9514_v20 }
 0x7c4   :  { %4210 = vmatpush1.msra.mxu0 %v9518_v22  ;;  %4281 = vmatpush1.msra.mxu1 %v9520_v23 }
 0x7c5   :  { %4211 = vmatprep.subr.mxu0 %v9524_v24  ;;  %4282 = vmatprep.subr.mxu1 %v11685_v45 }
 0x7c6   :  { %4212 = vmatpush1.msra.mxu0 %v9530_v39  ;;  %4283 = vmatpush1.msra.mxu1 %v9532_v41  ;;  %v4098_v41 = vld [vmem:[#allocation3 + $0x2] sm:$0x3] }
 0x7c7   :  { %4213 = vmatprep.subr.mxu0 %v9536_v43  ;;  %4284 = vmatprep.subr.mxu1 %v11686_v16 }
 0x7c8   :  { %4214 = vmatpush1.msra.mxu0 %v9542_v49  ;;  %4285 = vmatpush1.msra.mxu1 %v9544_v51 }
 0x7c9   :  { %4215 = vmatprep.subr.mxu0 %v9548_v53  ;;  %4286 = vmatprep.subr.mxu1 %v9550_v47 }
 0x7ca   :  { %4216 = vmatpush1.msra.mxu0 %v9554_v31  ;;  %4249 = vmatprep.mubr.f32.mxu0 %v11671_v21 }
 0x7cb   :  { %4287 = vmatpush1.msra.mxu1 %v9558_v37  ;;  %4320 = vmatprep.mubr.f32.mxu1 %v11671_v21 }
 0x7cc   :  { %4250 = vmatmul.mubr.f32.vlgmr.msra.gmra.mxu0 %v4098_v41  ;;  %4321 = vmatmul.mubr.f32.vlgmr.msra.gmra.mxu1 %v4098_v41  ;;  %v11687_v41 = vld [vmem:[#allocation26_spill] sm:$0xff] }
 0x7cd   :  { %4437 = vmatprep.subr.mxu0 %v9363_v10  ;;  %4508 = vmatprep.subr.mxu1 %v9365_v3 }
 0x7ce   :  { %4438 = vmatpush1.msra.mxu0 %v9378_v55  ;;  %4509 = vmatpush1.msra.mxu1 %v9380_v56 }
 0x7cf   :  { %4439 = vmatprep.subr.mxu0 %v9382_v12  ;;  %4510 = vmatprep.subr.mxu1 %v9384_v46 }
 0x7d0   :  { %4440 = vmatpush1.msra.mxu0 %v9386_v52  ;;  %4511 = vmatpush1.msra.mxu1 %v9388_v63 }
 0x7d1   :  { %4441 = vmatprep.subr.mxu0 %v9392_v36  ;;  %4512 = vmatprep.subr.mxu1 %v9394_v11 }
 0x7d2   :  { %4442 = vmatpush1.msra.mxu0 %v9398_v26  ;;  %4513 = vmatpush1.msra.mxu1 %v9400_v35 }
 0x7d3   :  { %4443 = vmatprep.subr.mxu0 %v9404_v2  ;;  %4514 = vmatprep.subr.mxu1 %v9406_v7 }
 0x7d4   :  { %4444 = vmatpush1.msra.mxu0 %v9410_v6  ;;  %4515 = vmatpush1.msra.mxu1 %v9412_v62 }
 0x7d5   :  { %4445 = vmatprep.subr.mxu0 %v9416_v57  ;;  %4516 = vmatprep.subr.mxu1 %v9418_v48 }
 0x7d6   :  { %4446 = vmatpush1.msra.mxu0 %v9422_v29  ;;  %4517 = vmatpush1.msra.mxu1 %v9424_v38 }
 0x7d7   :  { %4447 = vmatprep.subr.mxu0 %v9428_v30  ;;  %4518 = vmatprep.subr.mxu1 %v9430_v61 }
 0x7d8   :  { %4448 = vmatpush1.msra.mxu0 %v9434_v25  ;;  %4519 = vmatpush1.msra.mxu1 %v9436_v40 }
 0x7d9   :  { %4449 = vmatprep.subr.mxu0 %v9440_v1  ;;  %4520 = vmatprep.subr.mxu1 %v9442_v50 }
 0x7da   :  { %4450 = vmatpush1.msra.mxu0 %v9446_v58  ;;  %4521 = vmatpush1.msra.mxu1 %v9448_v42 }
 0x7db   :  { %4451 = vmatprep.subr.mxu0 %v9452_v60  ;;  %4522 = vmatprep.subr.mxu1 %v9454_v34 }
 0x7dc   :  { %4452 = vmatpush1.msra.mxu0 %v9458_v28  ;;  %4523 = vmatpush1.msra.mxu1 %v9460_v27 }
 0x7dd   :  { %4453 = vmatprep.subr.mxu0 %v9464_v59  ;;  %4524 = vmatprep.subr.mxu1 %v9466_v9 }
 0x7de   :  { %4454 = vmatpush1.msra.mxu0 %v9470_v5  ;;  %4525 = vmatpush1.msra.mxu1 %v9472_v8 }
 0x7df   :  { %4455 = vmatprep.subr.mxu0 %v9476_v32  ;;  %4526 = vmatprep.subr.mxu1 %v9478_v44 }
 0x7e0   :  { %4456 = vmatpush1.msra.mxu0 %v9482_v33  ;;  %4527 = vmatpush1.msra.mxu1 %v9484_v4 }
 0x7e1   :  { %4457 = vmatprep.subr.mxu0 %v9488_v19  ;;  %4528 = vmatprep.subr.mxu1 %v9490_v54 }
 0x7e2   :  { %4458 = vmatpush1.msra.mxu0 %v9494_v0  ;;  %4529 = vmatpush1.msra.mxu1 %v9496_v13 }
 0x7e3   :  { %4459 = vmatprep.subr.mxu0 %v9500_v14  ;;  %4530 = vmatprep.subr.mxu1 %v9502_v15  ;;  %v11688_v14 = vld [vmem:[#allocation27_spill] sm:$0xff] }
 0x7e4   :  { %4460 = vmatpush1.msra.mxu0 %v11687_v41  ;;  %4531 = vmatpush1.msra.mxu1 %v9508_v17 }
 0x7e5   :  { %4461 = vmatprep.subr.mxu0 %v9512_v18  ;;  %4532 = vmatprep.subr.mxu1 %v9514_v20 }
 0x7e6   :  { %4462 = vmatpush1.msra.mxu0 %v9518_v22  ;;  %4533 = vmatpush1.msra.mxu1 %v9520_v23 }
 0x7e7   :  { %4463 = vmatprep.subr.mxu0 %v9524_v24  ;;  %4534 = vmatprep.subr.mxu1 %v11685_v45 }
 0x7e8   :  { %4464 = vmatpush1.msra.mxu0 %v9530_v39  ;;  %4535 = vmatpush1.msra.mxu1 %v11688_v14  ;;  %v4350_v14 = vld [vmem:[#allocation3 + $0x4] sm:$0x3] }
 0x7e9   :  { %4465 = vmatprep.subr.mxu0 %v9536_v43  ;;  %4536 = vmatprep.subr.mxu1 %v11686_v16 }
 0x7ea   :  { %4466 = vmatpush1.msra.mxu0 %v9542_v49  ;;  %4537 = vmatpush1.msra.mxu1 %v9544_v51 }
 0x7eb   :  { %4467 = vmatprep.subr.mxu0 %v9548_v53  ;;  %4538 = vmatprep.subr.mxu1 %v9550_v47 }
 0x7ec   :  { %4468 = vmatpush1.msra.mxu0 %v9554_v31  ;;  %4501 = vmatprep.mubr.f32.mxu0 %v11671_v21 }
 0x7ed   :  { %4539 = vmatpush1.msra.mxu1 %v9558_v37  ;;  %4572 = vmatprep.mubr.f32.mxu1 %v11671_v21 }
 0x7ee   :  { %4502 = vmatmul.mubr.f32.vlgmr.msra.gmra.mxu0 %v4350_v14  ;;  %4573 = vmatmul.mubr.f32.vlgmr.msra.gmra.mxu1 %v4350_v14  ;;  %v9888_v14 = vld [vmem:[#allocation6 + $0xb0] sm:$0xff] }
 0x7ef   :  { %4689 = vmatprep.subr.mxu0 %v9363_v10  ;;  %4760 = vmatprep.subr.mxu1 %v9365_v3  ;;  %v11689_v10 = vld [vmem:[#allocation45_spill] sm:$0xff]  ;;  %v11690_v3 = vld [vmem:[#allocation27_spill] sm:$0xff]  ;;  %11695 = vst [vmem:[#allocation30_spill] sm:$0xff] %v9888_v14 }
 0x7f0   :  { %4690 = vmatpush1.msra.mxu0 %v9378_v55  ;;  %4761 = vmatpush1.msra.mxu1 %v9380_v56  ;;  %v9762_v55 = vld [vmem:[#allocation6 + $0x1e8] sm:$0xff]  ;;  %v9764_v56 = vld [vmem:[#allocation6 + $0x1f8] sm:$0xff] }
 0x7f1   :  { %4691 = vmatprep.subr.mxu0 %v9382_v12  ;;  %4762 = vmatprep.subr.mxu1 %v9384_v46  ;;  %v4602_v12 = vld [vmem:[#allocation3 + $0x6] sm:$0x3]  ;;  %v9768_v46 = vld [vmem:[#allocation6 + $0x1e0] sm:$0xff] }
 0x7f2   :  { %4692 = vmatpush1.msra.mxu0 %v9386_v52  ;;  %4763 = vmatpush1.msra.mxu1 %v9388_v63  ;;  %v9770_v52 = vld [vmem:[#allocation6 + $0x1f0] sm:$0xff]  ;;  %v9778_v63 = vld [vmem:[#allocation6 + $0x1c0] sm:$0xff] }
 0x7f3   :  { %4693 = vmatprep.subr.mxu0 %v9392_v36  ;;  %4764 = vmatprep.subr.mxu1 %v9394_v11  ;;  %v9780_v36 = vld [vmem:[#allocation6 + $0x1d0] sm:$0xff]  ;;  %v9784_v11 = vld [vmem:[#allocation6 + $0x1a8] sm:$0xff] }
 0x7f4   :  { %4694 = vmatpush1.msra.mxu0 %v9398_v26  ;;  %4765 = vmatpush1.msra.mxu1 %v9400_v35  ;;  %v9786_v26 = vld [vmem:[#allocation6 + $0x1b8] sm:$0xff]  ;;  %v9790_v35 = vld [vmem:[#allocation6 + $0x1a0] sm:$0xff] }
 0x7f5   :  { %4695 = vmatprep.subr.mxu0 %v9404_v2  ;;  %4766 = vmatprep.subr.mxu1 %v9406_v7  ;;  %v9792_v2 = vld [vmem:[#allocation6 + $0x1b0] sm:$0xff]  ;;  %v9796_v7 = vld [vmem:[#allocation6 + $0x188] sm:$0xff] }
 0x7f6   :  { %4696 = vmatpush1.msra.mxu0 %v9410_v6  ;;  %4767 = vmatpush1.msra.mxu1 %v9412_v62  ;;  %v9798_v6 = vld [vmem:[#allocation6 + $0x198] sm:$0xff]  ;;  %v9802_v62 = vld [vmem:[#allocation6 + $0x180] sm:$0xff] }
 0x7f7   :  { %4697 = vmatprep.subr.mxu0 %v9416_v57  ;;  %4768 = vmatprep.subr.mxu1 %v9418_v48  ;;  %v9804_v57 = vld [vmem:[#allocation6 + $0x190] sm:$0xff]  ;;  %v9808_v48 = vld [vmem:[#allocation6 + $0x168] sm:$0xff] }
 0x7f8   :  { %4698 = vmatpush1.msra.mxu0 %v9422_v29  ;;  %4769 = vmatpush1.msra.mxu1 %v9424_v38  ;;  %v9810_v29 = vld [vmem:[#allocation6 + $0x178] sm:$0xff]  ;;  %v9814_v38 = vld [vmem:[#allocation6 + $0x160] sm:$0xff] }
 0x7f9   :  { %4699 = vmatprep.subr.mxu0 %v9428_v30  ;;  %4770 = vmatprep.subr.mxu1 %v9430_v61  ;;  %v9816_v30 = vld [vmem:[#allocation6 + $0x170] sm:$0xff]  ;;  %v9820_v61 = vld [vmem:[#allocation6 + $0x148] sm:$0xff] }
 0x7fa   :  { %4700 = vmatpush1.msra.mxu0 %v9434_v25  ;;  %4771 = vmatpush1.msra.mxu1 %v9436_v40  ;;  %v9822_v25 = vld [vmem:[#allocation6 + $0x158] sm:$0xff]  ;;  %v9826_v40 = vld [vmem:[#allocation6 + $0x140] sm:$0xff] }
 0x7fb   :  { %4701 = vmatprep.subr.mxu0 %v9440_v1  ;;  %4772 = vmatprep.subr.mxu1 %v9442_v50  ;;  %v9828_v1 = vld [vmem:[#allocation6 + $0x150] sm:$0xff]  ;;  %v9832_v50 = vld [vmem:[#allocation6 + $0x128] sm:$0xff] }
 0x7fc   :  { %4702 = vmatpush1.msra.mxu0 %v9446_v58  ;;  %4773 = vmatpush1.msra.mxu1 %v9448_v42  ;;  %v9834_v58 = vld [vmem:[#allocation6 + $0x138] sm:$0xff]  ;;  %v9838_v42 = vld [vmem:[#allocation6 + $0x120] sm:$0xff] }
 0x7fd   :  { %4703 = vmatprep.subr.mxu0 %v9452_v60  ;;  %4774 = vmatprep.subr.mxu1 %v9454_v34  ;;  %v9840_v60 = vld [vmem:[#allocation6 + $0x130] sm:$0xff]  ;;  %v9844_v34 = vld [vmem:[#allocation6 + $0x108] sm:$0xff] }
 0x7fe   :  { %4704 = vmatpush1.msra.mxu0 %v9458_v28  ;;  %4775 = vmatpush1.msra.mxu1 %v9460_v27  ;;  %v9846_v28 = vld [vmem:[#allocation6 + $0x118] sm:$0xff]  ;;  %v9850_v27 = vld [vmem:[#allocation6 + $0x100] sm:$0xff] }
 0x7ff   :  { %4705 = vmatprep.subr.mxu0 %v9464_v59  ;;  %4776 = vmatprep.subr.mxu1 %v9466_v9  ;;  %v9852_v59 = vld [vmem:[#allocation6 + $0x110] sm:$0xff]  ;;  %v9856_v9 = vld [vmem:[#allocation6 + $0xe8] sm:$0xff] }
 0x800   :  { %4706 = vmatpush1.msra.mxu0 %v9470_v5  ;;  %4777 = vmatpush1.msra.mxu1 %v9472_v8  ;;  %v9858_v5 = vld [vmem:[#allocation6 + $0xf8] sm:$0xff]  ;;  %v9862_v8 = vld [vmem:[#allocation6 + $0xe0] sm:$0xff] }
 0x801   :  { %4707 = vmatprep.subr.mxu0 %v9476_v32  ;;  %4778 = vmatprep.subr.mxu1 %v9478_v44  ;;  %v9864_v32 = vld [vmem:[#allocation6 + $0xf0] sm:$0xff]  ;;  %v9868_v44 = vld [vmem:[#allocation6 + $0xc8] sm:$0xff] }
 0x802   :  { %4708 = vmatpush1.msra.mxu0 %v9482_v33  ;;  %4779 = vmatpush1.msra.mxu1 %v9484_v4  ;;  %11691 = vst [vmem:[#allocation28_spill] sm:$0xff] %v9868_v44  ;;  %v9870_v33 = vld [vmem:[#allocation6 + $0xd8] sm:$0xff]  ;;  %v9874_v4 = vld [vmem:[#allocation6 + $0xc0] sm:$0xff] }
 0x803   :  { %4709 = vmatprep.subr.mxu0 %v9488_v19  ;;  %4780 = vmatprep.subr.mxu1 %v9490_v54  ;;  %11692 = vst [vmem:[#allocation48_spill] sm:$0xff] %v9874_v4  ;;  %v9876_v19 = vld [vmem:[#allocation6 + $0xd0] sm:$0xff]  ;;  %v9880_v54 = vld [vmem:[#allocation6 + $0xa8] sm:$0xff] }
 0x804   :  { %4710 = vmatpush1.msra.mxu0 %v9494_v0  ;;  %4781 = vmatpush1.msra.mxu1 %v9496_v13  ;;  %11693 = vst [vmem:[#allocation29_spill] sm:$0xff] %v9880_v54  ;;  %v9882_v0 = vld [vmem:[#allocation6 + $0xb8] sm:$0xff]  ;;  %v9886_v13 = vld [vmem:[#allocation6 + $0xa0] sm:$0xff] }
 0x805   :  { %4711 = vmatprep.subr.mxu0 %v11689_v10  ;;  %4782 = vmatprep.subr.mxu1 %v9502_v15  ;;  %11694 = vst [vmem:[#allocation49_spill] sm:$0xff] %v9882_v0  ;;  %v9892_v15 = vld [vmem:[#allocation6 + $0x88] sm:$0xff] }
 0x806   :  { %4712 = vmatpush1.msra.mxu0 %v11687_v41  ;;  %4783 = vmatpush1.msra.mxu1 %v9508_v17  ;;  %11696 = vst [vmem:[#allocation50_spill] sm:$0xff] %v9892_v15  ;;  %v9898_v17 = vld [vmem:[#allocation6 + $0x80] sm:$0xff]  ;;  %v9936_v41 = vld [vmem:[#allocation6 + $0x30] sm:$0xff]  ;;  %v9940_v10 = vld [vmem:[#allocation6 + $0x8] sm:$0xff] }
 0x807   :  { %4713 = vmatprep.subr.mxu0 %v9512_v18  ;;  %4784 = vmatprep.subr.mxu1 %v9514_v20  ;;  %11698 = vst [vmem:[#allocation51_spill] sm:$0xff] %v9898_v17  ;;  %v9900_v18 = vld [vmem:[#allocation6 + $0x90] sm:$0xff]  ;;  %v9904_v20 = vld [vmem:[#allocation6 + $0x68] sm:$0xff]  ;;  %11710 = vst [vmem:[#allocation64_spill] sm:$0xff] %v9936_v41 }
 0x808   :  { %4714 = vmatpush1.msra.mxu0 %v9518_v22  ;;  %4785 = vmatpush1.msra.mxu1 %v9520_v23  ;;  %11699 = vst [vmem:[#allocation32_spill] sm:$0xff] %v9900_v18  ;;  %11700 = vst [vmem:[#allocation52_spill] sm:$0xff] %v9904_v20  ;;  %v9906_v22 = vld [vmem:[#allocation6 + $0x78] sm:$0xff]  ;;  %v9910_v23 = vld [vmem:[#allocation6 + $0x60] sm:$0xff] }
 0x809   :  { %4715 = vmatprep.subr.mxu0 %v9524_v24  ;;  %4786 = vmatprep.subr.mxu1 %v11685_v45  ;;  %11701 = vst [vmem:[#allocation33_spill] sm:$0xff] %v9906_v22  ;;  %11702 = vst [vmem:[#allocation53_spill] sm:$0xff] %v9910_v23  ;;  %v9912_v24 = vld [vmem:[#allocation6 + $0x70] sm:$0xff]  ;;  %v9934_v45 = vld [vmem:[#allocation6 + $0x20] sm:$0xff] }
 0x80a   :  { %4716 = vmatpush1.msra.mxu0 %v9530_v39  ;;  %4787 = vmatpush1.msra.mxu1 %v11690_v3  ;;  %v9918_v39 = vld [vmem:[#allocation6 + $0x58] sm:$0xff]  ;;  %11709 = vst [vmem:[#allocation63_spill] sm:$0xff] %v9934_v45 }
 0x80b   :  { %4717 = vmatprep.subr.mxu0 %v9536_v43  ;;  %4788 = vmatprep.subr.mxu1 %v11686_v16  ;;  %v9894_v16 = vld [vmem:[#allocation6 + $0x98] sm:$0xff]  ;;  %11704 = vst [vmem:[#allocation60_spill] sm:$0xff] %v9918_v39  ;;  %v9922_v43 = vld [vmem:[#allocation6 + $0x40] sm:$0xff] }
 0x80c   :  { %4718 = vmatpush1.msra.mxu0 %v9542_v49  ;;  %4789 = vmatpush1.msra.mxu1 %v9544_v51  ;;  %11697 = vst [vmem:[#allocation31_spill] sm:$0xff] %v9894_v16  ;;  %11705 = vst [vmem:[#allocation61_spill] sm:$0xff] %v9922_v43  ;;  %v9924_v49 = vld [vmem:[#allocation6 + $0x50] sm:$0xff]  ;;  %v9928_v51 = vld [vmem:[#allocation6 + $0x28] sm:$0xff] }
 0x80d   :  { %4719 = vmatprep.subr.mxu0 %v9548_v53  ;;  %4790 = vmatprep.subr.mxu1 %v9550_v47  ;;  %v9772_v47 = vld [vmem:[#allocation6 + $0x1c8] sm:$0xff]  ;;  %11706 = vst [vmem:[#allocation62_spill] sm:$0xff] %v9924_v49  ;;  %11707 = vst [vmem:[#allocation14_spill] sm:$0xff] %v9928_v51  ;;  %v9930_v53 = vld [vmem:[#allocation6 + $0x38] sm:$0xff] }
 0x80e   :  { %4720 = vmatpush1.msra.mxu0 %v9554_v31  ;;  %4753 = vmatprep.mubr.f32.mxu0 %v11671_v21  ;;  %v9774_v31 = vld [vmem:[#allocation6 + $0x1d8] sm:$0xff]  ;;  %11708 = vst [vmem:[#allocation34_spill] sm:$0xff] %v9930_v53 }
 0x80f   :  { %4791 = vmatpush1.msra.mxu1 %v9558_v37  ;;  %4824 = vmatprep.mubr.f32.mxu1 %v11671_v21  ;;  %v9916_v37 = vld [vmem:[#allocation6 + $0x48] sm:$0xff]  ;;  %v9942_v3 = vld [vmem:[#allocation6 + $0x18] sm:$0xff] }
 0x810   :  { %4754 = vmatmul.mubr.f32.vlgmr.msra.gmra.mxu0 %v4602_v12  ;;  %4825 = vmatmul.mubr.f32.vlgmr.msra.gmra.mxu1 %v4602_v12  ;;  %11703 = vst [vmem:[#allocation59_spill] sm:$0xff] %v9916_v37  ;;  %11711 = vst [vmem:[#allocation15_spill] sm:$0xff] %v9942_v3  ;;  %v9946_v12 = vld [vmem:[#allocation6] sm:$0xff] }
 0x811   :  { %4941 = vmatprep.subr.mxu0 %v9762_v55  ;;  %5012 = vmatprep.subr.mxu1 %v9764_v56 }
 0x812   :  { %4942 = vmatpush1.msra.mxu0 %v9768_v46  ;;  %5013 = vmatpush1.msra.mxu1 %v9770_v52 }
 0x813   :  { %4943 = vmatprep.subr.mxu0 %v9772_v47  ;;  %5014 = vmatprep.subr.mxu1 %v9774_v31 }
 0x814   :  { %4944 = vmatpush1.msra.mxu0 %v9778_v63  ;;  %5015 = vmatpush1.msra.mxu1 %v9780_v36 }
 0x815   :  { %4945 = vmatprep.subr.mxu0 %v9784_v11  ;;  %5016 = vmatprep.subr.mxu1 %v9786_v26 }
 0x816   :  { %4946 = vmatpush1.msra.mxu0 %v9790_v35  ;;  %5017 = vmatpush1.msra.mxu1 %v9792_v2 }
 0x817   :  { %4947 = vmatprep.subr.mxu0 %v9796_v7  ;;  %5018 = vmatprep.subr.mxu1 %v9798_v6 }
 0x818   :  { %4948 = vmatpush1.msra.mxu0 %v9802_v62  ;;  %5019 = vmatpush1.msra.mxu1 %v9804_v57 }
 0x819   :  { %4949 = vmatprep.subr.mxu0 %v9808_v48  ;;  %5020 = vmatprep.subr.mxu1 %v9810_v29 }
 0x81a   :  { %4950 = vmatpush1.msra.mxu0 %v9814_v38  ;;  %5021 = vmatpush1.msra.mxu1 %v9816_v30 }
 0x81b   :  { %4951 = vmatprep.subr.mxu0 %v9820_v61  ;;  %5022 = vmatprep.subr.mxu1 %v9822_v25 }
 0x81c   :  { %4952 = vmatpush1.msra.mxu0 %v9826_v40  ;;  %5023 = vmatpush1.msra.mxu1 %v9828_v1 }
 0x81d   :  { %4953 = vmatprep.subr.mxu0 %v9832_v50  ;;  %5024 = vmatprep.subr.mxu1 %v9834_v58 }
 0x81e   :  { %4954 = vmatpush1.msra.mxu0 %v9838_v42  ;;  %5025 = vmatpush1.msra.mxu1 %v9840_v60 }
 0x81f   :  { %4955 = vmatprep.subr.mxu0 %v9844_v34  ;;  %5026 = vmatprep.subr.mxu1 %v9846_v28 }
 0x820   :  { %4956 = vmatpush1.msra.mxu0 %v9850_v27  ;;  %5027 = vmatpush1.msra.mxu1 %v9852_v59 }
 0x821   :  { %4957 = vmatprep.subr.mxu0 %v9856_v9  ;;  %5028 = vmatprep.subr.mxu1 %v9858_v5 }
 0x822   :  { %4958 = vmatpush1.msra.mxu0 %v9862_v8  ;;  %5029 = vmatpush1.msra.mxu1 %v9864_v32 }
 0x823   :  { %4959 = vmatprep.subr.mxu0 %v9868_v44  ;;  %5030 = vmatprep.subr.mxu1 %v9870_v33 }
 0x824   :  { %4960 = vmatpush1.msra.mxu0 %v9874_v4  ;;  %5031 = vmatpush1.msra.mxu1 %v9876_v19 }
 0x825   :  { %4961 = vmatprep.subr.mxu0 %v9880_v54  ;;  %5032 = vmatprep.subr.mxu1 %v9882_v0 }
 0x826   :  { %4962 = vmatpush1.msra.mxu0 %v9886_v13  ;;  %5033 = vmatpush1.msra.mxu1 %v9888_v14 }
 0x827   :  { %4963 = vmatprep.subr.mxu0 %v9892_v15  ;;  %5034 = vmatprep.subr.mxu1 %v9894_v16 }
 0x828   :  { %4964 = vmatpush1.msra.mxu0 %v9898_v17  ;;  %5035 = vmatpush1.msra.mxu1 %v9900_v18 }
 0x829   :  { %4965 = vmatprep.subr.mxu0 %v9904_v20  ;;  %5036 = vmatprep.subr.mxu1 %v9906_v22 }
 0x82a   :  { %4966 = vmatpush1.msra.mxu0 %v9910_v23  ;;  %5037 = vmatpush1.msra.mxu1 %v9912_v24 }
 0x82b   :  { %4967 = vmatprep.subr.mxu0 %v9916_v37  ;;  %5038 = vmatprep.subr.mxu1 %v9918_v39  ;;  %v9950_v39 = vld [vmem:[#allocation6 + $0x10] sm:$0xff] }
 0x82c   :  { %4968 = vmatpush1.msra.mxu0 %v9922_v43  ;;  %5039 = vmatpush1.msra.mxu1 %v9924_v49 }
 0x82d   :  { %4969 = vmatprep.subr.mxu0 %v9928_v51  ;;  %5040 = vmatprep.subr.mxu1 %v9930_v53  ;;  %v4854_v53 = vld [vmem:[#allocation3 + $0x8] sm:$0x3] }
 0x82e   :  { %4970 = vmatpush1.msra.mxu0 %v9934_v45  ;;  %5041 = vmatpush1.msra.mxu1 %v9936_v41 }
 0x82f   :  { %4971 = vmatprep.subr.mxu0 %v9940_v10  ;;  %5042 = vmatprep.subr.mxu1 %v9942_v3 }
 0x830   :  { %4972 = vmatpush1.msra.mxu0 %v9946_v12  ;;  %5005 = vmatprep.mubr.f32.mxu0 %v11671_v21 }
 0x831   :  { %5043 = vmatpush1.msra.mxu1 %v9950_v39  ;;  %5076 = vmatprep.mubr.f32.mxu1 %v11671_v21 }
 0x832   :  { %5006 = vmatmul.mubr.f32.vlgmr.msra.gmra.mxu0 %v4854_v53  ;;  %5077 = vmatmul.mubr.f32.vlgmr.msra.gmra.mxu1 %v4854_v53 }
 0x833   :  { %5193 = vmatprep.subr.mxu0 %v9762_v55  ;;  %5264 = vmatprep.subr.mxu1 %v9764_v56 }
 0x834   :  { %5194 = vmatpush1.msra.mxu0 %v9768_v46  ;;  %5265 = vmatpush1.msra.mxu1 %v9770_v52 }
 0x835   :  { %5195 = vmatprep.subr.mxu0 %v9772_v47  ;;  %5266 = vmatprep.subr.mxu1 %v9774_v31 }
 0x836   :  { %5196 = vmatpush1.msra.mxu0 %v9778_v63  ;;  %5267 = vmatpush1.msra.mxu1 %v9780_v36 }
 0x837   :  { %5197 = vmatprep.subr.mxu0 %v9784_v11  ;;  %5268 = vmatprep.subr.mxu1 %v9786_v26 }
 0x838   :  { %5198 = vmatpush1.msra.mxu0 %v9790_v35  ;;  %5269 = vmatpush1.msra.mxu1 %v9792_v2 }
 0x839   :  { %5199 = vmatprep.subr.mxu0 %v9796_v7  ;;  %5270 = vmatprep.subr.mxu1 %v9798_v6 }
 0x83a   :  { %5200 = vmatpush1.msra.mxu0 %v9802_v62  ;;  %5271 = vmatpush1.msra.mxu1 %v9804_v57 }
 0x83b   :  { %5201 = vmatprep.subr.mxu0 %v9808_v48  ;;  %5272 = vmatprep.subr.mxu1 %v9810_v29 }
 0x83c   :  { %5202 = vmatpush1.msra.mxu0 %v9814_v38  ;;  %5273 = vmatpush1.msra.mxu1 %v9816_v30 }
 0x83d   :  { %5203 = vmatprep.subr.mxu0 %v9820_v61  ;;  %5274 = vmatprep.subr.mxu1 %v9822_v25 }
 0x83e   :  { %5204 = vmatpush1.msra.mxu0 %v9826_v40  ;;  %5275 = vmatpush1.msra.mxu1 %v9828_v1 }
 0x83f   :  { %5205 = vmatprep.subr.mxu0 %v9832_v50  ;;  %5276 = vmatprep.subr.mxu1 %v9834_v58 }
 0x840   :  { %5206 = vmatpush1.msra.mxu0 %v9838_v42  ;;  %5277 = vmatpush1.msra.mxu1 %v9840_v60 }
 0x841   :  { %5207 = vmatprep.subr.mxu0 %v9844_v34  ;;  %5278 = vmatprep.subr.mxu1 %v9846_v28 }
 0x842   :  { %5208 = vmatpush1.msra.mxu0 %v9850_v27  ;;  %5279 = vmatpush1.msra.mxu1 %v9852_v59 }
 0x843   :  { %5209 = vmatprep.subr.mxu0 %v9856_v9  ;;  %5280 = vmatprep.subr.mxu1 %v9858_v5 }
 0x844   :  { %5210 = vmatpush1.msra.mxu0 %v9862_v8  ;;  %5281 = vmatpush1.msra.mxu1 %v9864_v32 }
 0x845   :  { %5211 = vmatprep.subr.mxu0 %v9868_v44  ;;  %5282 = vmatprep.subr.mxu1 %v9870_v33 }
 0x846   :  { %5212 = vmatpush1.msra.mxu0 %v9874_v4  ;;  %5283 = vmatpush1.msra.mxu1 %v9876_v19 }
 0x847   :  { %5213 = vmatprep.subr.mxu0 %v9880_v54  ;;  %5284 = vmatprep.subr.mxu1 %v9882_v0 }
 0x848   :  { %5214 = vmatpush1.msra.mxu0 %v9886_v13  ;;  %5285 = vmatpush1.msra.mxu1 %v9888_v14 }
 0x849   :  { %5215 = vmatprep.subr.mxu0 %v9892_v15  ;;  %5286 = vmatprep.subr.mxu1 %v9894_v16  ;;  %v3714_v53 = vpop.f32.mrf.mxu0  ;;  %v3785_v44 = vpop.f32.mrf.mxu1  ;;  %v11712_v16 = vld [vmem:[#allocation60_spill] sm:$0xff] }
 0x84a   :  { %5216 = vmatpush1.msra.mxu0 %v9898_v17  ;;  %5287 = vmatpush1.msra.mxu1 %v9900_v18  ;;  %v11713_v18 = vld [vmem:[#allocation58_spill] sm:$0xff] }
 0x84b   :  { %5217 = vmatprep.subr.mxu0 %v9904_v20  ;;  %5288 = vmatprep.subr.mxu1 %v9906_v22  ;;  %v3716_v54 = vpop.f32.mrf.mxu0  ;;  %v3787_v0 = vpop.f32.mrf.mxu1  ;;  %v11714_v17 = vld [vmem:[#allocation34_spill] sm:$0xff] }
 0x84c   :  { %5218 = vmatpush1.msra.mxu0 %v9910_v23  ;;  %5289 = vmatpush1.msra.mxu1 %v9912_v24  ;;  %v3794_v14 = vcombine.low %v3714_v53, %v3716_v54  ;;  %v3795_v15 = vcombine.low %v3785_v44, %v3787_v0  ;;  %v11715_v54 = vld [vmem:[#allocation69_spill] sm:$0xff]  ;;  %v11716_v0 = vld [vmem:[#allocation70_spill] sm:$0xff] }
 0x84d   :  { %5219 = vmatprep.subr.mxu0 %v9916_v37  ;;  %5290 = vmatprep.subr.mxu1 %v11712_v16  ;;  %v5106_v53 = vld [vmem:[#allocation3 + $0xa] sm:$0x3] }
 0x84e   :  { %5220 = vmatpush1.msra.mxu0 %v9922_v43  ;;  %5291 = vmatpush1.msra.mxu1 %v9924_v49  ;;  %v3802_v20 = vrot.slane %v3794_v14, %v11713_v18  ;;  %v3809_v22 = vrot.slane %v3795_v15, %v11713_v18  ;;  %v11717_v14 = vcombine.low %v11715_v54, %v11716_v0  ;;  %v11725_v18 = vld [vmem:[#allocation32_spill] sm:$0xff] }
 0x84f   :  { %5221 = vmatprep.subr.mxu0 %v9928_v51  ;;  %5292 = vmatprep.subr.mxu1 %v11714_v17 }
 0x850   :  { %5222 = vmatpush1.msra.mxu0 %v9934_v45  ;;  %5293 = vmatpush1.msra.mxu1 %v9936_v41  ;;  %v3810_v44 = vcombine.low %v3802_v20, %v3809_v22 }
 0x851   :  { %5223 = vmatprep.subr.mxu0 %v9940_v10  ;;  %5294 = vmatprep.subr.mxu1 %v9942_v3 }
 0x852   :  { %5224 = vmatpush1.msra.mxu0 %v9946_v12  ;;  %5257 = vmatprep.mubr.f32.mxu0 %v11671_v21  ;;  %v3812_v15 = vadd.f32 %v3810_v44, %v11717_v14 }
 0x853   :  { %5295 = vmatpush1.msra.mxu1 %v9950_v39  ;;  %5328 = vmatprep.mubr.f32.mxu1 %v11671_v21 }
 0x854   :  { %5258 = vmatmul.mubr.f32.vlgmr.msra.gmra.mxu0 %v5106_v53  ;;  %5329 = vmatmul.mubr.f32.vlgmr.msra.gmra.mxu1 %v5106_v53  ;;  %v7679_v20 = vmul.f32 -1.442695, %v3812_v15  ;;  %v3820_v22 = vrot.slane %v3812_v15, 2  ;;  %v3831_v44 = vrot.slane %v3812_v15, 6  ;;  %v3828_v53 = vrot.slane %v3812_v15, 4  ;;  %v11718_v15 = vld [vmem:[#allocation28_spill] sm:$0xff] }
 0x855   :  { %5445 = vmatprep.subr.mxu0 %v9762_v55  ;;  %5516 = vmatprep.subr.mxu1 %v9764_v56 }
 0x856   :  { %5446 = vmatpush1.msra.mxu0 %v9768_v46  ;;  %5517 = vmatpush1.msra.mxu1 %v9770_v52  ;;  %7884 = vpow2.f32 %v7679_v20  ;;  %v7680_v54 = vmul.f32 -1.442695, %v3820_v22  ;;  %v7681_v0 = vmul.f32 -1.442695, %v3831_v44  ;;  %v11719_v44 = vld [vmem:[#allocation29_spill] sm:$0xff] }
 0x857   :  { %5447 = vmatprep.subr.mxu0 %v9772_v47  ;;  %5518 = vmatprep.subr.mxu1 %v9774_v31 }
 0x858   :  { %7886 = vpow2.f32 %v7680_v54  ;;  %5448 = vmatpush1.msra.mxu0 %v9778_v63  ;;  %5519 = vmatpush1.msra.mxu1 %v9780_v36 }
 0x859   :  { %5449 = vmatprep.subr.mxu0 %v9784_v11  ;;  %5520 = vmatprep.subr.mxu1 %v9786_v26  ;;  %7888 = vpow2.f32 %v7681_v0  ;;  %v11720_v0 = vld [vmem:[#allocation49_spill] sm:$0xff] }
 0x85a   :  { %5450 = vmatpush1.msra.mxu0 %v9790_v35  ;;  %5521 = vmatpush1.msra.mxu1 %v9792_v2 }
 0x85b   :  { %5451 = vmatprep.subr.mxu0 %v9796_v7  ;;  %5522 = vmatprep.subr.mxu1 %v9798_v6 }
 0x85c   :  { %5452 = vmatpush1.msra.mxu0 %v9802_v62  ;;  %5523 = vmatpush1.msra.mxu1 %v9804_v57 }
 0x85d   :  { %5453 = vmatprep.subr.mxu0 %v9808_v48  ;;  %5524 = vmatprep.subr.mxu1 %v9810_v29 }
 0x85e   :  { %5454 = vmatpush1.msra.mxu0 %v9814_v38  ;;  %5525 = vmatpush1.msra.mxu1 %v9816_v30 }
 0x85f   :  { %5455 = vmatprep.subr.mxu0 %v9820_v61  ;;  %5526 = vmatprep.subr.mxu1 %v9822_v25 }
 0x860   :  { %5456 = vmatpush1.msra.mxu0 %v9826_v40  ;;  %5527 = vmatpush1.msra.mxu1 %v9828_v1 }
 0x861   :  { %5457 = vmatprep.subr.mxu0 %v9832_v50  ;;  %5528 = vmatprep.subr.mxu1 %v9834_v58 }
 0x862   :  { %5458 = vmatpush1.msra.mxu0 %v9838_v42  ;;  %5529 = vmatpush1.msra.mxu1 %v9840_v60 }
 0x863   :  { %v7885_v14 = vpop.eup %7884  ;;  %5459 = vmatprep.subr.mxu0 %v9844_v34  ;;  %5530 = vmatprep.subr.mxu1 %v9846_v28 }
 0x864   :  { %v3816_v20 = vadd.f32 1.0, %v7885_v14  ;;  %5460 = vmatpush1.msra.mxu0 %v9850_v27  ;;  %5531 = vmatpush1.msra.mxu1 %v9852_v59  ;;  %v11721_v14 = vld [vmem:[#allocation30_spill] sm:$0xff] }
 0x865   :  { %v7887_v22 = vpop.eup %7886  ;;  %5461 = vmatprep.subr.mxu0 %v9856_v9  ;;  %5532 = vmatprep.subr.mxu1 %v9858_v5 }
 0x866   :  { %7890 = vrcp.f32 %v3816_v20  ;;  %v3825_v54 = vadd.f32 1.0, %v7887_v22  ;;  %5462 = vmatpush1.msra.mxu0 %v9862_v8  ;;  %5533 = vmatpush1.msra.mxu1 %v9864_v32  ;;  %v11722_v20 = vld [vmem:[#allocation50_spill] sm:$0xff]  ;;  %v11724_v22 = vld [vmem:[#allocation51_spill] sm:$0xff] }
 0x867   :  { %7892 = vtanh.f32 %v3828_v53  ;;  %5463 = vmatprep.subr.mxu0 %v11718_v15  ;;  %5534 = vmatprep.subr.mxu1 %v9870_v33  ;;  %v11723_v53 = vld [vmem:[#allocation31_spill] sm:$0xff] }
 0x868   :  { %7894 = vrcp.f32 %v3825_v54  ;;  %5464 = vmatpush1.msra.mxu0 %v9874_v4  ;;  %5535 = vmatpush1.msra.mxu1 %v9876_v19  ;;  %v11726_v54 = vld [vmem:[#allocation52_spill] sm:$0xff]  ;;  %v11727_v4 = vld [vmem:[#allocation33_spill] sm:$0xff] }
 0x869   :  { %5465 = vmatprep.subr.mxu0 %v11719_v44  ;;  %5536 = vmatprep.subr.mxu1 %v11720_v0 }
 0x86a   :  { %5466 = vmatpush1.msra.mxu0 %v9886_v13  ;;  %5537 = vmatpush1.msra.mxu1 %v11721_v14 }
 0x86b   :  { %5467 = vmatprep.subr.mxu0 %v11722_v20  ;;  %5538 = vmatprep.subr.mxu1 %v11723_v53 }
 0x86c   :  { %5468 = vmatpush1.msra.mxu0 %v11724_v22  ;;  %5539 = vmatpush1.msra.mxu1 %v11725_v18  ;;  %v7889_v18 = vpop.eup %7888 }
 0x86d   :  { %5469 = vmatprep.subr.mxu0 %v11726_v54  ;;  %5540 = vmatprep.subr.mxu1 %v11727_v4 }
 0x86e   :  { %5470 = vmatpush1.msra.mxu0 %v9910_v23  ;;  %5541 = vmatpush1.msra.mxu1 %v9912_v24 }
 0x86f   :  { %5471 = vmatprep.subr.mxu0 %v9916_v37  ;;  %5542 = vmatprep.subr.mxu1 %v11712_v16 }
 0x870   :  { %5472 = vmatpush1.msra.mxu0 %v9922_v43  ;;  %5543 = vmatpush1.msra.mxu1 %v9924_v49  ;;  %v3836_v43 = vadd.f32 1.0, %v7889_v18  ;;  %v10183_v18 = vld [vmem:[#allocation8 + $0x1f8] sm:$0xff] }
 0x871   :  { %5473 = vmatprep.subr.mxu0 %v9928_v51  ;;  %5544 = vmatprep.subr.mxu1 %v11714_v17  ;;  %v5358_v17 = vld [vmem:[#allocation3 + $0xc] sm:$0x3]  ;;  %11752 = vst [vmem:[#allocation19_spill] sm:$0xff] %v10183_v18 }
 0x872   :  { %5474 = vmatpush1.msra.mxu0 %v9934_v45  ;;  %5545 = vmatpush1.msra.mxu1 %v9936_v41  ;;  %v11728_v45 = vld [vmem:[#allocation25_spill] sm:$0xff]  ;;  %7896 = vrcp.f32 %v3836_v43  ;;  %v10195_v43 = vld [vmem:[#allocation8 + $0x1c8] sm:$0xff] }
 0x873   :  { %v7891_v23 = vpop.eup %7890  ;;  %5475 = vmatprep.subr.mxu0 %v9940_v10  ;;  %5546 = vmatprep.subr.mxu1 %v9942_v3 }
 0x874   :  { %v7893_v37 = vpop.eup %7892  ;;  %5476 = vmatpush1.msra.mxu0 %v9946_v12  ;;  %5509 = vmatprep.mubr.f32.mxu0 %v11671_v21 }
 0x875   :  { %v7895_v49 = vpop.eup %7894  ;;  %5547 = vmatpush1.msra.mxu1 %v9950_v39  ;;  %5580 = vmatprep.mubr.f32.mxu1 %v11671_v21  ;;  %v3840_v41 = vmul.f32 %v7893_v37, %v7891_v23  ;;  %v10191_v37 = vld [vmem:[#allocation8 + $0x1f0] sm:$0xff] }
 0x876   :  { %v3839_v51 = vmul.f32 %v7895_v49, %v11728_v45  ;;  %5510 = vmatmul.mubr.f32.vlgmr.msra.gmra.mxu0 %v5358_v17  ;;  %5581 = vmatmul.mubr.f32.vlgmr.msra.gmra.mxu1 %v5358_v17  ;;  %v10181_v17 = vld [vmem:[#allocation8 + $0x1e8] sm:$0xff]  ;;  %v10197_v49 = vld [vmem:[#allocation8 + $0x1d8] sm:$0xff] }
 0x877   :  { %5697 = vmatprep.subr.mxu0 %v9762_v55  ;;  %5768 = vmatprep.subr.mxu1 %v9764_v56  ;;  %v10126_v56 = vpop.f32.mrf.mxu0  ;;  %11751 = vst [vmem:[#allocation38_spill] sm:$0xff] %v10181_v17  ;;  %v10205_v45 = vld [vmem:[#allocation8 + $0x1a8] sm:$0xff] }
 0x878   :  { %v3841_v3 = vadd.f32 %v3840_v41, %v3839_v51  ;;  %5698 = vmatpush1.msra.mxu0 %v9768_v46  ;;  %5769 = vmatpush1.msra.mxu1 %v9770_v52  ;;  %11729 = vst [vmem:[#allocation35_spill] sm:$0xff] %v10126_v56  ;;  %v10128_v46 = vpop.f32.mrf.mxu1  ;;  %v10201_v51 = vld [vmem:[#allocation8 + $0x1d0] sm:$0xff]  ;;  %v10207_v41 = vld [vmem:[#allocation8 + $0x1b8] sm:$0xff]  ;;  %v10332_v56 = vld [vmem:[#allocation8 + $0x68] sm:$0xff] }
 0x879   :  { %5699 = vmatprep.subr.mxu0 %v9772_v47  ;;  %5770 = vmatprep.subr.mxu1 %v9774_v31  ;;  %11730 = vst [vmem:[#allocation16_spill] sm:$0xff] %v10128_v46  ;;  %v4163_v47 = vld [vmem:[%s11168_s6] sm:$0xf]  ;;  %11777 = vst [vmem:[#allocation29_spill] sm:$0xff] %v10332_v56 }
 0x87a   :  { %7898 = vtanh.f32 %v3841_v3  ;;  %5700 = vmatpush1.msra.mxu0 %v9778_v63  ;;  %5771 = vmatpush1.msra.mxu1 %v9780_v36  ;;  %v10141_v63 = vpop.f32.mrf.mxu0  ;;  %v10143_v36 = vpop.f32.mrf.mxu1  ;;  %v10213_v3 = vld [vmem:[#allocation8 + $0x1b0] sm:$0xff] }
 0x87b   :  { %5701 = vmatprep.subr.mxu0 %v9784_v11  ;;  %5772 = vmatprep.subr.mxu1 %v9786_v26  ;;  %11731 = vst [vmem:[#allocation36_spill] sm:$0xff] %v10141_v63  ;;  %11732 = vst [vmem:[#allocation17_spill] sm:$0xff] %v10143_v36  ;;  %v11733_v11 = vld [vmem:[#allocation48_spill] sm:$0xff]  ;;  %v11734_v26 = vld [vmem:[#allocation54_spill] sm:$0xff] }
 0x87c   :  { %5702 = vmatpush1.msra.mxu0 %v9790_v35  ;;  %5773 = vmatpush1.msra.mxu1 %v9792_v2  ;;  %v4168_v35 = vrot.slane %v4163_v47, %v11734_v26  ;;  %v11735_v2 = vld [vmem:[#allocation56_spill] sm:$0xff]  ;;  %v10334_v36 = vld [vmem:[#allocation8 + $0x78] sm:$0xff]  ;;  %v10338_v63 = vld [vmem:[#allocation8 + $0x60] sm:$0xff] }
 0x87d   :  { %5703 = vmatprep.subr.mxu0 %v9796_v7  ;;  %5774 = vmatprep.subr.mxu1 %v9798_v6  ;;  %v4176_v7 = vrot.slane %v4163_v47, %v11735_v2  ;;  %v11736_v6 = vld [vmem:[#allocation55_spill] sm:$0xff]  ;;  %11778 = vst [vmem:[#allocation49_spill] sm:$0xff] %v10334_v36  ;;  %11779 = vst [vmem:[#allocation30_spill] sm:$0xff] %v10338_v63 }
 0x87e   :  { %5704 = vmatpush1.msra.mxu0 %v9802_v62  ;;  %5775 = vmatpush1.msra.mxu1 %v9804_v57  ;;  %v4172_v62 = vrot.slane %v4163_v47, %v11736_v6  ;;  %v11737_v57 = vld [vmem:[#allocation57_spill] sm:$0xff] }
 0x87f   :  { %5705 = vmatprep.subr.mxu0 %v9808_v48  ;;  %5776 = vmatprep.subr.mxu1 %v9810_v29  ;;  %v7897_v55 = vpop.eup %7896  ;;  %v4180_v48 = vrot.slane %v4163_v47, %v11737_v57  ;;  %v10249_v47 = vld [vmem:[#allocation8 + $0x150] sm:$0xff] }
 0x880   :  { %5706 = vmatpush1.msra.mxu0 %v9814_v38  ;;  %5777 = vmatpush1.msra.mxu1 %v9816_v30 }
 0x881   :  { %5707 = vmatprep.subr.mxu0 %v9820_v61  ;;  %5778 = vmatprep.subr.mxu1 %v9822_v25  ;;  %v11738_v61 = vld [vmem:[#allocation32_spill] sm:$0xff] }
 0x882   :  { %5708 = vmatpush1.msra.mxu0 %v9826_v40  ;;  %5779 = vmatpush1.msra.mxu1 %v9828_v1 }
 0x883   :  { %5709 = vmatprep.subr.mxu0 %v9832_v50  ;;  %5780 = vmatprep.subr.mxu1 %v9834_v58 }
 0x884   :  { %5710 = vmatpush1.msra.mxu0 %v9838_v42  ;;  %5781 = vmatpush1.msra.mxu1 %v9840_v60  ;;  %v11739_v42 = vld [vmem:[#allocation53_spill] sm:$0xff] }
 0x885   :  { %5711 = vmatprep.subr.mxu0 %v9844_v34  ;;  %5782 = vmatprep.subr.mxu1 %v9846_v28  ;;  %v11740_v28 = vld [vmem:[#allocation59_spill] sm:$0xff] }
 0x886   :  { %5712 = vmatpush1.msra.mxu0 %v9850_v27  ;;  %5783 = vmatpush1.msra.mxu1 %v9852_v59  ;;  %v11741_v27 = vld [vmem:[#allocation61_spill] sm:$0xff]  ;;  %v11742_v59 = vld [vmem:[#allocation62_spill] sm:$0xff] }
 0x887   :  { %v7899_v52 = vpop.eup %7898  ;;  %5713 = vmatprep.subr.mxu0 %v9856_v9  ;;  %5784 = vmatprep.subr.mxu1 %v9858_v5  ;;  %v11743_v9 = vld [vmem:[#allocation58_spill] sm:$0xff] }
 0x888   :  { %v3843_v31 = vmul.f32 %v7899_v52, %v7897_v55  ;;  %5714 = vmatpush1.msra.mxu0 %v9862_v8  ;;  %5785 = vmatpush1.msra.mxu1 %v9864_v32  ;;  %v11746_v32 = vld [vmem:[#allocation14_spill] sm:$0xff]  ;;  %v10243_v55 = vld [vmem:[#allocation8 + $0x158] sm:$0xff] }
 0x889   :  { %5715 = vmatprep.subr.mxu0 %v11718_v15  ;;  %5786 = vmatprep.subr.mxu1 %v9870_v33  ;;  %v11747_v33 = vld [vmem:[#allocation34_spill] sm:$0xff]  ;;  %v10219_v15 = vld [vmem:[#allocation8 + $0x198] sm:$0xff] }
 0x88a   :  { %3845 = vst [vmem:[#allocation3 + $0xe] sm:$0x3] %v3843_v31  ;;  %5716 = vmatpush1.msra.mxu0 %v11733_v11  ;;  %5787 = vmatpush1.msra.mxu1 %v9876_v19  ;;  %v11749_v19 = vld [vmem:[#allocation64_spill] sm:$0xff]  ;;  %v10247_v52 = vld [vmem:[#allocation8 + $0x140] sm:$0xff]  ;;  %v10253_v31 = vld [vmem:[#allocation8 + $0x128] sm:$0xff] }
 0x88b   :  { %5717 = vmatprep.subr.mxu0 %v11719_v44  ;;  %5788 = vmatprep.subr.mxu1 %v11720_v0  ;;  %v10223_v44 = vld [vmem:[#allocation8 + $0x180] sm:$0xff]  ;;  %v10225_v0 = vld [vmem:[#allocation8 + $0x190] sm:$0xff]  ;;  %11753 = vst [vmem:[#allocation39_spill] sm:$0xff] %v10253_v31  ;;  %v10255_v11 = vld [vmem:[#allocation8 + $0x138] sm:$0xff] }
 0x88c   :  { %5718 = vmatpush1.msra.mxu0 %v9886_v13  ;;  %5789 = vmatpush1.msra.mxu1 %v11721_v14  ;;  %v4251_v29 = vpop.f32.mrf.mxu0  ;;  %v4322_v38 = vpop.f32.mrf.mxu1  ;;  %v10229_v14 = vld [vmem:[#allocation8 + $0x168] sm:$0xff]  ;;  %11754 = vst [vmem:[#allocation20_spill] sm:$0xff] %v10255_v11 }
 0x88d   :  { %5719 = vmatprep.subr.mxu0 %v11722_v20  ;;  %5790 = vmatprep.subr.mxu1 %v11723_v53  ;;  %v4252_v30 = vadd.f32 %v4251_v29, %v4168_v35  ;;  %v4323_v1 = vadd.f32 %v4322_v38, %v4176_v7  ;;  %v10231_v20 = vld [vmem:[#allocation8 + $0x178] sm:$0xff]  ;;  %v10235_v53 = vld [vmem:[#allocation8 + $0x160] sm:$0xff]  ;;  %v10261_v7 = vld [vmem:[#allocation8 + $0x130] sm:$0xff] }
 0x88e   :  { %5720 = vmatpush1.msra.mxu0 %v11724_v22  ;;  %5791 = vmatpush1.msra.mxu1 %v11738_v61  ;;  %v4253_v25 = vpop.f32.mrf.mxu0  ;;  %v4324_v40 = vpop.f32.mrf.mxu1  ;;  %v10237_v22 = vld [vmem:[#allocation8 + $0x170] sm:$0xff]  ;;  %v10259_v35 = vld [vmem:[#allocation8 + $0x120] sm:$0xff]  ;;  %11756 = vst [vmem:[#allocation21_spill] sm:$0xff] %v10261_v7  ;;  %v10279_v61 = vld [vmem:[#allocation8 + $0xf8] sm:$0xff] }
 0x88f   :  { %5721 = vmatprep.subr.mxu0 %v11726_v54  ;;  %5792 = vmatprep.subr.mxu1 %v11727_v4  ;;  %v4254_v50 = vadd.f32 %v4253_v25, %v4172_v62  ;;  %v4325_v58 = vadd.f32 %v4324_v40, %v4180_v48  ;;  %v11748_v4 = vld [vmem:[#allocation63_spill] sm:$0xff]  ;;  %11755 = vst [vmem:[#allocation40_spill] sm:$0xff] %v10259_v35  ;;  %v10267_v48 = vld [vmem:[#allocation8 + $0x118] sm:$0xff]  ;;  %v10271_v29 = vld [vmem:[#allocation8 + $0x100] sm:$0xff] }
 0x890   :  { %5722 = vmatpush1.msra.mxu0 %v11739_v42  ;;  %5793 = vmatpush1.msra.mxu1 %v9912_v24  ;;  %v10189_v24 = vld [vmem:[#allocation8 + $0x1e0] sm:$0xff]  ;;  %v10241_v54 = vld [vmem:[#allocation8 + $0x148] sm:$0xff]  ;;  %11758 = vst [vmem:[#allocation22_spill] sm:$0xff] %v10267_v48  ;;  %11759 = vst [vmem:[#allocation42_spill] sm:$0xff] %v10271_v29 }
 0x891   :  { %v4331_v60 = vcombine.low %v4252_v30, %v4254_v50  ;;  %v4332_v34 = vcombine.low %v4323_v1, %v4325_v58  ;;  %5723 = vmatprep.subr.mxu0 %v11740_v28  ;;  %5794 = vmatprep.subr.mxu1 %v11712_v16  ;;  %v11750_v16 = vld [vmem:[#allocation15_spill] sm:$0xff]  ;;  %v5610_v23 = vld [vmem:[#allocation3 + $0xe] sm:$0x3]  ;;  %v10273_v38 = vld [vmem:[#allocation8 + $0x110] sm:$0xff]  ;;  %11762 = vst [vmem:[#allocation24_spill] sm:$0xff] %v10279_v61 }
 0x892   :  { %5724 = vmatpush1.msra.mxu0 %v11741_v27  ;;  %5795 = vmatpush1.msra.mxu1 %v11742_v59  ;;  %v10265_v62 = vld [vmem:[#allocation8 + $0x108] sm:$0xff]  ;;  %11760 = vst [vmem:[#allocation23_spill] sm:$0xff] %v10273_v38  ;;  %v10283_v25 = vld [vmem:[#allocation8 + $0xe0] sm:$0xff]  ;;  %v10285_v40 = vld [vmem:[#allocation8 + $0xf0] sm:$0xff] }
 0x893   :  { %v10168_v5 = vrot.slane %v4331_v60, %v11743_v9  ;;  %v10171_v8 = vrot.slane %v4332_v34, %v11743_v9  ;;  %5725 = vmatprep.subr.mxu0 %v11746_v32  ;;  %5796 = vmatprep.subr.mxu1 %v11747_v33  ;;  %11757 = vst [vmem:[#allocation41_spill] sm:$0xff] %v10265_v62  ;;  %v10277_v30 = vld [vmem:[#allocation8 + $0xe8] sm:$0xff]  ;;  %11763 = vst [vmem:[#allocation44_spill] sm:$0xff] %v10283_v25  ;;  %v10291_v50 = vld [vmem:[#allocation8 + $0xd8] sm:$0xff] }
 0x894   :  { %5726 = vmatpush1.msra.mxu0 %v11748_v4  ;;  %5797 = vmatpush1.msra.mxu1 %v11749_v19  ;;  %11761 = vst [vmem:[#allocation43_spill] sm:$0xff] %v10277_v30  ;;  %11764 = vst [vmem:[#allocation65_spill] sm:$0xff] %v10285_v40  ;;  %v10289_v1 = vld [vmem:[#allocation8 + $0xc8] sm:$0xff]  ;;  %v10295_v58 = vld [vmem:[#allocation8 + $0xc0] sm:$0xff] }
 0x895   :  { %11744 = vst [vmem:[#allocation37_spill] sm:$0xff] %v10168_v5  ;;  %11745 = vst [vmem:[#allocation18_spill] sm:$0xff] %v10171_v8  ;;  %5727 = vmatprep.subr.mxu0 %v9940_v10  ;;  %5798 = vmatprep.subr.mxu1 %v11750_v16  ;;  %v10211_v10 = vld [vmem:[#allocation8 + $0x1a0] sm:$0xff]  ;;  %v10297_v42 = vld [vmem:[#allocation8 + $0xd0] sm:$0xff] }
 0x896   :  { %5728 = vmatpush1.msra.mxu0 %v9946_v12  ;;  %5799 = vmatpush1.msra.mxu1 %v9950_v39  ;;  %v10199_v39 = vld [vmem:[#allocation8 + $0x1c0] sm:$0xff]  ;;  %v10217_v12 = vld [vmem:[#allocation8 + $0x188] sm:$0xff]  ;;  %11765 = vst [vmem:[#allocation66_spill] sm:$0xff] %v10289_v1  ;;  %11766 = vst [vmem:[#allocation67_spill] sm:$0xff] %v10291_v50 }
 0x897   :  { %5761 = vmatprep.mubr.f32.mxu0 %v11671_v21  ;;  %5832 = vmatprep.mubr.f32.mxu1 %v11671_v21  ;;  %11767 = vst [vmem:[#allocation68_spill] sm:$0xff] %v10295_v58  ;;  %11768 = vst [vmem:[#allocation46_spill] sm:$0xff] %v10297_v42  ;;  %v4415_v60 = vld [vmem:[%s11168_s6] sm:$0xf]  ;;  %v10304_v34 = vld [vmem:[#allocation8 + $0xa8] sm:$0xff] }
 0x898   :  { %5927 = vmatprep.subr.mxu0 %v10181_v17  ;;  %5998 = vmatprep.subr.mxu1 %v10183_v18  ;;  %11769 = vst [vmem:[#allocation47_spill] sm:$0xff] %v10304_v34  ;;  %v10306_v28 = vld [vmem:[#allocation8 + $0xb8] sm:$0xff]  ;;  %v10310_v27 = vld [vmem:[#allocation8 + $0xa0] sm:$0xff]  ;;  %v10312_v59 = vld [vmem:[#allocation8 + $0xb0] sm:$0xff]  ;;  %v4420_v4 = vrot.slane %v4415_v60, %v11734_v26  ;;  %v4428_v19 = vrot.slane %v4415_v60, %v11735_v2 }
 0x899   :  { %5762 = vmatmul.mubr.f32.vlgmr.msra.gmra.mxu0 %v5610_v23  ;;  %5833 = vmatmul.mubr.f32.vlgmr.msra.gmra.mxu1 %v5610_v23  ;;  %11770 = vst [vmem:[#allocation26_spill] sm:$0xff] %v10306_v28  ;;  %11771 = vst [vmem:[#allocation45_spill] sm:$0xff] %v10310_v27  ;;  %v10316_v32 = vld [vmem:[#allocation8 + $0x88] sm:$0xff]  ;;  %v10318_v33 = vld [vmem:[#allocation8 + $0x98] sm:$0xff]  ;;  %v4424_v13 = vrot.slane %v4415_v60, %v11736_v6  ;;  %v4432_v8 = vrot.slane %v4415_v60, %v11737_v57 }
 0x89a   :  { %5928 = vmatpush1.msra.mxu0 %v10189_v24  ;;  %5999 = vmatpush1.msra.mxu1 %v10191_v37  ;;  %11772 = vst [vmem:[#allocation27_spill] sm:$0xff] %v10312_v59  ;;  %11773 = vst [vmem:[#allocation60_spill] sm:$0xff] %v10316_v32  ;;  %v10324_v16 = vld [vmem:[#allocation8 + $0x80] sm:$0xff]  ;;  %v10326_v23 = vld [vmem:[#allocation8 + $0x90] sm:$0xff] }
 0x89b   :  { %5929 = vmatprep.subr.mxu0 %v10195_v43  ;;  %6000 = vmatprep.subr.mxu1 %v10197_v49  ;;  %11774 = vst [vmem:[#allocation69_spill] sm:$0xff] %v10318_v33  ;;  %11775 = vst [vmem:[#allocation70_spill] sm:$0xff] %v10324_v16  ;;  %v10346_v57 = vld [vmem:[#allocation8 + $0x58] sm:$0xff]  ;;  %v10350_v2 = vld [vmem:[#allocation8 + $0x40] sm:$0xff] }
 0x89c   :  { %5930 = vmatpush1.msra.mxu0 %v10199_v39  ;;  %6001 = vmatpush1.msra.mxu1 %v10201_v51  ;;  %11776 = vst [vmem:[#allocation28_spill] sm:$0xff] %v10326_v23  ;;  %11782 = vst [vmem:[#allocation51_spill] sm:$0xff] %v10346_v57 }
 0x89d   :  { %5931 = vmatprep.subr.mxu0 %v10205_v45  ;;  %6002 = vmatprep.subr.mxu1 %v10207_v41  ;;  %11783 = vst [vmem:[#allocation52_spill] sm:$0xff] %v10350_v2 }
 0x89e   :  { %5932 = vmatpush1.msra.mxu0 %v10211_v10  ;;  %6003 = vmatpush1.msra.mxu1 %v10213_v3 }
 0x89f   :  { %5933 = vmatprep.subr.mxu0 %v10217_v12  ;;  %6004 = vmatprep.subr.mxu1 %v10219_v15 }
 0x8a0   :  { %5934 = vmatpush1.msra.mxu0 %v10223_v44  ;;  %6005 = vmatpush1.msra.mxu1 %v10225_v0 }
 0x8a1   :  { %5935 = vmatprep.subr.mxu0 %v10229_v14  ;;  %6006 = vmatprep.subr.mxu1 %v10231_v20 }
 0x8a2   :  { %5936 = vmatpush1.msra.mxu0 %v10235_v53  ;;  %6007 = vmatpush1.msra.mxu1 %v10237_v22 }
 0x8a3   :  { %5937 = vmatprep.subr.mxu0 %v10241_v54  ;;  %6008 = vmatprep.subr.mxu1 %v10243_v55 }
 0x8a4   :  { %5938 = vmatpush1.msra.mxu0 %v10247_v52  ;;  %6009 = vmatpush1.msra.mxu1 %v10249_v47 }
 0x8a5   :  { %5939 = vmatprep.subr.mxu0 %v10253_v31  ;;  %6010 = vmatprep.subr.mxu1 %v10255_v11 }
 0x8a6   :  { %5940 = vmatpush1.msra.mxu0 %v10259_v35  ;;  %6011 = vmatpush1.msra.mxu1 %v10261_v7 }
 0x8a7   :  { %5941 = vmatprep.subr.mxu0 %v10265_v62  ;;  %6012 = vmatprep.subr.mxu1 %v10267_v48 }
 0x8a8   :  { %5942 = vmatpush1.msra.mxu0 %v10271_v29  ;;  %6013 = vmatpush1.msra.mxu1 %v10273_v38 }
 0x8a9   :  { %5943 = vmatprep.subr.mxu0 %v10277_v30  ;;  %6014 = vmatprep.subr.mxu1 %v10279_v61 }
 0x8aa   :  { %5944 = vmatpush1.msra.mxu0 %v10283_v25  ;;  %6015 = vmatpush1.msra.mxu1 %v10285_v40 }
 0x8ab   :  { %5945 = vmatprep.subr.mxu0 %v10289_v1  ;;  %6016 = vmatprep.subr.mxu1 %v10291_v50 }
 0x8ac   :  { %5946 = vmatpush1.msra.mxu0 %v10295_v58  ;;  %6017 = vmatpush1.msra.mxu1 %v10297_v42 }
 0x8ad   :  { %5947 = vmatprep.subr.mxu0 %v10304_v34  ;;  %6018 = vmatprep.subr.mxu1 %v10306_v28  ;;  %v10340_v28 = vld [vmem:[#allocation8 + $0x70] sm:$0xff] }
 0x8ae   :  { %5948 = vmatpush1.msra.mxu0 %v10310_v27  ;;  %6019 = vmatpush1.msra.mxu1 %v10312_v59  ;;  %v4503_v5 = vpop.f32.mrf.mxu0  ;;  %v4574_v46 = vpop.f32.mrf.mxu1  ;;  %11780 = vst [vmem:[#allocation50_spill] sm:$0xff] %v10340_v28  ;;  %v10344_v27 = vld [vmem:[#allocation8 + $0x48] sm:$0xff] }
 0x8af   :  { %5949 = vmatprep.subr.mxu0 %v10316_v32  ;;  %6020 = vmatprep.subr.mxu1 %v10318_v33  ;;  %v4504_v34 = vadd.f32 %v4503_v5, %v4420_v4  ;;  %11781 = vst [vmem:[#allocation31_spill] sm:$0xff] %v10344_v27  ;;  %v4575_v6 = vadd.f32 %v4574_v46, %v4428_v19  ;;  %v10352_v5 = vld [vmem:[#allocation8 + $0x50] sm:$0xff]  ;;  %v10356_v4 = vld [vmem:[#allocation8 + $0x28] sm:$0xff]  ;;  %v10370_v19 = vld [vmem:[#allocation8 + $0x18] sm:$0xff] }
 0x8b0   :  { %5950 = vmatpush1.msra.mxu0 %v10324_v16  ;;  %6021 = vmatpush1.msra.mxu1 %v10326_v23  ;;  %v4505_v60 = vpop.f32.mrf.mxu0  ;;  %v4576_v59 = vpop.f32.mrf.mxu1  ;;  %11784 = vst [vmem:[#allocation33_spill] sm:$0xff] %v10352_v5  ;;  %11785 = vst [vmem:[#allocation25_spill] sm:$0xff] %v10356_v4  ;;  %v10358_v23 = vld [vmem:[#allocation8 + $0x38] sm:$0xff] }
 0x8b1   :  { %5951 = vmatprep.subr.mxu0 %v10332_v56  ;;  %6022 = vmatprep.subr.mxu1 %v10334_v36  ;;  %v4506_v33 = vadd.f32 %v4505_v60, %v4424_v13  ;;  %v4577_v32 = vadd.f32 %v4576_v59, %v4432_v8  ;;  %11786 = vst [vmem:[#allocation48_spill] sm:$0xff] %v10358_v23  ;;  %v10362_v13 = vld [vmem:[#allocation8 + $0x20] sm:$0xff]  ;;  %v10364_v8 = vld [vmem:[#allocation8 + $0x30] sm:$0xff]  ;;  %v10368_v59 = vld [vmem:[#allocation8 + $0x8] sm:$0xff] }
 0x8b2   :  { %5952 = vmatpush1.msra.mxu0 %v10338_v63  ;;  %6023 = vmatpush1.msra.mxu1 %v10340_v28  ;;  %11787 = vst [vmem:[#allocation54_spill] sm:$0xff] %v10362_v13  ;;  %11788 = vst [vmem:[#allocation32_spill] sm:$0xff] %v10364_v8 }
 0x8b3   :  { %v4583_v16 = vcombine.low %v4504_v34, %v4506_v33  ;;  %v4584_v46 = vcombine.low %v4575_v6, %v4577_v32  ;;  %5953 = vmatprep.subr.mxu0 %v10344_v27  ;;  %6024 = vmatprep.subr.mxu1 %v10346_v57  ;;  %11789 = vst [vmem:[#allocation53_spill] sm:$0xff] %v10368_v59  ;;  %11790 = vst [vmem:[#allocation59_spill] sm:$0xff] %v10370_v19  ;;  %v10380_v34 = vld [vmem:[#allocation8] sm:$0xff]  ;;  %v10384_v32 = vld [vmem:[#allocation8 + $0x10] sm:$0xff] }
 0x8b4   :  { %5954 = vmatpush1.msra.mxu0 %v10350_v2  ;;  %6025 = vmatpush1.msra.mxu1 %v10352_v5  ;;  %11793 = vst [vmem:[#allocation58_spill] sm:$0xff] %v10380_v34  ;;  %11794 = vst [vmem:[#allocation14_spill] sm:$0xff] %v10384_v32  ;;  %v11795_v33 = vld [vmem:[#allocation56_spill] sm:$0xff] }
 0x8b5   :  { %v10373_v60 = vrot.slane %v4583_v16, %v11743_v9  ;;  %v10376_v6 = vrot.slane %v4584_v46, %v11743_v9  ;;  %5955 = vmatprep.subr.mxu0 %v10356_v4  ;;  %6026 = vmatprep.subr.mxu1 %v10358_v23  ;;  %v4667_v16 = vld [vmem:[%s11168_s6] sm:$0xf] }
 0x8b6   :  { %5956 = vmatpush1.msra.mxu0 %v10362_v13  ;;  %6027 = vmatpush1.msra.mxu1 %v10364_v8  ;;  %v4672_v46 = vrot.slane %v4667_v16, %v11734_v26 }
 0x8b7   :  { %11791 = vst [vmem:[#allocation61_spill] sm:$0xff] %v10373_v60  ;;  %11792 = vst [vmem:[#allocation62_spill] sm:$0xff] %v10376_v6  ;;  %5957 = vmatprep.subr.mxu0 %v10368_v59  ;;  %6028 = vmatprep.subr.mxu1 %v10370_v19  ;;  %v4680_v6 = vrot.slane %v4667_v16, %v11795_v33  ;;  %v11796_v60 = vld [vmem:[#allocation55_spill] sm:$0xff] }
 0x8b8   :  { %5958 = vmatpush1.msra.mxu0 %v10380_v34  ;;  %5991 = vmatprep.mubr.f32.mxu0 %v11671_v21 }
 0x8b9   :  { %6029 = vmatpush1.msra.mxu1 %v10384_v32  ;;  %6062 = vmatprep.mubr.f32.mxu1 %v11671_v21 }
 0x8ba   :  { %5992 = vmatmul.mubr.f32.vlgmr.msra.gmra.mxu0 %v11671_v21  ;;  %6063 = vmatmul.mubr.f32.vlgmr.msra.gmra.mxu1 %v11671_v21 }
 0x8bb   :  { %6124 = vmatprep.subr.mxu0 %v10181_v17  ;;  %6195 = vmatprep.subr.mxu1 %v10183_v18 }
 0x8bc   :  { %6125 = vmatpush1.msra.mxu0 %v10189_v24  ;;  %6196 = vmatpush1.msra.mxu1 %v10191_v37 }
 0x8bd   :  { %6126 = vmatprep.subr.mxu0 %v10195_v43  ;;  %6197 = vmatprep.subr.mxu1 %v10197_v49 }
 0x8be   :  { %6127 = vmatpush1.msra.mxu0 %v10199_v39  ;;  %6198 = vmatpush1.msra.mxu1 %v10201_v51 }
 0x8bf   :  { %6128 = vmatprep.subr.mxu0 %v10205_v45  ;;  %6199 = vmatprep.subr.mxu1 %v10207_v41 }
 0x8c0   :  { %6129 = vmatpush1.msra.mxu0 %v10211_v10  ;;  %6200 = vmatpush1.msra.mxu1 %v10213_v3 }
 0x8c1   :  { %6130 = vmatprep.subr.mxu0 %v10217_v12  ;;  %6201 = vmatprep.subr.mxu1 %v10219_v15 }
 0x8c2   :  { %6131 = vmatpush1.msra.mxu0 %v10223_v44  ;;  %6202 = vmatpush1.msra.mxu1 %v10225_v0 }
 0x8c3   :  { %6132 = vmatprep.subr.mxu0 %v10229_v14  ;;  %6203 = vmatprep.subr.mxu1 %v10231_v20 }
 0x8c4   :  { %6133 = vmatpush1.msra.mxu0 %v10235_v53  ;;  %6204 = vmatpush1.msra.mxu1 %v10237_v22 }
 0x8c5   :  { %6134 = vmatprep.subr.mxu0 %v10241_v54  ;;  %6205 = vmatprep.subr.mxu1 %v10243_v55 }
 0x8c6   :  { %6135 = vmatpush1.msra.mxu0 %v10247_v52  ;;  %6206 = vmatpush1.msra.mxu1 %v10249_v47 }
 0x8c7   :  { %6136 = vmatprep.subr.mxu0 %v10253_v31  ;;  %6207 = vmatprep.subr.mxu1 %v10255_v11  ;;  %v11804_v11 = vld [vmem:[#allocation70_spill] sm:$0xff] }
 0x8c8   :  { %6137 = vmatpush1.msra.mxu0 %v10259_v35  ;;  %6208 = vmatpush1.msra.mxu1 %v10261_v7 }
 0x8c9   :  { %6138 = vmatprep.subr.mxu0 %v10265_v62  ;;  %6209 = vmatprep.subr.mxu1 %v10267_v48  ;;  %v11800_v48 = vld [vmem:[#allocation45_spill] sm:$0xff]  ;;  %v11802_v62 = vld [vmem:[#allocation60_spill] sm:$0xff] }
 0x8ca   :  { %6139 = vmatpush1.msra.mxu0 %v10271_v29  ;;  %6210 = vmatpush1.msra.mxu1 %v10273_v38  ;;  %v11797_v38 = vld [vmem:[#allocation57_spill] sm:$0xff]  ;;  %v11798_v29 = vld [vmem:[#allocation47_spill] sm:$0xff] }
 0x8cb   :  { %6140 = vmatprep.subr.mxu0 %v10277_v30  ;;  %6211 = vmatprep.subr.mxu1 %v10279_v61  ;;  %v4676_v30 = vrot.slane %v4667_v16, %v11796_v60  ;;  %v4684_v61 = vrot.slane %v4667_v16, %v11797_v38  ;;  %v11805_v16 = vld [vmem:[#allocation28_spill] sm:$0xff] }
 0x8cc   :  { %6141 = vmatpush1.msra.mxu0 %v10283_v25  ;;  %6212 = vmatpush1.msra.mxu1 %v10285_v40  ;;  %v11799_v25 = vld [vmem:[#allocation26_spill] sm:$0xff] }
 0x8cd   :  { %6142 = vmatprep.subr.mxu0 %v10289_v1  ;;  %6213 = vmatprep.subr.mxu1 %v10291_v50  ;;  %v11801_v50 = vld [vmem:[#allocation27_spill] sm:$0xff] }
 0x8ce   :  { %6143 = vmatpush1.msra.mxu0 %v10295_v58  ;;  %6214 = vmatpush1.msra.mxu1 %v10297_v42  ;;  %v11803_v58 = vld [vmem:[#allocation69_spill] sm:$0xff] }
 0x8cf   :  { %6144 = vmatprep.subr.mxu0 %v11798_v29  ;;  %6215 = vmatprep.subr.mxu1 %v11799_v25 }
 0x8d0   :  { %v4755_v40 = vpop.f32.mrf.mxu0  ;;  %v4826_v1 = vpop.f32.mrf.mxu1  ;;  %6145 = vmatpush1.msra.mxu0 %v11800_v48  ;;  %6216 = vmatpush1.msra.mxu1 %v11801_v50 }
 0x8d1   :  { %6146 = vmatprep.subr.mxu0 %v11802_v62  ;;  %6217 = vmatprep.subr.mxu1 %v11803_v58  ;;  %v4756_v42 = vadd.f32 %v4755_v40, %v4672_v46  ;;  %v4827_v29 = vadd.f32 %v4826_v1, %v4680_v6 }
 0x8d2   :  { %v4757_v7 = vpop.f32.mrf.mxu0  ;;  %v4828_v35 = vpop.f32.mrf.mxu1  ;;  %6147 = vmatpush1.msra.mxu0 %v11804_v11  ;;  %6218 = vmatpush1.msra.mxu1 %v11805_v16 }
 0x8d3   :  { %v4758_v31 = vadd.f32 %v4757_v7, %v4676_v30  ;;  %v4829_v25 = vadd.f32 %v4828_v35, %v4684_v61  ;;  %6148 = vmatprep.subr.mxu0 %v10332_v56  ;;  %6219 = vmatprep.subr.mxu1 %v10334_v36 }
 0x8d4   :  { %6149 = vmatpush1.msra.mxu0 %v10338_v63  ;;  %6220 = vmatpush1.msra.mxu1 %v10340_v28 }
 0x8d5   :  { %v4835_v62 = vcombine.low %v4756_v42, %v4758_v31  ;;  %v4836_v58 = vcombine.low %v4827_v29, %v4829_v25  ;;  %6150 = vmatprep.subr.mxu0 %v10344_v27  ;;  %6221 = vmatprep.subr.mxu1 %v10346_v57 }
 0x8d6   :  { %6151 = vmatpush1.msra.mxu0 %v10350_v2  ;;  %6222 = vmatpush1.msra.mxu1 %v10352_v5 }
 0x8d7   :  { %v10460_v35 = vrot.slane %v4835_v62, %v11743_v9  ;;  %v10463_v7 = vrot.slane %v4836_v58, %v11743_v9  ;;  %6152 = vmatprep.subr.mxu0 %v10356_v4  ;;  %6223 = vmatprep.subr.mxu1 %v10358_v23  ;;  %v4919_v62 = vld [vmem:[%s11168_s6] sm:$0xf] }
 0x8d8   :  { %6153 = vmatpush1.msra.mxu0 %v10362_v13  ;;  %6224 = vmatpush1.msra.mxu1 %v10364_v8  ;;  %v4924_v29 = vrot.slane %v4919_v62, %v11734_v26  ;;  %v4932_v30 = vrot.slane %v4919_v62, %v11795_v33  ;;  %v4928_v61 = vrot.slane %v4919_v62, %v11796_v60 }
 0x8d9   :  { %11806 = vst [vmem:[#allocation34_spill] sm:$0xff] %v10460_v35  ;;  %11807 = vst [vmem:[#allocation63_spill] sm:$0xff] %v10463_v7  ;;  %6154 = vmatprep.subr.mxu0 %v10368_v59  ;;  %6225 = vmatprep.subr.mxu1 %v10370_v19  ;;  %v4936_v25 = vrot.slane %v4919_v62, %v11797_v38  ;;  %v5171_v62 = vld [vmem:[%s11168_s6] sm:$0xf] }
 0x8da   :  { %6155 = vmatpush1.msra.mxu0 %v10380_v34  ;;  %6188 = vmatprep.mubr.f32.mxu0 %v11671_v21 }
 0x8db   :  { %6226 = vmatpush1.msra.mxu1 %v10384_v32  ;;  %6259 = vmatprep.mubr.f32.mxu1 %v11671_v21 }
 0x8dc   :  { %6321 = vmatprep.subr.mxu0 %v10181_v17  ;;  %6392 = vmatprep.subr.mxu1 %v10183_v18 }
 0x8f2   :  { %v5007_v40 = vpop.f32.mrf.mxu0  ;;  %v5078_v1 = vpop.f32.mrf.mxu1 }
 0x8f3   :  { %v5008_v6 = vadd.f32 %v5007_v40, %v4924_v29  ;;  %v5079_v46 = vadd.f32 %v5078_v1, %v4932_v30  ;;  %v5176_v29 = vrot.slane %v5171_v62, %v11734_v26  ;;  %v5184_v30 = vrot.slane %v5171_v62, %v11795_v33 }
 0x8f4   :  { %v5009_v58 = vpop.f32.mrf.mxu0  ;;  %v5080_v42 = vpop.f32.mrf.mxu1 }
 0x8f5   :  { %v5010_v31 = vadd.f32 %v5009_v58, %v4928_v61  ;;  %v5081_v7 = vadd.f32 %v5080_v42, %v4936_v25 }
 0x8f7   :  { %v5087_v35 = vcombine.low %v5008_v6, %v5010_v31  ;;  %v5088_v18 = vcombine.low %v5079_v46, %v5081_v7  ;;  %v5180_v31 = vrot.slane %v5171_v62, %v11796_v60  ;;  %v5188_v7 = vrot.slane %v5171_v62, %v11797_v38  ;;  %v5423_v62 = vld [vmem:[%s11168_s6] sm:$0xf] }
 0x8f9   :  { %v10487_v17 = vrot.slane %v5087_v35, %v11743_v9  ;;  %v10490_v32 = vrot.slane %v5088_v18, %v11743_v9 }
 0x8fb   :  { %11808 = vst [vmem:[#allocation64_spill] sm:$0xff] %v10487_v17  ;;  %11809 = vst [vmem:[#allocation15_spill] sm:$0xff] %v10490_v32 }
 0x914   :  { %v5259_v35 = vpop.f32.mrf.mxu0  ;;  %v5330_v61 = vpop.f32.mrf.mxu1 }
 0x915   :  { %v5260_v40 = vadd.f32 %v5259_v35, %v5176_v29  ;;  %v5331_v1 = vadd.f32 %v5330_v61, %v5184_v30  ;;  %v5428_v29 = vrot.slane %v5423_v62, %v11734_v26  ;;  %v5436_v30 = vrot.slane %v5423_v62, %v11795_v33 }
 0x916   :  { %v5261_v25 = vpop.f32.mrf.mxu0  ;;  %v5332_v18 = vpop.f32.mrf.mxu1 }
 0x917   :  { %v5262_v58 = vadd.f32 %v5261_v25, %v5180_v31  ;;  %v5333_v42 = vadd.f32 %v5332_v18, %v5188_v7  ;;  %v5432_v31 = vrot.slane %v5423_v62, %v11796_v60  ;;  %v5440_v7 = vrot.slane %v5423_v62, %v11797_v38  ;;  %v5675_v62 = vld [vmem:[%s11168_s6] sm:$0xf] }
 0x919   :  { %v5339_v6 = vcombine.low %v5260_v40, %v5262_v58  ;;  %v5340_v46 = vcombine.low %v5331_v1, %v5333_v42 }
 0x91b   :  { %v10502_v21 = vrot.slane %v5339_v6, %v11743_v9  ;;  %v10505_v32 = vrot.slane %v5340_v46, %v11743_v9 }
 0x91d   :  { %11810 = vst [vmem:[#allocation56_spill] sm:$0xff] %v10502_v21  ;;  %11811 = vst [vmem:[#allocation55_spill] sm:$0xff] %v10505_v32 }
 0x936   :  { %v5511_v35 = vpop.f32.mrf.mxu0  ;;  %v5582_v61 = vpop.f32.mrf.mxu1 }
 0x937   :  { %v5512_v40 = vadd.f32 %v5511_v35, %v5428_v29  ;;  %v5583_v1 = vadd.f32 %v5582_v61, %v5436_v30  ;;  %v5680_v29 = vrot.slane %v5675_v62, %v11734_v26  ;;  %v5688_v30 = vrot.slane %v5675_v62, %v11795_v33 }
 0x938   :  { %v5513_v25 = vpop.f32.mrf.mxu0  ;;  %v5584_v18 = vpop.f32.mrf.mxu1 }
 0x939   :  { %v5514_v58 = vadd.f32 %v5513_v25, %v5432_v31  ;;  %v5585_v42 = vadd.f32 %v5584_v18, %v5440_v7  ;;  %v5684_v31 = vrot.slane %v5675_v62, %v11796_v60  ;;  %v5692_v7 = vrot.slane %v5675_v62, %v11797_v38  ;;  %v3911_v62 = vld [vmem:[%s11168_s6] sm:$0xf] }
 0x93b   :  { %v5591_v6 = vcombine.low %v5512_v40, %v5514_v58  ;;  %v5592_v46 = vcombine.low %v5583_v1, %v5585_v42 }
 0x93d   :  { %v10517_v17 = vrot.slane %v5591_v6, %v11743_v9  ;;  %v10520_v32 = vrot.slane %v5592_v46, %v11743_v9 }
 0x93f   :  { %11812 = vst [vmem:[#allocation57_spill] sm:$0xff] %v10517_v17  ;;  %11813 = vst [vmem:[#allocation45_spill] sm:$0xff] %v10520_v32 }
 0x959   :  { %v5763_v35 = vpop.f32.mrf.mxu0  ;;  %v5834_v61 = vpop.f32.mrf.mxu1 }
 0x95a   :  { %v5764_v40 = vadd.f32 %v5763_v35, %v5680_v29  ;;  %v5835_v1 = vadd.f32 %v5834_v61, %v5688_v30  ;;  %v3920_v29 = vrot.slane %v3911_v62, %v11796_v60  ;;  %v3928_v30 = vrot.slane %v3911_v62, %v11797_v38  ;;  %v11816_v35 = vld [vmem:[#allocation36_spill] sm:$0xff] }
 0x95b   :  { %v5765_v25 = vpop.f32.mrf.mxu0  ;;  %v5836_v18 = vpop.f32.mrf.mxu1 }
 0x95c   :  { %v5766_v58 = vadd.f32 %v5765_v25, %v5684_v31  ;;  %v5837_v42 = vadd.f32 %v5836_v18, %v5692_v7  ;;  %v3916_v31 = vrot.slane %v3911_v62, %v11734_v26  ;;  %v3924_v7 = vrot.slane %v3911_v62, %v11795_v33  ;;  %v11817_v25 = vld [vmem:[#allocation17_spill] sm:$0xff] }
 0x95d   :  { %v4002_v61 = vadd.f32 %v11816_v35, %v3920_v29  ;;  %v4073_v18 = vadd.f32 %v11817_v25, %v3928_v30 }
 0x95e   :  { %v5843_v6 = vcombine.low %v5764_v40, %v5766_v58  ;;  %v5844_v46 = vcombine.low %v5835_v1, %v5837_v42  ;;  %v11818_v40 = vld [vmem:[#allocation35_spill] sm:$0xff]  ;;  %v11819_v58 = vld [vmem:[#allocation16_spill] sm:$0xff] }
 0x95f   :  { %v4000_v1 = vadd.f32 %v11818_v40, %v3916_v31  ;;  %v4071_v42 = vadd.f32 %v11819_v58, %v3924_v7 }
 0x960   :  { %v10532_v21 = vrot.slane %v5843_v6, %v11743_v9  ;;  %v10535_v32 = vrot.slane %v5844_v46, %v11743_v9 }
 0x961   :  { %v4079_v6 = vcombine.low %v4000_v1, %v4002_v61  ;;  %v4080_v46 = vcombine.low %v4071_v42, %v4073_v18 }
 0x962   :  { %11814 = vst [vmem:[#allocation27_spill] sm:$0xff] %v10532_v21  ;;  %11815 = vst [vmem:[#allocation71_spill] sm:$0xff] %v10535_v32 }
 0x963   :  { %v4087_v38 = vrot.slane %v4079_v6, %v11743_v9  ;;  %v4094_v26 = vrot.slane %v4080_v46, %v11743_v9 }
 0x965   :  { %v4095_v30 = vcombine.low %v4087_v38, %v4094_v26 }
 0x97a   :  { %v5993_v17 = vpop.f32.mrf.mxu0  ;;  %v6064_v32 = vpop.f32.mrf.mxu1 }
 0x97c   :  { %v5995_v21 = vpop.f32.mrf.mxu0  ;;  %v6066_v60 = vpop.f32.mrf.mxu1 }
 0x97d   :  { %v6073_v34 = vcombine.low %v5993_v17, %v5995_v21  ;;  %v6074_v33 = vcombine.low %v6064_v32, %v6066_v60 }
 0x97f   :  { %v6081_v62 = vrot.slane %v6073_v34, %v11743_v9  ;;  %v6088_v29 = vrot.slane %v6074_v33, %v11743_v9 }
 0x981   :  { %v6089_v31 = vcombine.low %v6081_v62, %v6088_v29 }
 0x983   :  { %v6091_v35 = vadd.f32 %v6089_v31, %v4095_v30  ;;  %v11820_v31 = vld [vmem:[#allocation39_spill] sm:$0xff] }
 0x985   :  { %v7682_v7 = vmul.f32 -1.442695, %v6091_v35  ;;  %v6099_v61 = vrot.slane %v6091_v35, 2  ;;  %v6110_v18 = vrot.slane %v6091_v35, 6  ;;  %v6107_v58 = vrot.slane %v6091_v35, 4  ;;  %v11821_v35 = vld [vmem:[#allocation20_spill] sm:$0xff] }
 0x987   :  { %7900 = vpow2.f32 %v7682_v7  ;;  %v7683_v25 = vmul.f32 -1.442695, %v6099_v61  ;;  %v7684_v40 = vmul.f32 -1.442695, %v6110_v18  ;;  %v11822_v7 = vld [vmem:[#allocation40_spill] sm:$0xff]  ;;  %v11823_v61 = vld [vmem:[#allocation21_spill] sm:$0xff] }
 0x988   :  { %v11825_v18 = vld [vmem:[#allocation22_spill] sm:$0xff] }
 0x989   :  { %7902 = vpow2.f32 %v7683_v25  ;;  %v11824_v25 = vld [vmem:[#allocation41_spill] sm:$0xff] }
 0x98a   :  { %7904 = vpow2.f32 %v7684_v40  ;;  %v11826_v40 = vld [vmem:[#allocation42_spill] sm:$0xff] }
 0x994   :  { %v7901_v1 = vpop.eup %7900 }
 0x995   :  { %v6095_v42 = vadd.f32 1.0, %v7901_v1  ;;  %v11827_v1 = vld [vmem:[#allocation23_spill] sm:$0xff] }
 0x996   :  { %v7903_v6 = vpop.eup %7902 }
 0x997   :  { %7906 = vrcp.f32 %v6095_v42  ;;  %v6104_v21 = vadd.f32 1.0, %v7903_v6  ;;  %v7905_v17 = vpop.eup %7904  ;;  %v11829_v42 = vld [vmem:[#allocation24_spill] sm:$0xff] }
 0x998   :  { %7908 = vtanh.f32 %v6107_v58  ;;  %v6115_v60 = vadd.f32 1.0, %v7905_v17  ;;  %v11828_v58 = vld [vmem:[#allocation43_spill] sm:$0xff]  ;;  %v11830_v6 = vld [vmem:[#allocation44_spill] sm:$0xff]  ;;  %v11832_v17 = vld [vmem:[#allocation66_spill] sm:$0xff] }
 0x999   :  { %7910 = vrcp.f32 %v6104_v21  ;;  %v11831_v21 = vld [vmem:[#allocation65_spill] sm:$0xff] }
 0x99a   :  { %7912 = vrcp.f32 %v6115_v60  ;;  %v11836_v60 = vld [vmem:[#allocation47_spill] sm:$0xff] }
 0x9a4   :  { %v7907_v34 = vpop.eup %7906 }
 0x9a5   :  { %v7909_v32 = vpop.eup %7908 }
 0x9a6   :  { %v7911_v46 = vpop.eup %7910  ;;  %v6119_v26 = vmul.f32 %v7909_v32, %v7907_v34  ;;  %v11833_v34 = vld [vmem:[#allocation67_spill] sm:$0xff]  ;;  %v11834_v32 = vld [vmem:[#allocation68_spill] sm:$0xff] }
 0x9a7   :  { %v6118_v38 = vmul.f32 0.0, %v7911_v46  ;;  %v7913_v62 = vpop.eup %7912  ;;  %v11835_v46 = vld [vmem:[#allocation46_spill] sm:$0xff] }
 0x9a9   :  { %v10554_v33 = vadd.f32 %v6119_v26, %v6118_v38  ;;  %v11837_v38 = vld [vmem:[#allocation26_spill] sm:$0xff]  ;;  %v11838_v26 = vld [vmem:[#allocation60_spill] sm:$0xff] }
 0x9ab   :  { %7914 = vtanh.f32 %v10554_v33 }
 0x9b8   :  { %v7915_v29 = vpop.eup %7914 }
 0x9b9   :  { %v6122_v30 = vmul.f32 %v7915_v29, %v7913_v62  ;;  %v11839_v62 = vld [vmem:[#allocation69_spill] sm:$0xff]  ;;  %v11840_v29 = vld [vmem:[#allocation58_spill] sm:$0xff] }
 0x9bb   :  { %6189 = vmatmul.mubr.f32.vlgmr.msra.gmra.mxu0 %v6122_v30  ;;  %6260 = vmatmul.mubr.f32.vlgmr.msra.gmra.mxu1 %v6122_v30  ;;  %v11841_v30 = vmov 0.0  }
 0x9bc   :  { %6322 = vmatpush1.msra.mxu0 %v10189_v24  ;;  %6393 = vmatpush1.msra.mxu1 %v10191_v37 }
 0x9bd   :  { %6323 = vmatprep.subr.mxu0 %v10195_v43  ;;  %6394 = vmatprep.subr.mxu1 %v10197_v49 }
 0x9be   :  { %6324 = vmatpush1.msra.mxu0 %v10199_v39  ;;  %6395 = vmatpush1.msra.mxu1 %v10201_v51 }
 0x9bf   :  { %6325 = vmatprep.subr.mxu0 %v10205_v45  ;;  %6396 = vmatprep.subr.mxu1 %v10207_v41 }
 0x9c0   :  { %6326 = vmatpush1.msra.mxu0 %v10211_v10  ;;  %6397 = vmatpush1.msra.mxu1 %v10213_v3 }
 0x9c1   :  { %6327 = vmatprep.subr.mxu0 %v10217_v12  ;;  %6398 = vmatprep.subr.mxu1 %v10219_v15 }
 0x9c2   :  { %6328 = vmatpush1.msra.mxu0 %v10223_v44  ;;  %6399 = vmatpush1.msra.mxu1 %v10225_v0 }
 0x9c3   :  { %6329 = vmatprep.subr.mxu0 %v10229_v14  ;;  %6400 = vmatprep.subr.mxu1 %v10231_v20 }
 0x9c4   :  { %6330 = vmatpush1.msra.mxu0 %v10235_v53  ;;  %6401 = vmatpush1.msra.mxu1 %v10237_v22 }
 0x9c5   :  { %6331 = vmatprep.subr.mxu0 %v10241_v54  ;;  %6402 = vmatprep.subr.mxu1 %v10243_v55 }
 0x9c6   :  { %6332 = vmatpush1.msra.mxu0 %v10247_v52  ;;  %6403 = vmatpush1.msra.mxu1 %v10249_v47 }
 0x9c7   :  { %6333 = vmatprep.subr.mxu0 %v11820_v31  ;;  %6404 = vmatprep.subr.mxu1 %v11821_v35 }
 0x9c8   :  { %6334 = vmatpush1.msra.mxu0 %v11822_v7  ;;  %6405 = vmatpush1.msra.mxu1 %v11823_v61 }
 0x9c9   :  { %6335 = vmatprep.subr.mxu0 %v11824_v25  ;;  %6406 = vmatprep.subr.mxu1 %v11825_v18 }
 0x9ca   :  { %6336 = vmatpush1.msra.mxu0 %v11826_v40  ;;  %6407 = vmatpush1.msra.mxu1 %v11827_v1 }
 0x9cb   :  { %6337 = vmatprep.subr.mxu0 %v11828_v58  ;;  %6408 = vmatprep.subr.mxu1 %v11829_v42 }
 0x9cc   :  { %6338 = vmatpush1.msra.mxu0 %v11830_v6  ;;  %6409 = vmatpush1.msra.mxu1 %v11831_v21 }
 0x9cd   :  { %6339 = vmatprep.subr.mxu0 %v11832_v17  ;;  %6410 = vmatprep.subr.mxu1 %v11833_v34 }
 0x9ce   :  { %6340 = vmatpush1.msra.mxu0 %v11834_v32  ;;  %6411 = vmatpush1.msra.mxu1 %v11835_v46 }
 0x9cf   :  { %6341 = vmatprep.subr.mxu0 %v11836_v60  ;;  %6412 = vmatprep.subr.mxu1 %v11837_v38 }
 0x9d0   :  { %6342 = vmatpush1.msra.mxu0 %v11800_v48  ;;  %6413 = vmatpush1.msra.mxu1 %v11801_v50 }
 0x9d1   :  { %6343 = vmatprep.subr.mxu0 %v11838_v26  ;;  %6414 = vmatprep.subr.mxu1 %v11839_v62 }
 0x9d2   :  { %6344 = vmatpush1.msra.mxu0 %v11804_v11  ;;  %6415 = vmatpush1.msra.mxu1 %v11805_v16 }
 0x9d3   :  { %6345 = vmatprep.subr.mxu0 %v10332_v56  ;;  %6416 = vmatprep.subr.mxu1 %v10334_v36  ;;  %v11846_v36 = vld [vmem:[#allocation18_spill] sm:$0xff] }
 0x9d4   :  { %6346 = vmatpush1.msra.mxu0 %v10338_v63  ;;  %6417 = vmatpush1.msra.mxu1 %v10340_v28  ;;  %v11845_v63 = vld [vmem:[#allocation37_spill] sm:$0xff] }
 0x9d5   :  { %6347 = vmatprep.subr.mxu0 %v10344_v27  ;;  %6418 = vmatprep.subr.mxu1 %v10346_v57  ;;  %v11842_v57 = vld [vmem:[#allocation14_spill] sm:$0xff] }
 0x9d6   :  { %6348 = vmatpush1.msra.mxu0 %v10350_v2  ;;  %6419 = vmatpush1.msra.mxu1 %v10352_v5  ;;  %v11843_v5 = vld [vmem:[#allocation38_spill] sm:$0xff] }
 0x9d7   :  { %6349 = vmatprep.subr.mxu0 %v10356_v4  ;;  %6420 = vmatprep.subr.mxu1 %v10358_v23  ;;  %v11844_v4 = vld [vmem:[#allocation19_spill] sm:$0xff] }
 0x9d8   :  { %6350 = vmatpush1.msra.mxu0 %v10362_v13  ;;  %6421 = vmatpush1.msra.mxu1 %v10364_v8 }
 0x9d9   :  { %6351 = vmatprep.subr.mxu0 %v10368_v59  ;;  %6422 = vmatprep.subr.mxu1 %v10370_v19 }
 0x9da   :  { %6352 = vmatpush1.msra.mxu0 %v11840_v29  ;;  %6385 = vmatprep.mubr.f32.mxu0 %v11841_v30 }
 0x9db   :  { %6423 = vmatpush1.msra.mxu1 %v11842_v57  ;;  %6456 = vmatprep.mubr.f32.mxu1 %v11841_v30  ;;  %v11847_v57 = vcombine.low %v11845_v63, %v11846_v36 }
 0x9dc   :  { %6518 = vmatprep.subr.mxu0 %v11843_v5  ;;  %6589 = vmatprep.subr.mxu1 %v11844_v4 }
 0xa7b   :  { %v6190_v23 = vpop.f32.mrf.mxu0  ;;  %v6261_v13 = vpop.f32.mrf.mxu1 }
 0xa7d   :  { %v6192_v2 = vpop.f32.mrf.mxu0  ;;  %v6263_v8 = vpop.f32.mrf.mxu1 }
 0xa7e   :  { %v6270_v27 = vcombine.low %v6190_v23, %v6192_v2  ;;  %v6271_v59 = vcombine.low %v6261_v13, %v6263_v8 }
 0xa80   :  { %v6278_v19 = vrot.slane %v6270_v27, %v11743_v9  ;;  %v6285_v29 = vrot.slane %v6271_v59, %v11743_v9 }
 0xa82   :  { %v6286_v28 = vcombine.low %v6278_v19, %v6285_v29 }
 0xa84   :  { %v6288_v56 = vadd.f32 %v6286_v28, %v11847_v57 }
 0xa86   :  { %v7685_v30 = vmul.f32 -1.442695, %v6288_v56  ;;  %v6296_v16 = vrot.slane %v6288_v56, 2  ;;  %v6307_v4 = vrot.slane %v6288_v56, 6  ;;  %v6304_v26 = vrot.slane %v6288_v56, 4 }
 0xa88   :  { %7916 = vpow2.f32 %v7685_v30  ;;  %v7686_v5 = vmul.f32 -1.442695, %v6296_v16  ;;  %v7687_v11 = vmul.f32 -1.442695, %v6307_v4 }
 0xa8a   :  { %7918 = vpow2.f32 %v7686_v5 }
 0xa8b   :  { %7920 = vpow2.f32 %v7687_v11 }
 0xa95   :  { %v7917_v62 = vpop.eup %7916 }
 0xa96   :  { %v6292_v2 = vadd.f32 1.0, %v7917_v62 }
 0xa97   :  { %v7919_v23 = vpop.eup %7918 }
 0xa98   :  { %7922 = vrcp.f32 %v6292_v2  ;;  %v6301_v27 = vadd.f32 1.0, %v7919_v23  ;;  %v7921_v13 = vpop.eup %7920 }
 0xa99   :  { %7924 = vtanh.f32 %v6304_v26  ;;  %v6312_v57 = vadd.f32 1.0, %v7921_v13 }
 0xa9a   :  { %7926 = vrcp.f32 %v6301_v27 }
 0xa9b   :  { %7928 = vrcp.f32 %v6312_v57 }
 0xaa5   :  { %v7923_v8 = vpop.eup %7922 }
 0xaa6   :  { %v7925_v63 = vpop.eup %7924 }
 0xaa7   :  { %v7927_v36 = vpop.eup %7926  ;;  %v6316_v59 = vmul.f32 %v7925_v63, %v7923_v8 }
 0xaa8   :  { %v6315_v28 = vmul.f32 %v7927_v36, %v10554_v33  ;;  %v7929_v56 = vpop.eup %7928 }
 0xaaa   :  { %v10629_v19 = vadd.f32 %v6316_v59, %v6315_v28  ;;  %v10711_v28 = vld [vmem:[#allocation8 + $0x1e0] sm:$0xff]  ;;  %v10714_v59 = vld [vmem:[#allocation8 + $0x1f0] sm:$0xff] }
 0xaac   :  { %7930 = vtanh.f32 %v10629_v19 }
 0xab9   :  { %v7931_v16 = vpop.eup %7930 }
 0xaba   :  { %v6319_v11 = vmul.f32 %v7931_v16, %v7929_v56  ;;  %v10720_v56 = vld [vmem:[#allocation8 + $0x1d8] sm:$0xff]  ;;  %v10723_v16 = vld [vmem:[#allocation8 + $0x1c0] sm:$0xff] }
 0xabc   :  { %6386 = vmatmul.mubr.f32.vlgmr.msra.gmra.mxu0 %v6319_v11  ;;  %6457 = vmatmul.mubr.f32.vlgmr.msra.gmra.mxu1 %v6319_v11  ;;  %v10726_v11 = vld [vmem:[#allocation8 + $0x1d0] sm:$0xff] }
 0xabd   :  { %6519 = vmatpush1.msra.mxu0 %v10189_v24  ;;  %6590 = vmatpush1.msra.mxu1 %v10191_v37  ;;  %v11848_v24 = vld [vmem:[#allocation60_spill] sm:$0xff]  ;;  %v11849_v37 = vld [vmem:[#allocation69_spill] sm:$0xff] }
 0xabe   :  { %6520 = vmatprep.subr.mxu0 %v10195_v43  ;;  %6591 = vmatprep.subr.mxu1 %v10197_v49  ;;  %v11850_v43 = vld [vmem:[#allocation70_spill] sm:$0xff]  ;;  %v11851_v49 = vld [vmem:[#allocation28_spill] sm:$0xff] }
 0xabf   :  { %6521 = vmatpush1.msra.mxu0 %v10199_v39  ;;  %6592 = vmatpush1.msra.mxu1 %v10201_v51  ;;  %v11852_v39 = vld [vmem:[#allocation29_spill] sm:$0xff] }
 0xac0   :  { %6522 = vmatprep.subr.mxu0 %v10205_v45  ;;  %6593 = vmatprep.subr.mxu1 %v10207_v41  ;;  %v11853_v51 = vld [vmem:[#allocation49_spill] sm:$0xff]  ;;  %v11854_v45 = vld [vmem:[#allocation30_spill] sm:$0xff] }
 0xac1   :  { %6523 = vmatpush1.msra.mxu0 %v10211_v10  ;;  %6594 = vmatpush1.msra.mxu1 %v10213_v3  ;;  %v11855_v41 = vld [vmem:[#allocation50_spill] sm:$0xff]  ;;  %v11856_v10 = vld [vmem:[#allocation31_spill] sm:$0xff] }
 0xac2   :  { %6524 = vmatprep.subr.mxu0 %v10217_v12  ;;  %6595 = vmatprep.subr.mxu1 %v10219_v15  ;;  %v11857_v3 = vld [vmem:[#allocation51_spill] sm:$0xff]  ;;  %v11858_v12 = vld [vmem:[#allocation52_spill] sm:$0xff]  ;;  %v11859_v15 = vld [vmem:[#allocation33_spill] sm:$0xff] }
 0xac3   :  { %6525 = vmatpush1.msra.mxu0 %v10223_v44  ;;  %6596 = vmatpush1.msra.mxu1 %v10225_v0  ;;  %v11860_v44 = vld [vmem:[#allocation25_spill] sm:$0xff]  ;;  %v11861_v0 = vld [vmem:[#allocation48_spill] sm:$0xff] }
 0xac4   :  { %6526 = vmatprep.subr.mxu0 %v10229_v14  ;;  %6597 = vmatprep.subr.mxu1 %v10231_v20  ;;  %v11862_v14 = vld [vmem:[#allocation54_spill] sm:$0xff]  ;;  %v11863_v20 = vld [vmem:[#allocation32_spill] sm:$0xff] }
 0xac5   :  { %6527 = vmatpush1.msra.mxu0 %v10235_v53  ;;  %6598 = vmatpush1.msra.mxu1 %v10237_v22  ;;  %v11864_v53 = vld [vmem:[#allocation53_spill] sm:$0xff]  ;;  %v11865_v22 = vld [vmem:[#allocation59_spill] sm:$0xff] }
 0xac6   :  { %6528 = vmatprep.subr.mxu0 %v10241_v54  ;;  %6599 = vmatprep.subr.mxu1 %v10243_v55  ;;  %v11866_v54 = vld [vmem:[#allocation58_spill] sm:$0xff]  ;;  %v11867_v55 = vmov 0.0  }
 0xac7   :  { %6529 = vmatpush1.msra.mxu0 %v10247_v52  ;;  %6600 = vmatpush1.msra.mxu1 %v10249_v47  ;;  %v11868_v52 = vld [vmem:[#allocation14_spill] sm:$0xff]  ;;  %v10696_v47 = vld [vmem:[#allocation8 + $0x1e8] sm:$0xff] }
 0xac8   :  { %6530 = vmatprep.subr.mxu0 %v11820_v31  ;;  %6601 = vmatprep.subr.mxu1 %v11821_v35  ;;  %11869 = vst [vmem:[#allocation36_spill] sm:$0xff] %v10696_v47 }
 0xac9   :  { %6531 = vmatpush1.msra.mxu0 %v11822_v7  ;;  %6602 = vmatpush1.msra.mxu1 %v11823_v61 }
 0xaca   :  { %6532 = vmatprep.subr.mxu0 %v11824_v25  ;;  %6603 = vmatprep.subr.mxu1 %v11825_v18 }
 0xacb   :  { %6533 = vmatpush1.msra.mxu0 %v11826_v40  ;;  %6604 = vmatpush1.msra.mxu1 %v11827_v1  ;;  %v11871_v1 = vld [vmem:[#allocation61_spill] sm:$0xff] }
 0xacc   :  { %6534 = vmatprep.subr.mxu0 %v11828_v58  ;;  %6605 = vmatprep.subr.mxu1 %v11829_v42  ;;  %v11872_v58 = vld [vmem:[#allocation62_spill] sm:$0xff] }
 0xacd   :  { %6535 = vmatpush1.msra.mxu0 %v11830_v6  ;;  %6606 = vmatpush1.msra.mxu1 %v11831_v21  ;;  %v11873_v42 = vcombine.low %v11871_v1, %v11872_v58  ;;  %v10792_v1 = vld [vmem:[#allocation8 + $0x118] sm:$0xff]  ;;  %v10795_v58 = vld [vmem:[#allocation8 + $0x100] sm:$0xff] }
 0xace   :  { %6536 = vmatprep.subr.mxu0 %v11832_v17  ;;  %6607 = vmatprep.subr.mxu1 %v11833_v34 }
 0xacf   :  { %6537 = vmatpush1.msra.mxu0 %v11834_v32  ;;  %6608 = vmatpush1.msra.mxu1 %v11835_v46 }
 0xad0   :  { %6538 = vmatprep.subr.mxu0 %v11836_v60  ;;  %6609 = vmatprep.subr.mxu1 %v11837_v38 }
 0xad1   :  { %6539 = vmatpush1.msra.mxu0 %v11800_v48  ;;  %6610 = vmatpush1.msra.mxu1 %v11801_v50  ;;  %v10699_v48 = vld [vmem:[#allocation8 + $0x1f8] sm:$0xff] }
 0xad2   :  { %6540 = vmatprep.subr.mxu0 %v11848_v24  ;;  %6611 = vmatprep.subr.mxu1 %v11849_v37  ;;  %11870 = vst [vmem:[#allocation17_spill] sm:$0xff] %v10699_v48  ;;  %v10729_v24 = vld [vmem:[#allocation8 + $0x1a8] sm:$0xff]  ;;  %v10732_v37 = vld [vmem:[#allocation8 + $0x1b8] sm:$0xff] }
 0xad3   :  { %6541 = vmatpush1.msra.mxu0 %v11850_v43  ;;  %6612 = vmatpush1.msra.mxu1 %v11851_v49  ;;  %v10735_v43 = vld [vmem:[#allocation8 + $0x1a0] sm:$0xff]  ;;  %v10738_v49 = vld [vmem:[#allocation8 + $0x1b0] sm:$0xff] }
 0xad4   :  { %6542 = vmatprep.subr.mxu0 %v11852_v39  ;;  %6613 = vmatprep.subr.mxu1 %v11853_v51  ;;  %v10741_v39 = vld [vmem:[#allocation8 + $0x188] sm:$0xff]  ;;  %v10744_v51 = vld [vmem:[#allocation8 + $0x198] sm:$0xff] }
 0xad5   :  { %6543 = vmatpush1.msra.mxu0 %v11854_v45  ;;  %6614 = vmatpush1.msra.mxu1 %v11855_v41  ;;  %v10747_v45 = vld [vmem:[#allocation8 + $0x180] sm:$0xff]  ;;  %v10750_v41 = vld [vmem:[#allocation8 + $0x190] sm:$0xff] }
 0xad6   :  { %6544 = vmatprep.subr.mxu0 %v11856_v10  ;;  %6615 = vmatprep.subr.mxu1 %v11857_v3  ;;  %v10753_v10 = vld [vmem:[#allocation8 + $0x168] sm:$0xff]  ;;  %v10756_v3 = vld [vmem:[#allocation8 + $0x178] sm:$0xff] }
 0xad7   :  { %6545 = vmatpush1.msra.mxu0 %v11858_v12  ;;  %6616 = vmatpush1.msra.mxu1 %v11859_v15  ;;  %v10759_v12 = vld [vmem:[#allocation8 + $0x160] sm:$0xff]  ;;  %v10762_v15 = vld [vmem:[#allocation8 + $0x170] sm:$0xff] }
 0xad8   :  { %6546 = vmatprep.subr.mxu0 %v11860_v44  ;;  %6617 = vmatprep.subr.mxu1 %v11861_v0 }
 0xad9   :  { %6547 = vmatpush1.msra.mxu0 %v11862_v14  ;;  %6618 = vmatpush1.msra.mxu1 %v11863_v20 }
 0xada   :  { %6548 = vmatprep.subr.mxu0 %v11864_v53  ;;  %6619 = vmatprep.subr.mxu1 %v11865_v22 }
 0xadb   :  { %6549 = vmatpush1.msra.mxu0 %v11866_v54  ;;  %6582 = vmatprep.mubr.f32.mxu0 %v11867_v55 }
 0xadc   :  { %6620 = vmatpush1.msra.mxu1 %v11868_v52  ;;  %6653 = vmatprep.mubr.f32.mxu1 %v11867_v55 }
 0xadd   :  { %6715 = vmatprep.subr.mxu0 %v10696_v47  ;;  %6786 = vmatprep.subr.mxu1 %v10699_v48 }
 0xb7c   :  { %v6387_v50 = vpop.f32.mrf.mxu0  ;;  %v6458_v33 = vpop.f32.mrf.mxu1 }
 0xb7e   :  { %v6389_v31 = vpop.f32.mrf.mxu0  ;;  %v6460_v35 = vpop.f32.mrf.mxu1 }
 0xb7f   :  { %v6467_v7 = vcombine.low %v6387_v50, %v6389_v31  ;;  %v6468_v61 = vcombine.low %v6458_v33, %v6460_v35  ;;  %v10765_v50 = vld [vmem:[#allocation8 + $0x148] sm:$0xff]  ;;  %v10768_v33 = vld [vmem:[#allocation8 + $0x158] sm:$0xff]  ;;  %v10771_v31 = vld [vmem:[#allocation8 + $0x140] sm:$0xff] }
 0xb80   :  { %v10774_v35 = vld [vmem:[#allocation8 + $0x150] sm:$0xff] }
 0xb81   :  { %v6475_v25 = vrot.slane %v6467_v7, %v11743_v9  ;;  %v6482_v18 = vrot.slane %v6468_v61, %v11743_v9  ;;  %v10777_v7 = vld [vmem:[#allocation8 + $0x128] sm:$0xff]  ;;  %v10780_v61 = vld [vmem:[#allocation8 + $0x138] sm:$0xff] }
 0xb83   :  { %v6483_v40 = vcombine.low %v6475_v25, %v6482_v18  ;;  %v10783_v25 = vld [vmem:[#allocation8 + $0x120] sm:$0xff]  ;;  %v10786_v18 = vld [vmem:[#allocation8 + $0x130] sm:$0xff] }
 0xb85   :  { %v6485_v6 = vadd.f32 %v6483_v40, %v11873_v42  ;;  %v10789_v40 = vld [vmem:[#allocation8 + $0x108] sm:$0xff]  ;;  %v10798_v42 = vld [vmem:[#allocation8 + $0x110] sm:$0xff] }
 0xb87   :  { %v7688_v21 = vmul.f32 -1.442695, %v6485_v6  ;;  %v6493_v17 = vrot.slane %v6485_v6, 2  ;;  %v6504_v32 = vrot.slane %v6485_v6, 6  ;;  %v6501_v38 = vrot.slane %v6485_v6, 4  ;;  %v10801_v6 = vld [vmem:[#allocation8 + $0xe8] sm:$0xff] }
 0xb89   :  { %7932 = vpow2.f32 %v7688_v21  ;;  %v7689_v34 = vmul.f32 -1.442695, %v6493_v17  ;;  %v7690_v46 = vmul.f32 -1.442695, %v6504_v32  ;;  %v10804_v21 = vld [vmem:[#allocation8 + $0xf8] sm:$0xff]  ;;  %v10807_v17 = vld [vmem:[#allocation8 + $0xe0] sm:$0xff] }
 0xb8a   :  { %v10813_v32 = vld [vmem:[#allocation8 + $0xc8] sm:$0xff] }
 0xb8b   :  { %7934 = vpow2.f32 %v7689_v34  ;;  %v10810_v34 = vld [vmem:[#allocation8 + $0xf0] sm:$0xff] }
 0xb8c   :  { %7936 = vpow2.f32 %v7690_v46  ;;  %v10816_v46 = vld [vmem:[#allocation8 + $0xd8] sm:$0xff] }
 0xb96   :  { %v7933_v60 = vpop.eup %7932 }
 0xb97   :  { %v6489_v26 = vadd.f32 1.0, %v7933_v60  ;;  %v10819_v60 = vld [vmem:[#allocation8 + $0xc0] sm:$0xff] }
 0xb98   :  { %v7935_v62 = vpop.eup %7934 }
 0xb99   :  { %7938 = vrcp.f32 %v6489_v26  ;;  %v6498_v29 = vadd.f32 1.0, %v7935_v62  ;;  %v7937_v30 = vpop.eup %7936  ;;  %v10825_v26 = vld [vmem:[#allocation8 + $0xa8] sm:$0xff]  ;;  %v10828_v62 = vld [vmem:[#allocation8 + $0xb8] sm:$0xff] }
 0xb9a   :  { %7940 = vtanh.f32 %v6501_v38  ;;  %v6509_v23 = vadd.f32 1.0, %v7937_v30  ;;  %v10822_v38 = vld [vmem:[#allocation8 + $0xd0] sm:$0xff] }
 0xb9b   :  { %7942 = vrcp.f32 %v6498_v29  ;;  %v10831_v29 = vld [vmem:[#allocation8 + $0xa0] sm:$0xff]  ;;  %v10834_v30 = vld [vmem:[#allocation8 + $0xb0] sm:$0xff] }
 0xb9c   :  { %7944 = vrcp.f32 %v6509_v23  ;;  %v10846_v23 = vld [vmem:[#allocation8 + $0x90] sm:$0xff] }
 0xb9d   :  { %11877 = vst [vmem:[#allocation20_spill] sm:$0xff] %v10846_v23 }
 0xba6   :  { %v7939_v5 = vpop.eup %7938 }
 0xba7   :  { %v7941_v4 = vpop.eup %7940 }
 0xba8   :  { %v7943_v2 = vpop.eup %7942  ;;  %v6513_v13 = vmul.f32 %v7941_v4, %v7939_v5  ;;  %v10837_v5 = vld [vmem:[#allocation8 + $0x88] sm:$0xff]  ;;  %v10840_v4 = vld [vmem:[#allocation8 + $0x98] sm:$0xff] }
 0xba9   :  { %v6512_v27 = vmul.f32 %v7943_v2, %v10629_v19  ;;  %v7945_v63 = vpop.eup %7944  ;;  %v10717_v19 = vld [vmem:[#allocation8 + $0x1c8] sm:$0xff]  ;;  %11874 = vst [vmem:[#allocation35_spill] sm:$0xff] %v10837_v5  ;;  %11875 = vst [vmem:[#allocation16_spill] sm:$0xff] %v10840_v4  ;;  %v10843_v2 = vld [vmem:[#allocation8 + $0x80] sm:$0xff] }
 0xbaa   :  { %11876 = vst [vmem:[#allocation39_spill] sm:$0xff] %v10843_v2 }
 0xbab   :  { %v10708_v8 = vadd.f32 %v6513_v13, %v6512_v27  ;;  %v10849_v27 = vld [vmem:[#allocation8 + $0x68] sm:$0xff]  ;;  %v10852_v13 = vld [vmem:[#allocation8 + $0x78] sm:$0xff] }
 0xbac   :  { %11878 = vst [vmem:[#allocation40_spill] sm:$0xff] %v10849_v27  ;;  %11879 = vst [vmem:[#allocation21_spill] sm:$0xff] %v10852_v13 }
 0xbad   :  { %7946 = vtanh.f32 %v10708_v8 }
 0xbba   :  { %v7947_v36 = vpop.eup %7946 }
 0xbbb   :  { %v6516_v57 = vmul.f32 %v7947_v36, %v7945_v63  ;;  %v10855_v63 = vld [vmem:[#allocation8 + $0x60] sm:$0xff]  ;;  %v10858_v36 = vld [vmem:[#allocation8 + $0x70] sm:$0xff] }
 0xbbc   :  { %11880 = vst [vmem:[#allocation41_spill] sm:$0xff] %v10855_v63  ;;  %11881 = vst [vmem:[#allocation22_spill] sm:$0xff] %v10858_v36 }
 0xbbd   :  { %6583 = vmatmul.mubr.f32.vlgmr.msra.gmra.mxu0 %v6516_v57  ;;  %6654 = vmatmul.mubr.f32.vlgmr.msra.gmra.mxu1 %v6516_v57  ;;  %v10861_v57 = vld [vmem:[#allocation8 + $0x48] sm:$0xff] }
 0xbbe   :  { %6716 = vmatpush1.msra.mxu0 %v10711_v28  ;;  %6787 = vmatpush1.msra.mxu1 %v10714_v59  ;;  %11882 = vst [vmem:[#allocation42_spill] sm:$0xff] %v10861_v57 }
 0xbbf   :  { %6717 = vmatprep.subr.mxu0 %v10717_v19  ;;  %6788 = vmatprep.subr.mxu1 %v10720_v56 }
 0xbc0   :  { %6718 = vmatpush1.msra.mxu0 %v10723_v16  ;;  %6789 = vmatpush1.msra.mxu1 %v10726_v11 }
 0xbc1   :  { %6719 = vmatprep.subr.mxu0 %v10729_v24  ;;  %6790 = vmatprep.subr.mxu1 %v10732_v37 }
 0xbc2   :  { %6720 = vmatpush1.msra.mxu0 %v10735_v43  ;;  %6791 = vmatpush1.msra.mxu1 %v10738_v49 }
 0xbc3   :  { %6721 = vmatprep.subr.mxu0 %v10741_v39  ;;  %6792 = vmatprep.subr.mxu1 %v10744_v51 }
 0xbc4   :  { %6722 = vmatpush1.msra.mxu0 %v10747_v45  ;;  %6793 = vmatpush1.msra.mxu1 %v10750_v41 }
 0xbc5   :  { %6723 = vmatprep.subr.mxu0 %v10753_v10  ;;  %6794 = vmatprep.subr.mxu1 %v10756_v3 }
 0xbc6   :  { %6724 = vmatpush1.msra.mxu0 %v10759_v12  ;;  %6795 = vmatpush1.msra.mxu1 %v10762_v15 }
 0xbc7   :  { %6725 = vmatprep.subr.mxu0 %v10765_v50  ;;  %6796 = vmatprep.subr.mxu1 %v10768_v33 }
 0xbc8   :  { %6726 = vmatpush1.msra.mxu0 %v10771_v31  ;;  %6797 = vmatpush1.msra.mxu1 %v10774_v35 }
 0xbc9   :  { %6727 = vmatprep.subr.mxu0 %v10777_v7  ;;  %6798 = vmatprep.subr.mxu1 %v10780_v61 }
 0xbca   :  { %6728 = vmatpush1.msra.mxu0 %v10783_v25  ;;  %6799 = vmatpush1.msra.mxu1 %v10786_v18 }
 0xbcb   :  { %6729 = vmatprep.subr.mxu0 %v10789_v40  ;;  %6800 = vmatprep.subr.mxu1 %v10792_v1 }
 0xbcc   :  { %6730 = vmatpush1.msra.mxu0 %v10795_v58  ;;  %6801 = vmatpush1.msra.mxu1 %v10798_v42 }
 0xbcd   :  { %6731 = vmatprep.subr.mxu0 %v10801_v6  ;;  %6802 = vmatprep.subr.mxu1 %v10804_v21 }
 0xbce   :  { %6732 = vmatpush1.msra.mxu0 %v10807_v17  ;;  %6803 = vmatpush1.msra.mxu1 %v10810_v34 }
 0xbcf   :  { %6733 = vmatprep.subr.mxu0 %v10813_v32  ;;  %6804 = vmatprep.subr.mxu1 %v10816_v46 }
 0xbd0   :  { %6734 = vmatpush1.msra.mxu0 %v10819_v60  ;;  %6805 = vmatpush1.msra.mxu1 %v10822_v38 }
 0xbd1   :  { %6735 = vmatprep.subr.mxu0 %v10825_v26  ;;  %6806 = vmatprep.subr.mxu1 %v10828_v62 }
 0xbd2   :  { %6736 = vmatpush1.msra.mxu0 %v10831_v29  ;;  %6807 = vmatpush1.msra.mxu1 %v10834_v30 }
 0xbd3   :  { %6737 = vmatprep.subr.mxu0 %v10837_v5  ;;  %6808 = vmatprep.subr.mxu1 %v10840_v4 }
 0xbd4   :  { %6738 = vmatpush1.msra.mxu0 %v10843_v2  ;;  %6809 = vmatpush1.msra.mxu1 %v10846_v23  ;;  %v10864_v23 = vld [vmem:[#allocation8 + $0x58] sm:$0xff] }
 0xbd5   :  { %6739 = vmatprep.subr.mxu0 %v10849_v27  ;;  %6810 = vmatprep.subr.mxu1 %v10852_v13  ;;  %11883 = vst [vmem:[#allocation23_spill] sm:$0xff] %v10864_v23  ;;  %v10867_v27 = vld [vmem:[#allocation8 + $0x40] sm:$0xff]  ;;  %v10870_v13 = vld [vmem:[#allocation8 + $0x50] sm:$0xff] }
 0xbd6   :  { %6740 = vmatpush1.msra.mxu0 %v10855_v63  ;;  %6811 = vmatpush1.msra.mxu1 %v10858_v36  ;;  %11884 = vst [vmem:[#allocation43_spill] sm:$0xff] %v10867_v27  ;;  %11885 = vst [vmem:[#allocation24_spill] sm:$0xff] %v10870_v13 }
 0xbd7   :  { %6741 = vmatprep.subr.mxu0 %v10861_v57  ;;  %6812 = vmatprep.subr.mxu1 %v10864_v23  ;;  %v11886_v23 = vld [vmem:[#allocation34_spill] sm:$0xff]  ;;  %v11887_v57 = vld [vmem:[#allocation63_spill] sm:$0xff] }
 0xbd8   :  { %6742 = vmatpush1.msra.mxu0 %v10867_v27  ;;  %6813 = vmatpush1.msra.mxu1 %v10870_v13 }
 0xbd9   :  { %6743 = vmatprep.subr.mxu0 %v11860_v44  ;;  %6814 = vmatprep.subr.mxu1 %v11861_v0 }
 0xbda   :  { %6744 = vmatpush1.msra.mxu0 %v11862_v14  ;;  %6815 = vmatpush1.msra.mxu1 %v11863_v20 }
 0xbdb   :  { %6745 = vmatprep.subr.mxu0 %v11864_v53  ;;  %6816 = vmatprep.subr.mxu1 %v11865_v22 }
 0xbdc   :  { %6746 = vmatpush1.msra.mxu0 %v11866_v54  ;;  %6779 = vmatprep.mubr.f32.mxu0 %v11867_v55 }
 0xbdd   :  { %6817 = vmatpush1.msra.mxu1 %v11868_v52  ;;  %6850 = vmatprep.mubr.f32.mxu1 %v11867_v55  ;;  %v11888_v52 = vcombine.low %v11886_v23, %v11887_v57 }
 0xbde   :  { %6912 = vmatprep.subr.mxu0 %v10696_v47  ;;  %6983 = vmatprep.subr.mxu1 %v10699_v48 }
 0xc7d   :  { %v6584_v44 = vpop.f32.mrf.mxu0  ;;  %v6655_v0 = vpop.f32.mrf.mxu1 }
 0xc7f   :  { %v6586_v14 = vpop.f32.mrf.mxu0  ;;  %v6657_v20 = vpop.f32.mrf.mxu1 }
 0xc80   :  { %v6664_v13 = vcombine.low %v6584_v44, %v6586_v14  ;;  %v6665_v53 = vcombine.low %v6655_v0, %v6657_v20 }
 0xc82   :  { %v6672_v22 = vrot.slane %v6664_v13, %v11743_v9  ;;  %v6679_v54 = vrot.slane %v6665_v53, %v11743_v9  ;;  %v11892_v53 = vld [vmem:[#allocation20_spill] sm:$0xff] }
 0xc84   :  { %v6680_v27 = vcombine.low %v6672_v22, %v6679_v54  ;;  %v11893_v22 = vld [vmem:[#allocation40_spill] sm:$0xff]  ;;  %v11894_v54 = vld [vmem:[#allocation21_spill] sm:$0xff] }
 0xc86   :  { %v6682_v36 = vadd.f32 %v6680_v27, %v11888_v52  ;;  %v11895_v52 = vld [vmem:[#allocation41_spill] sm:$0xff] }
 0xc88   :  { %v7691_v55 = vmul.f32 -1.442695, %v6682_v36  ;;  %v6690_v63 = vrot.slane %v6682_v36, 2  ;;  %v6701_v48 = vrot.slane %v6682_v36, 6  ;;  %v6698_v5 = vrot.slane %v6682_v36, 4  ;;  %v11891_v36 = vld [vmem:[#allocation39_spill] sm:$0xff] }
 0xc8a   :  { %7948 = vpow2.f32 %v7691_v55  ;;  %v7692_v47 = vmul.f32 -1.442695, %v6690_v63  ;;  %v7693_v2 = vmul.f32 -1.442695, %v6701_v48 }
 0xc8c   :  { %7950 = vpow2.f32 %v7692_v47 }
 0xc8d   :  { %7952 = vpow2.f32 %v7693_v2 }
 0xc97   :  { %v7949_v4 = vpop.eup %7948 }
 0xc98   :  { %v6686_v44 = vadd.f32 1.0, %v7949_v4 }
 0xc99   :  { %v7951_v0 = vpop.eup %7950 }
 0xc9a   :  { %7954 = vrcp.f32 %v6686_v44  ;;  %v6695_v13 = vadd.f32 1.0, %v7951_v0  ;;  %v7953_v14 = vpop.eup %7952  ;;  %v11896_v44 = vld [vmem:[#allocation22_spill] sm:$0xff] }
 0xc9b   :  { %7956 = vtanh.f32 %v6698_v5  ;;  %v6706_v57 = vadd.f32 1.0, %v7953_v14  ;;  %v11890_v5 = vld [vmem:[#allocation16_spill] sm:$0xff]  ;;  %v11897_v0 = vld [vmem:[#allocation42_spill] sm:$0xff]  ;;  %v11899_v14 = vld [vmem:[#allocation43_spill] sm:$0xff] }
 0xc9c   :  { %7958 = vrcp.f32 %v6695_v13  ;;  %v11898_v13 = vld [vmem:[#allocation23_spill] sm:$0xff] }
 0xc9d   :  { %7960 = vrcp.f32 %v6706_v57  ;;  %v10954_v57 = vld [vmem:[#allocation8 + $0x20] sm:$0xff] }
 0xc9e   :  { %11903 = vst [vmem:[#allocation66_spill] sm:$0xff] %v10954_v57 }
 0xca7   :  { %v7955_v20 = vpop.eup %7954 }
 0xca8   :  { %v7957_v23 = vpop.eup %7956 }
 0xca9   :  { %v7959_v27 = vpop.eup %7958  ;;  %v6710_v63 = vmul.f32 %v7957_v23, %v7955_v20  ;;  %v11900_v20 = vld [vmem:[#allocation24_spill] sm:$0xff]  ;;  %v10948_v23 = vld [vmem:[#allocation8 + $0x28] sm:$0xff] }
 0xcaa   :  { %v6709_v55 = vmul.f32 %v7959_v27, %v10708_v8  ;;  %v7961_v48 = vpop.eup %7960  ;;  %v11889_v8 = vld [vmem:[#allocation35_spill] sm:$0xff]  ;;  %11901 = vst [vmem:[#allocation44_spill] sm:$0xff] %v10948_v23  ;;  %v10951_v27 = vld [vmem:[#allocation8 + $0x38] sm:$0xff] }
 0xcab   :  { %11902 = vst [vmem:[#allocation65_spill] sm:$0xff] %v10951_v27 }
 0xcac   :  { %v10891_v47 = vadd.f32 %v6710_v63, %v6709_v55  ;;  %v10957_v55 = vld [vmem:[#allocation8 + $0x30] sm:$0xff]  ;;  %v10960_v63 = vld [vmem:[#allocation8 + $0x8] sm:$0xff] }
 0xcad   :  { %11904 = vst [vmem:[#allocation67_spill] sm:$0xff] %v10957_v55  ;;  %11905 = vst [vmem:[#allocation68_spill] sm:$0xff] %v10960_v63 }
 0xcae   :  { %7962 = vtanh.f32 %v10891_v47 }
 0xcbb   :  { %v7963_v4 = vpop.eup %7962 }
 0xcbc   :  { %v6713_v2 = vmul.f32 %v7963_v4, %v7961_v48  ;;  %v10963_v48 = vld [vmem:[#allocation8 + $0x18] sm:$0xff]  ;;  %v10966_v4 = vld [vmem:[#allocation8] sm:$0xff] }
 0xcbd   :  { %11906 = vst [vmem:[#allocation46_spill] sm:$0xff] %v10963_v48  ;;  %11907 = vst [vmem:[#allocation47_spill] sm:$0xff] %v10966_v4 }
 0xcbe   :  { %6780 = vmatmul.mubr.f32.vlgmr.msra.gmra.mxu0 %v6713_v2  ;;  %6851 = vmatmul.mubr.f32.vlgmr.msra.gmra.mxu1 %v6713_v2  ;;  %v11908_v2 = vmov 0.0  }
 0xcbf   :  { %6913 = vmatpush1.msra.mxu0 %v10711_v28  ;;  %6984 = vmatpush1.msra.mxu1 %v10714_v59 }
 0xcc0   :  { %6914 = vmatprep.subr.mxu0 %v10717_v19  ;;  %6985 = vmatprep.subr.mxu1 %v10720_v56 }
 0xcc1   :  { %6915 = vmatpush1.msra.mxu0 %v10723_v16  ;;  %6986 = vmatpush1.msra.mxu1 %v10726_v11 }
 0xcc2   :  { %6916 = vmatprep.subr.mxu0 %v10729_v24  ;;  %6987 = vmatprep.subr.mxu1 %v10732_v37 }
 0xcc3   :  { %6917 = vmatpush1.msra.mxu0 %v10735_v43  ;;  %6988 = vmatpush1.msra.mxu1 %v10738_v49 }
 0xcc4   :  { %6918 = vmatprep.subr.mxu0 %v10741_v39  ;;  %6989 = vmatprep.subr.mxu1 %v10744_v51 }
 0xcc5   :  { %6919 = vmatpush1.msra.mxu0 %v10747_v45  ;;  %6990 = vmatpush1.msra.mxu1 %v10750_v41 }
 0xcc6   :  { %6920 = vmatprep.subr.mxu0 %v10753_v10  ;;  %6991 = vmatprep.subr.mxu1 %v10756_v3 }
 0xcc7   :  { %6921 = vmatpush1.msra.mxu0 %v10759_v12  ;;  %6992 = vmatpush1.msra.mxu1 %v10762_v15 }
 0xcc8   :  { %6922 = vmatprep.subr.mxu0 %v10765_v50  ;;  %6993 = vmatprep.subr.mxu1 %v10768_v33 }
 0xcc9   :  { %6923 = vmatpush1.msra.mxu0 %v10771_v31  ;;  %6994 = vmatpush1.msra.mxu1 %v10774_v35 }
 0xcca   :  { %6924 = vmatprep.subr.mxu0 %v10777_v7  ;;  %6995 = vmatprep.subr.mxu1 %v10780_v61 }
 0xccb   :  { %6925 = vmatpush1.msra.mxu0 %v10783_v25  ;;  %6996 = vmatpush1.msra.mxu1 %v10786_v18 }
 0xccc   :  { %6926 = vmatprep.subr.mxu0 %v10789_v40  ;;  %6997 = vmatprep.subr.mxu1 %v10792_v1 }
 0xccd   :  { %6927 = vmatpush1.msra.mxu0 %v10795_v58  ;;  %6998 = vmatpush1.msra.mxu1 %v10798_v42 }
 0xcce   :  { %6928 = vmatprep.subr.mxu0 %v10801_v6  ;;  %6999 = vmatprep.subr.mxu1 %v10804_v21 }
 0xccf   :  { %6929 = vmatpush1.msra.mxu0 %v10807_v17  ;;  %7000 = vmatpush1.msra.mxu1 %v10810_v34 }
 0xcd0   :  { %6930 = vmatprep.subr.mxu0 %v10813_v32  ;;  %7001 = vmatprep.subr.mxu1 %v10816_v46 }
 0xcd1   :  { %6931 = vmatpush1.msra.mxu0 %v10819_v60  ;;  %7002 = vmatpush1.msra.mxu1 %v10822_v38 }
 0xcd2   :  { %6932 = vmatprep.subr.mxu0 %v10825_v26  ;;  %7003 = vmatprep.subr.mxu1 %v10828_v62 }
 0xcd3   :  { %6933 = vmatpush1.msra.mxu0 %v10831_v29  ;;  %7004 = vmatpush1.msra.mxu1 %v10834_v30 }
 0xcd4   :  { %6934 = vmatprep.subr.mxu0 %v11889_v8  ;;  %7005 = vmatprep.subr.mxu1 %v11890_v5 }
 0xcd5   :  { %6935 = vmatpush1.msra.mxu0 %v11891_v36  ;;  %7006 = vmatpush1.msra.mxu1 %v11892_v53 }
 0xcd6   :  { %6936 = vmatprep.subr.mxu0 %v11893_v22  ;;  %7007 = vmatprep.subr.mxu1 %v11894_v54  ;;  %v11913_v54 = vld [vmem:[#allocation15_spill] sm:$0xff] }
 0xcd7   :  { %6937 = vmatpush1.msra.mxu0 %v11895_v52  ;;  %7008 = vmatpush1.msra.mxu1 %v11896_v44  ;;  %v11912_v52 = vld [vmem:[#allocation64_spill] sm:$0xff] }
 0xcd8   :  { %6938 = vmatprep.subr.mxu0 %v11897_v0  ;;  %7009 = vmatprep.subr.mxu1 %v11898_v13 }
 0xcd9   :  { %6939 = vmatpush1.msra.mxu0 %v11899_v14  ;;  %7010 = vmatpush1.msra.mxu1 %v11900_v20 }
 0xcda   :  { %6940 = vmatprep.subr.mxu0 %v10948_v23  ;;  %7011 = vmatprep.subr.mxu1 %v10951_v27  ;;  %v10970_v27 = vld [vmem:[#allocation8 + $0x10] sm:$0xff] }
 0xcdb   :  { %6941 = vmatpush1.msra.mxu0 %v10954_v57  ;;  %7012 = vmatpush1.msra.mxu1 %v10957_v55  ;;  %11909 = vst [vmem:[#allocation26_spill] sm:$0xff] %v10970_v27  ;;  %v11910_v55 = vld [vmem:[#allocation36_spill] sm:$0xff]  ;;  %v11911_v57 = vld [vmem:[#allocation17_spill] sm:$0xff] }
 0xcdc   :  { %6942 = vmatprep.subr.mxu0 %v10960_v63  ;;  %7013 = vmatprep.subr.mxu1 %v10963_v48 }
 0xcdd   :  { %6943 = vmatpush1.msra.mxu0 %v10966_v4  ;;  %6976 = vmatprep.mubr.f32.mxu0 %v11908_v2 }
 0xcde   :  { %7014 = vmatpush1.msra.mxu1 %v10970_v27  ;;  %7047 = vmatprep.mubr.f32.mxu1 %v11908_v2  ;;  %v11914_v27 = vcombine.low %v11912_v52, %v11913_v54 }
 0xcdf   :  { %7109 = vmatprep.subr.mxu0 %v11910_v55  ;;  %7180 = vmatprep.subr.mxu1 %v11911_v57 }
 0xd7e   :  { %v6781_v63 = vpop.f32.mrf.mxu0  ;;  %v6852_v23 = vpop.f32.mrf.mxu1 }
 0xd80   :  { %v6783_v20 = vpop.f32.mrf.mxu0  ;;  %v6854_v48 = vpop.f32.mrf.mxu1 }
 0xd81   :  { %v6861_v14 = vcombine.low %v6781_v63, %v6783_v20  ;;  %v6862_v13 = vcombine.low %v6852_v23, %v6854_v48  ;;  %v11918_v63 = vld [vmem:[#allocation20_spill] sm:$0xff] }
 0xd82   :  { %v11919_v48 = vld [vmem:[#allocation40_spill] sm:$0xff] }
 0xd83   :  { %v6869_v4 = vrot.slane %v6861_v14, %v11743_v9  ;;  %v6876_v0 = vrot.slane %v6862_v13, %v11743_v9 }
 0xd85   :  { %v6877_v44 = vcombine.low %v6869_v4, %v6876_v0  ;;  %v11920_v4 = vld [vmem:[#allocation21_spill] sm:$0xff] }
 0xd87   :  { %v6879_v22 = vadd.f32 %v6877_v44, %v11914_v27 }
 0xd89   :  { %v7694_v2 = vmul.f32 -1.442695, %v6879_v22  ;;  %v6887_v53 = vrot.slane %v6879_v22, 2  ;;  %v6898_v57 = vrot.slane %v6879_v22, 6  ;;  %v6895_v8 = vrot.slane %v6879_v22, 4 }
 0xd8b   :  { %7964 = vpow2.f32 %v7694_v2  ;;  %v7695_v55 = vmul.f32 -1.442695, %v6887_v53  ;;  %v7696_v36 = vmul.f32 -1.442695, %v6898_v57  ;;  %v11917_v57 = vld [vmem:[#allocation39_spill] sm:$0xff]  ;;  %v11921_v2 = vld [vmem:[#allocation41_spill] sm:$0xff] }
 0xd8d   :  { %7966 = vpow2.f32 %v7695_v55 }
 0xd8e   :  { %7968 = vpow2.f32 %v7696_v36 }
 0xd98   :  { %v7965_v5 = vpop.eup %7964 }
 0xd99   :  { %v6883_v20 = vadd.f32 1.0, %v7965_v5 }
 0xd9a   :  { %v7967_v23 = vpop.eup %7966 }
 0xd9b   :  { %7970 = vrcp.f32 %v6883_v20  ;;  %v6892_v14 = vadd.f32 1.0, %v7967_v23  ;;  %v7969_v0 = vpop.eup %7968  ;;  %v11922_v20 = vld [vmem:[#allocation22_spill] sm:$0xff] }
 0xd9c   :  { %7972 = vtanh.f32 %v6895_v8  ;;  %v6903_v44 = vadd.f32 1.0, %v7969_v0  ;;  %v11916_v8 = vld [vmem:[#allocation16_spill] sm:$0xff]  ;;  %v11923_v23 = vld [vmem:[#allocation42_spill] sm:$0xff]  ;;  %v11925_v0 = vld [vmem:[#allocation43_spill] sm:$0xff] }
 0xd9d   :  { %7974 = vrcp.f32 %v6892_v14  ;;  %v11924_v14 = vld [vmem:[#allocation23_spill] sm:$0xff] }
 0xd9e   :  { %7976 = vrcp.f32 %v6903_v44  ;;  %v11929_v44 = vld [vmem:[#allocation66_spill] sm:$0xff] }
 0xda8   :  { %v7971_v13 = vpop.eup %7970 }
 0xda9   :  { %v7973_v54 = vpop.eup %7972 }
 0xdaa   :  { %v7975_v52 = vpop.eup %7974  ;;  %v6907_v53 = vmul.f32 %v7973_v54, %v7971_v13  ;;  %v11926_v13 = vld [vmem:[#allocation24_spill] sm:$0xff] }
 0xdab   :  { %v6906_v27 = vmul.f32 %v7975_v52, %v10891_v47  ;;  %v7977_v5 = vpop.eup %7976  ;;  %v11915_v47 = vld [vmem:[#allocation35_spill] sm:$0xff]  ;;  %v11927_v54 = vld [vmem:[#allocation44_spill] sm:$0xff]  ;;  %v11928_v52 = vld [vmem:[#allocation65_spill] sm:$0xff] }
 0xdad   :  { %v10982_v55 = vadd.f32 %v6907_v53, %v6906_v27  ;;  %v11930_v27 = vld [vmem:[#allocation67_spill] sm:$0xff]  ;;  %v11931_v53 = vld [vmem:[#allocation68_spill] sm:$0xff] }
 0xdaf   :  { %7978 = vtanh.f32 %v10982_v55 }
 0xdbc   :  { %v7979_v22 = vpop.eup %7978 }
 0xdbd   :  { %v6910_v36 = vmul.f32 %v7979_v22, %v7977_v5  ;;  %v11932_v5 = vld [vmem:[#allocation46_spill] sm:$0xff]  ;;  %v11933_v22 = vld [vmem:[#allocation47_spill] sm:$0xff] }
 0xdbf   :  { %6977 = vmatmul.mubr.f32.vlgmr.msra.gmra.mxu0 %v6910_v36  ;;  %7048 = vmatmul.mubr.f32.vlgmr.msra.gmra.mxu1 %v6910_v36  ;;  %v11934_v36 = vmov 0.0  }
 0xdc0   :  { %7110 = vmatpush1.msra.mxu0 %v10711_v28  ;;  %7181 = vmatpush1.msra.mxu1 %v10714_v59 }
 0xdc1   :  { %7111 = vmatprep.subr.mxu0 %v10717_v19  ;;  %7182 = vmatprep.subr.mxu1 %v10720_v56 }
 0xdc2   :  { %7112 = vmatpush1.msra.mxu0 %v10723_v16  ;;  %7183 = vmatpush1.msra.mxu1 %v10726_v11 }
 0xdc3   :  { %7113 = vmatprep.subr.mxu0 %v10729_v24  ;;  %7184 = vmatprep.subr.mxu1 %v10732_v37 }
 0xdc4   :  { %7114 = vmatpush1.msra.mxu0 %v10735_v43  ;;  %7185 = vmatpush1.msra.mxu1 %v10738_v49 }
 0xdc5   :  { %7115 = vmatprep.subr.mxu0 %v10741_v39  ;;  %7186 = vmatprep.subr.mxu1 %v10744_v51 }
 0xdc6   :  { %7116 = vmatpush1.msra.mxu0 %v10747_v45  ;;  %7187 = vmatpush1.msra.mxu1 %v10750_v41 }
 0xdc7   :  { %7117 = vmatprep.subr.mxu0 %v10753_v10  ;;  %7188 = vmatprep.subr.mxu1 %v10756_v3 }
 0xdc8   :  { %7118 = vmatpush1.msra.mxu0 %v10759_v12  ;;  %7189 = vmatpush1.msra.mxu1 %v10762_v15 }
 0xdc9   :  { %7119 = vmatprep.subr.mxu0 %v10765_v50  ;;  %7190 = vmatprep.subr.mxu1 %v10768_v33 }
 0xdca   :  { %7120 = vmatpush1.msra.mxu0 %v10771_v31  ;;  %7191 = vmatpush1.msra.mxu1 %v10774_v35 }
 0xdcb   :  { %7121 = vmatprep.subr.mxu0 %v10777_v7  ;;  %7192 = vmatprep.subr.mxu1 %v10780_v61 }
 0xdcc   :  { %7122 = vmatpush1.msra.mxu0 %v10783_v25  ;;  %7193 = vmatpush1.msra.mxu1 %v10786_v18 }
 0xdcd   :  { %7123 = vmatprep.subr.mxu0 %v10789_v40  ;;  %7194 = vmatprep.subr.mxu1 %v10792_v1 }
 0xdce   :  { %7124 = vmatpush1.msra.mxu0 %v10795_v58  ;;  %7195 = vmatpush1.msra.mxu1 %v10798_v42 }
 0xdcf   :  { %7125 = vmatprep.subr.mxu0 %v10801_v6  ;;  %7196 = vmatprep.subr.mxu1 %v10804_v21 }
 0xdd0   :  { %7126 = vmatpush1.msra.mxu0 %v10807_v17  ;;  %7197 = vmatpush1.msra.mxu1 %v10810_v34 }
 0xdd1   :  { %7127 = vmatprep.subr.mxu0 %v10813_v32  ;;  %7198 = vmatprep.subr.mxu1 %v10816_v46 }
 0xdd2   :  { %7128 = vmatpush1.msra.mxu0 %v10819_v60  ;;  %7199 = vmatpush1.msra.mxu1 %v10822_v38 }
 0xdd3   :  { %7129 = vmatprep.subr.mxu0 %v10825_v26  ;;  %7200 = vmatprep.subr.mxu1 %v10828_v62 }
 0xdd4   :  { %7130 = vmatpush1.msra.mxu0 %v10831_v29  ;;  %7201 = vmatpush1.msra.mxu1 %v10834_v30 }
 0xdd5   :  { %7131 = vmatprep.subr.mxu0 %v11915_v47  ;;  %7202 = vmatprep.subr.mxu1 %v11916_v8 }
 0xdd6   :  { %7132 = vmatpush1.msra.mxu0 %v11917_v57  ;;  %7203 = vmatpush1.msra.mxu1 %v11918_v63 }
 0xdd7   :  { %7133 = vmatprep.subr.mxu0 %v11919_v48  ;;  %7204 = vmatprep.subr.mxu1 %v11920_v4  ;;  %v11939_v4 = vld [vmem:[#allocation55_spill] sm:$0xff] }
 0xdd8   :  { %7134 = vmatpush1.msra.mxu0 %v11921_v2  ;;  %7205 = vmatpush1.msra.mxu1 %v11922_v20  ;;  %v11938_v2 = vld [vmem:[#allocation56_spill] sm:$0xff] }
 0xdd9   :  { %7135 = vmatprep.subr.mxu0 %v11923_v23  ;;  %7206 = vmatprep.subr.mxu1 %v11924_v14  ;;  %v11935_v14 = vld [vmem:[#allocation26_spill] sm:$0xff] }
 0xdda   :  { %7136 = vmatpush1.msra.mxu0 %v11925_v0  ;;  %7207 = vmatpush1.msra.mxu1 %v11926_v13  ;;  %v11936_v13 = vld [vmem:[#allocation36_spill] sm:$0xff] }
 0xddb   :  { %7137 = vmatprep.subr.mxu0 %v11927_v54  ;;  %7208 = vmatprep.subr.mxu1 %v11928_v52  ;;  %v11937_v54 = vld [vmem:[#allocation17_spill] sm:$0xff] }
 0xddc   :  { %7138 = vmatpush1.msra.mxu0 %v11929_v44  ;;  %7209 = vmatpush1.msra.mxu1 %v11930_v27 }
 0xddd   :  { %7139 = vmatprep.subr.mxu0 %v11931_v53  ;;  %7210 = vmatprep.subr.mxu1 %v11932_v5 }
 0xdde   :  { %7140 = vmatpush1.msra.mxu0 %v11933_v22  ;;  %7173 = vmatprep.mubr.f32.mxu0 %v11934_v36 }
 0xddf   :  { %7211 = vmatpush1.msra.mxu1 %v11935_v14  ;;  %7244 = vmatprep.mubr.f32.mxu1 %v11934_v36  ;;  %v11940_v14 = vcombine.low %v11938_v2, %v11939_v4 }
 0xde0   :  { %7306 = vmatprep.subr.mxu0 %v11936_v13  ;;  %7377 = vmatprep.subr.mxu1 %v11937_v54 }
 0xe7f   :  { %v6978_v52 = vpop.f32.mrf.mxu0  ;;  %v7049_v44 = vpop.f32.mrf.mxu1 }
 0xe81   :  { %v6980_v0 = vpop.f32.mrf.mxu0  ;;  %v7051_v27 = vpop.f32.mrf.mxu1 }
 0xe82   :  { %v7058_v23 = vcombine.low %v6978_v52, %v6980_v0  ;;  %v7059_v53 = vcombine.low %v7049_v44, %v7051_v27 }
 0xe84   :  { %v7066_v5 = vrot.slane %v7058_v23, %v11743_v9  ;;  %v7073_v22 = vrot.slane %v7059_v53, %v11743_v9 }
 0xe86   :  { %v7074_v20 = vcombine.low %v7066_v5, %v7073_v22 }
 0xe88   :  { %v7076_v48 = vadd.f32 %v7074_v20, %v11940_v14 }
 0xe8a   :  { %v7697_v36 = vmul.f32 -1.442695, %v7076_v48  ;;  %v7084_v63 = vrot.slane %v7076_v48, 2  ;;  %v7095_v54 = vrot.slane %v7076_v48, 6  ;;  %v7092_v47 = vrot.slane %v7076_v48, 4 }
 0xe8c   :  { %7980 = vpow2.f32 %v7697_v36  ;;  %v7698_v13 = vmul.f32 -1.442695, %v7084_v63  ;;  %v7699_v57 = vmul.f32 -1.442695, %v7095_v54 }
 0xe8e   :  { %7982 = vpow2.f32 %v7698_v13 }
 0xe8f   :  { %7984 = vpow2.f32 %v7699_v57 }
 0xe99   :  { %v7981_v8 = vpop.eup %7980 }
 0xe9a   :  { %v7080_v0 = vadd.f32 1.0, %v7981_v8 }
 0xe9b   :  { %v7983_v52 = vpop.eup %7982 }
 0xe9c   :  { %7986 = vrcp.f32 %v7080_v0  ;;  %v7089_v23 = vadd.f32 1.0, %v7983_v52  ;;  %v7985_v44 = vpop.eup %7984 }
 0xe9d   :  { %7988 = vtanh.f32 %v7092_v47  ;;  %v7100_v20 = vadd.f32 1.0, %v7985_v44 }
 0xe9e   :  { %7990 = vrcp.f32 %v7089_v23 }
 0xe9f   :  { %7992 = vrcp.f32 %v7100_v20  ;;  %v7516_v20 = vld [vmem:[#allocation9 + $0x70] sm:$0xff] }
 0xea9   :  { %v7987_v27 = vpop.eup %7986 }
 0xeaa   :  { %v7989_v4 = vpop.eup %7988 }
 0xeab   :  { %v7991_v2 = vpop.eup %7990  ;;  %v7104_v63 = vmul.f32 %v7989_v4, %v7987_v27 }
 0xeac   :  { %v7103_v14 = vmul.f32 %v7991_v2, %v10982_v55  ;;  %v7993_v8 = vpop.eup %7992  ;;  %v7517_v2 = vld [vmem:[#allocation9 + $0x78] sm:$0xff] }
 0xeae   :  { %v11057_v53 = vadd.f32 %v7104_v63, %v7103_v14  ;;  %v7515_v14 = vld [vmem:[#allocation9 + $0x68] sm:$0xff]  ;;  %v7514_v63 = vld [vmem:[#allocation9 + $0x60] sm:$0xff] }
 0xeb0   :  { %7994 = vtanh.f32 %v11057_v53 }
 0xebd   :  { %v7995_v48 = vpop.eup %7994 }
 0xebe   :  { %v7107_v57 = vmul.f32 %v7995_v48, %v7993_v8  ;;  %v7512_v8 = vld [vmem:[#allocation9 + $0x50] sm:$0xff]  ;;  %v7511_v48 = vld [vmem:[#allocation9 + $0x48] sm:$0xff] }
 0xec0   :  { %7174 = vmatmul.mubr.f32.vlgmr.msra.gmra.mxu0 %v7107_v57  ;;  %7245 = vmatmul.mubr.f32.vlgmr.msra.gmra.mxu1 %v7107_v57  ;;  %v7510_v57 = vld [vmem:[#allocation9 + $0x40] sm:$0xff] }
 0xec1   :  { %7307 = vmatpush1.msra.mxu0 %v10711_v28  ;;  %7378 = vmatpush1.msra.mxu1 %v10714_v59  ;;  %v11941_v28 = vld [vmem:[#allocation35_spill] sm:$0xff]  ;;  %v11942_v59 = vld [vmem:[#allocation16_spill] sm:$0xff] }
 0xec2   :  { %7308 = vmatprep.subr.mxu0 %v10717_v19  ;;  %7379 = vmatprep.subr.mxu1 %v10720_v56  ;;  %v11943_v19 = vld [vmem:[#allocation39_spill] sm:$0xff]  ;;  %v11944_v56 = vld [vmem:[#allocation20_spill] sm:$0xff] }
 0xec3   :  { %7309 = vmatpush1.msra.mxu0 %v10723_v16  ;;  %7380 = vmatpush1.msra.mxu1 %v10726_v11  ;;  %v11945_v16 = vld [vmem:[#allocation40_spill] sm:$0xff]  ;;  %v11946_v11 = vld [vmem:[#allocation21_spill] sm:$0xff] }
 0xec4   :  { %7310 = vmatprep.subr.mxu0 %v10729_v24  ;;  %7381 = vmatprep.subr.mxu1 %v10732_v37  ;;  %v11947_v24 = vld [vmem:[#allocation41_spill] sm:$0xff]  ;;  %v11948_v37 = vld [vmem:[#allocation22_spill] sm:$0xff] }
 0xec5   :  { %7311 = vmatpush1.msra.mxu0 %v10735_v43  ;;  %7382 = vmatpush1.msra.mxu1 %v10738_v49  ;;  %v11949_v43 = vld [vmem:[#allocation42_spill] sm:$0xff]  ;;  %v11950_v49 = vld [vmem:[#allocation23_spill] sm:$0xff] }
 0xec6   :  { %7312 = vmatprep.subr.mxu0 %v10741_v39  ;;  %7383 = vmatprep.subr.mxu1 %v10744_v51  ;;  %v11951_v39 = vld [vmem:[#allocation43_spill] sm:$0xff]  ;;  %v11952_v51 = vld [vmem:[#allocation24_spill] sm:$0xff] }
 0xec7   :  { %7313 = vmatpush1.msra.mxu0 %v10747_v45  ;;  %7384 = vmatpush1.msra.mxu1 %v10750_v41  ;;  %v11953_v45 = vld [vmem:[#allocation44_spill] sm:$0xff]  ;;  %v11954_v41 = vld [vmem:[#allocation65_spill] sm:$0xff] }
 0xec8   :  { %7314 = vmatprep.subr.mxu0 %v10753_v10  ;;  %7385 = vmatprep.subr.mxu1 %v10756_v3  ;;  %v11955_v10 = vld [vmem:[#allocation66_spill] sm:$0xff]  ;;  %v11956_v3 = vld [vmem:[#allocation67_spill] sm:$0xff] }
 0xec9   :  { %7315 = vmatpush1.msra.mxu0 %v10759_v12  ;;  %7386 = vmatpush1.msra.mxu1 %v10762_v15  ;;  %v11957_v12 = vld [vmem:[#allocation68_spill] sm:$0xff]  ;;  %v11958_v15 = vld [vmem:[#allocation46_spill] sm:$0xff] }
 0xeca   :  { %7316 = vmatprep.subr.mxu0 %v10765_v50  ;;  %7387 = vmatprep.subr.mxu1 %v10768_v33  ;;  %v11959_v50 = vld [vmem:[#allocation47_spill] sm:$0xff]  ;;  %v11960_v33 = vmov 0.0  }
 0xecb   :  { %7317 = vmatpush1.msra.mxu0 %v10771_v31  ;;  %7388 = vmatpush1.msra.mxu1 %v10774_v35  ;;  %v11961_v31 = vld [vmem:[#allocation26_spill] sm:$0xff] }
 0xecc   :  { %7318 = vmatprep.subr.mxu0 %v10777_v7  ;;  %7389 = vmatprep.subr.mxu1 %v10780_v61 }
 0xecd   :  { %7319 = vmatpush1.msra.mxu0 %v10783_v25  ;;  %7390 = vmatpush1.msra.mxu1 %v10786_v18 }
 0xece   :  { %7320 = vmatprep.subr.mxu0 %v10789_v40  ;;  %7391 = vmatprep.subr.mxu1 %v10792_v1 }
 0xecf   :  { %7321 = vmatpush1.msra.mxu0 %v10795_v58  ;;  %7392 = vmatpush1.msra.mxu1 %v10798_v42 }
 0xed0   :  { %7322 = vmatprep.subr.mxu0 %v10801_v6  ;;  %7393 = vmatprep.subr.mxu1 %v10804_v21  ;;  %v11962_v6 = vld [vmem:[#allocation57_spill] sm:$0xff] }
 0xed1   :  { %7323 = vmatpush1.msra.mxu0 %v10807_v17  ;;  %7394 = vmatpush1.msra.mxu1 %v10810_v34  ;;  %v11963_v21 = vld [vmem:[#allocation45_spill] sm:$0xff] }
 0xed2   :  { %7324 = vmatprep.subr.mxu0 %v10813_v32  ;;  %7395 = vmatprep.subr.mxu1 %v10816_v46  ;;  %v11964_v17 = vcombine.low %v11962_v6, %v11963_v21 }
 0xed3   :  { %7325 = vmatpush1.msra.mxu0 %v10819_v60  ;;  %7396 = vmatpush1.msra.mxu1 %v10822_v38 }
 0xed4   :  { %7326 = vmatprep.subr.mxu0 %v10825_v26  ;;  %7397 = vmatprep.subr.mxu1 %v10828_v62 }
 0xed5   :  { %7327 = vmatpush1.msra.mxu0 %v10831_v29  ;;  %7398 = vmatpush1.msra.mxu1 %v10834_v30 }
 0xed6   :  { %7328 = vmatprep.subr.mxu0 %v11941_v28  ;;  %7399 = vmatprep.subr.mxu1 %v11942_v59  ;;  %v7509_v28 = vld [vmem:[#allocation9 + $0x38] sm:$0xff]  ;;  %v7508_v59 = vld [vmem:[#allocation9 + $0x30] sm:$0xff] }
 0xed7   :  { %7329 = vmatpush1.msra.mxu0 %v11943_v19  ;;  %7400 = vmatpush1.msra.mxu1 %v11944_v56  ;;  %v7507_v19 = vld [vmem:[#allocation9 + $0x28] sm:$0xff]  ;;  %v7506_v56 = vld [vmem:[#allocation9 + $0x20] sm:$0xff] }
 0xed8   :  { %7330 = vmatprep.subr.mxu0 %v11945_v16  ;;  %7401 = vmatprep.subr.mxu1 %v11946_v11  ;;  %v7505_v16 = vld [vmem:[#allocation9 + $0x18] sm:$0xff]  ;;  %v7504_v11 = vld [vmem:[#allocation9 + $0x10] sm:$0xff] }
 0xed9   :  { %7331 = vmatpush1.msra.mxu0 %v11947_v24  ;;  %7402 = vmatpush1.msra.mxu1 %v11948_v37  ;;  %v7503_v24 = vld [vmem:[#allocation9 + $0x8] sm:$0xff]  ;;  %v7502_v37 = vld [vmem:[#allocation9] sm:$0xff] }
 0xeda   :  { %7332 = vmatprep.subr.mxu0 %v11949_v43  ;;  %7403 = vmatprep.subr.mxu1 %v11950_v49 }
 0xedb   :  { %7333 = vmatpush1.msra.mxu0 %v11951_v39  ;;  %7404 = vmatpush1.msra.mxu1 %v11952_v51 }
 0xedc   :  { %7334 = vmatprep.subr.mxu0 %v11953_v45  ;;  %7405 = vmatprep.subr.mxu1 %v11954_v41 }
 0xedd   :  { %7335 = vmatpush1.msra.mxu0 %v11955_v10  ;;  %7406 = vmatpush1.msra.mxu1 %v11956_v3 }
 0xede   :  { %7336 = vmatprep.subr.mxu0 %v11957_v12  ;;  %7407 = vmatprep.subr.mxu1 %v11958_v15  ;;  %v11965_v15 = vld [vmem:[#allocation27_spill] sm:$0xff] }
 0xedf   :  { %7337 = vmatpush1.msra.mxu0 %v11959_v50  ;;  %7370 = vmatprep.mubr.f32.mxu0 %v11960_v33  ;;  %v11966_v50 = vld [vmem:[#allocation71_spill] sm:$0xff] }
 0xee0   :  { %7408 = vmatpush1.msra.mxu1 %v11961_v31  ;;  %7441 = vmatprep.mubr.f32.mxu1 %v11960_v33  ;;  %v11967_v31 = vcombine.low %v11965_v15, %v11966_v50 }
 0xee1   :  { %7724 = vmatprep.subr.mxu0 %v11960_v33 }
 0xf80   :  { %v7175_v35 = vpop.f32.mrf.mxu0  ;;  %v7246_v7 = vpop.f32.mrf.mxu1 }
 0xf82   :  { %v7177_v61 = vpop.f32.mrf.mxu0  ;;  %v7248_v25 = vpop.f32.mrf.mxu1 }
 0xf83   :  { %v7255_v18 = vcombine.low %v7175_v35, %v7177_v61  ;;  %v7256_v40 = vcombine.low %v7246_v7, %v7248_v25 }
 0xf85   :  { %v7263_v1 = vrot.slane %v7255_v18, %v11743_v9  ;;  %v7270_v58 = vrot.slane %v7256_v40, %v11743_v9 }
 0xf87   :  { %v7271_v42 = vcombine.low %v7263_v1, %v7270_v58 }
 0xf89   :  { %v7273_v34 = vadd.f32 %v7271_v42, %v11964_v17 }
 0xf8b   :  { %v7700_v32 = vmul.f32 -1.442695, %v7273_v34  ;;  %v7281_v46 = vrot.slane %v7273_v34, 2  ;;  %v7292_v38 = vrot.slane %v7273_v34, 6  ;;  %v7289_v29 = vrot.slane %v7273_v34, 4 }
 0xf8d   :  { %7996 = vpow2.f32 %v7700_v32  ;;  %v7701_v60 = vmul.f32 -1.442695, %v7281_v46  ;;  %v7702_v26 = vmul.f32 -1.442695, %v7292_v38 }
 0xf8f   :  { %7998 = vpow2.f32 %v7701_v60 }
 0xf90   :  { %8000 = vpow2.f32 %v7702_v26 }
 0xf9a   :  { %v7997_v62 = vpop.eup %7996 }
 0xf9b   :  { %v7277_v30 = vadd.f32 1.0, %v7997_v62 }
 0xf9c   :  { %v7999_v55 = vpop.eup %7998 }
 0xf9d   :  { %8002 = vrcp.f32 %v7277_v30  ;;  %v7286_v47 = vadd.f32 1.0, %v7999_v55  ;;  %v8001_v5 = vpop.eup %8000  ;;  %v7706_v30 = vld [vmem:[%s11170_s8] ss:$0 sm:$0xff] }
 0xf9e   :  { %8004 = vtanh.f32 %v7289_v29  ;;  %v7297_v54 = vadd.f32 1.0, %v8001_v5 }
 0xf9f   :  { %8006 = vrcp.f32 %v7286_v47 }
 0xfa0   :  { %8008 = vrcp.f32 %v7297_v54 }
 0xfaa   :  { %v8003_v22 = vpop.eup %8002 }
 0xfab   :  { %v8005_v36 = vpop.eup %8004 }
 0xfac   :  { %v8007_v13 = vpop.eup %8006  ;;  %v7301_v52 = vmul.f32 %v8005_v36, %v8003_v22 }
 0xfad   :  { %v7300_v0 = vmul.f32 %v8007_v13, %v11057_v53  ;;  %v8009_v44 = vpop.eup %8008  ;;  %v7513_v53 = vld [vmem:[#allocation9 + $0x58] sm:$0xff] }
 0xfaf   :  { %v11131_v23 = vadd.f32 %v7301_v52, %v7300_v0 }
 0xfb1   :  { %8010 = vtanh.f32 %v11131_v23 }
 0xfbe   :  { %v8011_v27 = vpop.eup %8010 }
 0xfbf   :  { %v7304_v4 = vmul.f32 %v8011_v27, %v8009_v44 }
 0xfc1   :  { %7371 = vmatmul.mubr.f32.vlgmr.msra.gmra.mxu0 %v7304_v4  ;;  %7442 = vmatmul.mubr.f32.vlgmr.msra.gmra.mxu1 %v7304_v4 }
 0xfc2   :  { %7725 = vmatpush3.msra.mxu0 %v7517_v2  ;;  %7756 = vmatprep.mubr.msk.f32.mxu0 %vm8188_vm2, %v11960_v33 }
 0xfc3   :  { %7726 = vmatprep.subr.mxu0 %v11960_v33 }
 0xfc4   :  { %7727 = vmatpush3.msra.mxu0 %v7516_v20 }
 0xfc5   :  { %7728 = vmatprep.subr.mxu0 %v11960_v33 }
 0xfc6   :  { %7729 = vmatpush3.msra.mxu0 %v7515_v14 }
 0xfc7   :  { %7730 = vmatprep.subr.mxu0 %v11960_v33 }
 0xfc8   :  { %7731 = vmatpush3.msra.mxu0 %v7514_v63 }
 0xfc9   :  { %7732 = vmatprep.subr.mxu0 %v11960_v33 }
 0xfca   :  { %7733 = vmatpush3.msra.mxu0 %v7513_v53 }
 0xfcb   :  { %7734 = vmatprep.subr.mxu0 %v11960_v33 }
 0xfcc   :  { %7735 = vmatpush3.msra.mxu0 %v7512_v8 }
 0xfcd   :  { %7736 = vmatprep.subr.mxu0 %v11960_v33 }
 0xfce   :  { %7737 = vmatpush3.msra.mxu0 %v7511_v48 }
 0xfcf   :  { %7738 = vmatprep.subr.mxu0 %v11960_v33 }
 0xfd0   :  { %7739 = vmatpush3.msra.mxu0 %v7510_v57 }
 0xfd1   :  { %7740 = vmatprep.subr.mxu0 %v11960_v33 }
 0xfd2   :  { %7741 = vmatpush3.msra.mxu0 %v7509_v28 }
 0xfd3   :  { %7742 = vmatprep.subr.mxu0 %v11960_v33 }
 0xfd4   :  { %7743 = vmatpush3.msra.mxu0 %v7508_v59 }
 0xfd5   :  { %7744 = vmatprep.subr.mxu0 %v11960_v33 }
 0xfd6   :  { %7745 = vmatpush3.msra.mxu0 %v7507_v19 }
 0xfd7   :  { %7746 = vmatprep.subr.mxu0 %v11960_v33 }
 0xfd8   :  { %7747 = vmatpush3.msra.mxu0 %v7506_v56 }
 0xfd9   :  { %7748 = vmatprep.subr.mxu0 %v11960_v33 }
 0xfda   :  { %7749 = vmatpush3.msra.mxu0 %v7505_v16 }
 0xfdb   :  { %7750 = vmatprep.subr.mxu0 %v11960_v33 }
 0xfdc   :  { %7751 = vmatpush3.msra.mxu0 %v7504_v11 }
 0xfdd   :  { %7752 = vmatprep.subr.mxu0 %v11960_v33 }
 0xfde   :  { %7753 = vmatpush3.msra.mxu0 %v7503_v24 }
 0xfdf   :  { %7754 = vmatprep.subr.mxu0 %v11960_v33 }
 0xfe0   :  { %7755 = vmatpush3.msra.mxu0 %v7502_v37 }
0x1081   :  { %v7372_v43 = vpop.f32.mrf.mxu0  ;;  %v7443_v49 = vpop.f32.mrf.mxu1 }
0x1083   :  { %v7374_v39 = vpop.f32.mrf.mxu0  ;;  %v7445_v51 = vpop.f32.mrf.mxu1 }
0x1084   :  { %v7452_v45 = vcombine.low %v7372_v43, %v7374_v39  ;;  %v7453_v41 = vcombine.low %v7443_v49, %v7445_v51 }
0x1086   :  { %v7460_v10 = vrot.slane %v7452_v45, %v11743_v9  ;;  %v7467_v3 = vrot.slane %v7453_v41, %v11743_v9 }
0x1088   :  { %v7468_v12 = vcombine.low %v7460_v10, %v7467_v3 }
0x108a   :  { %v7470_v35 = vadd.f32 %v7468_v12, %v11967_v31 }
0x108c   :  { %v7703_v7 = vmul.f32 -1.442695, %v7470_v35  ;;  %v7478_v61 = vrot.slane %v7470_v35, 2  ;;  %v7489_v25 = vrot.slane %v7470_v35, 6  ;;  %v7486_v1 = vrot.slane %v7470_v35, 4 }
0x108e   :  { %8012 = vpow2.f32 %v7703_v7  ;;  %v7704_v33 = vmul.f32 -1.442695, %v7478_v61  ;;  %v7705_v18 = vmul.f32 -1.442695, %v7489_v25 }
0x1090   :  { %8014 = vpow2.f32 %v7704_v33 }
0x1091   :  { %8016 = vpow2.f32 %v7705_v18 }
0x109b   :  { %v8013_v40 = vpop.eup %8012 }
0x109c   :  { %v7474_v58 = vadd.f32 1.0, %v8013_v40 }
0x109d   :  { %v8015_v42 = vpop.eup %8014 }
0x109e   :  { %8018 = vrcp.f32 %v7474_v58  ;;  %v7483_v6 = vadd.f32 1.0, %v8015_v42  ;;  %v8017_v9 = vpop.eup %8016 }
0x109f   :  { %8020 = vtanh.f32 %v7486_v1  ;;  %v7494_v32 = vadd.f32 1.0, %v8017_v9 }
0x10a0   :  { %8022 = vrcp.f32 %v7483_v6 }
0x10a1   :  { %8024 = vrcp.f32 %v7494_v32 }
0x10ab   :  { %v8019_v21 = vpop.eup %8018 }
0x10ac   :  { %v8021_v17 = vpop.eup %8020 }
0x10ad   :  { %v8023_v34 = vpop.eup %8022  ;;  %v7498_v60 = vmul.f32 %v8021_v17, %v8019_v21 }
0x10ae   :  { %v7497_v46 = vmul.f32 %v8023_v34, %v11131_v23  ;;  %v8025_v26 = vpop.eup %8024 }
0x10b0   :  { %v7499_v38 = vadd.f32 %v7498_v60, %v7497_v46 }
0x10b2   :  { %8026 = vtanh.f32 %v7499_v38 }
0x10bf   :  { %v8027_v62 = vpop.eup %8026 }
0x10c0   :  { %v7501_v29 = vmul.f32 %v8027_v62, %v8025_v26 }
0x10c2   :  { %7757 = vmatmul.mubr.f32.vlgmr.msra.gmra.mxu0 %v7501_v29 }
0x1182   :  { %v7591_v55 = vpop.f32.mrf.mxu0 }
0x1183   :  { %v7592_v47 = vadd.f32 %v7706_v30, %v7591_v55 }
0x1184   :  { %v7758_v5 = vpop.f32.mrf.mxu0 }
0x1185   :  { %7595 = vst [vmem:[%s11171_s9] sm:$0x3] %v7592_v47 }
0x1186   :  { %7600 = vsyncpa [#allocation5], 1 }
0x1187   :  { %7601 = vsyncpa [#allocation7], 1 }
0x1188   :  { %7602 = vsyncpa [#allocation10], 1 }

</bundles_post_ra>
